<compile_context>
chip_gen: v7x
topology: tpu7x:2x2x1
jax: 0.10.0
libtpu: 0.0.40
codegen_flags: <defaults>
</compile_context>

<pallas_src>
import math

import jax
import jax.numpy as jnp
from jax.experimental import pallas as pl
from jax.experimental.pallas import tpu as pltpu

NUM_SAMPLES = 512  # module uses 10000; small shape for this synthetic run
GRID_N = 16        # synthetic mesh: GRID_N x GRID_N vertex grid -> 256 verts
KPAD = 8           # coordinate dim padded to 8 for an MXU-friendly K


# ----------------------------------------------------------------------------
# Pallas kernel: fused bidirectional chamfer statistics on one resident tile.
#   d      = max( xa @ ya, 0 )          (P, Q)  squared distances, single MXU pass
#   |cos|  = | xn @ ynT |               (P, Q)  normal cosines,    single MXU pass
#   mov->fix: per-row min + |cos| at nearest  -> (1,1) sums
#   fix->mov: per-col min + |cos| at nearest  -> (1,1) sums
# ----------------------------------------------------------------------------
def _chamfer_kernel(xa_ref, xn_ref, ya_ref, yn_ref,
                    sdx_ref, scx_ref, sdy_ref, scy_ref):
    xa = xa_ref[...]        # (P, 8)  [-2*x, |x|^2, 1, 0, 0, 0]
    xn = xn_ref[...]        # (P, 8)  [xn, 0...]
    ya = ya_ref[...]        # (8, Q)  [y; 1; |y|^2; 0; 0; 0]
    yn = yn_ref[...]        # (8, Q)  [yn; 0...]

    # Squared distances and normal cosines come directly off the MXU.
    d = jnp.maximum(jnp.dot(xa, ya, preferred_element_type=jnp.float32), 0.0)
    abscos = jnp.abs(jnp.dot(xn, yn, preferred_element_type=jnp.float32))

    # ---- mov -> fix : per-row nearest neighbor ----
    row_min = jnp.min(d, axis=1, keepdims=True)                       # (P, 1)
    # tie-insensitive |cos| at nearest (abs-cos >= 0, so 0 is a safe mask value)
    row_cos = jnp.max(jnp.where(d == row_min, abscos, 0.0),
                      axis=1, keepdims=True)                          # (P, 1)

    # ---- fix -> mov : per-column nearest neighbor ----
    col_min = jnp.min(d, axis=0, keepdims=True)                       # (1, Q)
    col_cos = jnp.max(jnp.where(d == col_min, abscos, 0.0),
                      axis=0, keepdims=True)                          # (1, Q)

    sdx_ref[...] = jnp.sum(row_min, axis=0, keepdims=True)            # (1, 1)
    scx_ref[...] = jnp.sum(row_cos, axis=0, keepdims=True)            # (1, 1)
    sdy_ref[...] = jnp.sum(col_min, axis=1, keepdims=True)            # (1, 1)
    scy_ref[...] = jnp.sum(col_cos, axis=1, keepdims=True)            # (1, 1)


def chamfer_stats_pallas(x, xn, y, yn):
    """Fused bidirectional chamfer statistics.

    Returns (mean_d_xy, mean_|cos|_xy, mean_d_yx, mean_|cos|_yx).
    NOTE: at the module's production NUM_SAMPLES=10000 this single-block version
    would need the tiled (grid over row slabs) variant with sentinel padding;
    at 512 samples the whole problem fits one VMEM-resident tile."""
    P, Q = x.shape[0], y.shape[0]
    x = x.astype(jnp.float32)
    y = y.astype(jnp.float32)
    xn = xn.astype(jnp.float32)
    yn = yn.astype(jnp.float32)

    # Homogeneous augmentation so d = |x|^2 + |y|^2 - 2 x.y is one matmul.
    xa = jnp.concatenate(
        [-2.0 * x,
         jnp.sum(x * x, axis=1, keepdims=True),
         jnp.ones((P, 1), jnp.float32),
         jnp.zeros((P, KPAD - 5), jnp.float32)], axis=1)              # (P, 8)
    ya = jnp.concatenate(
        [y,
         jnp.ones((Q, 1), jnp.float32),
         jnp.sum(y * y, axis=1, keepdims=True),
         jnp.zeros((Q, KPAD - 5), jnp.float32)], axis=1).T            # (8, Q)
    xnp_ = jnp.concatenate([xn, jnp.zeros((P, KPAD - 3), jnp.float32)], axis=1)
    ynT = jnp.concatenate([yn, jnp.zeros((Q, KPAD - 3), jnp.float32)], axis=1).T

    vmem = pl.BlockSpec(memory_space=pltpu.MemorySpace.VMEM)
    sdx, scx, sdy, scy = pl.pallas_call(
        _chamfer_kernel,
        out_shape=tuple(jax.ShapeDtypeStruct((1, 1), jnp.float32) for _ in range(4)),
        in_specs=[vmem, vmem, vmem, vmem],
        out_specs=(vmem, vmem, vmem, vmem),
    )(xa, xnp_, ya, ynT)

    return sdx[0, 0] / P, scx[0, 0] / P, sdy[0, 0] / Q, scy[0, 0] / Q


# ----------------------------------------------------------------------------
# Plain-JAX glue: synthetic meshes, rotation matrices, surface sampling
# ----------------------------------------------------------------------------
def make_grid_mesh(n, key, z_scale, offset):
    xs = jnp.linspace(-1.0, 1.0, n)
    gx, gy = jnp.meshgrid(xs, xs, indexing="ij")
    gz = z_scale * jnp.sin(3.0 * gx) * jnp.cos(2.0 * gy)
    gz = gz + 0.01 * jax.random.normal(key, gx.shape)
    verts = (jnp.stack([gx, gy, gz], axis=-1).reshape(-1, 3)
             + jnp.asarray(offset, dtype=jnp.float32))
    idx = jnp.arange(n * n).reshape(n, n)
    v00 = idx[:-1, :-1].reshape(-1)
    v01 = idx[:-1, 1:].reshape(-1)
    v10 = idx[1:, :-1].reshape(-1)
    v11 = idx[1:, 1:].reshape(-1)
    f1 = jnp.stack([v00, v10, v11], axis=-1)
    f2 = jnp.stack([v00, v11, v01], axis=-1)
    faces = jnp.concatenate([f1, f2], axis=0)
    return verts.astype(jnp.float32), faces.astype(jnp.int32)


def rot_x_T(a):  # pytorch3d RotateAxisAngle row-vector matrices
    c, s = jnp.cos(a), jnp.sin(a)
    o, z = jnp.ones_like(c), jnp.zeros_like(c)
    return jnp.stack([jnp.stack([o, z, z]),
                      jnp.stack([z, c, s]),
                      jnp.stack([z, -s, c])])


def rot_y_T(a):
    c, s = jnp.cos(a), jnp.sin(a)
    o, z = jnp.ones_like(c), jnp.zeros_like(c)
    return jnp.stack([jnp.stack([c, z, -s]),
                      jnp.stack([z, o, z]),
                      jnp.stack([s, z, c])])


def rot_z_T(a):
    c, s = jnp.cos(a), jnp.sin(a)
    o, z = jnp.ones_like(c), jnp.zeros_like(c)
    return jnp.stack([jnp.stack([c, s, z]),
                      jnp.stack([-s, c, z]),
                      jnp.stack([z, z, o])])


def sample_points_from_mesh(verts, faces, num_samples, key):
    """Area-weighted surface sampling with face normals (pytorch3d-style)."""
    v0, v1, v2 = verts[faces[:, 0]], verts[faces[:, 1]], verts[faces[:, 2]]
    cross = jnp.cross(v1 - v0, v2 - v0)
    areas = 0.5 * jnp.linalg.norm(cross, axis=-1)
    k1, k2, k3 = jax.random.split(key, 3)
    face_idx = jax.random.categorical(k1, jnp.log(areas + 1e-12), shape=(num_samples,))
    u = jax.random.uniform(k2, (num_samples, 1))
    v = jax.random.uniform(k3, (num_samples, 1))
    su = jnp.sqrt(u)
    w0, w1, w2 = 1.0 - su, su * (1.0 - v), su * v
    points = w0 * v0[face_idx] + w1 * v1[face_idx] + w2 * v2[face_idx]
    fn = cross / (jnp.linalg.norm(cross, axis=-1, keepdims=True) + 1e-6)
    normals = fn[face_idx]
    return points.astype(jnp.float32), normals.astype(jnp.float32)


# ----------------------------------------------------------------------------
# Model forward
# ----------------------------------------------------------------------------
def model_forward(params, fix_verts, fix_faces, mov_verts, mov_faces, sample_key):
    deg2rad = math.pi / 180.0
    Rx = rot_x_T(params["x"][0] * deg2rad)
    Ry = rot_y_T(params["y"][0] * deg2rad)
    Rz = rot_z_T(params["z"][0] * deg2rad)
    Rtot = (Rx @ Ry @ Rz).astype(jnp.float32)      # p' = (((p+t) @ Mx) @ My) @ Mz
    t = params["translation"].reshape(3).astype(jnp.float32)

    # Rigid transform in plain JAX: an (V,3)@(3,3)+t is tens of ns of MXU work;
    # a dedicated pallas_call would cost more in launch than it saves.
    tverts = (mov_verts.astype(jnp.float32) + t) @ Rtot

    k_fix, k_mov = jax.random.split(sample_key)
    s_fix, n_fix = sample_points_from_mesh(fix_verts, fix_faces, NUM_SAMPLES, k_fix)
    s_mov, n_mov = sample_points_from_mesh(tverts, mov_faces, NUM_SAMPLES, k_mov)

    # Pallas: fused bidirectional chamfer distance + normal consistency.
    d_xy, c_xy, d_yx, c_yx = chamfer_stats_pallas(s_mov, n_mov, s_fix, n_fix)
    loss_c = d_xy + d_yx
    loss_n = (1.0 - c_xy) + (1.0 - c_yx)
    loss = loss_c + loss_n
    return loss, (tverts, mov_faces)


if __name__ == "__main__":
    key = jax.random.PRNGKey(0)
    k_fix_mesh, k_mov_mesh, k_sample = jax.random.split(key, 3)

    # Synthetic deterministic "fix" and "mov" meshes (stand-ins for the .obj files).
    fix_verts, fix_faces = make_grid_mesh(GRID_N, k_fix_mesh, z_scale=0.20,
                                          offset=(0.0, 0.0, 0.0))
    mov_verts, mov_faces = make_grid_mesh(GRID_N, k_mov_mesh, z_scale=0.25,
                                          offset=(0.05, -0.03, 0.10))

    # Parameters exactly as in Model.__init__ (deterministic init).
    params = {
        "translation": jnp.zeros((1, 3), dtype=jnp.float32),
        "x": jnp.array([1.0], dtype=jnp.float32),
        "y": jnp.array([1.0], dtype=jnp.float32),
        "z": jnp.array([1.0], dtype=jnp.float32),
    }

    fwd = jax.jit(model_forward)
    loss, (tverts, tfaces) = fwd(params, fix_verts, fix_faces,
                                 mov_verts, mov_faces, k_sample)
    jax.block_until_ready(loss)
    jax.block_until_ready(tverts)
    print("KERNEL_OK")
</pallas_src>

<mosaic_0001>
module attributes {stable_mosaic.version = 11 : i64} {
  func.func @_chamfer_kernel(%arg0: memref<512x8xf32, #tpu.memory_space<vmem>>, %arg1: memref<512x8xf32, #tpu.memory_space<vmem>>, %arg2: memref<8x512xf32, #tpu.memory_space<vmem>>, %arg3: memref<8x512xf32, #tpu.memory_space<vmem>>, %arg4: memref<1x1xf32, #tpu.memory_space<vmem>>, %arg5: memref<1x1xf32, #tpu.memory_space<vmem>>, %arg6: memref<1x1xf32, #tpu.memory_space<vmem>>, %arg7: memref<1x1xf32, #tpu.memory_space<vmem>>) attributes {dimension_semantics = [], scalar_prefetch = 0 : i64, scratch_operands = 0 : i64, tpu.core_type = #tpu.core_type<tc>} {
    %c0 = arith.constant 0 : index
    %c0_0 = arith.constant 0 : index
    %0 = vector.load %arg0[%c0, %c0_0] : memref<512x8xf32, #tpu.memory_space<vmem>>, vector<512x8xf32>
    %c0_1 = arith.constant 0 : index
    %c0_2 = arith.constant 0 : index
    %1 = vector.load %arg1[%c0_1, %c0_2] : memref<512x8xf32, #tpu.memory_space<vmem>>, vector<512x8xf32>
    %c0_3 = arith.constant 0 : index
    %c0_4 = arith.constant 0 : index
    %2 = vector.load %arg2[%c0_3, %c0_4] : memref<8x512xf32, #tpu.memory_space<vmem>>, vector<8x512xf32>
    %c0_5 = arith.constant 0 : index
    %c0_6 = arith.constant 0 : index
    %3 = vector.load %arg3[%c0_5, %c0_6] : memref<8x512xf32, #tpu.memory_space<vmem>>, vector<8x512xf32>
    %cst = arith.constant dense<0.000000e+00> : vector<512x512xf32>
    %4 = tpu.matmul %0, %2, %cst {dimension_numbers = #tpu.dot_dimension_numbers<[1], [0], [0], [1], [0, 0, 1, 1], [], []>} : vector<512x8xf32>, vector<8x512xf32>, vector<512x512xf32> -> vector<512x512xf32>
    %cst_7 = arith.constant 0.000000e+00 : f32
    %5 = vector.broadcast %cst_7 : f32 to vector<512x512xf32>
    %6 = arith.maximumf %4, %5 : vector<512x512xf32>
    %cst_8 = arith.constant dense<0.000000e+00> : vector<512x512xf32>
    %7 = tpu.matmul %1, %3, %cst_8 {dimension_numbers = #tpu.dot_dimension_numbers<[1], [0], [0], [1], [0, 0, 1, 1], [], []>} : vector<512x8xf32>, vector<8x512xf32>, vector<512x512xf32> -> vector<512x512xf32>
    %8 = math.absf %7 : vector<512x512xf32>
    %cst_9 = arith.constant dense<0x7F800000> : vector<512xf32>
    %9 = vector.multi_reduction <minimumf>, %6, %cst_9 [1] : vector<512x512xf32> to vector<512xf32>
    %10 = vector.shape_cast %9 : vector<512xf32> to vector<512x1xf32>
    %11 = vector.broadcast %10 : vector<512x1xf32> to vector<512x512xf32>
    %12 = arith.cmpf oeq, %6, %11 : vector<512x512xf32>
    %cst_10 = arith.constant 0.000000e+00 : f32
    %13 = vector.broadcast %cst_10 : f32 to vector<512x512xf32>
    %14 = arith.select %12, %8, %13 : vector<512x512xi1>, vector<512x512xf32>
    %cst_11 = arith.constant dense<0xFF800000> : vector<512xf32>
    %15 = vector.multi_reduction <maximumf>, %14, %cst_11 [1] : vector<512x512xf32> to vector<512xf32>
    %16 = vector.shape_cast %15 : vector<512xf32> to vector<512x1xf32>
    %cst_12 = arith.constant dense<0x7F800000> : vector<512xf32>
    %17 = vector.multi_reduction <minimumf>, %6, %cst_12 [0] : vector<512x512xf32> to vector<512xf32>
    %18 = vector.shape_cast %17 : vector<512xf32> to vector<1x512xf32>
    %19 = vector.broadcast %18 : vector<1x512xf32> to vector<512x512xf32>
    %20 = arith.cmpf oeq, %6, %19 : vector<512x512xf32>
    %cst_13 = arith.constant 0.000000e+00 : f32
    %21 = vector.broadcast %cst_13 : f32 to vector<512x512xf32>
    %22 = arith.select %20, %8, %21 : vector<512x512xi1>, vector<512x512xf32>
    %cst_14 = arith.constant dense<0xFF800000> : vector<512xf32>
    %23 = vector.multi_reduction <maximumf>, %22, %cst_14 [0] : vector<512x512xf32> to vector<512xf32>
    %24 = vector.shape_cast %23 : vector<512xf32> to vector<1x512xf32>
    %cst_15 = arith.constant dense<0.000000e+00> : vector<1xf32>
    %25 = vector.multi_reduction <add>, %10, %cst_15 [0] : vector<512x1xf32> to vector<1xf32>
    %26 = vector.shape_cast %25 : vector<1xf32> to vector<1x1xf32>
    %c0_16 = arith.constant 0 : index
    %c0_17 = arith.constant 0 : index
    %27 = vector.load %arg4[%c0_16, %c0_17] : memref<1x1xf32, #tpu.memory_space<vmem>>, vector<1x1xf32>
    tpu.vector_store %arg4[%c0_16, %c0_17], %26 {strides = array<i32>} : memref<1x1xf32, #tpu.memory_space<vmem>>, vector<1x1xf32>,
    %cst_18 = arith.constant dense<0.000000e+00> : vector<1xf32>
    %28 = vector.multi_reduction <add>, %16, %cst_18 [0] : vector<512x1xf32> to vector<1xf32>
    %29 = vector.shape_cast %28 : vector<1xf32> to vector<1x1xf32>
    %c0_19 = arith.constant 0 : index
    %c0_20 = arith.constant 0 : index
    %30 = vector.load %arg5[%c0_19, %c0_20] : memref<1x1xf32, #tpu.memory_space<vmem>>, vector<1x1xf32>
    tpu.vector_store %arg5[%c0_19, %c0_20], %29 {strides = array<i32>} : memref<1x1xf32, #tpu.memory_space<vmem>>, vector<1x1xf32>,
    %cst_21 = arith.constant dense<0.000000e+00> : vector<1xf32>
    %31 = vector.multi_reduction <add>, %18, %cst_21 [1] : vector<1x512xf32> to vector<1xf32>
    %32 = vector.shape_cast %31 : vector<1xf32> to vector<1x1xf32>
    %c0_22 = arith.constant 0 : index
    %c0_23 = arith.constant 0 : index
    %33 = vector.load %arg6[%c0_22, %c0_23] : memref<1x1xf32, #tpu.memory_space<vmem>>, vector<1x1xf32>
    tpu.vector_store %arg6[%c0_22, %c0_23], %32 {strides = array<i32>} : memref<1x1xf32, #tpu.memory_space<vmem>>, vector<1x1xf32>,
    %cst_24 = arith.constant dense<0.000000e+00> : vector<1xf32>
    %34 = vector.multi_reduction <add>, %24, %cst_24 [1] : vector<1x512xf32> to vector<1xf32>
    %35 = vector.shape_cast %34 : vector<1xf32> to vector<1x1xf32>
    %c0_25 = arith.constant 0 : index
    %c0_26 = arith.constant 0 : index
    %36 = vector.load %arg7[%c0_25, %c0_26] : memref<1x1xf32, #tpu.memory_space<vmem>>, vector<1x1xf32>
    tpu.vector_store %arg7[%c0_25, %c0_26], %35 {strides = array<i32>} : memref<1x1xf32, #tpu.memory_space<vmem>>, vector<1x1xf32>,
    return
  }
}

</mosaic_0001>

<bundles_post_ra>
// kernel: model_forward.3
= control target key start
LH: loop header
LB: loop body
LE: loop exit
PB: predicated region body
PF: predicated region fallthrough
CT: control target
= control target key end

     0   :  { %13 = vsyncpa [#allocation3], 0  ;;  %s11020_s0 = inlined_call_operand.vmem [shape: f32[512,8], index: 0, kind: input, shape index: {}]   ;;  %s11021_s1 = inlined_call_operand.vmem [shape: f32[512,8], index: 1, kind: input, shape index: {}]   ;;  %s11022_s2 = inlined_call_operand.vmem [shape: f32[8,512], index: 2, kind: input, shape index: {}]   ;;  %s11023_s3 = inlined_call_operand.vmem [shape: f32[8,512], index: 3, kind: input, shape index: {}]   ;;  %s11024_s4 = inlined_call_operand.hbm [shape: f32[1,1], index: 4, kind: output, shape index: {0}]   ;;  %s11025_s5 = inlined_call_operand.hbm [shape: f32[1,1], index: 5, kind: output, shape index: {1}]   ;;  %s11026_s6 = inlined_call_operand.hbm [shape: f32[1,1], index: 6, kind: output, shape index: {2}]   ;;  %s11027_s7 = inlined_call_operand.hbm [shape: f32[1,1], index: 7, kind: output, shape index: {3}]  }
   0x1   :  { %14 = vsyncpa [#allocation5], 0  ;;  %v153_v0 = vld [vmem:[%s11022_s2 + $0x8] sm:$0xff]  ;;  %v155_v1 = vld [vmem:[%s11022_s2 + $0x18] sm:$0xff]  ;;  %vm160_vm0 = vcmask 64512   ;;  %v11028_v5 = vmov 0.0  }
   0x2   :  { %v152_v2 = vld [vmem:[%s11022_s2] sm:$0xff]  ;;  %353 = vmatprep.subr.mxu0 %v153_v0  ;;  %802 = vmatprep.subr.mxu1 %v155_v1  ;;  %v154_v3 = vld [vmem:[%s11022_s2 + $0x10] sm:$0xff]  ;;  %v157_v6 = vld [vmem:[%s11023_s3 + $0x8] sm:$0xff] }
   0x3   :  { %v24_v4 = vld [vmem:[%s11020_s0] sm:$0xff]  ;;  %354 = vmatpush1.msra.mxu0 %v152_v2  ;;  %417 = vmatprep.mubr.f32.mxu0 %v11028_v5  ;;  %v159_v8 = vld [vmem:[%s11023_s3 + $0x18] sm:$0xff]  ;;  %v25_v9 = vld [vmem:[%s11020_s0 + $0x8] sm:$0xff] }
   0x4   :  { %803 = vmatpush1.msra.mxu1 %v154_v3  ;;  %866 = vmatprep.mubr.f32.mxu1 %v11028_v5  ;;  %v156_v7 = vld [vmem:[%s11023_s3] sm:$0xff]  ;;  %v158_v10 = vld [vmem:[%s11023_s3 + $0x10] sm:$0xff]  ;;  %v27_v12 = vld [vmem:[%s11020_s0 + $0x18] sm:$0xff] }
   0x5   :  { %5277 = vmatmul.mubr.msk.f32.vlgmr.msra.gmra.mrb[0].mxu0 %vm160_vm0, %v24_v4  ;;  %5341 = vmatmul.mubr.msk.f32.vlgmr.msra.gmra.mrb[0].mxu1 %vm160_vm0, %v24_v4  ;;  %v26_v11 = vld [vmem:[%s11020_s0 + $0x10] sm:$0xff] }
   0x6   :  { %1699 = vmatprep.subr.mxu0 %v157_v6  ;;  %423 = vmatprep.mubr.f32.mxu0 %v11028_v5 }
   0x7   :  { %1700 = vmatpush1.msra.mxu0 %v156_v7  ;;  %872 = vmatprep.mubr.f32.mxu1 %v11028_v5 }
   0x8   :  { %2148 = vmatprep.subr.mxu1 %v159_v8 }
   0x9   :  { %5278 = vmatmul.mubr.msk.f32.gmra.mrb[2].mxu0 %vm160_vm0, %v25_v9  ;;  %5342 = vmatmul.mubr.msk.f32.gmra.mrb[2].mxu1 %vm160_vm0, %v25_v9 }
   0xa   :  { %2149 = vmatpush1.msra.mxu1 %v158_v10  ;;  %429 = vmatprep.mubr.f32.mxu0 %v11028_v5 }
   0xb   :  { %878 = vmatprep.mubr.f32.mxu1 %v11028_v5 }
   0xd   :  { %5279 = vmatmul.mubr.msk.f32.gmra.mrb[4].mxu0 %vm160_vm0, %v26_v11  ;;  %5343 = vmatmul.mubr.msk.f32.gmra.mrb[4].mxu1 %vm160_vm0, %v26_v11 }
   0xe   :  { %435 = vmatprep.mubr.f32.mxu0 %v11028_v5  ;;  %884 = vmatprep.mubr.f32.mxu1 %v11028_v5 }
   0xf   :  { %15 = vsyncpa [#allocation8], 0  ;;  %v28_v13 = vld [vmem:[%s11020_s0 + $0x20] sm:$0xff]  ;;  %v29_v14 = vld [vmem:[%s11020_s0 + $0x28] sm:$0xff] }
  0x10   :  { %v30_v15 = vld [vmem:[%s11020_s0 + $0x30] sm:$0xff]  ;;  %v31_v16 = vld [vmem:[%s11020_s0 + $0x38] sm:$0xff]  ;;  %v32_v17 = vld [vmem:[%s11020_s0 + $0x40] sm:$0xff] }
  0x11   :  { %5280 = vmatmul.mubr.msk.f32.gmra.mrb[6].mxu0 %vm160_vm0, %v27_v12  ;;  %5344 = vmatmul.mubr.msk.f32.gmra.mrb[6].mxu1 %vm160_vm0, %v27_v12  ;;  %v33_v18 = vld [vmem:[%s11020_s0 + $0x48] sm:$0xff]  ;;  %v34_v19 = vld [vmem:[%s11020_s0 + $0x50] sm:$0xff]  ;;  %v35_v20 = vld [vmem:[%s11020_s0 + $0x58] sm:$0xff] }
  0x12   :  { %441 = vmatprep.mubr.f32.mxu0 %v11028_v5  ;;  %890 = vmatprep.mubr.f32.mxu1 %v11028_v5  ;;  %v36_v21 = vld [vmem:[%s11020_s0 + $0x60] sm:$0xff]  ;;  %v37_v22 = vld [vmem:[%s11020_s0 + $0x68] sm:$0xff]  ;;  %v38_v23 = vld [vmem:[%s11020_s0 + $0x70] sm:$0xff] }
  0x13   :  { %v39_v24 = vld [vmem:[%s11020_s0 + $0x78] sm:$0xff]  ;;  %v40_v25 = vld [vmem:[%s11020_s0 + $0x80] sm:$0xff]  ;;  %v41_v26 = vld [vmem:[%s11020_s0 + $0x88] sm:$0xff] }
  0x14   :  { %v42_v27 = vld [vmem:[%s11020_s0 + $0x90] sm:$0xff]  ;;  %v43_v28 = vld [vmem:[%s11020_s0 + $0x98] sm:$0xff]  ;;  %v44_v29 = vld [vmem:[%s11020_s0 + $0xa0] sm:$0xff] }
  0x15   :  { %5281 = vmatmul.mubr.msk.f32.gmra.mrb[8].mxu0 %vm160_vm0, %v28_v13  ;;  %5345 = vmatmul.mubr.msk.f32.gmra.mrb[8].mxu1 %vm160_vm0, %v28_v13  ;;  %v45_v30 = vld [vmem:[%s11020_s0 + $0xa8] sm:$0xff]  ;;  %v46_v31 = vld [vmem:[%s11020_s0 + $0xb0] sm:$0xff]  ;;  %v47_v32 = vld [vmem:[%s11020_s0 + $0xb8] sm:$0xff] }
  0x16   :  { %447 = vmatprep.mubr.f32.mxu0 %v11028_v5  ;;  %896 = vmatprep.mubr.f32.mxu1 %v11028_v5  ;;  %v48_v33 = vld [vmem:[%s11020_s0 + $0xc0] sm:$0xff]  ;;  %v49_v34 = vld [vmem:[%s11020_s0 + $0xc8] sm:$0xff]  ;;  %v50_v35 = vld [vmem:[%s11020_s0 + $0xd0] sm:$0xff] }
  0x17   :  { %v51_v36 = vld [vmem:[%s11020_s0 + $0xd8] sm:$0xff]  ;;  %v52_v37 = vld [vmem:[%s11020_s0 + $0xe0] sm:$0xff]  ;;  %v53_v38 = vld [vmem:[%s11020_s0 + $0xe8] sm:$0xff] }
  0x18   :  { %v54_v39 = vld [vmem:[%s11020_s0 + $0xf0] sm:$0xff]  ;;  %v55_v40 = vld [vmem:[%s11020_s0 + $0xf8] sm:$0xff]  ;;  %v56_v41 = vld [vmem:[%s11020_s0 + $0x100] sm:$0xff] }
  0x19   :  { %5282 = vmatmul.mubr.msk.f32.gmra.mrb[10].mxu0 %vm160_vm0, %v29_v14  ;;  %5346 = vmatmul.mubr.msk.f32.gmra.mrb[10].mxu1 %vm160_vm0, %v29_v14  ;;  %v57_v42 = vld [vmem:[%s11020_s0 + $0x108] sm:$0xff]  ;;  %v58_v43 = vld [vmem:[%s11020_s0 + $0x110] sm:$0xff]  ;;  %v59_v44 = vld [vmem:[%s11020_s0 + $0x118] sm:$0xff] }
  0x1a   :  { %453 = vmatprep.mubr.f32.mxu0 %v11028_v5  ;;  %902 = vmatprep.mubr.f32.mxu1 %v11028_v5  ;;  %v60_v45 = vld [vmem:[%s11020_s0 + $0x120] sm:$0xff]  ;;  %v61_v46 = vld [vmem:[%s11020_s0 + $0x128] sm:$0xff]  ;;  %v62_v47 = vld [vmem:[%s11020_s0 + $0x130] sm:$0xff] }
  0x1b   :  { %v63_v48 = vld [vmem:[%s11020_s0 + $0x138] sm:$0xff]  ;;  %v64_v49 = vld [vmem:[%s11020_s0 + $0x140] sm:$0xff]  ;;  %v65_v50 = vld [vmem:[%s11020_s0 + $0x148] sm:$0xff] }
  0x1c   :  { %v66_v51 = vld [vmem:[%s11020_s0 + $0x150] sm:$0xff]  ;;  %v67_v52 = vld [vmem:[%s11020_s0 + $0x158] sm:$0xff]  ;;  %v68_v53 = vld [vmem:[%s11020_s0 + $0x160] sm:$0xff] }
  0x1d   :  { %5283 = vmatmul.mubr.msk.f32.gmra.mrb[12].mxu0 %vm160_vm0, %v30_v15  ;;  %5347 = vmatmul.mubr.msk.f32.gmra.mrb[12].mxu1 %vm160_vm0, %v30_v15  ;;  %v69_v54 = vld [vmem:[%s11020_s0 + $0x168] sm:$0xff]  ;;  %v70_v55 = vld [vmem:[%s11020_s0 + $0x170] sm:$0xff]  ;;  %v71_v56 = vld [vmem:[%s11020_s0 + $0x178] sm:$0xff] }
  0x1e   :  { %459 = vmatprep.mubr.f32.mxu0 %v11028_v5  ;;  %908 = vmatprep.mubr.f32.mxu1 %v11028_v5  ;;  %v72_v57 = vld [vmem:[%s11020_s0 + $0x180] sm:$0xff]  ;;  %v73_v58 = vld [vmem:[%s11020_s0 + $0x188] sm:$0xff]  ;;  %v74_v59 = vld [vmem:[%s11020_s0 + $0x190] sm:$0xff] }
  0x1f   :  { %v75_v60 = vld [vmem:[%s11020_s0 + $0x198] sm:$0xff]  ;;  %v76_v61 = vld [vmem:[%s11020_s0 + $0x1a0] sm:$0xff]  ;;  %v77_v62 = vld [vmem:[%s11020_s0 + $0x1a8] sm:$0xff] }
  0x20   :  { %v78_v7 = vld [vmem:[%s11020_s0 + $0x1b0] sm:$0xff] }
  0x21   :  { %5284 = vmatmul.mubr.msk.f32.gmra.mrb[14].mxu0 %vm160_vm0, %v31_v16  ;;  %5348 = vmatmul.mubr.msk.f32.gmra.mrb[14].mxu1 %vm160_vm0, %v31_v16  ;;  %v79_v16 = vld [vmem:[%s11020_s0 + $0x1b8] sm:$0xff] }
  0x22   :  { %465 = vmatprep.mubr.f32.mxu0 %v11028_v5  ;;  %914 = vmatprep.mubr.f32.mxu1 %v11028_v5 }
  0x25   :  { %5285 = vmatmul.mubr.msk.f32.gmra.mrb[16].mxu0 %vm160_vm0, %v32_v17  ;;  %5349 = vmatmul.mubr.msk.f32.gmra.mrb[16].mxu1 %vm160_vm0, %v32_v17 }
  0x26   :  { %471 = vmatprep.mubr.f32.mxu0 %v11028_v5  ;;  %920 = vmatprep.mubr.f32.mxu1 %v11028_v5 }
  0x29   :  { %5286 = vmatmul.mubr.msk.f32.gmra.mrb[18].mxu0 %vm160_vm0, %v33_v18  ;;  %5350 = vmatmul.mubr.msk.f32.gmra.mrb[18].mxu1 %vm160_vm0, %v33_v18 }
  0x2a   :  { %477 = vmatprep.mubr.f32.mxu0 %v11028_v5  ;;  %926 = vmatprep.mubr.f32.mxu1 %v11028_v5 }
  0x2d   :  { %5287 = vmatmul.mubr.msk.f32.gmra.mrb[20].mxu0 %vm160_vm0, %v34_v19  ;;  %5351 = vmatmul.mubr.msk.f32.gmra.mrb[20].mxu1 %vm160_vm0, %v34_v19 }
  0x2e   :  { %483 = vmatprep.mubr.f32.mxu0 %v11028_v5  ;;  %932 = vmatprep.mubr.f32.mxu1 %v11028_v5 }
  0x31   :  { %5288 = vmatmul.mubr.msk.f32.gmra.mrb[22].mxu0 %vm160_vm0, %v35_v20  ;;  %5352 = vmatmul.mubr.msk.f32.gmra.mrb[22].mxu1 %vm160_vm0, %v35_v20 }
  0x32   :  { %489 = vmatprep.mubr.f32.mxu0 %v11028_v5  ;;  %938 = vmatprep.mubr.f32.mxu1 %v11028_v5 }
  0x35   :  { %5289 = vmatmul.mubr.msk.f32.gmra.mrb[24].mxu0 %vm160_vm0, %v36_v21  ;;  %5353 = vmatmul.mubr.msk.f32.gmra.mrb[24].mxu1 %vm160_vm0, %v36_v21 }
  0x36   :  { %495 = vmatprep.mubr.f32.mxu0 %v11028_v5  ;;  %944 = vmatprep.mubr.f32.mxu1 %v11028_v5 }
  0x39   :  { %5290 = vmatmul.mubr.msk.f32.gmra.mrb[26].mxu0 %vm160_vm0, %v37_v22  ;;  %5354 = vmatmul.mubr.msk.f32.gmra.mrb[26].mxu1 %vm160_vm0, %v37_v22 }
  0x3a   :  { %501 = vmatprep.mubr.f32.mxu0 %v11028_v5  ;;  %950 = vmatprep.mubr.f32.mxu1 %v11028_v5 }
  0x3d   :  { %5291 = vmatmul.mubr.msk.f32.gmra.mrb[28].mxu0 %vm160_vm0, %v38_v23  ;;  %5355 = vmatmul.mubr.msk.f32.gmra.mrb[28].mxu1 %vm160_vm0, %v38_v23 }
  0x3e   :  { %507 = vmatprep.mubr.f32.mxu0 %v11028_v5  ;;  %956 = vmatprep.mubr.f32.mxu1 %v11028_v5 }
  0x41   :  { %5292 = vmatmul.mubr.msk.f32.gmra.mrb[30].mxu0 %vm160_vm0, %v39_v24  ;;  %5356 = vmatmul.mubr.msk.f32.gmra.mrb[30].mxu1 %vm160_vm0, %v39_v24 }
  0x42   :  { %513 = vmatprep.mubr.f32.mxu0 %v11028_v5  ;;  %962 = vmatprep.mubr.f32.mxu1 %v11028_v5 }
  0x45   :  { %5293 = vmatmul.mubr.msk.f32.gmra.mrb[32].mxu0 %vm160_vm0, %v40_v25  ;;  %5357 = vmatmul.mubr.msk.f32.gmra.mrb[32].mxu1 %vm160_vm0, %v40_v25 }
  0x46   :  { %519 = vmatprep.mubr.f32.mxu0 %v11028_v5  ;;  %968 = vmatprep.mubr.f32.mxu1 %v11028_v5 }
  0x49   :  { %5294 = vmatmul.mubr.msk.f32.gmra.mrb[34].mxu0 %vm160_vm0, %v41_v26  ;;  %5358 = vmatmul.mubr.msk.f32.gmra.mrb[34].mxu1 %vm160_vm0, %v41_v26 }
  0x4a   :  { %525 = vmatprep.mubr.f32.mxu0 %v11028_v5  ;;  %974 = vmatprep.mubr.f32.mxu1 %v11028_v5 }
  0x4d   :  { %5295 = vmatmul.mubr.msk.f32.gmra.mrb[36].mxu0 %vm160_vm0, %v42_v27  ;;  %5359 = vmatmul.mubr.msk.f32.gmra.mrb[36].mxu1 %vm160_vm0, %v42_v27 }
  0x4e   :  { %531 = vmatprep.mubr.f32.mxu0 %v11028_v5  ;;  %980 = vmatprep.mubr.f32.mxu1 %v11028_v5 }
  0x51   :  { %5296 = vmatmul.mubr.msk.f32.gmra.mrb[38].mxu0 %vm160_vm0, %v43_v28  ;;  %5360 = vmatmul.mubr.msk.f32.gmra.mrb[38].mxu1 %vm160_vm0, %v43_v28  ;;  %v80_v28 = vld [vmem:[%s11020_s0 + $0x1c0] sm:$0xff] }
  0x52   :  { %537 = vmatprep.mubr.f32.mxu0 %v11028_v5  ;;  %986 = vmatprep.mubr.f32.mxu1 %v11028_v5 }
  0x55   :  { %5297 = vmatmul.mubr.msk.f32.gmra.mrb[40].mxu0 %vm160_vm0, %v44_v29  ;;  %5361 = vmatmul.mubr.msk.f32.gmra.mrb[40].mxu1 %vm160_vm0, %v44_v29 }
  0x56   :  { %543 = vmatprep.mubr.f32.mxu0 %v11028_v5  ;;  %992 = vmatprep.mubr.f32.mxu1 %v11028_v5 }
  0x59   :  { %5298 = vmatmul.mubr.msk.f32.gmra.mrb[42].mxu0 %vm160_vm0, %v45_v30  ;;  %5362 = vmatmul.mubr.msk.f32.gmra.mrb[42].mxu1 %vm160_vm0, %v45_v30 }
  0x5a   :  { %549 = vmatprep.mubr.f32.mxu0 %v11028_v5  ;;  %998 = vmatprep.mubr.f32.mxu1 %v11028_v5 }
  0x5d   :  { %5299 = vmatmul.mubr.msk.f32.gmra.mrb[44].mxu0 %vm160_vm0, %v46_v31  ;;  %5363 = vmatmul.mubr.msk.f32.gmra.mrb[44].mxu1 %vm160_vm0, %v46_v31 }
  0x5e   :  { %555 = vmatprep.mubr.f32.mxu0 %v11028_v5  ;;  %1004 = vmatprep.mubr.f32.mxu1 %v11028_v5 }
  0x61   :  { %5300 = vmatmul.mubr.msk.f32.gmra.mrb[46].mxu0 %vm160_vm0, %v47_v32  ;;  %5364 = vmatmul.mubr.msk.f32.gmra.mrb[46].mxu1 %vm160_vm0, %v47_v32 }
  0x62   :  { %561 = vmatprep.mubr.f32.mxu0 %v11028_v5  ;;  %1010 = vmatprep.mubr.f32.mxu1 %v11028_v5 }
  0x65   :  { %5301 = vmatmul.mubr.msk.f32.gmra.mrb[48].mxu0 %vm160_vm0, %v48_v33  ;;  %5365 = vmatmul.mubr.msk.f32.gmra.mrb[48].mxu1 %vm160_vm0, %v48_v33 }
  0x66   :  { %567 = vmatprep.mubr.f32.mxu0 %v11028_v5  ;;  %1016 = vmatprep.mubr.f32.mxu1 %v11028_v5 }
  0x69   :  { %5302 = vmatmul.mubr.msk.f32.gmra.mrb[50].mxu0 %vm160_vm0, %v49_v34  ;;  %5366 = vmatmul.mubr.msk.f32.gmra.mrb[50].mxu1 %vm160_vm0, %v49_v34 }
  0x6a   :  { %573 = vmatprep.mubr.f32.mxu0 %v11028_v5  ;;  %1022 = vmatprep.mubr.f32.mxu1 %v11028_v5 }
  0x6d   :  { %5303 = vmatmul.mubr.msk.f32.gmra.mrb[52].mxu0 %vm160_vm0, %v50_v35  ;;  %5367 = vmatmul.mubr.msk.f32.gmra.mrb[52].mxu1 %vm160_vm0, %v50_v35 }
  0x6e   :  { %579 = vmatprep.mubr.f32.mxu0 %v11028_v5  ;;  %1028 = vmatprep.mubr.f32.mxu1 %v11028_v5 }
  0x71   :  { %5304 = vmatmul.mubr.msk.f32.gmra.mrb[54].mxu0 %vm160_vm0, %v51_v36  ;;  %5368 = vmatmul.mubr.msk.f32.gmra.mrb[54].mxu1 %vm160_vm0, %v51_v36 }
  0x72   :  { %585 = vmatprep.mubr.f32.mxu0 %v11028_v5  ;;  %1034 = vmatprep.mubr.f32.mxu1 %v11028_v5 }
  0x75   :  { %5305 = vmatmul.mubr.msk.f32.gmra.mrb[56].mxu0 %vm160_vm0, %v52_v37  ;;  %5369 = vmatmul.mubr.msk.f32.gmra.mrb[56].mxu1 %vm160_vm0, %v52_v37 }
  0x76   :  { %591 = vmatprep.mubr.f32.mxu0 %v11028_v5  ;;  %1040 = vmatprep.mubr.f32.mxu1 %v11028_v5 }
  0x79   :  { %5306 = vmatmul.mubr.msk.f32.gmra.mrb[58].mxu0 %vm160_vm0, %v53_v38  ;;  %5370 = vmatmul.mubr.msk.f32.gmra.mrb[58].mxu1 %vm160_vm0, %v53_v38 }
  0x7a   :  { %597 = vmatprep.mubr.f32.mxu0 %v11028_v5  ;;  %1046 = vmatprep.mubr.f32.mxu1 %v11028_v5 }
  0x7d   :  { %5307 = vmatmul.mubr.msk.f32.gmra.mrb[60].mxu0 %vm160_vm0, %v54_v39  ;;  %5371 = vmatmul.mubr.msk.f32.gmra.mrb[60].mxu1 %vm160_vm0, %v54_v39 }
  0x7e   :  { %603 = vmatprep.mubr.f32.mxu0 %v11028_v5  ;;  %1052 = vmatprep.mubr.f32.mxu1 %v11028_v5 }
  0x81   :  { %5308 = vmatmul.mubr.msk.f32.gmra.mrb[62].mxu0 %vm160_vm0, %v55_v40  ;;  %5372 = vmatmul.mubr.msk.f32.gmra.mrb[62].mxu1 %vm160_vm0, %v55_v40  ;;  %v81_v40 = vld [vmem:[%s11020_s0 + $0x1c8] sm:$0xff] }
  0x82   :  { %609 = vmatprep.mubr.f32.mxu0 %v11028_v5  ;;  %1058 = vmatprep.mubr.f32.mxu1 %v11028_v5 }
  0x85   :  { %5309 = vmatmul.mubr.msk.f32.gmra.mrb[64].mxu0 %vm160_vm0, %v56_v41  ;;  %5373 = vmatmul.mubr.msk.f32.gmra.mrb[64].mxu1 %vm160_vm0, %v56_v41 }
  0x86   :  { %615 = vmatprep.mubr.f32.mxu0 %v11028_v5  ;;  %1064 = vmatprep.mubr.f32.mxu1 %v11028_v5 }
  0x89   :  { %5310 = vmatmul.mubr.msk.f32.gmra.mrb[66].mxu0 %vm160_vm0, %v57_v42  ;;  %5374 = vmatmul.mubr.msk.f32.gmra.mrb[66].mxu1 %vm160_vm0, %v57_v42 }
  0x8a   :  { %621 = vmatprep.mubr.f32.mxu0 %v11028_v5  ;;  %1070 = vmatprep.mubr.f32.mxu1 %v11028_v5 }
  0x8d   :  { %5311 = vmatmul.mubr.msk.f32.gmra.mrb[68].mxu0 %vm160_vm0, %v58_v43  ;;  %5375 = vmatmul.mubr.msk.f32.gmra.mrb[68].mxu1 %vm160_vm0, %v58_v43 }
  0x8e   :  { %627 = vmatprep.mubr.f32.mxu0 %v11028_v5  ;;  %1076 = vmatprep.mubr.f32.mxu1 %v11028_v5 }
  0x91   :  { %5312 = vmatmul.mubr.msk.f32.gmra.mrb[70].mxu0 %vm160_vm0, %v59_v44  ;;  %5376 = vmatmul.mubr.msk.f32.gmra.mrb[70].mxu1 %vm160_vm0, %v59_v44 }
  0x92   :  { %633 = vmatprep.mubr.f32.mxu0 %v11028_v5  ;;  %1082 = vmatprep.mubr.f32.mxu1 %v11028_v5 }
  0x95   :  { %5313 = vmatmul.mubr.msk.f32.gmra.mrb[72].mxu0 %vm160_vm0, %v60_v45  ;;  %5377 = vmatmul.mubr.msk.f32.gmra.mrb[72].mxu1 %vm160_vm0, %v60_v45 }
  0x96   :  { %639 = vmatprep.mubr.f32.mxu0 %v11028_v5  ;;  %1088 = vmatprep.mubr.f32.mxu1 %v11028_v5 }
  0x99   :  { %5314 = vmatmul.mubr.msk.f32.gmra.mrb[74].mxu0 %vm160_vm0, %v61_v46  ;;  %5378 = vmatmul.mubr.msk.f32.gmra.mrb[74].mxu1 %vm160_vm0, %v61_v46 }
  0x9a   :  { %645 = vmatprep.mubr.f32.mxu0 %v11028_v5  ;;  %1094 = vmatprep.mubr.f32.mxu1 %v11028_v5 }
  0x9d   :  { %5315 = vmatmul.mubr.msk.f32.gmra.mrb[76].mxu0 %vm160_vm0, %v62_v47  ;;  %5379 = vmatmul.mubr.msk.f32.gmra.mrb[76].mxu1 %vm160_vm0, %v62_v47 }
  0x9e   :  { %651 = vmatprep.mubr.f32.mxu0 %v11028_v5  ;;  %1100 = vmatprep.mubr.f32.mxu1 %v11028_v5 }
  0xa1   :  { %5316 = vmatmul.mubr.msk.f32.gmra.mrb[78].mxu0 %vm160_vm0, %v63_v48  ;;  %5380 = vmatmul.mubr.msk.f32.gmra.mrb[78].mxu1 %vm160_vm0, %v63_v48 }
  0xa2   :  { %657 = vmatprep.mubr.f32.mxu0 %v11028_v5  ;;  %1106 = vmatprep.mubr.f32.mxu1 %v11028_v5 }
  0xa5   :  { %5317 = vmatmul.mubr.msk.f32.gmra.mrb[80].mxu0 %vm160_vm0, %v64_v49  ;;  %5381 = vmatmul.mubr.msk.f32.gmra.mrb[80].mxu1 %vm160_vm0, %v64_v49 }
  0xa6   :  { %663 = vmatprep.mubr.f32.mxu0 %v11028_v5  ;;  %1112 = vmatprep.mubr.f32.mxu1 %v11028_v5 }
  0xa9   :  { %5318 = vmatmul.mubr.msk.f32.gmra.mrb[82].mxu0 %vm160_vm0, %v65_v50  ;;  %5382 = vmatmul.mubr.msk.f32.gmra.mrb[82].mxu1 %vm160_vm0, %v65_v50 }
  0xaa   :  { %669 = vmatprep.mubr.f32.mxu0 %v11028_v5  ;;  %1118 = vmatprep.mubr.f32.mxu1 %v11028_v5 }
  0xad   :  { %5319 = vmatmul.mubr.msk.f32.gmra.mrb[84].mxu0 %vm160_vm0, %v66_v51  ;;  %5383 = vmatmul.mubr.msk.f32.gmra.mrb[84].mxu1 %vm160_vm0, %v66_v51 }
  0xae   :  { %675 = vmatprep.mubr.f32.mxu0 %v11028_v5  ;;  %1124 = vmatprep.mubr.f32.mxu1 %v11028_v5 }
  0xb1   :  { %5320 = vmatmul.mubr.msk.f32.gmra.mrb[86].mxu0 %vm160_vm0, %v67_v52  ;;  %5384 = vmatmul.mubr.msk.f32.gmra.mrb[86].mxu1 %vm160_vm0, %v67_v52  ;;  %v82_v52 = vld [vmem:[%s11020_s0 + $0x1d0] sm:$0xff] }
  0xb2   :  { %681 = vmatprep.mubr.f32.mxu0 %v11028_v5  ;;  %1130 = vmatprep.mubr.f32.mxu1 %v11028_v5 }
  0xb5   :  { %5321 = vmatmul.mubr.msk.f32.gmra.mrb[88].mxu0 %vm160_vm0, %v68_v53  ;;  %5385 = vmatmul.mubr.msk.f32.gmra.mrb[88].mxu1 %vm160_vm0, %v68_v53 }
  0xb6   :  { %687 = vmatprep.mubr.f32.mxu0 %v11028_v5  ;;  %1136 = vmatprep.mubr.f32.mxu1 %v11028_v5 }
  0xb9   :  { %5322 = vmatmul.mubr.msk.f32.gmra.mrb[90].mxu0 %vm160_vm0, %v69_v54  ;;  %5386 = vmatmul.mubr.msk.f32.gmra.mrb[90].mxu1 %vm160_vm0, %v69_v54 }
  0xba   :  { %693 = vmatprep.mubr.f32.mxu0 %v11028_v5  ;;  %1142 = vmatprep.mubr.f32.mxu1 %v11028_v5 }
  0xbd   :  { %5323 = vmatmul.mubr.msk.f32.gmra.mrb[92].mxu0 %vm160_vm0, %v70_v55  ;;  %5387 = vmatmul.mubr.msk.f32.gmra.mrb[92].mxu1 %vm160_vm0, %v70_v55 }
  0xbe   :  { %699 = vmatprep.mubr.f32.mxu0 %v11028_v5  ;;  %1148 = vmatprep.mubr.f32.mxu1 %v11028_v5 }
  0xc1   :  { %5324 = vmatmul.mubr.msk.f32.gmra.mrb[94].mxu0 %vm160_vm0, %v71_v56  ;;  %5388 = vmatmul.mubr.msk.f32.gmra.mrb[94].mxu1 %vm160_vm0, %v71_v56 }
  0xc2   :  { %705 = vmatprep.mubr.f32.mxu0 %v11028_v5  ;;  %1154 = vmatprep.mubr.f32.mxu1 %v11028_v5 }
  0xc5   :  { %5325 = vmatmul.mubr.msk.f32.gmra.mrb[96].mxu0 %vm160_vm0, %v72_v57  ;;  %5389 = vmatmul.mubr.msk.f32.gmra.mrb[96].mxu1 %vm160_vm0, %v72_v57 }
  0xc6   :  { %711 = vmatprep.mubr.f32.mxu0 %v11028_v5  ;;  %1160 = vmatprep.mubr.f32.mxu1 %v11028_v5 }
  0xc9   :  { %5326 = vmatmul.mubr.msk.f32.gmra.mrb[98].mxu0 %vm160_vm0, %v73_v58  ;;  %5390 = vmatmul.mubr.msk.f32.gmra.mrb[98].mxu1 %vm160_vm0, %v73_v58 }
  0xca   :  { %717 = vmatprep.mubr.f32.mxu0 %v11028_v5  ;;  %1166 = vmatprep.mubr.f32.mxu1 %v11028_v5 }
  0xcd   :  { %5327 = vmatmul.mubr.msk.f32.gmra.mrb[100].mxu0 %vm160_vm0, %v74_v59  ;;  %5391 = vmatmul.mubr.msk.f32.gmra.mrb[100].mxu1 %vm160_vm0, %v74_v59 }
  0xce   :  { %723 = vmatprep.mubr.f32.mxu0 %v11028_v5  ;;  %1172 = vmatprep.mubr.f32.mxu1 %v11028_v5 }
  0xd1   :  { %5328 = vmatmul.mubr.msk.f32.gmra.mrb[102].mxu0 %vm160_vm0, %v75_v60  ;;  %5392 = vmatmul.mubr.msk.f32.gmra.mrb[102].mxu1 %vm160_vm0, %v75_v60 }
  0xd2   :  { %729 = vmatprep.mubr.f32.mxu0 %v11028_v5  ;;  %1178 = vmatprep.mubr.f32.mxu1 %v11028_v5 }
  0xd5   :  { %5329 = vmatmul.mubr.msk.f32.gmra.mrb[104].mxu0 %vm160_vm0, %v76_v61  ;;  %5393 = vmatmul.mubr.msk.f32.gmra.mrb[104].mxu1 %vm160_vm0, %v76_v61 }
  0xd6   :  { %735 = vmatprep.mubr.f32.mxu0 %v11028_v5  ;;  %1184 = vmatprep.mubr.f32.mxu1 %v11028_v5 }
  0xd8   :  { %v419_v63 = vpop.f32.mrb[0].mxu0  ;;  %v868_v0 = vpop.f32.mrb[0].mxu1 }
  0xd9   :  { %v6077_v1 = vmax.f32 %v419_v63, 0.0  ;;  %v421_v2 = vpop.f32.mrb[1].mxu0  ;;  %5330 = vmatmul.mubr.msk.f32.gmra.mrb[106].mxu0 %vm160_vm0, %v77_v62  ;;  %5394 = vmatmul.mubr.msk.f32.gmra.mrb[106].mxu1 %vm160_vm0, %v77_v62  ;;  %v870_v3 = vpop.f32.mrb[1].mxu1  ;;  %v6083_v6 = vmax.f32 %v868_v0, 0.0  ;;  %v83_v0 = vld [vmem:[%s11020_s0 + $0x1d8] sm:$0xff] }
  0xda   :  { %v6081_v4 = vmax.f32 %v421_v2, 0.0  ;;  %741 = vmatprep.mubr.f32.mxu0 %v11028_v5  ;;  %1190 = vmatprep.mubr.f32.mxu1 %v11028_v5  ;;  %v6096_v14 = vmax.f32 %v870_v3, 0.0 }
  0xdb   :  { %11645 = vst [vmem:[#allocation12_spill] sm:$0xff] %v6077_v1  ;;  %11647 = vst [vmem:[#allocation14_spill] sm:$0xff] %v6083_v6 }
  0xdc   :  { %11646 = vst [vmem:[#allocation13_spill] sm:$0xff] %v6081_v4  ;;  %v425_v8 = vpop.f32.mrb[2].mxu0  ;;  %v874_v9 = vpop.f32.mrb[2].mxu1  ;;  %v2853_v10 = vmin.f32 %v6077_v1, %v6081_v4  ;;  %11649 = vst [vmem:[#allocation16_spill] sm:$0xff] %v6096_v14 }
  0xdd   :  { %v6092_v11 = vmax.f32 %v425_v8, 0.0  ;;  %v427_v12 = vpop.f32.mrb[3].mxu0  ;;  %5331 = vmatmul.mubr.msk.f32.gmra.mrb[108].mxu0 %vm160_vm0, %v78_v7  ;;  %v876_v13 = vpop.f32.mrb[3].mxu1  ;;  %5395 = vmatmul.mubr.msk.f32.gmra.mrb[108].mxu1 %vm160_vm0, %v78_v7  ;;  %v6106_v18 = vmax.f32 %v874_v9, 0.0 }
  0xde   :  { %v6098_v15 = vmax.f32 %v427_v12, 0.0  ;;  %747 = vmatprep.mubr.f32.mxu0 %v11028_v5  ;;  %1196 = vmatprep.mubr.f32.mxu1 %v11028_v5  ;;  %v2854_v17 = vmin.f32 %v2853_v10, %v6083_v6  ;;  %v6115_v26 = vmax.f32 %v876_v13, 0.0 }
  0xdf   :  { %11648 = vst [vmem:[#allocation15_spill] sm:$0xff] %v6092_v11  ;;  %11651 = vst [vmem:[#allocation18_spill] sm:$0xff] %v6106_v18 }
  0xe0   :  { %11650 = vst [vmem:[#allocation17_spill] sm:$0xff] %v6098_v15  ;;  %v431_v19 = vpop.f32.mrb[4].mxu0  ;;  %v880_v20 = vpop.f32.mrb[4].mxu1  ;;  %v2855_v21 = vmin.f32 %v2854_v17, %v6096_v14  ;;  %v2858_v22 = vmin.f32 %v6092_v11, %v6098_v15  ;;  %11653 = vst [vmem:[#allocation20_spill] sm:$0xff] %v6115_v26 }
  0xe1   :  { %v6111_v23 = vmax.f32 %v431_v19, 0.0  ;;  %v433_v24 = vpop.f32.mrb[5].mxu0  ;;  %5332 = vmatmul.mubr.msk.f32.gmra.mrb[110].mxu0 %vm160_vm0, %v79_v16  ;;  %v882_v25 = vpop.f32.mrb[5].mxu1  ;;  %5396 = vmatmul.mubr.msk.f32.gmra.mrb[110].mxu1 %vm160_vm0, %v79_v16  ;;  %v6125_v30 = vmax.f32 %v880_v20, 0.0  ;;  %v84_v20 = vld [vmem:[%s11020_s0 + $0x1e0] sm:$0xff] }
  0xe2   :  { %v6117_v27 = vmax.f32 %v433_v24, 0.0  ;;  %2856 = vmin.xlane.f32.xlu0 %v2855_v21  ;;  %753 = vmatprep.mubr.f32.mxu0 %v11028_v5  ;;  %v2859_v29 = vmin.f32 %v2858_v22, %v6106_v18  ;;  %v6134_v38 = vmax.f32 %v882_v25, 0.0 }
  0xe3   :  { %11652 = vst [vmem:[#allocation19_spill] sm:$0xff] %v6111_v23  ;;  %1202 = vmatprep.mubr.f32.mxu1 %v11028_v5  ;;  %11655 = vst [vmem:[#allocation22_spill] sm:$0xff] %v6125_v30 }
  0xe4   :  { %11654 = vst [vmem:[#allocation21_spill] sm:$0xff] %v6117_v27  ;;  %v437_v31 = vpop.f32.mrb[6].mxu0  ;;  %v886_v32 = vpop.f32.mrb[6].mxu1  ;;  %v2860_v33 = vmin.f32 %v2859_v29, %v6115_v26  ;;  %v2863_v34 = vmin.f32 %v6111_v23, %v6117_v27  ;;  %11657 = vst [vmem:[#allocation24_spill] sm:$0xff] %v6134_v38 }
  0xe5   :  { %v6130_v35 = vmax.f32 %v437_v31, 0.0  ;;  %v439_v36 = vpop.f32.mrb[7].mxu0  ;;  %5333 = vmatmul.mubr.msk.f32.gmra.mrb[112].mxu0 %vm160_vm0, %v80_v28  ;;  %v888_v37 = vpop.f32.mrb[7].mxu1  ;;  %5397 = vmatmul.mubr.msk.f32.gmra.mrb[112].mxu1 %vm160_vm0, %v80_v28  ;;  %v6144_v42 = vmax.f32 %v886_v32, 0.0 }
  0xe6   :  { %v6136_v39 = vmax.f32 %v439_v36, 0.0  ;;  %2861 = vmin.xlane.f32.xlu0 %v2860_v33  ;;  %759 = vmatprep.mubr.f32.mxu0 %v11028_v5  ;;  %v2864_v41 = vmin.f32 %v2863_v34, %v6125_v30  ;;  %v6153_v50 = vmax.f32 %v888_v37, 0.0  ;;  %v85_v37 = vld [vmem:[%s11020_s0 + $0x1e8] sm:$0xff] }
  0xe7   :  { %11656 = vst [vmem:[#allocation23_spill] sm:$0xff] %v6130_v35  ;;  %1208 = vmatprep.mubr.f32.mxu1 %v11028_v5  ;;  %11659 = vst [vmem:[#allocation26_spill] sm:$0xff] %v6144_v42 }
  0xe8   :  { %11658 = vst [vmem:[#allocation25_spill] sm:$0xff] %v6136_v39  ;;  %v443_v43 = vpop.f32.mrb[8].mxu0  ;;  %v892_v44 = vpop.f32.mrb[8].mxu1  ;;  %v2865_v45 = vmin.f32 %v2864_v41, %v6134_v38  ;;  %v2868_v46 = vmin.f32 %v6130_v35, %v6136_v39  ;;  %11661 = vst [vmem:[#allocation28_spill] sm:$0xff] %v6153_v50 }
  0xe9   :  { %v6149_v47 = vmax.f32 %v443_v43, 0.0  ;;  %v445_v48 = vpop.f32.mrb[9].mxu0  ;;  %5334 = vmatmul.mubr.msk.f32.gmra.mrb[114].mxu0 %vm160_vm0, %v81_v40  ;;  %v894_v49 = vpop.f32.mrb[9].mxu1  ;;  %5398 = vmatmul.mubr.msk.f32.gmra.mrb[114].mxu1 %vm160_vm0, %v81_v40  ;;  %v6163_v54 = vmax.f32 %v892_v44, 0.0 }
  0xea   :  { %v6155_v51 = vmax.f32 %v445_v48, 0.0  ;;  %2866 = vmin.xlane.f32.xlu1 %v2865_v45  ;;  %765 = vmatprep.mubr.f32.mxu0 %v11028_v5  ;;  %v2869_v53 = vmin.f32 %v2868_v46, %v6144_v42  ;;  %v6172_v62 = vmax.f32 %v894_v49, 0.0 }
  0xeb   :  { %11660 = vst [vmem:[#allocation27_spill] sm:$0xff] %v6149_v47  ;;  %1214 = vmatprep.mubr.f32.mxu1 %v11028_v5  ;;  %11663 = vst [vmem:[#allocation30_spill] sm:$0xff] %v6163_v54 }
  0xec   :  { %11662 = vst [vmem:[#allocation29_spill] sm:$0xff] %v6155_v51  ;;  %v449_v55 = vpop.f32.mrb[10].mxu0  ;;  %v898_v56 = vpop.f32.mrb[10].mxu1  ;;  %v2870_v57 = vmin.f32 %v2869_v53, %v6153_v50  ;;  %v2873_v58 = vmin.f32 %v6149_v47, %v6155_v51  ;;  %11665 = vst [vmem:[#allocation32_spill] sm:$0xff] %v6172_v62 }
  0xed   :  { %v6168_v59 = vmax.f32 %v449_v55, 0.0  ;;  %v451_v60 = vpop.f32.mrb[11].mxu0  ;;  %5335 = vmatmul.mubr.msk.f32.gmra.mrb[116].mxu0 %vm160_vm0, %v82_v52  ;;  %v900_v61 = vpop.f32.mrb[11].mxu1  ;;  %5399 = vmatmul.mubr.msk.f32.gmra.mrb[116].mxu1 %vm160_vm0, %v82_v52  ;;  %v6182_v3 = vmax.f32 %v898_v56, 0.0  ;;  %v86_v56 = vld [vmem:[%s11020_s0 + $0x1f0] sm:$0xff] }
  0xee   :  { %v6174_v63 = vmax.f32 %v451_v60, 0.0  ;;  %2871 = vmin.xlane.f32.xlu1 %v2870_v57  ;;  %771 = vmatprep.mubr.f32.mxu0 %v11028_v5  ;;  %v2874_v2 = vmin.f32 %v2873_v58, %v6163_v54  ;;  %v6191_v17 = vmax.f32 %v900_v61, 0.0 }
  0xef   :  { %11664 = vst [vmem:[#allocation31_spill] sm:$0xff] %v6168_v59  ;;  %1220 = vmatprep.mubr.f32.mxu1 %v11028_v5  ;;  %11667 = vst [vmem:[#allocation34_spill] sm:$0xff] %v6182_v3 }
  0xf0   :  { %11666 = vst [vmem:[#allocation33_spill] sm:$0xff] %v6174_v63  ;;  %v455_v7 = vpop.f32.mrb[12].mxu0  ;;  %v904_v8 = vpop.f32.mrb[12].mxu1  ;;  %v2875_v9 = vmin.f32 %v2874_v2, %v6172_v62  ;;  %v2878_v10 = vmin.f32 %v6168_v59, %v6174_v63  ;;  %11669 = vst [vmem:[#allocation36_spill] sm:$0xff] %v6191_v17 }
  0xf1   :  { %v6187_v12 = vmax.f32 %v455_v7, 0.0  ;;  %v457_v13 = vpop.f32.mrb[13].mxu0  ;;  %5336 = vmatmul.mubr.msk.f32.gmra.mrb[118].mxu0 %vm160_vm0, %v83_v0  ;;  %v906_v16 = vpop.f32.mrb[13].mxu1  ;;  %5400 = vmatmul.mubr.msk.f32.gmra.mrb[118].mxu1 %vm160_vm0, %v83_v0  ;;  %v6201_v22 = vmax.f32 %v904_v8, 0.0 }
  0xf2   :  { %v6193_v19 = vmax.f32 %v457_v13, 0.0  ;;  %2876 = vmin.xlane.f32.xlu0 %v2875_v9  ;;  %777 = vmatprep.mubr.f32.mxu0 %v11028_v5  ;;  %v2879_v21 = vmin.f32 %v2878_v10, %v6182_v3  ;;  %v6210_v34 = vmax.f32 %v906_v16, 0.0  ;;  %v87_v16 = vld [vmem:[%s11020_s0 + $0x1f8] sm:$0xff] }
  0xf3   :  { %11668 = vst [vmem:[#allocation35_spill] sm:$0xff] %v6187_v12  ;;  %1226 = vmatprep.mubr.f32.mxu1 %v11028_v5  ;;  %11671 = vst [vmem:[#allocation38_spill] sm:$0xff] %v6201_v22 }
  0xf4   :  { %11670 = vst [vmem:[#allocation37_spill] sm:$0xff] %v6193_v19  ;;  %v461_v24 = vpop.f32.mrb[14].mxu0  ;;  %v910_v25 = vpop.f32.mrb[14].mxu1  ;;  %v2880_v28 = vmin.f32 %v2879_v21, %v6191_v17  ;;  %v2883_v29 = vmin.f32 %v6187_v12, %v6193_v19  ;;  %11673 = vst [vmem:[#allocation40_spill] sm:$0xff] %v6210_v34 }
  0xf5   :  { %v6206_v31 = vmax.f32 %v461_v24, 0.0  ;;  %v463_v32 = vpop.f32.mrb[15].mxu0  ;;  %5337 = vmatmul.mubr.msk.f32.gmra.mrb[120].mxu0 %vm160_vm0, %v84_v20  ;;  %v912_v33 = vpop.f32.mrb[15].mxu1  ;;  %5401 = vmatmul.mubr.msk.f32.gmra.mrb[120].mxu1 %vm160_vm0, %v84_v20  ;;  %v6220_v41 = vmax.f32 %v910_v25, 0.0 }
  0xf6   :  { %v6212_v36 = vmax.f32 %v463_v32, 0.0  ;;  %2881 = vmin.xlane.f32.xlu1 %v2880_v28  ;;  %783 = vmatprep.mubr.f32.mxu0 %v11028_v5  ;;  %v2884_v40 = vmin.f32 %v2883_v29, %v6201_v22  ;;  %v6229_v53 = vmax.f32 %v912_v33, 0.0 }
  0xf7   :  { %11672 = vst [vmem:[#allocation39_spill] sm:$0xff] %v6206_v31  ;;  %1232 = vmatprep.mubr.f32.mxu1 %v11028_v5  ;;  %11675 = vst [vmem:[#allocation42_spill] sm:$0xff] %v6220_v41 }
  0xf8   :  { %11674 = vst [vmem:[#allocation41_spill] sm:$0xff] %v6212_v36  ;;  %v467_v43 = vpop.f32.mrb[16].mxu0  ;;  %v916_v44 = vpop.f32.mrb[16].mxu1  ;;  %v2885_v45 = vmin.f32 %v2884_v40, %v6210_v34  ;;  %v2888_v46 = vmin.f32 %v6206_v31, %v6212_v36  ;;  %11677 = vst [vmem:[#allocation44_spill] sm:$0xff] %v6229_v53 }
  0xf9   :  { %v6225_v48 = vmax.f32 %v467_v43, 0.0  ;;  %v469_v49 = vpop.f32.mrb[17].mxu0  ;;  %5338 = vmatmul.mubr.msk.f32.gmra.mrb[122].mxu0 %vm160_vm0, %v85_v37  ;;  %v918_v52 = vpop.f32.mrb[17].mxu1  ;;  %5402 = vmatmul.mubr.msk.f32.gmra.mrb[122].mxu1 %vm160_vm0, %v85_v37  ;;  %v6239_v58 = vmax.f32 %v916_v44, 0.0  ;;  %v88_v44 = vld [vmem:[%s11021_s1] sm:$0xff] }
  0xfa   :  { %v6231_v55 = vmax.f32 %v469_v49, 0.0  ;;  %2886 = vmin.xlane.f32.xlu0 %v2885_v45  ;;  %789 = vmatprep.mubr.f32.mxu0 %v11028_v5  ;;  %v2889_v57 = vmin.f32 %v2888_v46, %v6220_v41  ;;  %v6248_v10 = vmax.f32 %v918_v52, 0.0 }
  0xfb   :  { %11676 = vst [vmem:[#allocation43_spill] sm:$0xff] %v6225_v48  ;;  %1238 = vmatprep.mubr.f32.mxu1 %v11028_v5  ;;  %11679 = vst [vmem:[#allocation46_spill] sm:$0xff] %v6239_v58 }
  0xfc   :  { %11678 = vst [vmem:[#allocation45_spill] sm:$0xff] %v6231_v55  ;;  %v473_v60 = vpop.f32.mrb[18].mxu0  ;;  %v922_v61 = vpop.f32.mrb[18].mxu1  ;;  %v2890_v0 = vmin.f32 %v2889_v57, %v6229_v53  ;;  %v2893_v2 = vmin.f32 %v6225_v48, %v6231_v55  ;;  %11681 = vst [vmem:[#allocation48_spill] sm:$0xff] %v6248_v10 }
  0xfd   :  { %v6244_v7 = vmax.f32 %v473_v60, 0.0  ;;  %v475_v8 = vpop.f32.mrb[19].mxu0  ;;  %5339 = vmatmul.mubr.msk.f32.gmra.mrb[124].mxu0 %vm160_vm0, %v86_v56  ;;  %v924_v9 = vpop.f32.mrb[19].mxu1  ;;  %5403 = vmatmul.mubr.msk.f32.gmra.mrb[124].mxu1 %vm160_vm0, %v86_v56  ;;  %v6258_v21 = vmax.f32 %v922_v61, 0.0 }
  0xfe   :  { %v6250_v13 = vmax.f32 %v475_v8, 0.0  ;;  %2891 = vmin.xlane.f32.xlu1 %v2890_v0  ;;  %795 = vmatprep.mubr.f32.mxu0 %v11028_v5  ;;  %v2894_v20 = vmin.f32 %v2893_v2, %v6239_v58  ;;  %v6267_v40 = vmax.f32 %v924_v9, 0.0  ;;  %v89_v9 = vld [vmem:[%s11021_s1 + $0x8] sm:$0xff] }
  0xff   :  { %11680 = vst [vmem:[#allocation47_spill] sm:$0xff] %v6244_v7  ;;  %1244 = vmatprep.mubr.f32.mxu1 %v11028_v5  ;;  %11683 = vst [vmem:[#allocation50_spill] sm:$0xff] %v6258_v21 }
 0x100   :  { %11682 = vst [vmem:[#allocation49_spill] sm:$0xff] %v6250_v13  ;;  %v479_v24 = vpop.f32.mrb[20].mxu0  ;;  %v928_v25 = vpop.f32.mrb[20].mxu1  ;;  %v2895_v28 = vmin.f32 %v2894_v20, %v6248_v10  ;;  %v2898_v29 = vmin.f32 %v6244_v7, %v6250_v13  ;;  %11685 = vst [vmem:[#allocation52_spill] sm:$0xff] %v6267_v40 }
 0x101   :  { %v6263_v32 = vmax.f32 %v479_v24, 0.0  ;;  %v481_v33 = vpop.f32.mrb[21].mxu0  ;;  %5340 = vmatmul.mubr.msk.f32.gmra.mrb[126].mxu0 %vm160_vm0, %v87_v16  ;;  %v930_v37 = vpop.f32.mrb[21].mxu1  ;;  %5404 = vmatmul.mubr.msk.f32.gmra.mrb[126].mxu1 %vm160_vm0, %v87_v16  ;;  %v6277_v46 = vmax.f32 %v928_v25, 0.0 }
 0x102   :  { %v6269_v43 = vmax.f32 %v481_v33, 0.0  ;;  %2896 = vmin.xlane.f32.xlu0 %v2895_v28  ;;  %1763 = vmatprep.mubr.f32.mxu0 %v11028_v5  ;;  %v2899_v45 = vmin.f32 %v2898_v29, %v6258_v21  ;;  %v6286_v2 = vmax.f32 %v930_v37, 0.0 }
 0x103   :  { %11684 = vst [vmem:[#allocation51_spill] sm:$0xff] %v6263_v32  ;;  %2212 = vmatprep.mubr.f32.mxu1 %v11028_v5  ;;  %11687 = vst [vmem:[#allocation54_spill] sm:$0xff] %v6277_v46 }
 0x104   :  { %11686 = vst [vmem:[#allocation53_spill] sm:$0xff] %v6269_v43  ;;  %v485_v49 = vpop.f32.mrb[22].mxu0  ;;  %v934_v52 = vpop.f32.mrb[22].mxu1  ;;  %v2900_v56 = vmin.f32 %v2899_v45, %v6267_v40  ;;  %v2903_v57 = vmin.f32 %v6263_v32, %v6269_v43  ;;  %11689 = vst [vmem:[#allocation56_spill] sm:$0xff] %v6286_v2 }
 0x105   :  { %v6282_v60 = vmax.f32 %v485_v49, 0.0  ;;  %v487_v61 = vpop.f32.mrb[23].mxu0  ;;  %v936_v0 = vpop.f32.mrb[23].mxu1  ;;  %5405 = vmatmul.mubr.msk.f32.vlgmr.msra.gmra.mrb[128].mxu0 %vm160_vm0, %v88_v44  ;;  %5469 = vmatmul.mubr.msk.f32.vlgmr.msra.gmra.mrb[128].mxu1 %vm160_vm0, %v88_v44  ;;  %v6296_v20 = vmax.f32 %v934_v52, 0.0  ;;  %v90_v52 = vld [vmem:[%s11021_s1 + $0x10] sm:$0xff] }
 0x106   :  { %v6288_v8 = vmax.f32 %v487_v61, 0.0  ;;  %2901 = vmin.xlane.f32.xlu1 %v2900_v56  ;;  %1769 = vmatprep.mubr.f32.mxu0 %v11028_v5  ;;  %v2904_v16 = vmin.f32 %v2903_v57, %v6277_v46  ;;  %v6305_v45 = vmax.f32 %v936_v0, 0.0 }
 0x107   :  { %11688 = vst [vmem:[#allocation55_spill] sm:$0xff] %v6282_v60  ;;  %2218 = vmatprep.mubr.f32.mxu1 %v11028_v5  ;;  %11691 = vst [vmem:[#allocation58_spill] sm:$0xff] %v6296_v20 }
 0x108   :  { %11690 = vst [vmem:[#allocation57_spill] sm:$0xff] %v6288_v8  ;;  %v491_v24 = vpop.f32.mrb[24].mxu0  ;;  %v940_v25 = vpop.f32.mrb[24].mxu1  ;;  %v2905_v28 = vmin.f32 %v2904_v16, %v6286_v2  ;;  %v2908_v29 = vmin.f32 %v6282_v60, %v6288_v8  ;;  %11693 = vst [vmem:[#allocation60_spill] sm:$0xff] %v6305_v45 }
 0x109   :  { %v6301_v33 = vmax.f32 %v491_v24, 0.0  ;;  %v493_v37 = vpop.f32.mrb[25].mxu0  ;;  %v942_v44 = vpop.f32.mrb[25].mxu1  ;;  %5406 = vmatmul.mubr.msk.f32.gmra.mrb[130].mxu0 %vm160_vm0, %v89_v9  ;;  %5470 = vmatmul.mubr.msk.f32.gmra.mrb[130].mxu1 %vm160_vm0, %v89_v9  ;;  %v6315_v57 = vmax.f32 %v940_v25, 0.0  ;;  %v11699_v25 = vmov 0.0  }
 0x10a   :  { %v6307_v49 = vmax.f32 %v493_v37, 0.0  ;;  %2906 = vmin.xlane.f32.xlu0 %v2905_v28  ;;  %1775 = vmatprep.mubr.f32.mxu0 %v11028_v5  ;;  %v2909_v56 = vmin.f32 %v2908_v29, %v6296_v20  ;;  %v6324_v29 = vmax.f32 %v942_v44, 0.0 }
 0x10b   :  { %11692 = vst [vmem:[#allocation59_spill] sm:$0xff] %v6301_v33  ;;  %2224 = vmatprep.mubr.f32.mxu1 %v11028_v5  ;;  %11695 = vst [vmem:[#allocation62_spill] sm:$0xff] %v6315_v57 }
 0x10c   :  { %11694 = vst [vmem:[#allocation61_spill] sm:$0xff] %v6307_v49  ;;  %v497_v61 = vpop.f32.mrb[26].mxu0  ;;  %v946_v16 = vpop.f32.mrb[26].mxu1  ;;  %v2910_v0 = vmin.f32 %v2909_v56, %v6305_v45  ;;  %v2913_v9 = vmin.f32 %v6301_v33, %v6307_v49  ;;  %11697 = vst [vmem:[#allocation64_spill] sm:$0xff] %v6324_v29  ;;  %v91_v56 = vld [vmem:[%s11021_s1 + $0x18] sm:$0xff] }
 0x10d   :  { %v6320_v24 = vmax.f32 %v497_v61, 0.0  ;;  %v499_v28 = vpop.f32.mrb[27].mxu0  ;;  %v948_v37 = vpop.f32.mrb[27].mxu1  ;;  %5407 = vmatmul.mubr.msk.f32.gmra.mrb[132].mxu0 %vm160_vm0, %v90_v52  ;;  %5471 = vmatmul.mubr.msk.f32.gmra.mrb[132].mxu1 %vm160_vm0, %v90_v52  ;;  %v6334_v49 = vmax.f32 %v946_v16, 0.0  ;;  %v92_v16 = vld [vmem:[%s11021_s1 + $0x20] sm:$0xff] }
 0x10e   :  { %v6326_v5 = vmax.f32 %v499_v28, 0.0  ;;  %2911 = vmin.xlane.f32.xlu1 %v2910_v0  ;;  %1781 = vmatprep.mubr.f32.mxu0 %v11699_v25  ;;  %v2914_v61 = vmin.f32 %v2913_v9, %v6315_v57  ;;  %v6343_v9 = vmax.f32 %v948_v37, 0.0 }
 0x10f   :  { %11696 = vst [vmem:[#allocation63_spill] sm:$0xff] %v6320_v24  ;;  %2230 = vmatprep.mubr.f32.mxu1 %v11699_v25  ;;  %11700 = vst [vmem:[#allocation66_spill] sm:$0xff] %v6334_v49 }
 0x110   :  { %11698 = vst [vmem:[#allocation65_spill] sm:$0xff] %v6326_v5  ;;  %v503_v33 = vpop.f32.mrb[28].mxu0  ;;  %v952_v45 = vpop.f32.mrb[28].mxu1  ;;  %v2915_v44 = vmin.f32 %v2914_v61, %v6324_v29  ;;  %v2918_v52 = vmin.f32 %v6320_v24, %v6326_v5  ;;  %11702 = vst [vmem:[#allocation68_spill] sm:$0xff] %v6343_v9 }
 0x111   :  { %v6339_v0 = vmax.f32 %v503_v33, 0.0  ;;  %v505_v28 = vpop.f32.mrb[29].mxu0  ;;  %v954_v8 = vpop.f32.mrb[29].mxu1  ;;  %5408 = vmatmul.mubr.msk.f32.gmra.mrb[134].mxu0 %vm160_vm0, %v91_v56  ;;  %5472 = vmatmul.mubr.msk.f32.gmra.mrb[134].mxu1 %vm160_vm0, %v91_v56  ;;  %v6353_v61 = vmax.f32 %v952_v45, 0.0  ;;  %v93_v45 = vld [vmem:[%s11021_s1 + $0x28] sm:$0xff] }
 0x112   :  { %v6345_v57 = vmax.f32 %v505_v28, 0.0  ;;  %2916 = vmin.xlane.f32.xlu0 %v2915_v44  ;;  %1787 = vmatprep.mubr.f32.mxu0 %v11699_v25  ;;  %v2919_v33 = vmin.f32 %v2918_v52, %v6334_v49  ;;  %v6362_v52 = vmax.f32 %v954_v8, 0.0 }
 0x113   :  { %11701 = vst [vmem:[#allocation67_spill] sm:$0xff] %v6339_v0  ;;  %2236 = vmatprep.mubr.f32.mxu1 %v11699_v25  ;;  %11704 = vst [vmem:[#allocation70_spill] sm:$0xff] %v6353_v61 }
 0x114   :  { %11703 = vst [vmem:[#allocation69_spill] sm:$0xff] %v6345_v57  ;;  %v509_v5 = vpop.f32.mrb[30].mxu0  ;;  %v958_v24 = vpop.f32.mrb[30].mxu1  ;;  %v2920_v37 = vmin.f32 %v2919_v33, %v6343_v9  ;;  %v2923_v56 = vmin.f32 %v6339_v0, %v6345_v57  ;;  %11706 = vst [vmem:[#allocation72_spill] sm:$0xff] %v6362_v52 }
 0x115   :  { %v6358_v44 = vmax.f32 %v509_v5, 0.0  ;;  %v511_v28 = vpop.f32.mrb[31].mxu0  ;;  %v960_v29 = vpop.f32.mrb[31].mxu1  ;;  %5409 = vmatmul.mubr.msk.f32.gmra.mrb[136].mxu0 %vm160_vm0, %v92_v16  ;;  %5473 = vmatmul.mubr.msk.f32.gmra.mrb[136].mxu1 %vm160_vm0, %v92_v16  ;;  %v6372_v33 = vmax.f32 %v958_v24, 0.0  ;;  %v94_v24 = vld [vmem:[%s11021_s1 + $0x30] sm:$0xff] }
 0x116   :  { %v6364_v49 = vmax.f32 %v511_v28, 0.0  ;;  %2921 = vmin.xlane.f32.xlu1 %v2920_v37  ;;  %1793 = vmatprep.mubr.f32.mxu0 %v11699_v25  ;;  %v2924_v5 = vmin.f32 %v2923_v56, %v6353_v61  ;;  %v6381_v56 = vmax.f32 %v960_v29, 0.0 }
 0x117   :  { %11705 = vst [vmem:[#allocation71_spill] sm:$0xff] %v6358_v44  ;;  %2242 = vmatprep.mubr.f32.mxu1 %v11699_v25  ;;  %11708 = vst [vmem:[#allocation74_spill] sm:$0xff] %v6372_v33 }
 0x118   :  { %11707 = vst [vmem:[#allocation73_spill] sm:$0xff] %v6364_v49  ;;  %v515_v57 = vpop.f32.mrb[32].mxu0  ;;  %v964_v0 = vpop.f32.mrb[32].mxu1  ;;  %v2925_v8 = vmin.f32 %v2924_v5, %v6362_v52  ;;  %v2928_v16 = vmin.f32 %v6358_v44, %v6364_v49  ;;  %11710 = vst [vmem:[#allocation76_spill] sm:$0xff] %v6381_v56 }
 0x119   :  { %v6377_v37 = vmax.f32 %v515_v57, 0.0  ;;  %v517_v28 = vpop.f32.mrb[33].mxu0  ;;  %v966_v9 = vpop.f32.mrb[33].mxu1  ;;  %5410 = vmatmul.mubr.msk.f32.gmra.mrb[138].mxu0 %vm160_vm0, %v93_v45  ;;  %5474 = vmatmul.mubr.msk.f32.gmra.mrb[138].mxu1 %vm160_vm0, %v93_v45  ;;  %v6391_v5 = vmax.f32 %v964_v0, 0.0  ;;  %v95_v0 = vld [vmem:[%s11021_s1 + $0x38] sm:$0xff] }
 0x11a   :  { %v6383_v61 = vmax.f32 %v517_v28, 0.0  ;;  %2926 = vmin.xlane.f32.xlu0 %v2925_v8  ;;  %1799 = vmatprep.mubr.f32.mxu0 %v11699_v25  ;;  %v2929_v57 = vmin.f32 %v2928_v16, %v6372_v33  ;;  %v6400_v16 = vmax.f32 %v966_v9, 0.0 }
 0x11b   :  { %11709 = vst [vmem:[#allocation75_spill] sm:$0xff] %v6377_v37  ;;  %2248 = vmatprep.mubr.f32.mxu1 %v11699_v25  ;;  %11712 = vst [vmem:[#allocation78_spill] sm:$0xff] %v6391_v5 }
 0x11c   :  { %11711 = vst [vmem:[#allocation77_spill] sm:$0xff] %v6383_v61  ;;  %v521_v49 = vpop.f32.mrb[34].mxu0  ;;  %v970_v44 = vpop.f32.mrb[34].mxu1  ;;  %v2930_v29 = vmin.f32 %v2929_v57, %v6381_v56  ;;  %v2933_v45 = vmin.f32 %v6377_v37, %v6383_v61  ;;  %11714 = vst [vmem:[#allocation80_spill] sm:$0xff] %v6400_v16 }
 0x11d   :  { %v6396_v8 = vmax.f32 %v521_v49, 0.0  ;;  %v523_v28 = vpop.f32.mrb[35].mxu0  ;;  %v972_v52 = vpop.f32.mrb[35].mxu1  ;;  %5411 = vmatmul.mubr.msk.f32.gmra.mrb[140].mxu0 %vm160_vm0, %v94_v24  ;;  %5475 = vmatmul.mubr.msk.f32.gmra.mrb[140].mxu1 %vm160_vm0, %v94_v24  ;;  %v6410_v57 = vmax.f32 %v970_v44, 0.0  ;;  %v96_v44 = vld [vmem:[%s11021_s1 + $0x40] sm:$0xff] }
 0x11e   :  { %v6402_v33 = vmax.f32 %v523_v28, 0.0  ;;  %2931 = vmin.xlane.f32.xlu1 %v2930_v29  ;;  %1805 = vmatprep.mubr.f32.mxu0 %v11699_v25  ;;  %v2934_v49 = vmin.f32 %v2933_v45, %v6391_v5  ;;  %v6419_v45 = vmax.f32 %v972_v52, 0.0 }
 0x11f   :  { %11713 = vst [vmem:[#allocation79_spill] sm:$0xff] %v6396_v8  ;;  %2254 = vmatprep.mubr.f32.mxu1 %v11699_v25  ;;  %11716 = vst [vmem:[#allocation82_spill] sm:$0xff] %v6410_v57 }
 0x120   :  { %11715 = vst [vmem:[#allocation81_spill] sm:$0xff] %v6402_v33  ;;  %v527_v61 = vpop.f32.mrb[36].mxu0  ;;  %v976_v37 = vpop.f32.mrb[36].mxu1  ;;  %v2935_v9 = vmin.f32 %v2934_v49, %v6400_v16  ;;  %v2938_v24 = vmin.f32 %v6396_v8, %v6402_v33  ;;  %11718 = vst [vmem:[#allocation84_spill] sm:$0xff] %v6419_v45 }
 0x121   :  { %v6415_v29 = vmax.f32 %v527_v61, 0.0  ;;  %v529_v28 = vpop.f32.mrb[37].mxu0  ;;  %v978_v56 = vpop.f32.mrb[37].mxu1  ;;  %5412 = vmatmul.mubr.msk.f32.gmra.mrb[142].mxu0 %vm160_vm0, %v95_v0  ;;  %5476 = vmatmul.mubr.msk.f32.gmra.mrb[142].mxu1 %vm160_vm0, %v95_v0  ;;  %v6429_v49 = vmax.f32 %v976_v37, 0.0  ;;  %v97_v37 = vld [vmem:[%s11021_s1 + $0x48] sm:$0xff] }
 0x122   :  { %v6421_v5 = vmax.f32 %v529_v28, 0.0  ;;  %2936 = vmin.xlane.f32.xlu0 %v2935_v9  ;;  %1811 = vmatprep.mubr.f32.mxu0 %v11699_v25  ;;  %v2939_v61 = vmin.f32 %v2938_v24, %v6410_v57  ;;  %v6438_v24 = vmax.f32 %v978_v56, 0.0 }
 0x123   :  { %11717 = vst [vmem:[#allocation83_spill] sm:$0xff] %v6415_v29  ;;  %2260 = vmatprep.mubr.f32.mxu1 %v11699_v25  ;;  %11720 = vst [vmem:[#allocation86_spill] sm:$0xff] %v6429_v49 }
 0x124   :  { %11719 = vst [vmem:[#allocation85_spill] sm:$0xff] %v6421_v5  ;;  %v533_v33 = vpop.f32.mrb[38].mxu0  ;;  %v982_v8 = vpop.f32.mrb[38].mxu1  ;;  %v2940_v52 = vmin.f32 %v2939_v61, %v6419_v45  ;;  %v2943_v0 = vmin.f32 %v6415_v29, %v6421_v5  ;;  %11722 = vst [vmem:[#allocation88_spill] sm:$0xff] %v6438_v24 }
 0x125   :  { %v6434_v9 = vmax.f32 %v533_v33, 0.0  ;;  %v535_v28 = vpop.f32.mrb[39].mxu0  ;;  %v984_v16 = vpop.f32.mrb[39].mxu1  ;;  %5413 = vmatmul.mubr.msk.f32.gmra.mrb[144].mxu0 %vm160_vm0, %v96_v44  ;;  %5477 = vmatmul.mubr.msk.f32.gmra.mrb[144].mxu1 %vm160_vm0, %v96_v44  ;;  %v6448_v61 = vmax.f32 %v982_v8, 0.0  ;;  %v98_v8 = vld [vmem:[%s11021_s1 + $0x50] sm:$0xff] }
 0x126   :  { %v6440_v57 = vmax.f32 %v535_v28, 0.0  ;;  %2941 = vmin.xlane.f32.xlu1 %v2940_v52  ;;  %1817 = vmatprep.mubr.f32.mxu0 %v11699_v25  ;;  %v2944_v33 = vmin.f32 %v2943_v0, %v6429_v49  ;;  %v6457_v0 = vmax.f32 %v984_v16, 0.0 }
 0x127   :  { %11721 = vst [vmem:[#allocation87_spill] sm:$0xff] %v6434_v9  ;;  %2266 = vmatprep.mubr.f32.mxu1 %v11699_v25  ;;  %11724 = vst [vmem:[#allocation90_spill] sm:$0xff] %v6448_v61 }
 0x128   :  { %11723 = vst [vmem:[#allocation89_spill] sm:$0xff] %v6440_v57  ;;  %v539_v5 = vpop.f32.mrb[40].mxu0  ;;  %v988_v29 = vpop.f32.mrb[40].mxu1  ;;  %v2945_v56 = vmin.f32 %v2944_v33, %v6438_v24  ;;  %v2948_v44 = vmin.f32 %v6434_v9, %v6440_v57  ;;  %11726 = vst [vmem:[#allocation92_spill] sm:$0xff] %v6457_v0 }
 0x129   :  { %v6453_v52 = vmax.f32 %v539_v5, 0.0  ;;  %v541_v28 = vpop.f32.mrb[41].mxu0  ;;  %v990_v45 = vpop.f32.mrb[41].mxu1  ;;  %5414 = vmatmul.mubr.msk.f32.gmra.mrb[146].mxu0 %vm160_vm0, %v97_v37  ;;  %5478 = vmatmul.mubr.msk.f32.gmra.mrb[146].mxu1 %vm160_vm0, %v97_v37  ;;  %v6467_v33 = vmax.f32 %v988_v29, 0.0  ;;  %v99_v29 = vld [vmem:[%s11021_s1 + $0x58] sm:$0xff] }
 0x12a   :  { %v6459_v49 = vmax.f32 %v541_v28, 0.0  ;;  %2946 = vmin.xlane.f32.xlu0 %v2945_v56  ;;  %1823 = vmatprep.mubr.f32.mxu0 %v11699_v25  ;;  %v2949_v5 = vmin.f32 %v2948_v44, %v6448_v61  ;;  %v6476_v44 = vmax.f32 %v990_v45, 0.0 }
 0x12b   :  { %11725 = vst [vmem:[#allocation91_spill] sm:$0xff] %v6453_v52  ;;  %2272 = vmatprep.mubr.f32.mxu1 %v11699_v25  ;;  %11728 = vst [vmem:[#allocation94_spill] sm:$0xff] %v6467_v33 }
 0x12c   :  { %11727 = vst [vmem:[#allocation93_spill] sm:$0xff] %v6459_v49  ;;  %v545_v57 = vpop.f32.mrb[42].mxu0  ;;  %v994_v9 = vpop.f32.mrb[42].mxu1  ;;  %v2950_v16 = vmin.f32 %v2949_v5, %v6457_v0  ;;  %v2953_v37 = vmin.f32 %v6453_v52, %v6459_v49  ;;  %11730 = vst [vmem:[#allocation96_spill] sm:$0xff] %v6476_v44 }
 0x12d   :  { %v6472_v56 = vmax.f32 %v545_v57, 0.0  ;;  %v547_v28 = vpop.f32.mrb[43].mxu0  ;;  %v996_v24 = vpop.f32.mrb[43].mxu1  ;;  %5415 = vmatmul.mubr.msk.f32.gmra.mrb[148].mxu0 %vm160_vm0, %v98_v8  ;;  %5479 = vmatmul.mubr.msk.f32.gmra.mrb[148].mxu1 %vm160_vm0, %v98_v8  ;;  %v6486_v5 = vmax.f32 %v994_v9, 0.0  ;;  %v100_v9 = vld [vmem:[%s11021_s1 + $0x60] sm:$0xff] }
 0x12e   :  { %v6478_v61 = vmax.f32 %v547_v28, 0.0  ;;  %2951 = vmin.xlane.f32.xlu1 %v2950_v16  ;;  %1829 = vmatprep.mubr.f32.mxu0 %v11699_v25  ;;  %v2954_v57 = vmin.f32 %v2953_v37, %v6467_v33  ;;  %v6495_v37 = vmax.f32 %v996_v24, 0.0 }
 0x12f   :  { %11729 = vst [vmem:[#allocation95_spill] sm:$0xff] %v6472_v56  ;;  %2278 = vmatprep.mubr.f32.mxu1 %v11699_v25  ;;  %11732 = vst [vmem:[#allocation98_spill] sm:$0xff] %v6486_v5 }
 0x130   :  { %11731 = vst [vmem:[#allocation97_spill] sm:$0xff] %v6478_v61  ;;  %v551_v49 = vpop.f32.mrb[44].mxu0  ;;  %v1000_v52 = vpop.f32.mrb[44].mxu1  ;;  %v2955_v45 = vmin.f32 %v2954_v57, %v6476_v44  ;;  %v2958_v8 = vmin.f32 %v6472_v56, %v6478_v61  ;;  %11734 = vst [vmem:[#allocation100_spill] sm:$0xff] %v6495_v37 }
 0x131   :  { %v6491_v16 = vmax.f32 %v551_v49, 0.0  ;;  %v553_v28 = vpop.f32.mrb[45].mxu0  ;;  %v1002_v0 = vpop.f32.mrb[45].mxu1  ;;  %5416 = vmatmul.mubr.msk.f32.gmra.mrb[150].mxu0 %vm160_vm0, %v99_v29  ;;  %5480 = vmatmul.mubr.msk.f32.gmra.mrb[150].mxu1 %vm160_vm0, %v99_v29  ;;  %v6505_v57 = vmax.f32 %v1000_v52, 0.0  ;;  %v101_v52 = vld [vmem:[%s11021_s1 + $0x68] sm:$0xff] }
 0x132   :  { %v6497_v33 = vmax.f32 %v553_v28, 0.0  ;;  %2956 = vmin.xlane.f32.xlu0 %v2955_v45  ;;  %1835 = vmatprep.mubr.f32.mxu0 %v11699_v25  ;;  %v2959_v49 = vmin.f32 %v2958_v8, %v6486_v5  ;;  %v6514_v8 = vmax.f32 %v1002_v0, 0.0 }
 0x133   :  { %11733 = vst [vmem:[#allocation99_spill] sm:$0xff] %v6491_v16  ;;  %2284 = vmatprep.mubr.f32.mxu1 %v11699_v25  ;;  %11736 = vst [vmem:[#allocation102_spill] sm:$0xff] %v6505_v57 }
 0x134   :  { %11735 = vst [vmem:[#allocation101_spill] sm:$0xff] %v6497_v33  ;;  %v557_v61 = vpop.f32.mrb[46].mxu0  ;;  %v1006_v56 = vpop.f32.mrb[46].mxu1  ;;  %v2960_v24 = vmin.f32 %v2959_v49, %v6495_v37  ;;  %v2963_v29 = vmin.f32 %v6491_v16, %v6497_v33  ;;  %11738 = vst [vmem:[#allocation104_spill] sm:$0xff] %v6514_v8 }
 0x135   :  { %v6510_v45 = vmax.f32 %v557_v61, 0.0  ;;  %v559_v28 = vpop.f32.mrb[47].mxu0  ;;  %v1008_v44 = vpop.f32.mrb[47].mxu1  ;;  %5417 = vmatmul.mubr.msk.f32.gmra.mrb[152].mxu0 %vm160_vm0, %v100_v9  ;;  %5481 = vmatmul.mubr.msk.f32.gmra.mrb[152].mxu1 %vm160_vm0, %v100_v9  ;;  %v6524_v49 = vmax.f32 %v1006_v56, 0.0  ;;  %v102_v56 = vld [vmem:[%s11021_s1 + $0x70] sm:$0xff] }
 0x136   :  { %v6516_v5 = vmax.f32 %v559_v28, 0.0  ;;  %2961 = vmin.xlane.f32.xlu1 %v2960_v24  ;;  %1841 = vmatprep.mubr.f32.mxu0 %v11699_v25  ;;  %v2964_v61 = vmin.f32 %v2963_v29, %v6505_v57  ;;  %v6533_v29 = vmax.f32 %v1008_v44, 0.0 }
 0x137   :  { %11737 = vst [vmem:[#allocation103_spill] sm:$0xff] %v6510_v45  ;;  %2290 = vmatprep.mubr.f32.mxu1 %v11699_v25  ;;  %11740 = vst [vmem:[#allocation106_spill] sm:$0xff] %v6524_v49 }
 0x138   :  { %11739 = vst [vmem:[#allocation105_spill] sm:$0xff] %v6516_v5  ;;  %v563_v33 = vpop.f32.mrb[48].mxu0  ;;  %v1012_v16 = vpop.f32.mrb[48].mxu1  ;;  %v2965_v0 = vmin.f32 %v2964_v61, %v6514_v8  ;;  %v2968_v9 = vmin.f32 %v6510_v45, %v6516_v5  ;;  %11742 = vst [vmem:[#allocation108_spill] sm:$0xff] %v6533_v29 }
 0x139   :  { %v6529_v24 = vmax.f32 %v563_v33, 0.0  ;;  %v565_v28 = vpop.f32.mrb[49].mxu0  ;;  %v1014_v37 = vpop.f32.mrb[49].mxu1  ;;  %5418 = vmatmul.mubr.msk.f32.gmra.mrb[154].mxu0 %vm160_vm0, %v101_v52  ;;  %5482 = vmatmul.mubr.msk.f32.gmra.mrb[154].mxu1 %vm160_vm0, %v101_v52  ;;  %v6543_v61 = vmax.f32 %v1012_v16, 0.0  ;;  %v103_v16 = vld [vmem:[%s11021_s1 + $0x78] sm:$0xff] }
 0x13a   :  { %v6535_v57 = vmax.f32 %v565_v28, 0.0  ;;  %2966 = vmin.xlane.f32.xlu0 %v2965_v0  ;;  %1847 = vmatprep.mubr.f32.mxu0 %v11699_v25  ;;  %v2969_v33 = vmin.f32 %v2968_v9, %v6524_v49  ;;  %v6552_v9 = vmax.f32 %v1014_v37, 0.0 }
 0x13b   :  { %11741 = vst [vmem:[#allocation107_spill] sm:$0xff] %v6529_v24  ;;  %2296 = vmatprep.mubr.f32.mxu1 %v11699_v25  ;;  %11744 = vst [vmem:[#allocation110_spill] sm:$0xff] %v6543_v61 }
 0x13c   :  { %11743 = vst [vmem:[#allocation109_spill] sm:$0xff] %v6535_v57  ;;  %v569_v5 = vpop.f32.mrb[50].mxu0  ;;  %v1018_v45 = vpop.f32.mrb[50].mxu1  ;;  %v2970_v44 = vmin.f32 %v2969_v33, %v6533_v29  ;;  %v2973_v52 = vmin.f32 %v6529_v24, %v6535_v57  ;;  %11746 = vst [vmem:[#allocation112_spill] sm:$0xff] %v6552_v9 }
 0x13d   :  { %v6548_v0 = vmax.f32 %v569_v5, 0.0  ;;  %v571_v28 = vpop.f32.mrb[51].mxu0  ;;  %v1020_v8 = vpop.f32.mrb[51].mxu1  ;;  %5419 = vmatmul.mubr.msk.f32.gmra.mrb[156].mxu0 %vm160_vm0, %v102_v56  ;;  %5483 = vmatmul.mubr.msk.f32.gmra.mrb[156].mxu1 %vm160_vm0, %v102_v56  ;;  %v6562_v33 = vmax.f32 %v1018_v45, 0.0  ;;  %v104_v45 = vld [vmem:[%s11021_s1 + $0x80] sm:$0xff] }
 0x13e   :  { %v6554_v49 = vmax.f32 %v571_v28, 0.0  ;;  %2971 = vmin.xlane.f32.xlu1 %v2970_v44  ;;  %1853 = vmatprep.mubr.f32.mxu0 %v11699_v25  ;;  %v2974_v5 = vmin.f32 %v2973_v52, %v6543_v61  ;;  %v6571_v52 = vmax.f32 %v1020_v8, 0.0 }
 0x13f   :  { %11745 = vst [vmem:[#allocation111_spill] sm:$0xff] %v6548_v0  ;;  %2302 = vmatprep.mubr.f32.mxu1 %v11699_v25  ;;  %11748 = vst [vmem:[#allocation114_spill] sm:$0xff] %v6562_v33 }
 0x140   :  { %11747 = vst [vmem:[#allocation113_spill] sm:$0xff] %v6554_v49  ;;  %v575_v57 = vpop.f32.mrb[52].mxu0  ;;  %v1024_v24 = vpop.f32.mrb[52].mxu1  ;;  %v2975_v37 = vmin.f32 %v2974_v5, %v6552_v9  ;;  %v2978_v56 = vmin.f32 %v6548_v0, %v6554_v49  ;;  %11750 = vst [vmem:[#allocation116_spill] sm:$0xff] %v6571_v52 }
 0x141   :  { %v6567_v44 = vmax.f32 %v575_v57, 0.0  ;;  %v577_v28 = vpop.f32.mrb[53].mxu0  ;;  %v1026_v29 = vpop.f32.mrb[53].mxu1  ;;  %5420 = vmatmul.mubr.msk.f32.gmra.mrb[158].mxu0 %vm160_vm0, %v103_v16  ;;  %5484 = vmatmul.mubr.msk.f32.gmra.mrb[158].mxu1 %vm160_vm0, %v103_v16  ;;  %v6581_v5 = vmax.f32 %v1024_v24, 0.0  ;;  %v105_v24 = vld [vmem:[%s11021_s1 + $0x88] sm:$0xff] }
 0x142   :  { %v6573_v61 = vmax.f32 %v577_v28, 0.0  ;;  %2976 = vmin.xlane.f32.xlu0 %v2975_v37  ;;  %1859 = vmatprep.mubr.f32.mxu0 %v11699_v25  ;;  %v2979_v57 = vmin.f32 %v2978_v56, %v6562_v33  ;;  %v6590_v56 = vmax.f32 %v1026_v29, 0.0 }
 0x143   :  { %11749 = vst [vmem:[#allocation115_spill] sm:$0xff] %v6567_v44  ;;  %2308 = vmatprep.mubr.f32.mxu1 %v11699_v25  ;;  %11752 = vst [vmem:[#allocation118_spill] sm:$0xff] %v6581_v5 }
 0x144   :  { %11751 = vst [vmem:[#allocation117_spill] sm:$0xff] %v6573_v61  ;;  %v581_v49 = vpop.f32.mrb[54].mxu0  ;;  %v1030_v0 = vpop.f32.mrb[54].mxu1  ;;  %v2980_v8 = vmin.f32 %v2979_v57, %v6571_v52  ;;  %v2983_v16 = vmin.f32 %v6567_v44, %v6573_v61  ;;  %11754 = vst [vmem:[#allocation120_spill] sm:$0xff] %v6590_v56 }
 0x145   :  { %v6586_v37 = vmax.f32 %v581_v49, 0.0  ;;  %v583_v28 = vpop.f32.mrb[55].mxu0  ;;  %v1032_v9 = vpop.f32.mrb[55].mxu1  ;;  %5421 = vmatmul.mubr.msk.f32.gmra.mrb[160].mxu0 %vm160_vm0, %v104_v45  ;;  %5485 = vmatmul.mubr.msk.f32.gmra.mrb[160].mxu1 %vm160_vm0, %v104_v45  ;;  %v6600_v57 = vmax.f32 %v1030_v0, 0.0  ;;  %v106_v0 = vld [vmem:[%s11021_s1 + $0x90] sm:$0xff] }
 0x146   :  { %v6592_v33 = vmax.f32 %v583_v28, 0.0  ;;  %2981 = vmin.xlane.f32.xlu1 %v2980_v8  ;;  %1865 = vmatprep.mubr.f32.mxu0 %v11699_v25  ;;  %v2984_v49 = vmin.f32 %v2983_v16, %v6581_v5  ;;  %v6609_v16 = vmax.f32 %v1032_v9, 0.0 }
 0x147   :  { %11753 = vst [vmem:[#allocation119_spill] sm:$0xff] %v6586_v37  ;;  %2314 = vmatprep.mubr.f32.mxu1 %v11699_v25  ;;  %11756 = vst [vmem:[#allocation122_spill] sm:$0xff] %v6600_v57 }
 0x148   :  { %11755 = vst [vmem:[#allocation121_spill] sm:$0xff] %v6592_v33  ;;  %v587_v61 = vpop.f32.mrb[56].mxu0  ;;  %v1036_v44 = vpop.f32.mrb[56].mxu1  ;;  %v2985_v29 = vmin.f32 %v2984_v49, %v6590_v56  ;;  %v2988_v45 = vmin.f32 %v6586_v37, %v6592_v33  ;;  %11758 = vst [vmem:[#allocation124_spill] sm:$0xff] %v6609_v16 }
 0x149   :  { %v6605_v8 = vmax.f32 %v587_v61, 0.0  ;;  %v589_v28 = vpop.f32.mrb[57].mxu0  ;;  %v1038_v52 = vpop.f32.mrb[57].mxu1  ;;  %5422 = vmatmul.mubr.msk.f32.gmra.mrb[162].mxu0 %vm160_vm0, %v105_v24  ;;  %5486 = vmatmul.mubr.msk.f32.gmra.mrb[162].mxu1 %vm160_vm0, %v105_v24  ;;  %v6619_v49 = vmax.f32 %v1036_v44, 0.0  ;;  %v107_v44 = vld [vmem:[%s11021_s1 + $0x98] sm:$0xff] }
 0x14a   :  { %v6611_v5 = vmax.f32 %v589_v28, 0.0  ;;  %2986 = vmin.xlane.f32.xlu0 %v2985_v29  ;;  %1871 = vmatprep.mubr.f32.mxu0 %v11699_v25  ;;  %v2989_v61 = vmin.f32 %v2988_v45, %v6600_v57  ;;  %v6628_v45 = vmax.f32 %v1038_v52, 0.0 }
 0x14b   :  { %11757 = vst [vmem:[#allocation123_spill] sm:$0xff] %v6605_v8  ;;  %2320 = vmatprep.mubr.f32.mxu1 %v11699_v25  ;;  %11760 = vst [vmem:[#allocation126_spill] sm:$0xff] %v6619_v49 }
 0x14c   :  { %11759 = vst [vmem:[#allocation125_spill] sm:$0xff] %v6611_v5  ;;  %v593_v33 = vpop.f32.mrb[58].mxu0  ;;  %v1042_v37 = vpop.f32.mrb[58].mxu1  ;;  %v2990_v9 = vmin.f32 %v2989_v61, %v6609_v16  ;;  %v2993_v24 = vmin.f32 %v6605_v8, %v6611_v5  ;;  %11762 = vst [vmem:[#allocation128_spill] sm:$0xff] %v6628_v45 }
 0x14d   :  { %v6624_v29 = vmax.f32 %v593_v33, 0.0  ;;  %v595_v28 = vpop.f32.mrb[59].mxu0  ;;  %v1044_v56 = vpop.f32.mrb[59].mxu1  ;;  %5423 = vmatmul.mubr.msk.f32.gmra.mrb[164].mxu0 %vm160_vm0, %v106_v0  ;;  %5487 = vmatmul.mubr.msk.f32.gmra.mrb[164].mxu1 %vm160_vm0, %v106_v0  ;;  %v6638_v61 = vmax.f32 %v1042_v37, 0.0  ;;  %v4074_v37 = vmin.f32 %v6081_v4, %v6098_v15 }
 0x14e   :  { %v6630_v57 = vmax.f32 %v595_v28, 0.0  ;;  %2991 = vmin.xlane.f32.xlu1 %v2990_v9  ;;  %1877 = vmatprep.mubr.f32.mxu0 %v11699_v25  ;;  %v2994_v33 = vmin.f32 %v2993_v24, %v6619_v49  ;;  %v4005_v9 = vmin.f32 %v6077_v1, %v6092_v11  ;;  %v4143_v28 = vmin.f32 %v6083_v6, %v6106_v18 }
 0x14f   :  { %11761 = vst [vmem:[#allocation127_spill] sm:$0xff] %v6624_v29  ;;  %2326 = vmatprep.mubr.f32.mxu1 %v11699_v25  ;;  %11764 = vst [vmem:[#allocation130_spill] sm:$0xff] %v6638_v61  ;;  %v4212_v6 = vmin.f32 %v6096_v14, %v6115_v26 }
 0x150   :  { %11763 = vst [vmem:[#allocation129_spill] sm:$0xff] %v6630_v57  ;;  %v599_v5 = vpop.f32.mrb[60].mxu0  ;;  %v1048_v8 = vpop.f32.mrb[60].mxu1  ;;  %v2995_v52 = vmin.f32 %v2994_v33, %v6628_v45  ;;  %v2998_v0 = vmin.f32 %v6624_v29, %v6630_v57  ;;  %v6653_v33 = vmax.f32 %v1044_v56, 0.0  ;;  %v4144_v15 = vmin.f32 %v4143_v28, %v6125_v30 }
 0x151   :  { %v6647_v16 = vmax.f32 %v599_v5, 0.0  ;;  %v601_v24 = vpop.f32.mrb[61].mxu0  ;;  %v1050_v49 = vpop.f32.mrb[61].mxu1  ;;  %5424 = vmatmul.mubr.msk.f32.gmra.mrb[166].mxu0 %vm160_vm0, %v107_v44  ;;  %5488 = vmatmul.mubr.msk.f32.gmra.mrb[166].mxu1 %vm160_vm0, %v107_v44  ;;  %v108_v5 = vld [vmem:[%s11021_s1 + $0xa0] sm:$0xff]  ;;  %v4006_v44 = vmin.f32 %v4005_v9, %v6111_v23  ;;  %v4075_v56 = vmin.f32 %v4074_v37, %v6117_v27  ;;  %v4213_v1 = vmin.f32 %v4212_v6, %v6134_v38  ;;  %v109_v6 = vld [vmem:[%s11021_s1 + $0xa8] sm:$0xff] }
 0x152   :  { %11766 = vst [vmem:[#allocation132_spill] sm:$0xff] %v6653_v33  ;;  %v6655_v57 = vmax.f32 %v601_v24, 0.0  ;;  %2996 = vmin.xlane.f32.xlu0 %v2995_v52  ;;  %1883 = vmatprep.mubr.f32.mxu0 %v11699_v25  ;;  %v2999_v18 = vmin.f32 %v2998_v0, %v6638_v61  ;;  %v6668_v52 = vmax.f32 %v1048_v8, 0.0  ;;  %v4145_v9 = vmin.f32 %v4144_v15, %v6144_v42 }
 0x153   :  { %11765 = vst [vmem:[#allocation131_spill] sm:$0xff] %v6647_v16  ;;  %2332 = vmatprep.mubr.f32.mxu1 %v11699_v25  ;;  %v4007_v26 = vmin.f32 %v4006_v44, %v6130_v35  ;;  %v4076_v8 = vmin.f32 %v4075_v56, %v6136_v39  ;;  %v4214_v44 = vmin.f32 %v4213_v1, %v6153_v50 }
 0x154   :  { %11767 = vst [vmem:[#allocation133_spill] sm:$0xff] %v6655_v57  ;;  %11768 = vst [vmem:[#allocation134_spill] sm:$0xff] %v6668_v52  ;;  %v605_v24 = vpop.f32.mrb[62].mxu0  ;;  %v1054_v11 = vpop.f32.mrb[62].mxu1  ;;  %v3000_v4 = vmin.f32 %v2999_v18, %v6653_v33  ;;  %v3003_v0 = vmin.f32 %v6647_v16, %v6655_v57  ;;  %v6681_v18 = vmax.f32 %v1050_v49, 0.0 }
 0x155   :  { %v6676_v28 = vmax.f32 %v605_v24, 0.0  ;;  %v607_v30 = vpop.f32.mrb[63].mxu0  ;;  %v1056_v14 = vpop.f32.mrb[63].mxu1  ;;  %5425 = vmatmul.mubr.msk.f32.gmra.mrb[168].mxu0 %vm160_vm0, %v108_v5  ;;  %5489 = vmatmul.mubr.msk.f32.gmra.mrb[168].mxu1 %vm160_vm0, %v108_v5  ;;  %v4008_v24 = vmin.f32 %v4007_v26, %v6149_v47  ;;  %v4146_v5 = vmin.f32 %v4145_v9, %v6163_v54  ;;  %v6695_v49 = vmax.f32 %v1054_v11, 0.0  ;;  %v11829_v47 = vld [vmem:[#allocation88_spill] sm:$0xff] }
 0x156   :  { %11770 = vst [vmem:[#allocation136_spill] sm:$0xff] %v6681_v18  ;;  %v6683_v37 = vmax.f32 %v607_v30, 0.0  ;;  %3001 = vmin.xlane.f32.xlu1 %v3000_v4  ;;  %1889 = vmatprep.mubr.f32.mxu0 %v11699_v25  ;;  %v3004_v15 = vmin.f32 %v3003_v0, %v6668_v52  ;;  %v4077_v30 = vmin.f32 %v4076_v8, %v6155_v51  ;;  %v6708_v8 = vmax.f32 %v1056_v14, 0.0 }
 0x157   :  { %11769 = vst [vmem:[#allocation135_spill] sm:$0xff] %v6676_v28  ;;  %2338 = vmatprep.mubr.f32.mxu1 %v11699_v25  ;;  %11772 = vst [vmem:[#allocation138_spill] sm:$0xff] %v6695_v49  ;;  %v4215_v0 = vmin.f32 %v4214_v44, %v6172_v62  ;;  %v4009_v1 = vmin.f32 %v4008_v24, %v6168_v59  ;;  %v4147_v26 = vmin.f32 %v4146_v5, %v6182_v3  ;;  %v110_v44 = vld [vmem:[%s11021_s1 + $0xb0] sm:$0xff] }
 0x158   :  { %11771 = vst [vmem:[#allocation137_spill] sm:$0xff] %v6683_v37  ;;  %v611_v4 = vpop.f32.mrb[64].mxu0  ;;  %v1060_v56 = vpop.f32.mrb[64].mxu1  ;;  %v3005_v42 = vmin.f32 %v3004_v15, %v6681_v18  ;;  %v3008_v38 = vmin.f32 %v6676_v28, %v6683_v37  ;;  %v4078_v11 = vmin.f32 %v4077_v30, %v6174_v63  ;;  %11774 = vst [vmem:[#allocation140_spill] sm:$0xff] %v6708_v8 }
 0x159   :  { %v6703_v9 = vmax.f32 %v611_v4, 0.0  ;;  %v613_v54 = vpop.f32.mrb[65].mxu0  ;;  %v1062_v50 = vpop.f32.mrb[65].mxu1  ;;  %5426 = vmatmul.mubr.msk.f32.gmra.mrb[170].mxu0 %vm160_vm0, %v109_v6  ;;  %5490 = vmatmul.mubr.msk.f32.gmra.mrb[170].mxu1 %vm160_vm0, %v109_v6  ;;  %v4216_v5 = vmin.f32 %v4215_v0, %v6191_v17  ;;  %v4010_v4 = vmin.f32 %v4009_v1, %v6187_v12  ;;  %v4148_v6 = vmin.f32 %v4147_v26, %v6201_v22 }
 0x15a   :  { %v6710_v15 = vmax.f32 %v613_v54, 0.0  ;;  %3006 = vmin.xlane.f32.xlu0 %v3005_v42  ;;  %1895 = vmatprep.mubr.f32.mxu0 %v11699_v25  ;;  %v3009_v24 = vmin.f32 %v3008_v38, %v6695_v49  ;;  %v4079_v14 = vmin.f32 %v4078_v11, %v6193_v19  ;;  %v6722_v54 = vmax.f32 %v1060_v56, 0.0 }
 0x15b   :  { %11773 = vst [vmem:[#allocation139_spill] sm:$0xff] %v6703_v9  ;;  %2344 = vmatprep.mubr.f32.mxu1 %v11699_v25  ;;  %v4217_v38 = vmin.f32 %v4216_v5, %v6210_v34  ;;  %v4011_v0 = vmin.f32 %v4010_v4, %v6206_v31  ;;  %v4149_v1 = vmin.f32 %v4148_v6, %v6220_v41  ;;  %v6735_v11 = vmax.f32 %v1062_v50, 0.0  ;;  %v111_v5 = vld [vmem:[%s11021_s1 + $0xb8] sm:$0xff] }
 0x15c   :  { %11775 = vst [vmem:[#allocation141_spill] sm:$0xff] %v6710_v15  ;;  %11776 = vst [vmem:[#allocation142_spill] sm:$0xff] %v6722_v54  ;;  %v617_v42 = vpop.f32.mrb[66].mxu0  ;;  %v1066_v30 = vpop.f32.mrb[66].mxu1  ;;  %v3010_v3 = vmin.f32 %v3009_v24, %v6708_v8  ;;  %v3013_v62 = vmin.f32 %v6703_v9, %v6710_v15  ;;  %v4080_v56 = vmin.f32 %v4079_v14, %v6212_v36 }
 0x15d   :  { %v6730_v26 = vmax.f32 %v617_v42, 0.0  ;;  %v619_v22 = vpop.f32.mrb[67].mxu0  ;;  %v1068_v17 = vpop.f32.mrb[67].mxu1  ;;  %5427 = vmatmul.mubr.msk.f32.gmra.mrb[172].mxu0 %vm160_vm0, %v110_v44  ;;  %5491 = vmatmul.mubr.msk.f32.gmra.mrb[172].mxu1 %vm160_vm0, %v110_v44  ;;  %11778 = vst [vmem:[#allocation144_spill] sm:$0xff] %v6735_v11  ;;  %v4218_v6 = vmin.f32 %v4217_v38, %v6229_v53  ;;  %v4012_v42 = vmin.f32 %v4011_v0, %v6225_v48 }
 0x15e   :  { %v6737_v24 = vmax.f32 %v619_v22, 0.0  ;;  %3011 = vmin.xlane.f32.xlu1 %v3010_v3  ;;  %1901 = vmatprep.mubr.f32.mxu0 %v11699_v25  ;;  %v3014_v4 = vmin.f32 %v3013_v62, %v6722_v54  ;;  %v4150_v44 = vmin.f32 %v4149_v1, %v6239_v58  ;;  %v4081_v50 = vmin.f32 %v4080_v56, %v6231_v55 }
 0x15f   :  { %11777 = vst [vmem:[#allocation143_spill] sm:$0xff] %v6730_v26  ;;  %2350 = vmatprep.mubr.f32.mxu1 %v11699_v25  ;;  %v6749_v22 = vmax.f32 %v1066_v30, 0.0  ;;  %v4219_v62 = vmin.f32 %v4218_v6, %v6248_v10  ;;  %v4013_v38 = vmin.f32 %v4012_v42, %v6244_v7  ;;  %v6762_v56 = vmax.f32 %v1068_v17, 0.0  ;;  %v112_v6 = vld [vmem:[%s11021_s1 + $0xc0] sm:$0xff] }
 0x160   :  { %11779 = vst [vmem:[#allocation145_spill] sm:$0xff] %v6737_v24  ;;  %v623_v3 = vpop.f32.mrb[68].mxu0  ;;  %v1072_v14 = vpop.f32.mrb[68].mxu1  ;;  %v3015_v41 = vmin.f32 %v3014_v4, %v6735_v11  ;;  %v3018_v34 = vmin.f32 %v6730_v26, %v6737_v24  ;;  %v4151_v0 = vmin.f32 %v4150_v44, %v6258_v21  ;;  %v4082_v30 = vmin.f32 %v4081_v50, %v6250_v13 }
 0x161   :  { %11780 = vst [vmem:[#allocation146_spill] sm:$0xff] %v6749_v22  ;;  %v6757_v1 = vmax.f32 %v623_v3, 0.0  ;;  %v625_v58 = vpop.f32.mrb[69].mxu0  ;;  %v1074_v53 = vpop.f32.mrb[69].mxu1  ;;  %5428 = vmatmul.mubr.msk.f32.gmra.mrb[174].mxu0 %vm160_vm0, %v111_v5  ;;  %5492 = vmatmul.mubr.msk.f32.gmra.mrb[174].mxu1 %vm160_vm0, %v111_v5  ;;  %11782 = vst [vmem:[#allocation148_spill] sm:$0xff] %v6762_v56  ;;  %v4220_v44 = vmin.f32 %v4219_v62, %v6267_v40  ;;  %v4014_v3 = vmin.f32 %v4013_v38, %v6263_v32 }
 0x162   :  { %v6764_v4 = vmax.f32 %v625_v58, 0.0  ;;  %3016 = vmin.xlane.f32.xlu0 %v3015_v41  ;;  %1907 = vmatprep.mubr.f32.mxu0 %v11699_v25  ;;  %v3019_v42 = vmin.f32 %v3018_v34, %v6749_v22  ;;  %v4152_v5 = vmin.f32 %v4151_v0, %v6277_v46  ;;  %v4083_v17 = vmin.f32 %v4082_v30, %v6269_v43 }
 0x163   :  { %11781 = vst [vmem:[#allocation147_spill] sm:$0xff] %v6757_v1  ;;  %2356 = vmatprep.mubr.f32.mxu1 %v11699_v25  ;;  %v6776_v58 = vmax.f32 %v1072_v14, 0.0  ;;  %v4221_v34 = vmin.f32 %v4220_v44, %v6286_v2  ;;  %v4015_v62 = vmin.f32 %v4014_v3, %v6282_v60  ;;  %v11786_v14 = vld [vmem:[#allocation57_spill] sm:$0xff]  ;;  %v113_v44 = vld [vmem:[%s11021_s1 + $0xc8] sm:$0xff] }
 0x164   :  { %11783 = vst [vmem:[#allocation149_spill] sm:$0xff] %v6764_v4  ;;  %v629_v41 = vpop.f32.mrb[70].mxu0  ;;  %v1078_v50 = vpop.f32.mrb[70].mxu1  ;;  %v3020_v21 = vmin.f32 %v3019_v42, %v6762_v56  ;;  %v3023_v10 = vmin.f32 %v6757_v1, %v6764_v4  ;;  %v4153_v38 = vmin.f32 %v4152_v5, %v6296_v20  ;;  %v4084_v30 = vmin.f32 %v4083_v17, %v11786_v14  ;;  %v11789_v5 = vld [vmem:[#allocation60_spill] sm:$0xff]  ;;  %v11790_v20 = vld [vmem:[#allocation59_spill] sm:$0xff] }
 0x165   :  { %11784 = vst [vmem:[#allocation150_spill] sm:$0xff] %v6776_v58  ;;  %v6784_v0 = vmax.f32 %v629_v41, 0.0  ;;  %v631_v46 = vpop.f32.mrb[71].mxu0  ;;  %v1080_v40 = vpop.f32.mrb[71].mxu1  ;;  %5429 = vmatmul.mubr.msk.f32.gmra.mrb[176].mxu0 %vm160_vm0, %v112_v6  ;;  %5493 = vmatmul.mubr.msk.f32.gmra.mrb[176].mxu1 %vm160_vm0, %v112_v6  ;;  %v6789_v42 = vmax.f32 %v1074_v53, 0.0  ;;  %v4222_v41 = vmin.f32 %v4221_v34, %v11789_v5  ;;  %v4016_v2 = vmin.f32 %v4015_v62, %v11790_v20  ;;  %v11791_v6 = vld [vmem:[#allocation62_spill] sm:$0xff] }
 0x166   :  { %v6791_v43 = vmax.f32 %v631_v46, 0.0  ;;  %3021 = vmin.xlane.f32.xlu1 %v3020_v21  ;;  %1913 = vmatprep.mubr.f32.mxu0 %v11699_v25  ;;  %v3024_v3 = vmin.f32 %v3023_v10, %v6776_v58  ;;  %v4154_v60 = vmin.f32 %v4153_v38, %v11791_v6  ;;  %v11792_v53 = vld [vmem:[#allocation61_spill] sm:$0xff]  ;;  %v6803_v17 = vmax.f32 %v1078_v50, 0.0  ;;  %v11794_v10 = vld [vmem:[#allocation64_spill] sm:$0xff]  ;;  %v11795_v34 = vld [vmem:[#allocation63_spill] sm:$0xff] }
 0x167   :  { %11785 = vst [vmem:[#allocation151_spill] sm:$0xff] %v6784_v0  ;;  %11787 = vst [vmem:[#allocation152_spill] sm:$0xff] %v6789_v42  ;;  %2362 = vmatprep.mubr.f32.mxu1 %v11699_v25  ;;  %v4085_v46 = vmin.f32 %v4084_v30, %v11792_v53  ;;  %v4223_v7 = vmin.f32 %v4222_v41, %v11794_v10  ;;  %v4017_v5 = vmin.f32 %v4016_v2, %v11795_v34  ;;  %v11796_v62 = vld [vmem:[#allocation66_spill] sm:$0xff]  ;;  %v11798_v50 = vld [vmem:[#allocation65_spill] sm:$0xff] }
 0x168   :  { %11788 = vst [vmem:[#allocation153_spill] sm:$0xff] %v6791_v43  ;;  %11793 = vst [vmem:[#allocation154_spill] sm:$0xff] %v6803_v17  ;;  %v635_v21 = vpop.f32.mrb[72].mxu0  ;;  %v1084_v14 = vpop.f32.mrb[72].mxu1  ;;  %v3025_v32 = vmin.f32 %v3024_v3, %v6789_v42  ;;  %v3028_v13 = vmin.f32 %v6784_v0, %v6791_v43  ;;  %v4155_v20 = vmin.f32 %v4154_v60, %v11796_v62  ;;  %v6816_v3 = vmax.f32 %v1080_v40, 0.0  ;;  %v114_v60 = vld [vmem:[%s11021_s1 + $0xd0] sm:$0xff] }
 0x169   :  { %v6811_v38 = vmax.f32 %v635_v21, 0.0  ;;  %v637_v6 = vpop.f32.mrb[73].mxu0  ;;  %v1086_v55 = vpop.f32.mrb[73].mxu1  ;;  %5430 = vmatmul.mubr.msk.f32.gmra.mrb[178].mxu0 %vm160_vm0, %v113_v44  ;;  %5494 = vmatmul.mubr.msk.f32.gmra.mrb[178].mxu1 %vm160_vm0, %v113_v44  ;;  %v4086_v30 = vmin.f32 %v4085_v46, %v11798_v50  ;;  %v11801_v41 = vld [vmem:[#allocation68_spill] sm:$0xff]  ;;  %v11802_v62 = vld [vmem:[#allocation67_spill] sm:$0xff]  ;;  %v11803_v44 = vld [vmem:[#allocation70_spill] sm:$0xff] }
 0x16a   :  { %11799 = vst [vmem:[#allocation156_spill] sm:$0xff] %v6816_v3  ;;  %v6818_v53 = vmax.f32 %v637_v6, 0.0  ;;  %3026 = vmin.xlane.f32.xlu0 %v3025_v32  ;;  %1919 = vmatprep.mubr.f32.mxu0 %v11699_v25  ;;  %v3029_v2 = vmin.f32 %v3028_v13, %v6803_v17  ;;  %v4224_v21 = vmin.f32 %v4223_v7, %v11801_v41  ;;  %v11804_v40 = vld [vmem:[#allocation69_spill] sm:$0xff]  ;;  %v6830_v46 = vmax.f32 %v1084_v14, 0.0  ;;  %v11806_v13 = vld [vmem:[#allocation72_spill] sm:$0xff]  ;;  %v11807_v7 = vld [vmem:[#allocation71_spill] sm:$0xff] }
 0x16b   :  { %11797 = vst [vmem:[#allocation155_spill] sm:$0xff] %v6811_v38  ;;  %v4018_v10 = vmin.f32 %v4017_v5, %v11802_v62  ;;  %v4156_v34 = vmin.f32 %v4155_v20, %v11803_v44  ;;  %2368 = vmatprep.mubr.f32.mxu1 %v11699_v25  ;;  %v4087_v6 = vmin.f32 %v4086_v30, %v11804_v40  ;;  %v11808_v5 = vld [vmem:[#allocation74_spill] sm:$0xff]  ;;  %v11810_v14 = vld [vmem:[#allocation73_spill] sm:$0xff] }
 0x16c   :  { %11800 = vst [vmem:[#allocation157_spill] sm:$0xff] %v6818_v53  ;;  %11805 = vst [vmem:[#allocation158_spill] sm:$0xff] %v6830_v46  ;;  %v641_v32 = vpop.f32.mrb[74].mxu0  ;;  %v1090_v50 = vpop.f32.mrb[74].mxu1  ;;  %v3030_v48 = vmin.f32 %v3029_v2, %v6816_v3  ;;  %v3033_v36 = vmin.f32 %v6811_v38, %v6818_v53  ;;  %v4225_v31 = vmin.f32 %v4224_v21, %v11806_v13  ;;  %v6843_v2 = vmax.f32 %v1086_v55, 0.0  ;;  %v11813_v21 = vld [vmem:[#allocation76_spill] sm:$0xff] }
 0x16d   :  { %v4019_v41 = vmin.f32 %v4018_v10, %v11807_v7  ;;  %v4157_v62 = vmin.f32 %v4156_v34, %v11808_v5  ;;  %v6838_v20 = vmax.f32 %v641_v32, 0.0  ;;  %v643_v44 = vpop.f32.mrb[75].mxu0  ;;  %v1092_v19 = vpop.f32.mrb[75].mxu1  ;;  %5431 = vmatmul.mubr.msk.f32.gmra.mrb[180].mxu0 %vm160_vm0, %v114_v60  ;;  %5495 = vmatmul.mubr.msk.f32.gmra.mrb[180].mxu1 %vm160_vm0, %v114_v60  ;;  %v4088_v30 = vmin.f32 %v4087_v6, %v11810_v14  ;;  %v115_v10 = vld [vmem:[%s11021_s1 + $0xd8] sm:$0xff]  ;;  %v11814_v5 = vld [vmem:[#allocation75_spill] sm:$0xff]  ;;  %v11816_v55 = vld [vmem:[#allocation77_spill] sm:$0xff] }
 0x16e   :  { %11811 = vst [vmem:[#allocation160_spill] sm:$0xff] %v6843_v2  ;;  %v6845_v40 = vmax.f32 %v643_v44, 0.0  ;;  %3031 = vmin.xlane.f32.xlu1 %v3030_v48  ;;  %1925 = vmatprep.mubr.f32.mxu0 %v11699_v25  ;;  %v3034_v34 = vmin.f32 %v3033_v36, %v6830_v46  ;;  %v4226_v32 = vmin.f32 %v4225_v31, %v11813_v21  ;;  %v11815_v60 = vld [vmem:[#allocation78_spill] sm:$0xff]  ;;  %v6857_v6 = vmax.f32 %v1090_v50, 0.0  ;;  %v11818_v36 = vld [vmem:[#allocation80_spill] sm:$0xff]  ;;  %v11819_v31 = vld [vmem:[#allocation79_spill] sm:$0xff] }
 0x16f   :  { %11809 = vst [vmem:[#allocation159_spill] sm:$0xff] %v6838_v20  ;;  %v4020_v13 = vmin.f32 %v4019_v41, %v11814_v5  ;;  %v4158_v7 = vmin.f32 %v4157_v62, %v11815_v60  ;;  %2374 = vmatprep.mubr.f32.mxu1 %v11699_v25  ;;  %v4089_v44 = vmin.f32 %v4088_v30, %v11816_v55  ;;  %v11820_v41 = vld [vmem:[#allocation82_spill] sm:$0xff]  ;;  %v11822_v50 = vld [vmem:[#allocation81_spill] sm:$0xff] }
 0x170   :  { %11812 = vst [vmem:[#allocation161_spill] sm:$0xff] %v6845_v40  ;;  %11817 = vst [vmem:[#allocation162_spill] sm:$0xff] %v6857_v6  ;;  %v647_v48 = vpop.f32.mrb[76].mxu0  ;;  %v1096_v14 = vpop.f32.mrb[76].mxu1  ;;  %v3035_v12 = vmin.f32 %v3034_v34, %v6843_v2  ;;  %v3038_v63 = vmin.f32 %v6838_v20, %v6845_v40  ;;  %v4227_v59 = vmin.f32 %v4226_v32, %v11818_v36  ;;  %v6870_v34 = vmax.f32 %v1092_v19, 0.0  ;;  %v11825_v32 = vld [vmem:[#allocation84_spill] sm:$0xff] }
 0x171   :  { %v4021_v21 = vmin.f32 %v4020_v13, %v11819_v31  ;;  %v4159_v5 = vmin.f32 %v4158_v7, %v11820_v41  ;;  %v6865_v62 = vmax.f32 %v647_v48, 0.0  ;;  %v649_v60 = vpop.f32.mrb[77].mxu0  ;;  %v1098_v51 = vpop.f32.mrb[77].mxu1  ;;  %5432 = vmatmul.mubr.msk.f32.gmra.mrb[182].mxu0 %vm160_vm0, %v115_v10  ;;  %5496 = vmatmul.mubr.msk.f32.gmra.mrb[182].mxu1 %vm160_vm0, %v115_v10  ;;  %v4090_v30 = vmin.f32 %v4089_v44, %v11822_v50  ;;  %v116_v13 = vld [vmem:[%s11021_s1 + $0xe0] sm:$0xff]  ;;  %v11827_v44 = vld [vmem:[#allocation86_spill] sm:$0xff]  ;;  %v11828_v36 = vld [vmem:[#allocation85_spill] sm:$0xff] }
 0x172   :  { %11823 = vst [vmem:[#allocation164_spill] sm:$0xff] %v6870_v34  ;;  %v6872_v55 = vmax.f32 %v649_v60, 0.0  ;;  %3036 = vmin.xlane.f32.xlu0 %v3035_v12  ;;  %1931 = vmatprep.mubr.f32.mxu0 %v11699_v25  ;;  %v3039_v7 = vmin.f32 %v3038_v63, %v6857_v6  ;;  %v4228_v48 = vmin.f32 %v4227_v59, %v11825_v32  ;;  %v11826_v10 = vld [vmem:[#allocation83_spill] sm:$0xff]  ;;  %v6886_v35 = vmax.f32 %v1096_v14, 0.0  ;;  %v117_v14 = vld [vmem:[%s11021_s1 + $0xe8] sm:$0xff] }
 0x173   :  { %11821 = vst [vmem:[#allocation163_spill] sm:$0xff] %v6865_v62  ;;  %2380 = vmatprep.mubr.f32.mxu1 %v11699_v25  ;;  %v4022_v41 = vmin.f32 %v4021_v21, %v11826_v10  ;;  %v4160_v19 = vmin.f32 %v4159_v5, %v11827_v44  ;;  %v4091_v60 = vmin.f32 %v4090_v30, %v11828_v36  ;;  %v11832_v21 = vld [vmem:[#allocation87_spill] sm:$0xff]  ;;  %v11833_v44 = vld [vmem:[#allocation90_spill] sm:$0xff]  ;;  %v6904_v36 = vmax.f32 %v1098_v51, 0.0 }
 0x174   :  { %11824 = vst [vmem:[#allocation165_spill] sm:$0xff] %v6872_v55  ;;  %v653_v50 = vpop.f32.mrb[78].mxu0  ;;  %v1102_v12 = vpop.f32.mrb[78].mxu1  ;;  %v3040_v31 = vmin.f32 %v3039_v7, %v6870_v34  ;;  %v4229_v39 = vmin.f32 %v4228_v48, %v11829_v47  ;;  %11830 = vst [vmem:[#allocation166_spill] sm:$0xff] %v6886_v35  ;;  %v3043_v5 = vmin.f32 %v6865_v62, %v6872_v55  ;;  %v11836_v47 = vld [vmem:[#allocation92_spill] sm:$0xff] }
 0x175   :  { %v6888_v27 = vmax.f32 %v653_v50, 0.0  ;;  %v655_v63 = vpop.f32.mrb[79].mxu0  ;;  %v1104_v59 = vpop.f32.mrb[79].mxu1  ;;  %5433 = vmatmul.mubr.msk.f32.gmra.mrb[184].mxu0 %vm160_vm0, %v116_v13  ;;  %5497 = vmatmul.mubr.msk.f32.gmra.mrb[184].mxu1 %vm160_vm0, %v116_v13  ;;  %v4023_v30 = vmin.f32 %v4022_v41, %v11832_v21  ;;  %v4161_v32 = vmin.f32 %v4160_v19, %v11833_v44  ;;  %v11835_v50 = vld [vmem:[#allocation89_spill] sm:$0xff]  ;;  %11837 = vst [vmem:[#allocation169_spill] sm:$0xff] %v6904_v36  ;;  %v11838_v19 = vld [vmem:[#allocation91_spill] sm:$0xff] }
 0x176   :  { %v6896_v7 = vmax.f32 %v655_v63, 0.0  ;;  %3041 = vmin.xlane.f32.xlu1 %v3040_v31  ;;  %1937 = vmatprep.mubr.f32.mxu0 %v11699_v25  ;;  %v4092_v48 = vmin.f32 %v4091_v60, %v11835_v50  ;;  %v4230_v13 = vmin.f32 %v4229_v39, %v11836_v47  ;;  %v3044_v41 = vmin.f32 %v3043_v5, %v6886_v35  ;;  %v11839_v44 = vld [vmem:[#allocation94_spill] sm:$0xff]  ;;  %v11841_v60 = vld [vmem:[#allocation93_spill] sm:$0xff]  ;;  %v11842_v39 = vld [vmem:[#allocation96_spill] sm:$0xff] }
 0x177   :  { %11831 = vst [vmem:[#allocation167_spill] sm:$0xff] %v6888_v27  ;;  %2386 = vmatprep.mubr.f32.mxu1 %v11699_v25  ;;  %v4024_v63 = vmin.f32 %v4023_v30, %v11838_v19  ;;  %v4162_v31 = vmin.f32 %v4161_v32, %v11839_v44  ;;  %v6910_v21 = vmax.f32 %v1102_v12, 0.0  ;;  %v11844_v12 = vld [vmem:[#allocation95_spill] sm:$0xff]  ;;  %v6922_v30 = vmax.f32 %v1104_v59, 0.0 }
 0x178   :  { %11834 = vst [vmem:[#allocation168_spill] sm:$0xff] %v6896_v7  ;;  %v659_v10 = vpop.f32.mrb[80].mxu0  ;;  %v1108_v23 = vpop.f32.mrb[80].mxu1  ;;  %v3048_v55 = vmin.f32 %v6888_v27, %v6896_v7  ;;  %v4093_v50 = vmin.f32 %v4092_v48, %v11841_v60  ;;  %v4231_v51 = vmin.f32 %v4230_v13, %v11842_v39  ;;  %v3045_v32 = vmin.f32 %v3044_v41, %v6904_v36  ;;  %v11847_v13 = vld [vmem:[#allocation98_spill] sm:$0xff]  ;;  %v11848_v41 = vld [vmem:[#allocation97_spill] sm:$0xff] }
 0x179   :  { %11840 = vst [vmem:[#allocation170_spill] sm:$0xff] %v6910_v21  ;;  %v6916_v47 = vmax.f32 %v659_v10, 0.0  ;;  %v661_v62 = vpop.f32.mrb[81].mxu0  ;;  %v1110_v34 = vpop.f32.mrb[81].mxu1  ;;  %5434 = vmatmul.mubr.msk.f32.gmra.mrb[186].mxu0 %vm160_vm0, %v117_v14  ;;  %5498 = vmatmul.mubr.msk.f32.gmra.mrb[186].mxu1 %vm160_vm0, %v117_v14  ;;  %v4025_v5 = vmin.f32 %v4024_v63, %v11844_v12  ;;  %11845 = vst [vmem:[#allocation172_spill] sm:$0xff] %v6922_v30  ;;  %v118_v10 = vld [vmem:[%s11021_s1 + $0xf0] sm:$0xff]  ;;  %v4163_v14 = vmin.f32 %v4162_v31, %v11847_v13 }
 0x17a   :  { %v6924_v44 = vmax.f32 %v661_v62, 0.0  ;;  %1943 = vmatprep.mubr.f32.mxu0 %v11699_v25  ;;  %2392 = vmatprep.mubr.f32.mxu1 %v11699_v25  ;;  %v3049_v48 = vmin.f32 %v3048_v55, %v6910_v21  ;;  %v4094_v39 = vmin.f32 %v4093_v50, %v11848_v41  ;;  %v11849_v63 = vld [vmem:[#allocation100_spill] sm:$0xff]  ;;  %v11850_v12 = vld [vmem:[#allocation99_spill] sm:$0xff]  ;;  %v11851_v27 = vld [vmem:[#allocation102_spill] sm:$0xff]  ;;  %v6938_v35 = vmax.f32 %v1108_v23, 0.0 }
 0x17b   :  { %11843 = vst [vmem:[#allocation171_spill] sm:$0xff] %v6916_v47  ;;  %3046 = vmin.xlane.f32.xlu0 %v3045_v32  ;;  %v4232_v59 = vmin.f32 %v4231_v51, %v11849_v63  ;;  %v4026_v62 = vmin.f32 %v4025_v5, %v11850_v12  ;;  %v4164_v36 = vmin.f32 %v4163_v14, %v11851_v27  ;;  %v11854_v31 = vld [vmem:[#allocation101_spill] sm:$0xff]  ;;  %v11855_v32 = vld [vmem:[#allocation104_spill] sm:$0xff]  ;;  %v119_v23 = vld [vmem:[%s11021_s1 + $0xf8] sm:$0xff]  ;;  %v6956_v63 = vmax.f32 %v1110_v34, 0.0 }
 0x17c   :  { %11846 = vst [vmem:[#allocation173_spill] sm:$0xff] %v6924_v44  ;;  %v665_v60 = vpop.f32.mrb[82].mxu0  ;;  %v1114_v19 = vpop.f32.mrb[82].mxu1  ;;  %v3050_v7 = vmin.f32 %v3049_v48, %v6922_v30  ;;  %11852 = vst [vmem:[#allocation174_spill] sm:$0xff] %v6938_v35  ;;  %v3053_v50 = vmin.f32 %v6916_v47, %v6924_v44  ;;  %v4095_v51 = vmin.f32 %v4094_v39, %v11854_v31  ;;  %v11858_v27 = vld [vmem:[#allocation106_spill] sm:$0xff] }
 0x17d   :  { %v6940_v40 = vmax.f32 %v665_v60, 0.0  ;;  %v667_v55 = vpop.f32.mrb[83].mxu0  ;;  %v1116_v21 = vpop.f32.mrb[83].mxu1  ;;  %5435 = vmatmul.mubr.msk.f32.gmra.mrb[188].mxu0 %vm160_vm0, %v118_v10  ;;  %5499 = vmatmul.mubr.msk.f32.gmra.mrb[188].mxu1 %vm160_vm0, %v118_v10  ;;  %v4233_v5 = vmin.f32 %v4232_v59, %v11855_v32  ;;  %v11857_v60 = vld [vmem:[#allocation103_spill] sm:$0xff]  ;;  %v4165_v10 = vmin.f32 %v4164_v36, %v11858_v27  ;;  %11859 = vst [vmem:[#allocation177_spill] sm:$0xff] %v6956_v63  ;;  %v11860_v59 = vld [vmem:[#allocation105_spill] sm:$0xff] }
 0x17e   :  { %v6948_v48 = vmax.f32 %v667_v55, 0.0  ;;  %3051 = vmin.xlane.f32.xlu1 %v3050_v7  ;;  %1949 = vmatprep.mubr.f32.mxu0 %v11699_v25  ;;  %v4027_v14 = vmin.f32 %v4026_v62, %v11857_v60  ;;  %v3054_v39 = vmin.f32 %v3053_v50, %v6938_v35  ;;  %v4096_v55 = vmin.f32 %v4095_v51, %v11860_v59  ;;  %v11861_v32 = vld [vmem:[#allocation108_spill] sm:$0xff]  ;;  %v11863_v62 = vld [vmem:[#allocation107_spill] sm:$0xff]  ;;  %v11864_v36 = vld [vmem:[#allocation110_spill] sm:$0xff] }
 0x17f   :  { %11853 = vst [vmem:[#allocation175_spill] sm:$0xff] %v6940_v40  ;;  %2398 = vmatprep.mubr.f32.mxu1 %v11699_v25  ;;  %v4234_v7 = vmin.f32 %v4233_v5, %v11861_v32  ;;  %v6962_v31 = vmax.f32 %v1114_v19, 0.0  ;;  %v4166_v34 = vmin.f32 %v4165_v10, %v11864_v36  ;;  %v11866_v50 = vld [vmem:[#allocation109_spill] sm:$0xff]  ;;  %v6974_v5 = vmax.f32 %v1116_v21, 0.0  ;;  %v11869_v10 = vld [vmem:[#allocation112_spill] sm:$0xff] }
 0x180   :  { %11856 = vst [vmem:[#allocation176_spill] sm:$0xff] %v6948_v48  ;;  %v671_v13 = vpop.f32.mrb[84].mxu0  ;;  %v1120_v12 = vpop.f32.mrb[84].mxu1  ;;  %v3058_v41 = vmin.f32 %v6940_v40, %v6948_v48  ;;  %v4028_v60 = vmin.f32 %v4027_v14, %v11863_v62  ;;  %v3055_v19 = vmin.f32 %v3054_v39, %v6956_v63  ;;  %v4097_v51 = vmin.f32 %v4096_v55, %v11866_v50  ;;  %v11870_v39 = vld [vmem:[#allocation111_spill] sm:$0xff]  ;;  %v11871_v55 = vld [vmem:[#allocation114_spill] sm:$0xff]  ;;  %v11872_v50 = vld [vmem:[#allocation113_spill] sm:$0xff] }
 0x181   :  { %11862 = vst [vmem:[#allocation178_spill] sm:$0xff] %v6962_v31  ;;  %v6968_v27 = vmax.f32 %v671_v13, 0.0  ;;  %v673_v44 = vpop.f32.mrb[85].mxu0  ;;  %v1122_v47 = vpop.f32.mrb[85].mxu1  ;;  %5436 = vmatmul.mubr.msk.f32.gmra.mrb[190].mxu0 %vm160_vm0, %v119_v23  ;;  %5500 = vmatmul.mubr.msk.f32.gmra.mrb[190].mxu1 %vm160_vm0, %v119_v23  ;;  %11867 = vst [vmem:[#allocation180_spill] sm:$0xff] %v6974_v5  ;;  %v120_v13 = vld [vmem:[%s11021_s1 + $0x100] sm:$0xff]  ;;  %v4235_v23 = vmin.f32 %v4234_v7, %v11869_v10  ;;  %v4167_v21 = vmin.f32 %v4166_v34, %v11871_v55 }
 0x182   :  { %v6976_v32 = vmax.f32 %v673_v44, 0.0  ;;  %1955 = vmatprep.mubr.f32.mxu0 %v11699_v25  ;;  %2404 = vmatprep.mubr.f32.mxu1 %v11699_v25  ;;  %v3059_v14 = vmin.f32 %v3058_v41, %v6962_v31  ;;  %v4029_v36 = vmin.f32 %v4028_v60, %v11870_v39  ;;  %v4098_v44 = vmin.f32 %v4097_v51, %v11872_v50  ;;  %v11873_v40 = vld [vmem:[#allocation116_spill] sm:$0xff]  ;;  %v11876_v7 = vld [vmem:[#allocation115_spill] sm:$0xff] }
 0x183   :  { %11865 = vst [vmem:[#allocation179_spill] sm:$0xff] %v6968_v27  ;;  %3056 = vmin.xlane.f32.xlu0 %v3055_v19  ;;  %v4236_v63 = vmin.f32 %v4235_v23, %v11873_v40  ;;  %v6990_v35 = vmax.f32 %v1120_v12, 0.0  ;;  %v11877_v19 = vld [vmem:[#allocation118_spill] sm:$0xff]  ;;  %v121_v12 = vld [vmem:[%s11021_s1 + $0x108] sm:$0xff]  ;;  %v7008_v50 = vmax.f32 %v1122_v47, 0.0 }
 0x184   :  { %11868 = vst [vmem:[#allocation181_spill] sm:$0xff] %v6976_v32  ;;  %v677_v62 = vpop.f32.mrb[86].mxu0  ;;  %v1126_v59 = vpop.f32.mrb[86].mxu1  ;;  %v3060_v48 = vmin.f32 %v3059_v14, %v6974_v5  ;;  %v3063_v60 = vmin.f32 %v6968_v27, %v6976_v32  ;;  %v4030_v34 = vmin.f32 %v4029_v36, %v11876_v7  ;;  %v4168_v51 = vmin.f32 %v4167_v21, %v11877_v19  ;;  %v11880_v40 = vld [vmem:[#allocation120_spill] sm:$0xff]  ;;  %v11882_v21 = vld [vmem:[#allocation119_spill] sm:$0xff]  ;;  %v11883_v19 = vld [vmem:[#allocation122_spill] sm:$0xff] }
 0x185   :  { %11874 = vst [vmem:[#allocation182_spill] sm:$0xff] %v6990_v35  ;;  %v6992_v30 = vmax.f32 %v677_v62, 0.0  ;;  %v679_v41 = vpop.f32.mrb[87].mxu0  ;;  %v1128_v31 = vpop.f32.mrb[87].mxu1  ;;  %5437 = vmatmul.mubr.msk.f32.gmra.mrb[192].mxu0 %vm160_vm0, %v120_v13  ;;  %5501 = vmatmul.mubr.msk.f32.gmra.mrb[192].mxu1 %vm160_vm0, %v120_v13  ;;  %v11879_v62 = vld [vmem:[#allocation117_spill] sm:$0xff]  ;;  %v4237_v13 = vmin.f32 %v4236_v63, %v11880_v40  ;;  %11881 = vst [vmem:[#allocation185_spill] sm:$0xff] %v7008_v50 }
 0x186   :  { %v7000_v14 = vmax.f32 %v679_v41, 0.0  ;;  %3061 = vmin.xlane.f32.xlu1 %v3060_v48  ;;  %1961 = vmatprep.mubr.f32.mxu0 %v11699_v25  ;;  %v4099_v23 = vmin.f32 %v4098_v44, %v11879_v62  ;;  %v3064_v36 = vmin.f32 %v3063_v60, %v6990_v35  ;;  %v4031_v41 = vmin.f32 %v4030_v34, %v11882_v21  ;;  %v11885_v44 = vld [vmem:[#allocation121_spill] sm:$0xff]  ;;  %v11886_v63 = vld [vmem:[#allocation124_spill] sm:$0xff]  ;;  %v11888_v60 = vld [vmem:[#allocation123_spill] sm:$0xff] }
 0x187   :  { %11875 = vst [vmem:[#allocation183_spill] sm:$0xff] %v6992_v30  ;;  %2410 = vmatprep.mubr.f32.mxu1 %v11699_v25  ;;  %v4169_v48 = vmin.f32 %v4168_v51, %v11883_v19  ;;  %v7014_v7 = vmax.f32 %v1126_v59, 0.0  ;;  %v4238_v47 = vmin.f32 %v4237_v13, %v11886_v63  ;;  %v7026_v51 = vmax.f32 %v1128_v31, 0.0  ;;  %v11891_v13 = vld [vmem:[#allocation126_spill] sm:$0xff] }
 0x188   :  { %11878 = vst [vmem:[#allocation184_spill] sm:$0xff] %v7000_v14  ;;  %v683_v55 = vpop.f32.mrb[88].mxu0  ;;  %v1132_v39 = vpop.f32.mrb[88].mxu1  ;;  %v3068_v10 = vmin.f32 %v6992_v30, %v7000_v14  ;;  %v4100_v62 = vmin.f32 %v4099_v23, %v11885_v44  ;;  %v3065_v59 = vmin.f32 %v3064_v36, %v7008_v50  ;;  %v4032_v34 = vmin.f32 %v4031_v41, %v11888_v60  ;;  %v11892_v36 = vld [vmem:[#allocation125_spill] sm:$0xff] }
 0x189   :  { %11884 = vst [vmem:[#allocation186_spill] sm:$0xff] %v7014_v7  ;;  %v7020_v40 = vmax.f32 %v683_v55, 0.0  ;;  %v685_v32 = vpop.f32.mrb[89].mxu0  ;;  %v1134_v27 = vpop.f32.mrb[89].mxu1  ;;  %5438 = vmatmul.mubr.msk.f32.gmra.mrb[194].mxu0 %vm160_vm0, %v121_v12  ;;  %5502 = vmatmul.mubr.msk.f32.gmra.mrb[194].mxu1 %vm160_vm0, %v121_v12  ;;  %11889 = vst [vmem:[#allocation188_spill] sm:$0xff] %v7026_v51  ;;  %v122_v55 = vld [vmem:[%s11021_s1 + $0x110] sm:$0xff]  ;;  %v4170_v12 = vmin.f32 %v4169_v48, %v11891_v13  ;;  %v4239_v31 = vmin.f32 %v4238_v47, %v6628_v45 }
 0x18a   :  { %v7028_v19 = vmax.f32 %v685_v32, 0.0  ;;  %1967 = vmatprep.mubr.f32.mxu0 %v11699_v25  ;;  %2416 = vmatprep.mubr.f32.mxu1 %v11699_v25  ;;  %v3069_v23 = vmin.f32 %v3068_v10, %v7014_v7  ;;  %v4101_v63 = vmin.f32 %v4100_v62, %v11892_v36  ;;  %v4033_v32 = vmin.f32 %v4032_v34, %v6624_v29  ;;  %v11895_v48 = vld [vmem:[#allocation129_spill] sm:$0xff] }
 0x18b   :  { %11887 = vst [vmem:[#allocation187_spill] sm:$0xff] %v7020_v40  ;;  %3066 = vmin.xlane.f32.xlu0 %v3065_v59  ;;  %v4171_v21 = vmin.f32 %v4170_v12, %v6638_v61  ;;  %v7042_v14 = vmax.f32 %v1132_v39, 0.0  ;;  %v4240_v59 = vmin.f32 %v4239_v31, %v6653_v33  ;;  %v123_v39 = vld [vmem:[%s11021_s1 + $0x118] sm:$0xff]  ;;  %v7061_v12 = vmax.f32 %v1134_v27, 0.0 }
 0x18c   :  { %11890 = vst [vmem:[#allocation189_spill] sm:$0xff] %v7028_v19  ;;  %v689_v41 = vpop.f32.mrb[90].mxu0  ;;  %v1138_v60 = vpop.f32.mrb[90].mxu1  ;;  %v3070_v44 = vmin.f32 %v3069_v23, %v7026_v51  ;;  %v3073_v62 = vmin.f32 %v7020_v40, %v7028_v19  ;;  %v4102_v47 = vmin.f32 %v4101_v63, %v11895_v48  ;;  %v4034_v23 = vmin.f32 %v4033_v32, %v6647_v16 }
 0x18d   :  { %11893 = vst [vmem:[#allocation190_spill] sm:$0xff] %v7042_v14  ;;  %v7044_v30 = vmax.f32 %v689_v41, 0.0  ;;  %v691_v10 = vpop.f32.mrb[91].mxu0  ;;  %v1140_v7 = vpop.f32.mrb[91].mxu1  ;;  %5439 = vmatmul.mubr.msk.f32.gmra.mrb[196].mxu0 %vm160_vm0, %v122_v55  ;;  %5503 = vmatmul.mubr.msk.f32.gmra.mrb[196].mxu1 %vm160_vm0, %v122_v55  ;;  %v4172_v55 = vmin.f32 %v4171_v21, %v6668_v52  ;;  %11897 = vst [vmem:[#allocation193_spill] sm:$0xff] %v7061_v12  ;;  %v4241_v41 = vmin.f32 %v4240_v59, %v6681_v18 }
 0x18e   :  { %v7052_v34 = vmax.f32 %v691_v10, 0.0  ;;  %1973 = vmatprep.mubr.f32.mxu0 %v11699_v25  ;;  %2422 = vmatprep.mubr.f32.mxu1 %v11699_v25  ;;  %v3074_v63 = vmin.f32 %v3073_v62, %v7042_v14  ;;  %v4103_v31 = vmin.f32 %v4102_v47, %v6655_v57  ;;  %v7066_v10 = vmax.f32 %v1138_v60, 0.0 }
 0x18f   :  { %11894 = vst [vmem:[#allocation191_spill] sm:$0xff] %v7044_v30  ;;  %3071 = vmin.xlane.f32.xlu0 %v3070_v44  ;;  %v4035_v32 = vmin.f32 %v4034_v23, %v6676_v28  ;;  %v4173_v21 = vmin.f32 %v4172_v55, %v6695_v49  ;;  %v7078_v47 = vmax.f32 %v1140_v7, 0.0 }
 0x190   :  { %11896 = vst [vmem:[#allocation192_spill] sm:$0xff] %v7052_v34  ;;  %11898 = vst [vmem:[#allocation194_spill] sm:$0xff] %v7066_v10  ;;  %v695_v33 = vpop.f32.mrb[92].mxu0  ;;  %v1144_v48 = vpop.f32.mrb[92].mxu1  ;;  %v3078_v61 = vmin.f32 %v7044_v30, %v7052_v34  ;;  %v3075_v60 = vmin.f32 %v3074_v63, %v7061_v12  ;;  %v4104_v62 = vmin.f32 %v4103_v31, %v6683_v37 }
 0x191   :  { %v7072_v27 = vmax.f32 %v695_v33, 0.0  ;;  %v697_v44 = vpop.f32.mrb[93].mxu0  ;;  %v1146_v52 = vpop.f32.mrb[93].mxu1  ;;  %5440 = vmatmul.mubr.msk.f32.gmra.mrb[198].mxu0 %vm160_vm0, %v123_v39  ;;  %5504 = vmatmul.mubr.msk.f32.gmra.mrb[198].mxu1 %vm160_vm0, %v123_v39  ;;  %11900 = vst [vmem:[#allocation196_spill] sm:$0xff] %v7078_v47  ;;  %v124_v33 = vld [vmem:[%s11021_s1 + $0x120] sm:$0xff]  ;;  %v4242_v39 = vmin.f32 %v4241_v41, %v6708_v8  ;;  %v4036_v55 = vmin.f32 %v4035_v32, %v6703_v9  ;;  %v7094_v28 = vmax.f32 %v1144_v48, 0.0 }
 0x192   :  { %v7080_v59 = vmax.f32 %v697_v44, 0.0  ;;  %1979 = vmatprep.mubr.f32.mxu0 %v11699_v25  ;;  %2428 = vmatprep.mubr.f32.mxu1 %v11699_v25  ;;  %v3079_v23 = vmin.f32 %v3078_v61, %v7066_v10  ;;  %v4174_v7 = vmin.f32 %v4173_v21, %v6722_v54  ;;  %v4105_v63 = vmin.f32 %v4104_v62, %v6710_v15  ;;  %v125_v48 = vld [vmem:[%s11021_s1 + $0x128] sm:$0xff] }
 0x193   :  { %11899 = vst [vmem:[#allocation195_spill] sm:$0xff] %v7072_v27  ;;  %3076 = vmin.xlane.f32.xlu0 %v3075_v60  ;;  %v4243_v49 = vmin.f32 %v4242_v39, %v6735_v11  ;;  %11902 = vst [vmem:[#allocation198_spill] sm:$0xff] %v7094_v28  ;;  %v4037_v32 = vmin.f32 %v4036_v55, %v6730_v26  ;;  %v7115_v39 = vmax.f32 %v1146_v52, 0.0  ;;  %v11930_v9 = vld [vmem:[#allocation172_spill] sm:$0xff] }
 0x194   :  { %11901 = vst [vmem:[#allocation197_spill] sm:$0xff] %v7080_v59  ;;  %v701_v31 = vpop.f32.mrb[94].mxu0  ;;  %v1150_v44 = vpop.f32.mrb[94].mxu1  ;;  %v3080_v37 = vmin.f32 %v3079_v23, %v7078_v47  ;;  %v3083_v41 = vmin.f32 %v7072_v27, %v7080_v59  ;;  %v4175_v21 = vmin.f32 %v4174_v7, %v6749_v22  ;;  %v4106_v62 = vmin.f32 %v4105_v63, %v6737_v24 }
 0x195   :  { %v7096_v18 = vmax.f32 %v701_v31, 0.0  ;;  %v703_v61 = vpop.f32.mrb[95].mxu0  ;;  %v1152_v57 = vpop.f32.mrb[95].mxu1  ;;  %5441 = vmatmul.mubr.msk.f32.gmra.mrb[200].mxu0 %vm160_vm0, %v124_v33  ;;  %5505 = vmatmul.mubr.msk.f32.gmra.mrb[200].mxu1 %vm160_vm0, %v124_v33  ;;  %v4244_v33 = vmin.f32 %v4243_v49, %v6762_v56  ;;  %11905 = vst [vmem:[#allocation201_spill] sm:$0xff] %v7115_v39  ;;  %v4038_v7 = vmin.f32 %v4037_v32, %v6757_v1 }
 0x196   :  { %v7104_v60 = vmax.f32 %v703_v61, 0.0  ;;  %1985 = vmatprep.mubr.f32.mxu0 %v11699_v25  ;;  %2434 = vmatprep.mubr.f32.mxu1 %v11699_v25  ;;  %v7113_v23 = vpop.xlane.xlu0 %2856  ;;  %v3084_v55 = vmin.f32 %v3083_v41, %v7094_v28  ;;  %v4176_v31 = vmin.f32 %v4175_v21, %v6776_v58  ;;  %v7120_v61 = vmax.f32 %v1150_v44, 0.0 }
 0x197   :  { %11903 = vst [vmem:[#allocation199_spill] sm:$0xff] %v7096_v18  ;;  %3081 = vmin.xlane.f32.xlu0 %v3080_v37  ;;  %v4107_v49 = vmin.f32 %v4106_v62, %v6764_v4  ;;  %v4245_v56 = vmin.f32 %v4244_v33, %v6789_v42  ;;  %v4039_v41 = vmin.f32 %v4038_v7, %v6784_v0  ;;  %v7132_v32 = vmax.f32 %v1152_v57, 0.0  ;;  %v7143_v33 = vpop.xlane.xlu1 %2866 }
 0x198   :  { %11904 = vst [vmem:[#allocation200_spill] sm:$0xff] %v7104_v60  ;;  %11906 = vst [vmem:[#allocation202_spill] sm:$0xff] %v7120_v61  ;;  %v707_v22 = vpop.f32.mrb[96].mxu0  ;;  %v1156_v26 = vpop.f32.mrb[96].mxu1  ;;  %v3088_v63 = vmin.f32 %v7096_v18, %v7104_v60  ;;  %v3085_v44 = vmin.f32 %v3084_v55, %v7115_v39 }
 0x199   :  { %v7126_v52 = vmax.f32 %v707_v22, 0.0  ;;  %v709_v37 = vpop.f32.mrb[97].mxu0  ;;  %v1158_v24 = vpop.f32.mrb[97].mxu1  ;;  %5442 = vmatmul.mubr.msk.f32.gmra.mrb[202].mxu0 %vm160_vm0, %v125_v48  ;;  %5506 = vmatmul.mubr.msk.f32.gmra.mrb[202].mxu1 %vm160_vm0, %v125_v48  ;;  %11908 = vst [vmem:[#allocation204_spill] sm:$0xff] %v7132_v32  ;;  %v126_v22 = vld [vmem:[%s11021_s1 + $0x130] sm:$0xff]  ;;  %v4177_v48 = vmin.f32 %v4176_v31, %v6803_v17  ;;  %11910 = vst [vmem:[#allocation206_spill] sm:$0xff] %v7143_v33  ;;  %v4108_v57 = vmin.f32 %v4107_v49, %v6791_v43 }
 0x19a   :  { %v7134_v21 = vmax.f32 %v709_v37, 0.0  ;;  %1991 = vmatprep.mubr.f32.mxu0 %v11699_v25  ;;  %2440 = vmatprep.mubr.f32.mxu1 %v11699_v25  ;;  %v3089_v62 = vmin.f32 %v3088_v63, %v7120_v61  ;;  %v4246_v55 = vmin.f32 %v4245_v56, %v6816_v3  ;;  %v4040_v7 = vmin.f32 %v4039_v41, %v6811_v38 }
 0x19b   :  { %11907 = vst [vmem:[#allocation203_spill] sm:$0xff] %v7126_v52  ;;  %3086 = vmin.xlane.f32.xlu0 %v3085_v44  ;;  %v4178_v4 = vmin.f32 %v4177_v48, %v6830_v46  ;;  %v7150_v58 = vmax.f32 %v1156_v26, 0.0  ;;  %v4109_v49 = vmin.f32 %v4108_v57, %v6818_v53  ;;  %v127_v26 = vld [vmem:[%s11021_s1 + $0x138] sm:$0xff]  ;;  %v7169_v48 = vpop.xlane.xlu0 %2861 }
 0x19c   :  { %11909 = vst [vmem:[#allocation205_spill] sm:$0xff] %v7134_v21  ;;  %v713_v37 = vpop.f32.mrb[98].mxu0  ;;  %v1162_v0 = vpop.f32.mrb[98].mxu1  ;;  %v3090_v42 = vmin.f32 %v3089_v62, %v7132_v32  ;;  %v3093_v56 = vmin.f32 %v7126_v52, %v7134_v21  ;;  %v4247_v44 = vmin.f32 %v4246_v55, %v6843_v2  ;;  %v4041_v62 = vmin.f32 %v4040_v7, %v6838_v20  ;;  %v11916_v55 = vld [vmem:[#allocation161_spill] sm:$0xff]  ;;  %v11917_v2 = vld [vmem:[#allocation164_spill] sm:$0xff]  ;;  %v11919_v20 = vld [vmem:[#allocation163_spill] sm:$0xff] }
 0x19d   :  { %11911 = vst [vmem:[#allocation207_spill] sm:$0xff] %v7150_v58  ;;  %v7152_v63 = vmax.f32 %v713_v37, 0.0  ;;  %v715_v31 = vpop.f32.mrb[99].mxu0  ;;  %v1164_v17 = vpop.f32.mrb[99].mxu1  ;;  %5443 = vmatmul.mubr.msk.f32.gmra.mrb[204].mxu0 %vm160_vm0, %v126_v22  ;;  %5507 = vmatmul.mubr.msk.f32.gmra.mrb[204].mxu1 %vm160_vm0, %v126_v22  ;;  %v4179_v22 = vmin.f32 %v4178_v4, %v6857_v6  ;;  %11914 = vst [vmem:[#allocation210_spill] sm:$0xff] %v7169_v48  ;;  %v7171_v37 = vmax.f32 %v1158_v24, 0.0 }
 0x19e   :  { %v7160_v41 = vmax.f32 %v715_v31, 0.0  ;;  %1997 = vmatprep.mubr.f32.mxu0 %v11699_v25  ;;  %2446 = vmatprep.mubr.f32.mxu1 %v11699_v25  ;;  %v3094_v57 = vmin.f32 %v3093_v56, %v7150_v58  ;;  %v4110_v31 = vmin.f32 %v4109_v49, %v11916_v55  ;;  %v4248_v53 = vmin.f32 %v4247_v44, %v11917_v2  ;;  %v11920_v6 = vld [vmem:[#allocation166_spill] sm:$0xff]  ;;  %v11922_v56 = vld [vmem:[#allocation165_spill] sm:$0xff] }
 0x19f   :  { %11912 = vst [vmem:[#allocation208_spill] sm:$0xff] %v7152_v63  ;;  %11915 = vst [vmem:[#allocation211_spill] sm:$0xff] %v7171_v37  ;;  %3091 = vmin.xlane.f32.xlu0 %v3090_v42  ;;  %v7176_v46 = vmax.f32 %v1162_v0, 0.0  ;;  %v4042_v4 = vmin.f32 %v4041_v62, %v11919_v20  ;;  %v4180_v43 = vmin.f32 %v4179_v22, %v11920_v6  ;;  %v7188_v44 = vmax.f32 %v1164_v17, 0.0  ;;  %v11925_v22 = vld [vmem:[#allocation169_spill] sm:$0xff]  ;;  %v11927_v17 = vld [vmem:[#allocation167_spill] sm:$0xff] }
 0x1a0   :  { %11913 = vst [vmem:[#allocation209_spill] sm:$0xff] %v7160_v41  ;;  %v719_v38 = vpop.f32.mrb[100].mxu0  ;;  %v1168_v3 = vpop.f32.mrb[100].mxu1  ;;  %v3098_v7 = vmin.f32 %v7152_v63, %v7160_v41  ;;  %v3095_v0 = vmin.f32 %v3094_v57, %v7171_v37  ;;  %v4111_v49 = vmin.f32 %v4110_v31, %v11922_v56  ;;  %v5069_v57 = vadd.f32 %v7169_v48, %v7113_v23  ;;  %v11928_v56 = vld [vmem:[#allocation170_spill] sm:$0xff]  ;;  %v11929_v6 = vld [vmem:[#allocation168_spill] sm:$0xff] }
 0x1a1   :  { %11918 = vst [vmem:[#allocation212_spill] sm:$0xff] %v7176_v46  ;;  %v7182_v24 = vmax.f32 %v719_v38, 0.0  ;;  %v721_v42 = vpop.f32.mrb[101].mxu0  ;;  %v1170_v1 = vpop.f32.mrb[101].mxu1  ;;  %5444 = vmatmul.mubr.msk.f32.gmra.mrb[206].mxu0 %vm160_vm0, %v127_v26  ;;  %5508 = vmatmul.mubr.msk.f32.gmra.mrb[206].mxu1 %vm160_vm0, %v127_v26  ;;  %11923 = vst [vmem:[#allocation214_spill] sm:$0xff] %v7188_v44  ;;  %v128_v38 = vld [vmem:[%s11021_s1 + $0x140] sm:$0xff]  ;;  %v4249_v26 = vmin.f32 %v4248_v53, %v11925_v22  ;;  %v4181_v20 = vmin.f32 %v4180_v43, %v11928_v56 }
 0x1a2   :  { %v7190_v2 = vmax.f32 %v721_v42, 0.0  ;;  %2003 = vmatprep.mubr.f32.mxu0 %v11699_v25  ;;  %2452 = vmatprep.mubr.f32.mxu1 %v11699_v25  ;;  %v3099_v62 = vmin.f32 %v3098_v7, %v7176_v46  ;;  %v7201_v31 = vpop.xlane.xlu1 %2871  ;;  %v4043_v42 = vmin.f32 %v4042_v4, %v11927_v17  ;;  %v4112_v55 = vmin.f32 %v4111_v49, %v11929_v6  ;;  %v7228_v56 = vpop.xlane.xlu0 %2876 }
 0x1a3   :  { %11921 = vst [vmem:[#allocation213_spill] sm:$0xff] %v7182_v24  ;;  %11926 = vst [vmem:[#allocation216_spill] sm:$0xff] %v7201_v31  ;;  %3096 = vmin.xlane.f32.xlu0 %v3095_v0  ;;  %v4250_v7 = vmin.f32 %v4249_v26, %v11930_v9  ;;  %v7208_v8 = vmax.f32 %v1168_v3, 0.0  ;;  %v5070_v4 = vadd.f32 %v5069_v57, %v7143_v33  ;;  %v11933_v0 = vld [vmem:[#allocation171_spill] sm:$0xff]  ;;  %v11936_v3 = vld [vmem:[#allocation173_spill] sm:$0xff]  ;;  %v7230_v57 = vmax.f32 %v1170_v1, 0.0 }
 0x1a4   :  { %11924 = vst [vmem:[#allocation215_spill] sm:$0xff] %v7190_v2  ;;  %v725_v11 = vpop.f32.mrb[102].mxu0  ;;  %v1174_v15 = vpop.f32.mrb[102].mxu1  ;;  %v3100_v54 = vmin.f32 %v3099_v62, %v7188_v44  ;;  %v3103_v43 = vmin.f32 %v7182_v24, %v7190_v2  ;;  %v4044_v49 = vmin.f32 %v4043_v42, %v11933_v0  ;;  %v11934_v62 = vld [vmem:[#allocation174_spill] sm:$0xff]  ;;  %v11937_v9 = vld [vmem:[#allocation177_spill] sm:$0xff]  ;;  %v11939_v42 = vld [vmem:[#allocation175_spill] sm:$0xff] }
 0x1a5   :  { %11931 = vst [vmem:[#allocation217_spill] sm:$0xff] %v7208_v8  ;;  %v7210_v53 = vmax.f32 %v725_v11, 0.0  ;;  %v727_v22 = vpop.f32.mrb[103].mxu0  ;;  %v1176_v16 = vpop.f32.mrb[103].mxu1  ;;  %5445 = vmatmul.mubr.msk.f32.gmra.mrb[208].mxu0 %vm160_vm0, %v128_v38  ;;  %5509 = vmatmul.mubr.msk.f32.gmra.mrb[208].mxu1 %vm160_vm0, %v128_v38  ;;  %v4182_v6 = vmin.f32 %v4181_v20, %v11934_v62  ;;  %v129_v11 = vld [vmem:[%s11021_s1 + $0x148] sm:$0xff]  ;;  %v4113_v38 = vmin.f32 %v4112_v55, %v11936_v3  ;;  %11938 = vst [vmem:[#allocation220_spill] sm:$0xff] %v7230_v57 }
 0x1a6   :  { %v7219_v26 = vmax.f32 %v727_v22, 0.0  ;;  %2009 = vmatprep.mubr.f32.mxu0 %v11699_v25  ;;  %2458 = vmatprep.mubr.f32.mxu1 %v11699_v25  ;;  %v4251_v17 = vmin.f32 %v4250_v7, %v11937_v9  ;;  %v3104_v20 = vmin.f32 %v3103_v43, %v7208_v8  ;;  %v5071_v22 = vadd.f32 %v5070_v4, %v7201_v31  ;;  %v11941_v3 = vld [vmem:[#allocation178_spill] sm:$0xff]  ;;  %v11942_v9 = vld [vmem:[#allocation176_spill] sm:$0xff] }
 0x1a7   :  { %11932 = vst [vmem:[#allocation218_spill] sm:$0xff] %v7210_v53  ;;  %3101 = vmin.xlane.f32.xlu0 %v3100_v54  ;;  %v4045_v0 = vmin.f32 %v4044_v49, %v11939_v42  ;;  %v7235_v62 = vmax.f32 %v1174_v15, 0.0  ;;  %v4183_v7 = vmin.f32 %v4182_v6, %v11941_v3  ;;  %v4114_v36 = vmin.f32 %v4113_v38, %v11942_v9  ;;  %v11946_v38 = vld [vmem:[#allocation179_spill] sm:$0xff]  ;;  %v7259_v9 = vpop.xlane.xlu1 %2881 }
 0x1a8   :  { %11935 = vst [vmem:[#allocation219_spill] sm:$0xff] %v7219_v26  ;;  %v731_v29 = vpop.f32.mrb[104].mxu0  ;;  %v1180_v45 = vpop.f32.mrb[104].mxu1  ;;  %v3108_v55 = vmin.f32 %v7210_v53, %v7219_v26  ;;  %v3105_v15 = vmin.f32 %v3104_v20, %v7230_v57  ;;  %v4252_v43 = vmin.f32 %v4251_v17, %v6974_v5  ;;  %v7247_v4 = vmax.f32 %v1176_v16, 0.0 }
 0x1a9   :  { %11940 = vst [vmem:[#allocation221_spill] sm:$0xff] %v7235_v62  ;;  %v7241_v1 = vmax.f32 %v731_v29, 0.0  ;;  %v733_v54 = vpop.f32.mrb[105].mxu0  ;;  %v1182_v13 = vpop.f32.mrb[105].mxu1  ;;  %5446 = vmatmul.mubr.msk.f32.gmra.mrb[210].mxu0 %vm160_vm0, %v129_v11  ;;  %5510 = vmatmul.mubr.msk.f32.gmra.mrb[210].mxu1 %vm160_vm0, %v129_v11  ;;  %v130_v29 = vld [vmem:[%s11021_s1 + $0x150] sm:$0xff]  ;;  %v4046_v11 = vmin.f32 %v4045_v0, %v11946_v38  ;;  %v4184_v20 = vmin.f32 %v4183_v7, %v6990_v35  ;;  %v11948_v0 = vld [vmem:[#allocation183_spill] sm:$0xff] }
 0x1aa   :  { %11944 = vst [vmem:[#allocation223_spill] sm:$0xff] %v7247_v4  ;;  %v7249_v49 = vmax.f32 %v733_v54, 0.0  ;;  %2015 = vmatprep.mubr.f32.mxu0 %v11699_v25  ;;  %2464 = vmatprep.mubr.f32.mxu1 %v11699_v25  ;;  %v3109_v6 = vmin.f32 %v3108_v55, %v7235_v62  ;;  %v7261_v16 = vpop.xlane.xlu0 %2886  ;;  %v5072_v17 = vadd.f32 %v5071_v22, %v7228_v56  ;;  %v11947_v54 = vld [vmem:[#allocation181_spill] sm:$0xff]  ;;  %v11949_v7 = vld [vmem:[#allocation186_spill] sm:$0xff]  ;;  %v7273_v33 = vmax.f32 %v1180_v45, 0.0 }
 0x1ab   :  { %11943 = vst [vmem:[#allocation222_spill] sm:$0xff] %v7241_v1  ;;  %3106 = vmin.xlane.f32.xlu0 %v3105_v15  ;;  %v4115_v5 = vmin.f32 %v4114_v36, %v11947_v54  ;;  %v4253_v42 = vmin.f32 %v4252_v43, %v7008_v50  ;;  %v4047_v38 = vmin.f32 %v4046_v11, %v11948_v0  ;;  %v11951_v43 = vld [vmem:[#allocation184_spill] sm:$0xff]  ;;  %v131_v45 = vld [vmem:[%s11021_s1 + $0x158] sm:$0xff]  ;;  %v7293_v0 = vpop.xlane.xlu1 %2891 }
 0x1ac   :  { %11945 = vst [vmem:[#allocation224_spill] sm:$0xff] %v7249_v49  ;;  %v7266_v3 = vpop.f32.mrb[106].mxu0  ;;  %v7268_v31 = vpop.f32.mrb[106].mxu1  ;;  %v3110_v55 = vmin.f32 %v3109_v6, %v7247_v4  ;;  %v4185_v35 = vmin.f32 %v4184_v20, %v11949_v7  ;;  %11950 = vst [vmem:[#allocation225_spill] sm:$0xff] %v7273_v33  ;;  %v3113_v36 = vmin.f32 %v7241_v1, %v7249_v49 }
 0x1ad   :  { %v7275_v48 = vpop.f32.mrb[107].mxu0  ;;  %v7277_v15 = vpop.f32.mrb[107].mxu1  ;;  %5447 = vmatmul.mubr.msk.f32.gmra.mrb[212].mxu0 %vm160_vm0, %v130_v29  ;;  %5511 = vmatmul.mubr.msk.f32.gmra.mrb[212].mxu1 %vm160_vm0, %v130_v29  ;;  %v5073_v22 = vadd.f32 %v5072_v17, %v7259_v9  ;;  %v4116_v6 = vmin.f32 %v4115_v5, %v11951_v43  ;;  %v4254_v11 = vmin.f32 %v4253_v42, %v7026_v51  ;;  %v7297_v17 = vmax.f32 %v1182_v13, 0.0 }
 0x1ae   :  { %2021 = vmatprep.mubr.f32.mxu0 %v11699_v25  ;;  %2470 = vmatprep.mubr.f32.mxu1 %v11699_v25  ;;  %v4048_v20 = vmin.f32 %v4047_v38, %v7020_v40  ;;  %v4186_v29 = vmin.f32 %v4185_v35, %v7042_v14  ;;  %11952 = vst [vmem:[#allocation226_spill] sm:$0xff] %v7293_v0  ;;  %v7295_v7 = vpop.xlane.xlu0 %2896 }
 0x1af   :  { %11953 = vst [vmem:[#allocation227_spill] sm:$0xff] %v7295_v7  ;;  %11954 = vst [vmem:[#allocation228_spill] sm:$0xff] %v7297_v17  ;;  %3111 = vmin.xlane.f32.xlu0 %v3110_v55  ;;  %v3114_v5 = vmin.f32 %v3113_v36, %v7273_v33  ;;  %v5074_v42 = vadd.f32 %v5073_v22, %v7261_v16  ;;  %v4117_v51 = vmin.f32 %v4116_v6, %v7028_v19 }
 0x1b0   :  { %v4255_v43 = vmin.f32 %v4254_v11, %v7061_v12  ;;  %v7303_v50 = vpop.f32.mrb[108].mxu0  ;;  %v7305_v38 = vpop.f32.mrb[108].mxu1  ;;  %v4049_v35 = vmin.f32 %v4048_v20, %v7044_v30  ;;  %v4187_v40 = vmin.f32 %v4186_v29, %v7066_v10  ;;  %v132_v11 = vld [vmem:[%s11021_s1 + $0x160] sm:$0xff] }
 0x1b1   :  { %v7309_v14 = vpop.f32.mrb[109].mxu0  ;;  %v7311_v13 = vpop.f32.mrb[109].mxu1  ;;  %5448 = vmatmul.mubr.msk.f32.gmra.mrb[214].mxu0 %vm160_vm0, %v131_v45  ;;  %5512 = vmatmul.mubr.msk.f32.gmra.mrb[214].mxu1 %vm160_vm0, %v131_v45  ;;  %v3115_v55 = vmin.f32 %v3114_v5, %v7297_v17  ;;  %v5075_v36 = vadd.f32 %v5074_v42, %v7293_v0  ;;  %v4118_v22 = vmin.f32 %v4117_v51, %v7052_v34 }
 0x1b2   :  { %v4256_v6 = vmin.f32 %v4255_v43, %v7078_v47  ;;  %2027 = vmatprep.mubr.f32.mxu0 %v11699_v25  ;;  %2476 = vmatprep.mubr.f32.mxu1 %v11699_v25  ;;  %v4050_v20 = vmin.f32 %v4049_v35, %v7072_v27  ;;  %v4188_v45 = vmin.f32 %v4187_v40, %v7094_v28  ;;  %v7326_v29 = vpop.xlane.xlu1 %2901  ;;  %v7328_v5 = vpop.xlane.xlu0 %2906 }
 0x1b3   :  { %11955 = vst [vmem:[#allocation229_spill] sm:$0xff] %v7326_v29  ;;  %11956 = vst [vmem:[#allocation230_spill] sm:$0xff] %v7328_v5  ;;  %3116 = vmin.xlane.f32.xlu0 %v3115_v55  ;;  %v5076_v51 = vadd.f32 %v5075_v36, %v7295_v7  ;;  %v4119_v43 = vmin.f32 %v4118_v22, %v7080_v59 }
 0x1b4   :  { %v4257_v42 = vmin.f32 %v4256_v6, %v7115_v39  ;;  %v7333_v47 = vpop.f32.mrb[110].mxu0  ;;  %v7335_v34 = vpop.f32.mrb[110].mxu1  ;;  %v4051_v30 = vmin.f32 %v4050_v20, %v7096_v18  ;;  %v4189_v35 = vmin.f32 %v4188_v45, %v7120_v61  ;;  %v133_v6 = vld [vmem:[%s11021_s1 + $0x168] sm:$0xff] }
 0x1b5   :  { %v751_v40 = vpop.f32.mrb[111].mxu0  ;;  %v7339_v27 = vpop.f32.mrb[111].mxu1  ;;  %5449 = vmatmul.mubr.msk.f32.gmra.mrb[216].mxu0 %vm160_vm0, %v132_v11  ;;  %5513 = vmatmul.mubr.msk.f32.gmra.mrb[216].mxu1 %vm160_vm0, %v132_v11  ;;  %v5077_v55 = vadd.f32 %v5076_v51, %v7326_v29  ;;  %v4120_v36 = vmin.f32 %v4119_v43, %v7104_v60 }
 0x1b6   :  { %v4258_v22 = vmin.f32 %v4257_v42, %v7132_v32  ;;  %2033 = vmatprep.mubr.f32.mxu0 %v11699_v25  ;;  %2482 = vmatprep.mubr.f32.mxu1 %v11699_v25  ;;  %v4052_v20 = vmin.f32 %v4051_v30, %v7126_v52  ;;  %v4190_v45 = vmin.f32 %v4189_v35, %v7150_v58  ;;  %v7353_v18 = vpop.xlane.xlu1 %2911  ;;  %v7355_v11 = vpop.xlane.xlu0 %2916 }
 0x1b7   :  { %11957 = vst [vmem:[#allocation231_spill] sm:$0xff] %v7353_v18  ;;  %11958 = vst [vmem:[#allocation232_spill] sm:$0xff] %v7355_v11  ;;  %v5078_v51 = vadd.f32 %v5077_v55, %v7328_v5  ;;  %v4121_v43 = vmin.f32 %v4120_v36, %v7134_v21 }
 0x1b8   :  { %v4259_v42 = vmin.f32 %v4258_v22, %v7171_v37  ;;  %v7360_v32 = vpop.f32.mrb[112].mxu0  ;;  %v7362_v60 = vpop.f32.mrb[112].mxu1  ;;  %v4053_v61 = vmin.f32 %v4052_v20, %v7152_v63  ;;  %v4191_v30 = vmin.f32 %v4190_v45, %v7176_v46  ;;  %v134_v20 = vld [vmem:[%s11021_s1 + $0x170] sm:$0xff] }
 0x1b9   :  { %v7366_v52 = vpop.f32.mrb[113].mxu0  ;;  %v7368_v35 = vpop.f32.mrb[113].mxu1  ;;  %5450 = vmatmul.mubr.msk.f32.gmra.mrb[218].mxu0 %vm160_vm0, %v133_v6  ;;  %5514 = vmatmul.mubr.msk.f32.gmra.mrb[218].mxu1 %vm160_vm0, %v133_v6  ;;  %v5079_v55 = vadd.f32 %v5078_v51, %v7353_v18  ;;  %v4122_v36 = vmin.f32 %v4121_v43, %v7160_v41  ;;  %v7383_v6 = vmax.f32 %v7266_v3, 0.0  ;;  %v7386_v51 = vmax.f32 %v7275_v48, 0.0 }
 0x1ba   :  { %v4260_v22 = vmin.f32 %v4259_v42, %v7188_v44  ;;  %2039 = vmatprep.mubr.f32.mxu0 %v11699_v25  ;;  %2488 = vmatprep.mubr.f32.mxu1 %v11699_v25  ;;  %v4054_v45 = vmin.f32 %v4053_v61, %v7182_v24  ;;  %v4192_v63 = vmin.f32 %v4191_v30, %v7208_v8  ;;  %v7403_v48 = vpop.xlane.xlu1 %2921 }
 0x1bb   :  { %11959 = vst [vmem:[#allocation233_spill] sm:$0xff] %v7383_v6  ;;  %11960 = vst [vmem:[#allocation234_spill] sm:$0xff] %v7386_v51  ;;  %v5080_v43 = vadd.f32 %v5079_v55, %v7355_v11  ;;  %v4123_v42 = vmin.f32 %v4122_v36, %v7190_v2  ;;  %v7407_v36 = vmax.f32 %v7268_v31, 0.0  ;;  %v7423_v31 = vmax.f32 %v7277_v15, 0.0 }
 0x1bc   :  { %v7390_v44 = vpop.f32.mrb[114].mxu0  ;;  %v7392_v41 = vpop.f32.mrb[114].mxu1  ;;  %v4261_v46 = vmin.f32 %v4260_v22, %v7230_v57  ;;  %v4055_v61 = vmin.f32 %v4054_v45, %v7210_v53  ;;  %v4193_v30 = vmin.f32 %v4192_v63, %v7235_v62  ;;  %11961 = vst [vmem:[#allocation235_spill] sm:$0xff] %v7403_v48  ;;  %v7410_v22 = vmax.f32 %v7303_v50, 0.0 }
 0x1bd   :  { %v7397_v24 = vpop.f32.mrb[115].mxu0  ;;  %v7399_v3 = vpop.f32.mrb[115].mxu1  ;;  %5451 = vmatmul.mubr.msk.f32.gmra.mrb[220].mxu0 %vm160_vm0, %v134_v20  ;;  %5515 = vmatmul.mubr.msk.f32.gmra.mrb[220].mxu1 %vm160_vm0, %v134_v20  ;;  %v4124_v55 = vmin.f32 %v4123_v42, %v7219_v26  ;;  %11962 = vst [vmem:[#allocation236_spill] sm:$0xff] %v7407_v36  ;;  %v7413_v63 = vmax.f32 %v7309_v14, 0.0  ;;  %v135_v20 = vld [vmem:[%s11021_s1 + $0x178] sm:$0xff]  ;;  %11965 = vst [vmem:[#allocation239_spill] sm:$0xff] %v7423_v31  ;;  %v3118_v50 = vmin.f32 %v7383_v6, %v7386_v51 }
 0x1be   :  { %11963 = vst [vmem:[#allocation237_spill] sm:$0xff] %v7410_v22  ;;  %2045 = vmatprep.mubr.f32.mxu0 %v11699_v25  ;;  %2494 = vmatprep.mubr.f32.mxu1 %v11699_v25  ;;  %v4262_v45 = vmin.f32 %v4261_v46, %v7247_v4  ;;  %v4056_v42 = vmin.f32 %v4055_v61, %v7241_v1  ;;  %v7429_v26 = vmax.f32 %v7305_v38, 0.0  ;;  %v7432_v53 = vmax.f32 %v7333_v47, 0.0 }
 0x1bf   :  { %11964 = vst [vmem:[#allocation238_spill] sm:$0xff] %v7413_v63  ;;  %v4194_v14 = vmin.f32 %v4193_v30, %v7273_v33  ;;  %v7434_v62 = vmax.f32 %v751_v40, 0.0  ;;  %v7437_v61 = vadd.f32 %v5080_v43, %v7403_v48  ;;  %v4125_v15 = vmin.f32 %v4124_v55, %v7249_v49 }
 0x1c0   :  { %11966 = vst [vmem:[#allocation240_spill] sm:$0xff] %v7429_v26  ;;  %11967 = vst [vmem:[#allocation241_spill] sm:$0xff] %v7432_v53  ;;  %v767_v57 = vpop.f32.mrb[116].mxu0  ;;  %v1216_v46 = vpop.f32.mrb[116].mxu1  ;;  %v4263_v1 = vmin.f32 %v4262_v45, %v7297_v17  ;;  %v7442_v4 = vmax.f32 %v7311_v13, 0.0  ;;  %v4057_v47 = vmin.f32 %v4056_v42, %v7383_v6  ;;  %v7449_v43 = vmax.f32 %v7335_v34, 0.0 }
 0x1c1   :  { %11968 = vst [vmem:[#allocation242_spill] sm:$0xff] %v7434_v62  ;;  %11969 = vst [vmem:[#allocation243_spill] sm:$0xff] %v7437_v61  ;;  %v769_v30 = vpop.f32.mrb[117].mxu0  ;;  %v1218_v38 = vpop.f32.mrb[117].mxu1  ;;  %5452 = vmatmul.mubr.msk.f32.gmra.mrb[222].mxu0 %vm160_vm0, %v135_v20  ;;  %5516 = vmatmul.mubr.msk.f32.gmra.mrb[222].mxu1 %vm160_vm0, %v135_v20  ;;  %v4195_v40 = vmin.f32 %v4194_v14, %v7407_v36  ;;  %v136_v13 = vld [vmem:[%s11021_s1 + $0x180] sm:$0xff]  ;;  %v3123_v55 = vmin.f32 %v7410_v22, %v7413_v63  ;;  %v7461_v42 = vmax.f32 %v7339_v27, 0.0 }
 0x1c2   :  { %11970 = vst [vmem:[#allocation244_spill] sm:$0xff] %v7442_v4  ;;  %11971 = vst [vmem:[#allocation245_spill] sm:$0xff] %v7449_v43  ;;  %2051 = vmatprep.mubr.f32.mxu0 %v11699_v25  ;;  %2500 = vmatprep.mubr.f32.mxu1 %v11699_v25  ;;  %v4126_v20 = vmin.f32 %v4125_v15, %v7386_v51  ;;  %v4264_v45 = vmin.f32 %v4263_v1, %v7423_v31  ;;  %v7469_v17 = vmax.f32 %v7360_v32, 0.0 }
 0x1c3   :  { %11972 = vst [vmem:[#allocation246_spill] sm:$0xff] %v7461_v42  ;;  %v7464_v34 = vmin.f32 %v3118_v50, %v7407_v36  ;;  %v4058_v14 = vmin.f32 %v4057_v47, %v7410_v22  ;;  %v4196_v6 = vmin.f32 %v4195_v40, %v7429_v26  ;;  %v3128_v15 = vmin.f32 %v7432_v53, %v7434_v62 }
 0x1c4   :  { %11973 = vst [vmem:[#allocation247_spill] sm:$0xff] %v7469_v17  ;;  %v773_v49 = vpop.f32.mrb[118].mxu0  ;;  %v1222_v33 = vpop.f32.mrb[118].mxu1  ;;  %v4127_v1 = vmin.f32 %v4126_v20, %v7413_v63  ;;  %v4265_v27 = vmin.f32 %v4264_v45, %v7442_v4  ;;  %v7476_v51 = vmax.f32 %v7362_v60, 0.0  ;;  %v7479_v50 = vmax.f32 %v7366_v52, 0.0  ;;  %v137_v60 = vld [vmem:[%s11021_s1 + $0x188] sm:$0xff] }
 0x1c5   :  { %v775_v47 = vpop.f32.mrb[119].mxu0  ;;  %v1224_v40 = vpop.f32.mrb[119].mxu1  ;;  %5453 = vmatmul.mubr.msk.f32.gmra.mrb[224].mxu0 %vm160_vm0, %v136_v13  ;;  %5517 = vmatmul.mubr.msk.f32.gmra.mrb[224].mxu1 %vm160_vm0, %v136_v13  ;;  %v4059_v32 = vmin.f32 %v4058_v14, %v7432_v53  ;;  %v4197_v22 = vmin.f32 %v4196_v6, %v7449_v43  ;;  %v7486_v20 = vmax.f32 %v7368_v35, 0.0  ;;  %v7494_v52 = vmin.f32 %v3123_v55, %v7429_v26 }
 0x1c6   :  { %11974 = vst [vmem:[#allocation248_spill] sm:$0xff] %v7476_v51  ;;  %11975 = vst [vmem:[#allocation249_spill] sm:$0xff] %v7479_v50  ;;  %2057 = vmatprep.mubr.f32.mxu0 %v11699_v25  ;;  %2506 = vmatprep.mubr.f32.mxu1 %v11699_v25  ;;  %v4128_v13 = vmin.f32 %v4127_v1, %v7434_v62  ;;  %v4266_v45 = vmin.f32 %v4265_v27, %v7461_v42  ;;  %v7499_v6 = vmax.f32 %v7390_v44, 0.0 }
 0x1c7   :  { %11976 = vst [vmem:[#allocation250_spill] sm:$0xff] %v7486_v20  ;;  %v7502_v35 = vmax.f32 %v7392_v41, 0.0  ;;  %v4060_v14 = vmin.f32 %v4059_v32, %v7469_v17  ;;  %v7506_v53 = vmax.f32 %v7397_v24, 0.0  ;;  %v7509_v63 = vmax.f32 %v7399_v3, 0.0 }
 0x1c8   :  { %11977 = vst [vmem:[#allocation251_spill] sm:$0xff] %v7499_v6  ;;  %v779_v55 = vpop.f32.mrb[120].mxu0  ;;  %v1228_v26 = vpop.f32.mrb[120].mxu1  ;;  %v7512_v1 = vmin.f32 %v3128_v15, %v7449_v43  ;;  %v4198_v27 = vmin.f32 %v4197_v22, %v7476_v51  ;;  %v4129_v44 = vmin.f32 %v4128_v13, %v7479_v50  ;;  %v7516_v62 = vmax.f32 %v767_v57, 0.0  ;;  %v138_v57 = vld [vmem:[%s11021_s1 + $0x190] sm:$0xff] }
 0x1c9   :  { %11978 = vst [vmem:[#allocation252_spill] sm:$0xff] %v7502_v35  ;;  %11979 = vst [vmem:[#allocation253_spill] sm:$0xff] %v7506_v53  ;;  %v7518_v41 = vmax.f32 %v1216_v46, 0.0  ;;  %v781_v32 = vpop.f32.mrb[121].mxu0  ;;  %v1230_v36 = vpop.f32.mrb[121].mxu1  ;;  %5454 = vmatmul.mubr.msk.f32.gmra.mrb[226].mxu0 %vm160_vm0, %v137_v60  ;;  %5518 = vmatmul.mubr.msk.f32.gmra.mrb[226].mxu1 %vm160_vm0, %v137_v60  ;;  %v4267_v24 = vmin.f32 %v4266_v45, %v7486_v20  ;;  %v7523_v3 = vmax.f32 %v769_v30, 0.0 }
 0x1ca   :  { %11980 = vst [vmem:[#allocation254_spill] sm:$0xff] %v7509_v63  ;;  %11981 = vst [vmem:[#allocation255_spill] sm:$0xff] %v7512_v1  ;;  %v7525_v15 = vmax.f32 %v1218_v38, 0.0  ;;  %2063 = vmatprep.mubr.f32.mxu0 %v11699_v25  ;;  %2512 = vmatprep.mubr.f32.mxu1 %v11699_v25  ;;  %v3133_v22 = vmin.f32 %v7469_v17, %v7479_v50  ;;  %v4061_v46 = vmin.f32 %v4060_v14, %v7499_v6  ;;  %v12029_v20 = vld [vmem:[#allocation216_spill] sm:$0xff] }
 0x1cb   :  { %11982 = vst [vmem:[#allocation256_spill] sm:$0xff] %v7516_v62  ;;  %11983 = vst [vmem:[#allocation257_spill] sm:$0xff] %v7518_v41  ;;  %v4199_v60 = vmin.f32 %v4198_v27, %v7502_v35  ;;  %v7536_v13 = vmax.f32 %v773_v49, 0.0  ;;  %v7538_v30 = vmax.f32 %v1222_v33, 0.0  ;;  %v4130_v38 = vmin.f32 %v4129_v44, %v7506_v53 }
 0x1cc   :  { %11984 = vst [vmem:[#allocation258_spill] sm:$0xff] %v7523_v3  ;;  %11985 = vst [vmem:[#allocation259_spill] sm:$0xff] %v7525_v15  ;;  %v4268_v45 = vmin.f32 %v4267_v24, %v7509_v63  ;;  %v7542_v43 = vmax.f32 %v775_v47, 0.0  ;;  %v7544_v2 = vmax.f32 %v1224_v40, 0.0  ;;  %v785_v8 = vpop.f32.mrb[122].mxu0  ;;  %v1234_v37 = vpop.f32.mrb[122].mxu1  ;;  %v4062_v50 = vmin.f32 %v4061_v46, %v7516_v62 }
 0x1cd   :  { %11986 = vst [vmem:[#allocation260_spill] sm:$0xff] %v7536_v13  ;;  %11987 = vst [vmem:[#allocation261_spill] sm:$0xff] %v7538_v30  ;;  %v4200_v14 = vmin.f32 %v4199_v60, %v7518_v41  ;;  %v7548_v17 = vmax.f32 %v779_v55, 0.0  ;;  %v7550_v49 = vmax.f32 %v1228_v26, 0.0  ;;  %v787_v33 = vpop.f32.mrb[123].mxu0  ;;  %v1236_v27 = vpop.f32.mrb[123].mxu1  ;;  %5455 = vmatmul.mubr.msk.f32.gmra.mrb[228].mxu0 %vm160_vm0, %v138_v57  ;;  %5519 = vmatmul.mubr.msk.f32.gmra.mrb[228].mxu1 %vm160_vm0, %v138_v57 }
 0x1ce   :  { %11988 = vst [vmem:[#allocation262_spill] sm:$0xff] %v7542_v43  ;;  %11989 = vst [vmem:[#allocation263_spill] sm:$0xff] %v7544_v2  ;;  %v4131_v47 = vmin.f32 %v4130_v38, %v7523_v3  ;;  %v4269_v40 = vmin.f32 %v4268_v45, %v7525_v15  ;;  %v7556_v44 = vmax.f32 %v781_v32, 0.0  ;;  %v7558_v24 = vmax.f32 %v1230_v36, 0.0  ;;  %2069 = vmatprep.mubr.f32.mxu0 %v11699_v25  ;;  %v139_v26 = vld [vmem:[%s11021_s1 + $0x198] sm:$0xff] }
 0x1cf   :  { %11990 = vst [vmem:[#allocation264_spill] sm:$0xff] %v7548_v17  ;;  %11991 = vst [vmem:[#allocation265_spill] sm:$0xff] %v7550_v49  ;;  %2518 = vmatprep.mubr.f32.mxu1 %v11699_v25  ;;  %v4063_v55 = vmin.f32 %v4062_v50, %v7536_v13  ;;  %v4201_v57 = vmin.f32 %v4200_v14, %v7538_v30  ;;  %v7567_v46 = vmax.f32 %v785_v8, 0.0  ;;  %v7569_v60 = vmax.f32 %v1234_v37, 0.0  ;;  %v12020_v63 = vld [vmem:[#allocation14_spill] sm:$0xff] }
 0x1d0   :  { %11992 = vst [vmem:[#allocation266_spill] sm:$0xff] %v7556_v44  ;;  %11993 = vst [vmem:[#allocation267_spill] sm:$0xff] %v7558_v24  ;;  %v4132_v32 = vmin.f32 %v4131_v47, %v7542_v43  ;;  %v4270_v36 = vmin.f32 %v4269_v40, %v7544_v2  ;;  %v7573_v38 = vmax.f32 %v787_v33, 0.0  ;;  %v7575_v45 = vmax.f32 %v1236_v27, 0.0  ;;  %v791_v21 = vpop.f32.mrb[124].mxu0  ;;  %v1240_v58 = vpop.f32.mrb[124].mxu1 }
 0x1d1   :  { %11994 = vst [vmem:[#allocation268_spill] sm:$0xff] %v7567_v46  ;;  %11995 = vst [vmem:[#allocation269_spill] sm:$0xff] %v7569_v60  ;;  %v4064_v39 = vmin.f32 %v4063_v55, %v7548_v17  ;;  %v4202_v50 = vmin.f32 %v4201_v57, %v7550_v49  ;;  %v7579_v59 = vmax.f32 %v791_v21, 0.0  ;;  %v7581_v8 = vmax.f32 %v1240_v58, 0.0  ;;  %v793_v37 = vpop.f32.mrb[125].mxu0  ;;  %v1242_v14 = vpop.f32.mrb[125].mxu1  ;;  %5456 = vmatmul.mubr.msk.f32.gmra.mrb[230].mxu0 %vm160_vm0, %v139_v26 }
 0x1d2   :  { %11996 = vst [vmem:[#allocation270_spill] sm:$0xff] %v7573_v38  ;;  %11997 = vst [vmem:[#allocation271_spill] sm:$0xff] %v7575_v45  ;;  %5520 = vmatmul.mubr.msk.f32.gmra.mrb[230].mxu1 %vm160_vm0, %v139_v26  ;;  %v4133_v33 = vmin.f32 %v4132_v32, %v7556_v44  ;;  %v4271_v27 = vmin.f32 %v4270_v36, %v7558_v24  ;;  %v7587_v47 = vmax.f32 %v793_v37, 0.0  ;;  %v7589_v40 = vmax.f32 %v1242_v14, 0.0  ;;  %v140_v58 = vld [vmem:[%s11021_s1 + $0x1a0] sm:$0xff]  ;;  %v12002_v55 = vld [vmem:[#allocation12_spill] sm:$0xff] }
 0x1d3   :  { %11998 = vst [vmem:[#allocation272_spill] sm:$0xff] %v7579_v59  ;;  %11999 = vst [vmem:[#allocation273_spill] sm:$0xff] %v7581_v8  ;;  %2075 = vmatprep.mubr.f32.mxu0 %v11699_v25  ;;  %2524 = vmatprep.mubr.f32.mxu1 %v11699_v25  ;;  %v4065_v21 = vmin.f32 %v4064_v39, %v7567_v46  ;;  %v4203_v26 = vmin.f32 %v4202_v50, %v7569_v60 }
 0x1d4   :  { %12000 = vst [vmem:[#allocation274_spill] sm:$0xff] %v7587_v47  ;;  %12001 = vst [vmem:[#allocation275_spill] sm:$0xff] %v7589_v40  ;;  %vm3173_vm1 = vcmp.eq.f32.partialorder %v12002_v55, %v7113_v23  ;;  %v3138_v57 = vmin.f32 %v7499_v6, %v7506_v53  ;;  %v3143_v32 = vmin.f32 %v7516_v62, %v7523_v3  ;;  %v797_v14 = vpop.f32.mrb[126].mxu0  ;;  %v1246_v28 = vpop.f32.mrb[126].mxu1 }
 0x1d5   :  { %v4134_v36 = vmin.f32 %v4133_v33, %v7573_v38  ;;  %v4272_v37 = vmin.f32 %v4271_v27, %v7575_v45  ;;  %v7607_v10 = vmin.f32 %v3133_v22, %v7476_v51  ;;  %v3148_v39 = vmin.f32 %v7536_v13, %v7542_v43  ;;  %v799_v3 = vpop.f32.mrb[127].mxu0  ;;  %v1248_v33 = vpop.f32.mrb[127].mxu1  ;;  %5457 = vmatmul.mubr.msk.f32.gmra.mrb[232].mxu0 %vm160_vm0, %v140_v58  ;;  %v12006_v22 = vld [vmem:[#allocation13_spill] sm:$0xff]  ;;  %v12009_v13 = vld [vmem:[#allocation210_spill] sm:$0xff] }
 0x1d6   :  { %v4066_v50 = vmin.f32 %v4065_v21, %v7579_v59  ;;  %v4204_v12 = vmin.f32 %v4203_v26, %v7581_v8  ;;  %v7613_v53 = vmax.f32 %v797_v14, 0.0  ;;  %v7615_v6 = vmax.f32 %v1246_v28, 0.0  ;;  %5521 = vmatmul.mubr.msk.f32.gmra.mrb[232].mxu1 %vm160_vm0, %v140_v58  ;;  %2081 = vmatprep.mubr.f32.mxu0 %v11699_v25  ;;  %v141_v28 = vld [vmem:[%s11021_s1 + $0x1a8] sm:$0xff]  ;;  %v12019_v59 = vld [vmem:[#allocation21_spill] sm:$0xff] }
 0x1d7   :  { %12003 = vst [vmem:[#allocation12_spill] sm:$0xff] %v7607_v10  ;;  %vm3174_vm2 = vcmp.eq.f32.partialorder %v12006_v22, %v7113_v23  ;;  %v4135_v27 = vmin.f32 %v4134_v36, %v7587_v47  ;;  %v4273_v43 = vmin.f32 %v4272_v37, %v7589_v40  ;;  %v7623_v21 = vmax.f32 %v799_v3, 0.0  ;;  %2530 = vmatprep.mubr.f32.mxu1 %v11699_v25  ;;  %v12010_v36 = vld [vmem:[#allocation15_spill] sm:$0xff] }
 0x1d8   :  { %12004 = vst [vmem:[#allocation276_spill] sm:$0xff] %v7613_v53  ;;  %12005 = vst [vmem:[#allocation277_spill] sm:$0xff] %v7615_v6  ;;  %v7625_v26 = vmax.f32 %v1248_v33, 0.0  ;;  %v4067_v58 = vmin.f32 %v4066_v50, %v7613_v53  ;;  %v4205_v14 = vmin.f32 %v4204_v12, %v7615_v6  ;;  %vm3177_vm3 = vcmp.eq.f32.partialorder %v12010_v36, %v12009_v13  ;;  %v7644_v51 = vpop.f32.mrb[128].mxu0  ;;  %v7646_v19 = vpop.f32.mrb[128].mxu1 }
 0x1d9   :  { %12007 = vst [vmem:[#allocation13_spill] sm:$0xff] %v7623_v21  ;;  %v7637_v3 = vmin.f32 %v3138_v57, %v7502_v35  ;;  %v7640_v37 = vmin.f32 %v3143_v32, %v7518_v41  ;;  %v4136_v33 = vmin.f32 %v4135_v27, %v7623_v21  ;;  %5458 = vmatmul.mubr.msk.f32.gmra.mrb[234].mxu0 %vm160_vm0, %v141_v28  ;;  %v7660_v12 = vpop.f32.mrb[129].mxu0  ;;  %v12015_v11 = vand.u32 2147483647, %v7644_v51 }
 0x1da   :  { %12008 = vst [vmem:[#allocation278_spill] sm:$0xff] %v7625_v26  ;;  %v4274_v62 = vmin.f32 %v4273_v43, %v7625_v26  ;;  %v4068_v54 = vrot.slane %v4067_v58, 4  ;;  %v4206_v57 = vrot.slane %v4205_v14, 4  ;;  %5522 = vmatmul.mubr.msk.f32.gmra.mrb[234].mxu1 %vm160_vm0, %v141_v28  ;;  %v12013_v43 = vld [vmem:[#allocation17_spill] sm:$0xff]  ;;  %v7658_v32 = vmin.f32 %v3148_v39, %v7538_v30  ;;  %v7662_v26 = vpop.f32.mrb[129].mxu1  ;;  %2087 = vmatprep.mubr.f32.mxu0 %v11699_v25 }
 0x1db   :  { %12011 = vst [vmem:[#allocation210_spill] sm:$0xff] %v7637_v3  ;;  %12012 = vst [vmem:[#allocation15_spill] sm:$0xff] %v7640_v37  ;;  %vm3178_vm4 = vcmp.eq.f32.partialorder %v12013_v43, %v12009_v13  ;;  %v4137_v27 = vrot.slane %v4136_v33, 4  ;;  %2536 = vmatprep.mubr.f32.mxu1 %v11699_v25  ;;  %v142_v28 = vld [vmem:[%s11021_s1 + $0x1b0] sm:$0xff]  ;;  %v7682_v61 = vsel %vm3173_vm1, %v12015_v11, 0.0  ;;  %vm3175_vm7 = vcmp.eq.f32.partialorder %v12020_v63, %v7113_v23 }
 0x1dc   :  { %12014 = vst [vmem:[#allocation17_spill] sm:$0xff] %v7658_v32  ;;  %v4275_v41 = vrot.slane %v4274_v62, 4  ;;  %v4069_v35 = vmin.f32 %v4067_v58, %v4068_v54  ;;  %v4207_v30 = vmin.f32 %v4205_v14, %v4206_v57  ;;  %v11520_v50 = vand.u32 2147483647, %v7660_v12  ;;  %v7685_v39 = vpop.f32.mrb[130].mxu0  ;;  %v7687_v54 = vpop.f32.mrb[130].mxu1 }
 0x1dd   :  { %v4138_v21 = vmin.f32 %v4136_v33, %v4137_v27  ;;  %v7690_v53 = vpop.f32.mrb[131].mxu0  ;;  %5459 = vmatmul.mubr.msk.f32.gmra.mrb[236].mxu0 %vm160_vm0, %v142_v28  ;;  %v12027_v29 = vand.u32 2147483647, %v7685_v39  ;;  %v12028_v3 = vand.u32 2147483647, %v7687_v54 }
 0x1de   :  { %v4276_v48 = vmin.f32 %v4274_v62, %v4275_v41  ;;  %v4070_v58 = vrot.slane %v4069_v35, 2  ;;  %v4208_v14 = vrot.slane %v4207_v30, 2  ;;  %v7693_v62 = vpop.f32.mrb[131].mxu1  ;;  %5523 = vmatmul.mubr.msk.f32.gmra.mrb[236].mxu1 %vm160_vm0, %v142_v28  ;;  %v7704_v6 = vsel %vm3174_vm2, %v11520_v50, 0.0  ;;  %2093 = vmatprep.mubr.f32.mxu0 %v11699_v25  ;;  %v143_v28 = vld [vmem:[%s11021_s1 + $0x1b8] sm:$0xff] }
 0x1df   :  { %v4139_v41 = vrot.slane %v4138_v21, 2  ;;  %2542 = vmatprep.mubr.f32.mxu1 %v11699_v25  ;;  %v12016_v50 = vand.u32 2147483647, %v7685_v39  ;;  %v2602_v2 = vand.u32 2147483647, %v7690_v53 }
 0x1e0   :  { %v4277_v33 = vrot.slane %v4276_v48, 2  ;;  %v4071_v11 = vmin.f32 %v4069_v35, %v4070_v58  ;;  %v4209_v57 = vmin.f32 %v4207_v30, %v4208_v14  ;;  %v7722_v32 = vpop.f32.mrb[132].mxu0  ;;  %v12017_v35 = vld [vmem:[#allocation206_spill] sm:$0xff]  ;;  %v12018_v30 = vld [vmem:[#allocation19_spill] sm:$0xff]  ;;  %v7726_v58 = vpop.f32.mrb[132].mxu1 }
 0x1e1   :  { %v4140_v18 = vmin.f32 %v4138_v21, %v4139_v41  ;;  %v7719_v5 = vsel %vm3177_vm3, %v12016_v50, 0.0  ;;  %vm3181_vm5 = vcmp.eq.f32.partialorder %v12018_v30, %v12017_v35  ;;  %v7729_v21 = vpop.f32.mrb[133].mxu0  ;;  %5460 = vmatmul.mubr.msk.f32.gmra.mrb[238].mxu0 %vm160_vm0, %v143_v28  ;;  %v7732_v41 = vpop.f32.mrb[133].mxu1  ;;  %v7740_v40 = vsel %vm3178_vm4, %v2602_v2, 0.0 }
 0x1e2   :  { %v4278_v8 = vmin.f32 %v4276_v48, %v4277_v33  ;;  %v4072_v14 = vrot.slane %v4071_v11, 1  ;;  %v4210_v27 = vrot.slane %v4209_v57, 1  ;;  %5524 = vmatmul.mubr.msk.f32.gmra.mrb[238].mxu1 %vm160_vm0, %v143_v28  ;;  %vm3182_vm6 = vcmp.eq.f32.partialorder %v12019_v59, %v12017_v35  ;;  %2099 = vmatprep.mubr.f32.mxu0 %v11699_v25  ;;  %v144_v28 = vld [vmem:[%s11021_s1 + $0x1c0] sm:$0xff] }
 0x1e3   :  { %v4141_v50 = vrot.slane %v4140_v18, 1  ;;  %2548 = vmatprep.mubr.f32.mxu1 %v11699_v25  ;;  %v2605_v48 = vand.u32 2147483647, %v7722_v32  ;;  %v2606_v45 = vand.u32 2147483647, %v7729_v21 }
 0x1e4   :  { %v4279_v33 = vrot.slane %v4278_v8, 1  ;;  %v7750_v53 = vmin.f32 %v4071_v11, %v4072_v14  ;;  %v7752_v47 = vmin.f32 %v4209_v57, %v4210_v27  ;;  %v12021_v11 = vld [vmem:[#allocation16_spill] sm:$0xff]  ;;  %v7767_v57 = vpop.f32.mrb[134].mxu0  ;;  %v7769_v27 = vpop.f32.mrb[134].mxu1  ;;  %v12023_v14 = vand.u32 2147483647, %v7644_v51 }
 0x1e5   :  { %v7757_v15 = vmin.f32 %v4140_v18, %v4141_v50  ;;  %vm3176_vm8 = vcmp.eq.f32.partialorder %v12021_v11, %v7113_v23  ;;  %v12022_v18 = vld [vmem:[#allocation18_spill] sm:$0xff]  ;;  %5461 = vmatmul.mubr.msk.f32.gmra.mrb[240].mxu0 %vm160_vm0, %v144_v28  ;;  %v7782_v32 = vpop.f32.mrb[135].mxu1  ;;  %v12025_v51 = vand.u32 2147483647, %v7660_v12  ;;  %v12031_v12 = vld [vmem:[#allocation20_spill] sm:$0xff]  ;;  %v12042_v23 = vld [vmem:[#allocation29_spill] sm:$0xff] }
 0x1e6   :  { %v7759_v37 = vmin.f32 %v4278_v8, %v4279_v33  ;;  %vm4281_vm9 = vcmp.eq.f32.partialorder %v12002_v55, %v7750_v53  ;;  %vm4283_vm10 = vcmp.eq.f32.partialorder %v12020_v63, %v7752_v47  ;;  %vm4285_vm11 = vcmp.eq.f32.partialorder %v12010_v36, %v7750_v53  ;;  %v7779_v8 = vpop.f32.mrb[135].mxu0  ;;  %5525 = vmatmul.mubr.msk.f32.gmra.mrb[240].mxu1 %vm160_vm0, %v144_v28  ;;  %v145_v36 = vld [vmem:[%s11021_s1 + $0x1c8] sm:$0xff]  ;;  %v12030_v28 = vld [vmem:[#allocation23_spill] sm:$0xff] }
 0x1e7   :  { %vm4287_vm12 = vcmp.eq.f32.partialorder %v12022_v18, %v7752_v47  ;;  %v4537_v21 = vsel %vm4281_vm9, %v12023_v14, 0.0  ;;  %v12024_v55 = vand.u32 2147483647, %v7646_v19  ;;  %vm4282_vm13 = vcmp.eq.f32.partialorder %v12006_v22, %v7757_v15  ;;  %2105 = vmatprep.mubr.f32.mxu0 %v11699_v25  ;;  %2554 = vmatprep.mubr.f32.mxu1 %v11699_v25 }
 0x1e8   :  { %vm4284_vm14 = vcmp.eq.f32.partialorder %v12021_v11, %v7759_v37  ;;  %v4538_v33 = vsel %vm4282_vm13, %v12025_v51, 0.0  ;;  %v12026_v14 = vand.u32 2147483647, %v7662_v26  ;;  %v4541_v22 = vsel %vm4285_vm11, %v12027_v29, 0.0  ;;  %v12032_v51 = vld [vmem:[#allocation25_spill] sm:$0xff]  ;;  %v7814_v29 = vpop.f32.mrb[136].mxu0 }
 0x1e9   :  { %v4539_v50 = vsel %vm4283_vm10, %v12024_v55, 0.0  ;;  %v4543_v7 = vsel %vm4287_vm12, %v12028_v3, 0.0  ;;  %vm3185_vm15 = vcmp.eq.f32.partialorder %v12030_v28, %v12029_v20  ;;  %v4793_v10 = vmax.f32 %v4537_v21, %v4541_v22  ;;  %v7816_v39 = vpop.f32.mrb[136].mxu1  ;;  %5462 = vmatmul.mubr.msk.f32.gmra.mrb[242].mxu0 %vm160_vm0, %v145_v36  ;;  %v147_v11 = vld [vmem:[%s11021_s1 + $0x1d8] sm:$0xff] }
 0x1ea   :  { %v4540_v55 = vsel %vm4284_vm14, %v12026_v14, 0.0  ;;  %v4931_v60 = vmax.f32 %v4539_v50, %v4543_v7  ;;  %vm4286_vm1 = vcmp.eq.f32.partialorder %v12013_v43, %v7757_v15  ;;  %vm4288_vm2 = vcmp.eq.f32.partialorder %v12031_v12, %v7759_v37  ;;  %v7827_v43 = vpop.f32.mrb[137].mxu0  ;;  %v7830_v21 = vpop.f32.mrb[137].mxu1  ;;  %5526 = vmatmul.mubr.msk.f32.gmra.mrb[242].mxu1 %vm160_vm0, %v145_v36  ;;  %2111 = vmatprep.mubr.f32.mxu0 %v11699_v25 }
 0x1eb   :  { %vm3186_vm3 = vcmp.eq.f32.partialorder %v12032_v51, %v12029_v20  ;;  %v4542_v3 = vsel %vm4286_vm1, %v2602_v2, 0.0  ;;  %v12033_v14 = vand.u32 2147483647, %v7693_v62  ;;  %v7823_v7 = vsel %vm3181_vm5, %v2605_v48, 0.0  ;;  %2560 = vmatprep.mubr.f32.mxu1 %v11699_v25 }
 0x1ec   :  { %vm4289_vm4 = vcmp.eq.f32.partialorder %v12018_v30, %v7750_v53  ;;  %vm3179_vm9 = vcmp.eq.f32.partialorder %v12022_v18, %v12009_v13  ;;  %v4862_v2 = vmax.f32 %v4538_v33, %v4542_v3  ;;  %v146_v30 = vld [vmem:[%s11021_s1 + $0x1d0] sm:$0xff]  ;;  %v12035_v1 = vand.u32 2147483647, %v7726_v58  ;;  %v7860_v33 = vpop.f32.mrb[138].mxu0 }
 0x1ed   :  { %v4544_v0 = vsel %vm4288_vm2, %v12033_v14, 0.0  ;;  %v4545_v22 = vsel %vm4289_vm4, %v2605_v48, 0.0  ;;  %v12034_v14 = vld [vmem:[#allocation22_spill] sm:$0xff]  ;;  %vm4290_vm5 = vcmp.eq.f32.partialorder %v12019_v59, %v7757_v15  ;;  %vm3180_vm11 = vcmp.eq.f32.partialorder %v12031_v12, %v12009_v13  ;;  %5463 = vmatmul.mubr.msk.f32.gmra.mrb[244].mxu0 %vm160_vm0, %v146_v30 }
 0x1ee   :  { %v5000_v50 = vmax.f32 %v4540_v55, %v4544_v0  ;;  %vm4291_vm10 = vcmp.eq.f32.partialorder %v12034_v14, %v7752_v47  ;;  %v7841_v42 = vmax.f32 %v4793_v10, %v4545_v22  ;;  %v7848_v0 = vsel %vm3182_vm6, %v2606_v45, 0.0  ;;  %v7862_v55 = vpop.f32.mrb[138].mxu1  ;;  %v12039_v10 = vld [vmem:[#allocation27_spill] sm:$0xff]  ;;  %5527 = vmatmul.mubr.msk.f32.gmra.mrb[244].mxu1 %vm160_vm0, %v146_v30  ;;  %2117 = vmatprep.mubr.f32.mxu0 %v11699_v25 }
 0x1ef   :  { %v4547_v4 = vsel %vm4291_vm10, %v12035_v1, 0.0  ;;  %v4546_v36 = vsel %vm4290_vm5, %v2606_v45, 0.0  ;;  %v12036_v3 = vand.u32 2147483647, %v7646_v19  ;;  %vm3189_vm12 = vcmp.eq.f32.partialorder %v12039_v10, %v7228_v56  ;;  %v7880_v1 = vpop.f32.mrb[139].mxu0  ;;  %v7883_v19 = vpop.f32.mrb[139].mxu1  ;;  %2566 = vmatprep.mubr.f32.mxu1 %v11699_v25 }
 0x1f0   :  { %v7855_v48 = vmax.f32 %v4931_v60, %v4547_v4  ;;  %v7869_v22 = vmax.f32 %v4862_v2, %v4546_v36  ;;  %v12037_v4 = vld [vmem:[#allocation24_spill] sm:$0xff]  ;;  %v12038_v60 = vand.u32 2147483647, %v7662_v26  ;;  %v12040_v63 = vand.u32 2147483647, %v7732_v41 }
 0x1f1   :  { %v3431_v59 = vsel %vm3175_vm7, %v12036_v3, 0.0  ;;  %vm4292_vm6 = vcmp.eq.f32.partialorder %v12037_v4, %v7759_v37  ;;  %v12041_v36 = vmax.f32 %v7682_v61, %v7704_v6  ;;  %v2609_v3 = vand.u32 2147483647, %v7767_v57  ;;  %v12043_v6 = vld [vmem:[#allocation26_spill] sm:$0xff]  ;;  %5464 = vmatmul.mubr.msk.f32.gmra.mrb[246].mxu0 %vm160_vm0, %v147_v11 }
 0x1f2   :  { %v3432_v45 = vsel %vm3176_vm8, %v12038_v60, 0.0  ;;  %v4548_v2 = vsel %vm4292_vm6, %v12040_v63, 0.0  ;;  %vm4293_vm7 = vcmp.eq.f32.partialorder %v12030_v28, %v7750_v53  ;;  %vm3190_vm8 = vcmp.eq.f32.partialorder %v12042_v23, %v7228_v56  ;;  %v7916_v63 = vpop.f32.mrb[140].mxu0  ;;  %5528 = vmatmul.mubr.msk.f32.gmra.mrb[246].mxu1 %vm160_vm0, %v147_v11  ;;  %2123 = vmatprep.mubr.f32.mxu0 %v11699_v25 }
 0x1f3   :  { %v3686_v26 = vmax.f32 %v12041_v36, %v3431_v59  ;;  %v7900_v60 = vmax.f32 %v5000_v50, %v4548_v2  ;;  %v11554_v61 = vand.u32 2147483647, %v7769_v27  ;;  %vm4295_vm13 = vcmp.eq.f32.partialorder %v12043_v6, %v7752_v47  ;;  %v7918_v2 = vpop.f32.mrb[140].mxu1  ;;  %v7930_v28 = vpop.f32.mrb[141].mxu0  ;;  %2572 = vmatprep.mubr.f32.mxu1 %v11699_v25 }
 0x1f4   :  { %v2610_v57 = vand.u32 2147483647, %v7779_v8  ;;  %vm3183_vm14 = vcmp.eq.f32.partialorder %v12034_v14, %v12017_v35  ;;  %v7912_v59 = vsel %vm3185_vm15, %v2609_v3, 0.0  ;;  %v4549_v50 = vsel %vm4293_vm7, %v2609_v3, 0.0  ;;  %12044 = vst [vmem:[#allocation206_spill] sm:$0xff] %v7918_v2  ;;  %12045 = vst [vmem:[#allocation19_spill] sm:$0xff] %v7930_v28 }
 0x1f5   :  { %v3687_v30 = vmax.f32 %v3686_v26, %v3432_v45  ;;  %vm4294_vm1 = vcmp.eq.f32.partialorder %v12032_v51, %v7757_v15  ;;  %v4795_v8 = vmax.f32 %v7841_v42, %v4549_v50  ;;  %v4551_v36 = vsel %vm4295_vm13, %v11554_v61, 0.0  ;;  %v7933_v26 = vpop.f32.mrb[141].mxu1  ;;  %v12053_v50 = vld [vmem:[#allocation33_spill] sm:$0xff] }
 0x1f6   :  { %v7926_v45 = vsel %vm3186_vm3, %v2610_v57, 0.0  ;;  %vm3184_vm15 = vcmp.eq.f32.partialorder %v12037_v4, %v12017_v35  ;;  %12046 = vst [vmem:[#allocation21_spill] sm:$0xff] %v7933_v26  ;;  %v12047_v42 = vmin.f32 %v7548_v17, %v7556_v44  ;;  %v4933_v51 = vmax.f32 %v7855_v48, %v4551_v36  ;;  %v148_v26 = vld [vmem:[%s11021_s1 + $0x1e0] sm:$0xff]  ;;  %v12049_v36 = vld [vmem:[#allocation28_spill] sm:$0xff]  ;;  %v7976_v44 = vpop.f32.mrb[142].mxu0  ;;  %v7978_v11 = vpop.f32.mrb[142].mxu1 }
 0x1f7   :  { %3688 = vmax.xlane.f32.xlu0 %v3687_v30  ;;  %v4550_v61 = vsel %vm4294_vm1, %v2610_v57, 0.0  ;;  %v11559_v2 = vand.u32 2147483647, %v7782_v32  ;;  %v12048_v28 = vand.u32 2147483647, %v7687_v54  ;;  %vm4296_vm2 = vcmp.eq.f32.partialorder %v12049_v36, %v7759_v37  ;;  %v12050_v57 = vld [vmem:[#allocation31_spill] sm:$0xff]  ;;  %5465 = vmatmul.mubr.msk.f32.gmra.mrb[248].mxu0 %vm160_vm0, %v148_v26 }
 0x1f8   :  { %v7939_v3 = vmin.f32 %v12047_v42, %v7550_v49  ;;  %v4864_v48 = vmax.f32 %v7869_v22, %v4550_v61  ;;  %vm3193_vm3 = vcmp.eq.f32.partialorder %v12050_v57, %v7259_v9  ;;  %v12051_v18 = vand.u32 2147483647, %v7693_v62  ;;  %5529 = vmatmul.mubr.msk.f32.gmra.mrb[248].mxu1 %vm160_vm0, %v148_v26  ;;  %2129 = vmatprep.mubr.f32.mxu0 %v11699_v25 }
 0x1f9   :  { %v3435_v30 = vsel %vm3179_vm9, %v12048_v28, 0.0  ;;  %v4552_v54 = vsel %vm4296_vm2, %v11559_v2, 0.0  ;;  %v12052_v61 = vmax.f32 %v7719_v5, %v7740_v40  ;;  %v2613_v42 = vand.u32 2147483647, %v7814_v29  ;;  %v7985_v5 = vpop.f32.mrb[143].mxu0  ;;  %v7988_v40 = vpop.f32.mrb[143].mxu1  ;;  %2578 = vmatprep.mubr.f32.mxu1 %v11699_v25 }
 0x1fa   :  { %v3436_v22 = vsel %vm3180_vm11, %v12051_v18, 0.0  ;;  %vm3194_vm4 = vcmp.eq.f32.partialorder %v12053_v50, %v7259_v9  ;;  %v5002_v2 = vmax.f32 %v7900_v60, %v4552_v54  ;;  %vm4297_vm9 = vcmp.eq.f32.partialorder %v12039_v10, %v7750_v53  ;;  %v149_v54 = vld [vmem:[%s11021_s1 + $0x1e8] sm:$0xff] }
 0x1fb   :  { %v3691_v28 = vmax.f32 %v12052_v61, %v3435_v30  ;;  %v11560_v13 = vand.u32 2147483647, %v7816_v39  ;;  %v2614_v62 = vand.u32 2147483647, %v7827_v43  ;;  %vm3187_vm10 = vcmp.eq.f32.partialorder %v12043_v6, %v12029_v20  ;;  %v12055_v30 = vld [vmem:[#allocation30_spill] sm:$0xff]  ;;  %5466 = vmatmul.mubr.msk.f32.gmra.mrb[250].mxu0 %vm160_vm0, %v149_v54 }
 0x1fc   :  { %v12054_v12 = vmin.f32 %v7464_v34, %v7423_v31  ;;  %v7998_v60 = vsel %vm3189_vm12, %v2613_v42, 0.0  ;;  %v4553_v43 = vsel %vm4297_vm9, %v2613_v42, 0.0  ;;  %vm4299_vm5 = vcmp.eq.f32.partialorder %v12055_v30, %v7752_v47  ;;  %v8028_v42 = vpop.f32.mrb[144].mxu1  ;;  %5530 = vmatmul.mubr.msk.f32.gmra.mrb[250].mxu1 %vm160_vm0, %v149_v54  ;;  %2135 = vmatprep.mubr.f32.mxu0 %v11699_v25 }
 0x1fd   :  { %v3692_v29 = vmax.f32 %v3691_v28, %v3436_v22  ;;  %v8006_v18 = vmax.f32 %v4795_v8, %v4553_v43  ;;  %v4555_v34 = vsel %vm4299_vm5, %v11560_v13, 0.0  ;;  %v8013_v10 = vsel %vm3190_vm8, %v2614_v62, 0.0  ;;  %v8026_v28 = vpop.f32.mrb[144].mxu0  ;;  %2584 = vmatprep.mubr.f32.mxu1 %v11699_v25 }
 0x1fe   :  { %3121 = vmin.xlane.f32.xlu0 %v12054_v12  ;;  %vm4298_vm11 = vcmp.eq.f32.partialorder %v12042_v23, %v7757_v15  ;;  %vm3188_vm6 = vcmp.eq.f32.partialorder %v12049_v36, %v12029_v20  ;;  %v8021_v8 = vmax.f32 %v4933_v51, %v4555_v34  ;;  %v11566_v61 = vand.u32 2147483647, %v7830_v21  ;;  %v12057_v51 = vld [vmem:[#allocation32_spill] sm:$0xff]  ;;  %v8044_v34 = vpop.f32.mrb[145].mxu1  ;;  %v12077_v20 = vld [vmem:[#allocation206_spill] sm:$0xff] }
 0x1ff   :  { %3693 = vmax.xlane.f32.xlu1 %v3692_v29  ;;  %v4554_v22 = vsel %vm4298_vm11, %v2614_v62, 0.0  ;;  %v12056_v23 = vand.u32 2147483647, %v7726_v58  ;;  %vm4300_vm12 = vcmp.eq.f32.partialorder %v12057_v51, %v7759_v37  ;;  %v12058_v29 = vld [vmem:[#allocation35_spill] sm:$0xff]  ;;  %v8041_v62 = vpop.f32.mrb[145].mxu0  ;;  %v12062_v13 = vmax.f32 %v7823_v7, %v7848_v0  ;;  %v12063_v58 = vld [vmem:[#allocation37_spill] sm:$0xff] }
 0x200   :  { %v8035_v43 = vmax.f32 %v4864_v48, %v4554_v22  ;;  %vm3197_vm7 = vcmp.eq.f32.partialorder %v12058_v29, %v7261_v16  ;;  %v4556_v14 = vsel %vm4300_vm12, %v11566_v61, 0.0  ;;  %v12059_v48 = vld [vmem:[#allocation244_spill] sm:$0xff]  ;;  %v2617_v49 = vand.u32 2147483647, %v7860_v33 }
 0x201   :  { %v3439_v12 = vsel %vm3183_vm14, %v12056_v23, 0.0  ;;  %v12060_v22 = vmin.f32 %v7494_v52, %v12059_v48  ;;  %v12061_v23 = vand.u32 2147483647, %v7732_v41  ;;  %vm3198_vm8 = vcmp.eq.f32.partialorder %v12063_v58, %v7261_v16  ;;  %v150_v52 = vld [vmem:[%s11021_s1 + $0x1f0] sm:$0xff] }
 0x202   :  { %v3696_v17 = vmax.f32 %v12062_v13, %v3439_v12  ;;  %v8068_v41 = vmax.f32 %v5002_v2, %v4556_v14  ;;  %vm4301_vm13 = vcmp.eq.f32.partialorder %v12050_v57, %v7750_v53  ;;  %v11565_v35 = vand.u32 2147483647, %v7862_v55  ;;  %v12064_v2 = vld [vmem:[#allocation34_spill] sm:$0xff]  ;;  %v8085_v13 = vpop.f32.mrb[146].mxu0  ;;  %5467 = vmatmul.mubr.msk.f32.gmra.mrb[252].mxu0 %vm160_vm0, %v150_v52  ;;  %5531 = vmatmul.mubr.msk.f32.gmra.mrb[252].mxu1 %vm160_vm0, %v150_v52  ;;  %v12076_v48 = vld [vmem:[#allocation41_spill] sm:$0xff] }
 0x203   :  { %3126 = vmin.xlane.f32.xlu0 %v12060_v22  ;;  %v3440_v26 = vsel %vm3184_vm15, %v12061_v23, 0.0  ;;  %v2618_v7 = vand.u32 2147483647, %v7880_v1  ;;  %vm3191_vm14 = vcmp.eq.f32.partialorder %v12055_v30, %v7228_v56  ;;  %v8081_v33 = vsel %vm3193_vm3, %v2617_v49, 0.0  ;;  %v8087_v1 = vpop.f32.mrb[146].mxu1  ;;  %v12065_v23 = vld [vmem:[#allocation255_spill] sm:$0xff]  ;;  %2141 = vmatprep.mubr.f32.mxu0 %v11699_v25 }
 0x204   :  { %v3697_v0 = vmax.f32 %v3696_v17, %v3440_v26  ;;  %v4557_v4 = vsel %vm4301_vm13, %v2617_v49, 0.0  ;;  %vm4303_vm1 = vcmp.eq.f32.partialorder %v12064_v2, %v7752_v47  ;;  %vm4302_vm15 = vcmp.eq.f32.partialorder %v12053_v50, %v7757_v15  ;;  %v8101_v49 = vpop.f32.mrb[147].mxu0  ;;  %v8104_v57 = vpop.f32.mrb[147].mxu1  ;;  %v12066_v50 = vld [vmem:[#allocation246_spill] sm:$0xff]  ;;  %v12071_v26 = vld [vmem:[#allocation39_spill] sm:$0xff]  ;;  %2590 = vmatprep.mubr.f32.mxu1 %v11699_v25 }
 0x205   :  { %v4797_v54 = vmax.f32 %v8006_v18, %v4557_v4  ;;  %v4559_v12 = vsel %vm4303_vm1, %v11565_v35, 0.0  ;;  %v8095_v17 = vsel %vm3194_vm4, %v2618_v7, 0.0  ;;  %vm3192_vm2 = vcmp.eq.f32.partialorder %v12057_v51, %v7228_v56  ;;  %v151_v35 = vld [vmem:[%s11021_s1 + $0x1f8] sm:$0xff]  ;;  %s5633_s1 = smov [#allocation2]  }
 0x206   :  { %3698 = vmax.xlane.f32.xlu1 %v3697_v0  ;;  %v4935_v18 = vmax.f32 %v8021_v8, %v4559_v12  ;;  %v4558_v14 = vsel %vm4302_vm15, %v2618_v7, 0.0  ;;  %v11569_v22 = vand.u32 2147483647, %v7883_v19  ;;  %v12067_v4 = vmin.f32 %v12065_v23, %v12066_v50  ;;  %v12069_v7 = vld [vmem:[#allocation36_spill] sm:$0xff]  ;;  %v12070_v12 = vld [vmem:[#allocation226_spill] sm:$0xff]  ;;  %v12072_v23 = vld [vmem:[#allocation269_spill] sm:$0xff]  ;;  %5468 = vmatmul.mubr.msk.f32.gmra.mrb[254].mxu0 %vm160_vm0, %v151_v35 }
 0x207   :  { %v12068_v61 = vand.u32 2147483647, %v7769_v27  ;;  %v4866_v0 = vmax.f32 %v8035_v43, %v4558_v14  ;;  %vm4304_vm3 = vcmp.eq.f32.partialorder %v12069_v7, %v7759_v37  ;;  %vm3201_vm4 = vcmp.eq.f32.partialorder %v12071_v26, %v12070_v12  ;;  %5532 = vmatmul.mubr.msk.f32.gmra.mrb[254].mxu1 %vm160_vm0, %v151_v35  ;;  %s5228_s17 = sshll.u32 %s5633_s1, 4  ;;  %s5229_s17 = int_to_ptr.vmem [resolvable:$true] %s5228_s17 }
 0x208   :  { %3131 = vmin.xlane.f32.xlu0 %v12067_v4  ;;  %v12073_v27 = vmin.f32 %v7567_v46, %v7573_v38  ;;  %v4560_v6 = vsel %vm4304_vm3, %v11569_v22, 0.0  ;;  %v12075_v52 = vmax.f32 %v7912_v59, %v7926_v45  ;;  %v2621_v50 = vand.u32 2147483647, %v7916_v63  ;;  %v8149_v38 = vpop.f32.mrb[148].mxu1  ;;  %v12078_v59 = vld [vmem:[#allocation19_spill] sm:$0xff]  ;;  %s5538_s18 = scalar_lea.vmem %s5229_s17, 16  ;;  %p5543_p1 = scmp.lt.s32.totalorder %s5229_s17, %s5229_s17 }
 0x209   :  { %v3443_v8 = vsel %vm3187_vm10, %v12068_v61, 0.0  ;;  %v12074_v61 = vand.u32 2147483647, %v7782_v32  ;;  %vm3202_vm9 = vcmp.eq.f32.partialorder %v12076_v48, %v12070_v12  ;;  %v5004_v32 = vmax.f32 %v8068_v41, %v4560_v6  ;;  %v8160_v63 = vpop.f32.mrb[149].mxu1  ;;  %v12079_v6 = vld [vmem:[#allocation38_spill] sm:$0xff]  ;;  %p5539_p0 = scmp.ne.s32.totalorder %s5229_s17, %s5538_s18  ;;  %s5542_s0 = scalar_lea.vmem %s5229_s17, 32 }
 0x20a   :  { %v8132_v4 = vmin.f32 %v12073_v27, %v12072_v23  ;;  %v3701_v14 = vmax.f32 %v12075_v52, %v3443_v8  ;;  %v8147_v27 = vpop.f32.mrb[148].mxu0  ;;  %vm4305_vm10 = vcmp.eq.f32.partialorder %v12058_v29, %v7750_v53  ;;  %v2622_v45 = vand.u32 2147483647, %v12078_v59  ;;  %v12080_v52 = vld [vmem:[#allocation12_spill] sm:$0xff]  ;;  %v12081_v59 = vld [vmem:[#allocation250_spill] sm:$0xff]  ;;  %p5544_p2 = scmp.lt.s32.totalorder %s5542_s0, %s5538_s18 }
 0x20b   :  { %v3444_v43 = vsel %vm3188_vm6, %v12074_v61, 0.0  ;;  %v8157_v8 = vpop.f32.mrb[149].mxu0  ;;  %vm3195_vm5 = vcmp.eq.f32.partialorder %v12064_v2, %v7259_v9  ;;  %v8167_v25 = vsel %vm3197_vm7, %v2621_v50, 0.0  ;;  %v4561_v41 = vsel %vm4305_vm10, %v2621_v50, 0.0  ;;  %v12093_v50 = vld [vmem:[#allocation271_spill] sm:$0xff] }
 0x20c   :  { %v3702_v61 = vmax.f32 %v3701_v14, %v3444_v43  ;;  %vm4307_vm11 = vcmp.eq.f32.partialorder %v12079_v6, %v7752_v47  ;;  %v12082_v22 = vmin.f32 %v12080_v52, %v12081_v59  ;;  %v8174_v36 = vmax.f32 %v4797_v54, %v4561_v41  ;;  %v8193_v14 = vpop.f32.mrb[150].mxu0  ;;  %v8195_v41 = vpop.f32.mrb[150].mxu1  ;;  %v12100_v59 = vld [vmem:[#allocation45_spill] sm:$0xff]  ;;  %p5545_p3 = por %p5544_p2, %p5543_p1 }
 0x20d   :  { %v12083_v46 = vand.u32 2147483647, %v12077_v20  ;;  %v8181_v43 = vsel %vm3198_vm8, %v2622_v45, 0.0  ;;  %vm4306_vm6 = vcmp.eq.f32.partialorder %v12063_v58, %v7757_v15  ;;  %vm3196_vm12 = vcmp.eq.f32.partialorder %v12069_v7, %v7259_v9  ;;  %12085 = vst [vmem:[#allocation14_spill] sm:$0xff] %v8193_v14  ;;  %12086 = vst [vmem:[#allocation16_spill] sm:$0xff] %v8195_v41  ;;  %v8210_v54 = vpop.f32.mrb[151].mxu1 }
 0x20e   :  { %3136 = vmin.xlane.f32.xlu0 %v12082_v22  ;;  %3703 = vmax.xlane.f32.xlu1 %v3702_v61  ;;  %v12084_v22 = vld [vmem:[#allocation21_spill] sm:$0xff]  ;;  %v12087_v58 = vand.u32 2147483647, %v7816_v39  ;;  %v12090_v61 = vld [vmem:[#allocation43_spill] sm:$0xff]  ;;  %12092 = vst [vmem:[#allocation216_spill] sm:$0xff] %v8210_v54  ;;  %v12097_v41 = vld [vmem:[#allocation210_spill] sm:$0xff]  ;;  %vm4309_vm13 = vcmp.eq.f32.partialorder %v12071_v26, %v7750_v53  ;;  %vm4310_vm15 = vcmp.eq.f32.partialorder %v12076_v48, %v7757_v15  ;;  %p5546_p4 = pnand %p5545_p3, %p5539_p0 }
 0x20f   :  { %v4563_v23 = vsel %vm4307_vm11, %v12083_v46, 0.0  ;;  %v4562_v46 = vsel %vm4306_vm6, %v2622_v45, 0.0  ;;  %v8208_v45 = vpop.f32.mrb[151].mxu0  ;;  %v12094_v39 = vand.u32 2147483647, %v12084_v22  ;;  %v12098_v54 = vld [vmem:[#allocation254_spill] sm:$0xff]  ;;  %vm4313_vm10 = vcmp.eq.f32.partialorder %v12090_v61, %v7750_v53 }
 0x210   :  { %v8188_v29 = vmax.f32 %v4935_v18, %v4563_v23  ;;  %v3447_v52 = vsel %vm3191_vm14, %v12087_v58, 0.0  ;;  %v8202_v35 = vmax.f32 %v4866_v0, %v4562_v46  ;;  %v12088_v18 = vld [vmem:[#allocation40_spill] sm:$0xff]  ;;  %v12089_v23 = vld [vmem:[#allocation227_spill] sm:$0xff]  ;;  %12091 = vst [vmem:[#allocation18_spill] sm:$0xff] %v8208_v45  ;;  %v12095_v30 = vand.u32 2147483647, %v7830_v21 }
 0x211   :  { %vm4308_vm0 = vcmp.eq.f32.partialorder %v12088_v18, %v7759_v37  ;;  %vm3205_vm7 = vcmp.eq.f32.partialorder %v12090_v61, %v12089_v23  ;;  %v12096_v46 = vmax.f32 %v7998_v60, %v8013_v10  ;;  %v2625_v45 = vand.u32 2147483647, %v7976_v44  ;;  %v8245_v51 = vpop.f32.mrb[152].mxu0  ;;  %v8259_v26 = vpop.f32.mrb[152].mxu1 }
 0x212   :  { %v4564_v31 = vsel %vm4308_vm0, %v12094_v39, 0.0  ;;  %v3448_v0 = vsel %vm3192_vm2, %v12095_v30, 0.0  ;;  %v12099_v14 = vmin.f32 %v12097_v41, %v12098_v54  ;;  %vm3206_vm8 = vcmp.eq.f32.partialorder %v12100_v59, %v12089_v23  ;;  %v8261_v41 = vpop.f32.mrb[153].mxu0  ;;  %v8270_v48 = vpop.f32.mrb[153].mxu1  ;;  %v12111_v30 = vld [vmem:[#allocation272_spill] sm:$0xff]  ;;  %v12115_v54 = vld [vmem:[#allocation49_spill] sm:$0xff] }
 0x213   :  { %v3706_v58 = vmax.f32 %v12096_v46, %v3447_v52  ;;  %v8230_v39 = vmax.f32 %v5004_v32, %v4564_v31  ;;  %v11576_v56 = vand.u32 2147483647, %v7978_v11  ;;  %v2626_v21 = vand.u32 2147483647, %v7985_v5  ;;  %v12101_v31 = vld [vmem:[#allocation42_spill] sm:$0xff]  ;;  %v12103_v46 = vld [vmem:[#allocation259_spill] sm:$0xff] }
 0x214   :  { %3141 = vmin.xlane.f32.xlu0 %v12099_v14  ;;  %vm3199_vm14 = vcmp.eq.f32.partialorder %v12079_v6, %v7261_v16  ;;  %v8241_v60 = vsel %vm3201_vm4, %v2625_v45, 0.0  ;;  %v4565_v10 = vsel %vm4309_vm13, %v2625_v45, 0.0  ;;  %vm4311_vm1 = vcmp.eq.f32.partialorder %v12101_v31, %v7752_v47  ;;  %12105 = vst [vmem:[#allocation23_spill] sm:$0xff] %v8270_v48  ;;  %v12109_v52 = vld [vmem:[#allocation47_spill] sm:$0xff]  ;;  %v8297_v48 = vpop.f32.mrb[154].mxu0 }
 0x215   :  { %v3707_v44 = vmax.f32 %v3706_v58, %v3448_v0  ;;  %v4799_v32 = vmax.f32 %v8174_v36, %v4565_v10  ;;  %v4567_v5 = vsel %vm4311_vm1, %v11576_v56, 0.0  ;;  %v8253_v14 = vsel %vm3202_vm9, %v2626_v21, 0.0  ;;  %v12102_v0 = vld [vmem:[#allocation15_spill] sm:$0xff]  ;;  %v12110_v56 = vld [vmem:[#allocation274_spill] sm:$0xff] }
 0x216   :  { %vm3200_vm2 = vcmp.eq.f32.partialorder %v12088_v18, %v7261_v16  ;;  %v4937_v36 = vmax.f32 %v8188_v29, %v4567_v5  ;;  %v4566_v45 = vsel %vm4310_vm15, %v2626_v21, 0.0  ;;  %v12104_v58 = vmin.f32 %v12102_v0, %v12103_v46  ;;  %v12107_v5 = vld [vmem:[#allocation44_spill] sm:$0xff]  ;;  %v12108_v21 = vld [vmem:[#allocation229_spill] sm:$0xff]  ;;  %v12131_v18 = vld [vmem:[#allocation50_spill] sm:$0xff] }
 0x217   :  { %3708 = vmax.xlane.f32.xlu1 %v3707_v44  ;;  %v12106_v10 = vand.u32 2147483647, %v7862_v55  ;;  %v4868_v29 = vmax.f32 %v8202_v35, %v4566_v45  ;;  %vm4312_vm3 = vcmp.eq.f32.partialorder %v12107_v5, %v7759_v37  ;;  %vm3209_vm4 = vcmp.eq.f32.partialorder %v12109_v52, %v12108_v21 }
 0x218   :  { %3146 = vmin.xlane.f32.xlu0 %v12104_v58  ;;  %v3163_v0 = vmin.f32 %v12111_v30, %v12110_v56  ;;  %v12112_v58 = vand.u32 2147483647, %v7988_v40  ;;  %v12113_v55 = vand.u32 2147483647, %v7883_v19  ;;  %v12114_v35 = vmax.f32 %v8081_v33, %v8095_v17  ;;  %v8299_v56 = vpop.f32.mrb[154].mxu1  ;;  %v8306_v33 = vpop.f32.mrb[155].mxu0 }
 0x219   :  { %v3451_v44 = vsel %vm3195_vm5, %v12106_v10, 0.0  ;;  %v2629_v10 = vand.u32 2147483647, %v8026_v28  ;;  %vm3210_vm9 = vcmp.eq.f32.partialorder %v12115_v54, %v12108_v21  ;;  %v11578_v9 = vand.u32 2147483647, %v8028_v42  ;;  %v8308_v17 = vpop.f32.mrb[155].mxu1 }
 0x21a   :  { %v4568_v46 = vsel %vm4312_vm3, %v12112_v58, 0.0  ;;  %v3452_v2 = vsel %vm3196_vm12, %v12113_v55, 0.0  ;;  %v3711_v45 = vmax.f32 %v12114_v35, %v3451_v44  ;;  %v2630_v19 = vand.u32 2147483647, %v8041_v62  ;;  %v12117_v44 = vld [vmem:[#allocation17_spill] sm:$0xff]  ;;  %v12118_v55 = vld [vmem:[#allocation263_spill] sm:$0xff] }
 0x21b   :  { %v5006_v58 = vmax.f32 %v8230_v39, %v4568_v46  ;;  %vm3203_vm5 = vcmp.eq.f32.partialorder %v12101_v31, %v12070_v12  ;;  %v8315_v7 = vsel %vm3205_vm7, %v2629_v10, 0.0  ;;  %v4569_v39 = vsel %vm4313_vm10, %v2629_v10, 0.0  ;;  %v12116_v46 = vld [vmem:[#allocation46_spill] sm:$0xff] }
 0x21c   :  { %v3712_v28 = vmax.f32 %v3711_v45, %v3452_v2  ;;  %vm4315_vm11 = vcmp.eq.f32.partialorder %v12116_v46, %v7752_v47  ;;  %v12119_v62 = vmin.f32 %v12117_v44, %v12118_v55  ;;  %v8322_v35 = vmax.f32 %v4799_v32, %v4569_v39  ;;  %v8340_v39 = vpop.f32.mrb[156].mxu0  ;;  %v12125_v32 = vld [vmem:[#allocation273_spill] sm:$0xff] }
 0x21d   :  { %v4571_v30 = vsel %vm4315_vm11, %v11578_v9, 0.0  ;;  %v8329_v2 = vsel %vm3206_vm8, %v2630_v19, 0.0  ;;  %vm4314_vm6 = vcmp.eq.f32.partialorder %v12100_v59, %v7757_v15  ;;  %vm3204_vm12 = vcmp.eq.f32.partialorder %v12107_v5, %v12070_v12  ;;  %12120 = vst [vmem:[#allocation20_spill] sm:$0xff] %v8340_v39  ;;  %v8354_v9 = vpop.f32.mrb[156].mxu1  ;;  %v8356_v10 = vpop.f32.mrb[157].mxu0 }
 0x21e   :  { %3151 = vmin.xlane.f32.xlu0 %v12119_v62  ;;  %3713 = vmax.xlane.f32.xlu1 %v3712_v28  ;;  %v8335_v61 = vmax.f32 %v4937_v36, %v4571_v30  ;;  %v4570_v45 = vsel %vm4314_vm6, %v2630_v19, 0.0  ;;  %v12121_v44 = vand.u32 2147483647, %v12077_v20  ;;  %v12122_v28 = vld [vmem:[#allocation48_spill] sm:$0xff]  ;;  %v12123_v36 = vld [vmem:[#allocation230_spill] sm:$0xff]  ;;  %v12124_v30 = vld [vmem:[#allocation51_spill] sm:$0xff]  ;;  %v3164_v19 = vmin.f32 %v3163_v0, %v12125_v32 }
 0x21f   :  { %v8347_v62 = vmax.f32 %v4868_v29, %v4570_v45  ;;  %vm4316_vm0 = vcmp.eq.f32.partialorder %v12122_v28, %v7759_v37  ;;  %vm3213_vm7 = vcmp.eq.f32.partialorder %v12124_v30, %v12123_v36  ;;  %v12126_v20 = vand.u32 2147483647, %v8044_v34  ;;  %v12129_v0 = vld [vmem:[#allocation53_spill] sm:$0xff] }
 0x220   :  { %v3455_v59 = vsel %vm3199_vm14, %v12121_v44, 0.0  ;;  %v12127_v6 = vand.u32 2147483647, %v12084_v22  ;;  %v12128_v45 = vmax.f32 %v8167_v25, %v8181_v43  ;;  %v2633_v39 = vand.u32 2147483647, %v8085_v13 }
 0x221   :  { %v4572_v55 = vsel %vm4316_vm0, %v12126_v20, 0.0  ;;  %vm3214_vm8 = vcmp.eq.f32.partialorder %v12129_v0, %v12123_v36  ;;  %v12130_v32 = vmin.f32 %v7939_v3, %v7558_v24  ;;  %v8374_v20 = vpop.f32.mrb[157].mxu1  ;;  %vm4317_vm13 = vcmp.eq.f32.partialorder %v12109_v52, %v7750_v53 }
 0x222   :  { %v3456_v29 = vsel %vm3200_vm2, %v12127_v6, 0.0  ;;  %v3716_v44 = vmax.f32 %v12128_v45, %v3455_v59  ;;  %v8376_v22 = vmax.f32 %v5006_v58, %v4572_v55  ;;  %v11579_v16 = vand.u32 2147483647, %v8087_v1  ;;  %v8391_v58 = vpop.f32.mrb[158].mxu0  ;;  %v8393_v55 = vpop.f32.mrb[158].mxu1  ;;  %v12136_v6 = vld [vmem:[#allocation55_spill] sm:$0xff] }
 0x223   :  { %3156 = vmin.xlane.f32.xlu0 %v12130_v32  ;;  %v2634_v25 = vand.u32 2147483647, %v8101_v49  ;;  %vm3207_vm14 = vcmp.eq.f32.partialorder %v12116_v46, %v12089_v23  ;;  %v8387_v3 = vsel %vm3209_vm4, %v2633_v39, 0.0  ;;  %v4573_v43 = vsel %vm4317_vm13, %v2633_v39, 0.0  ;;  %v8407_v52 = vpop.f32.mrb[159].mxu0  ;;  %v8409_v39 = vpop.f32.mrb[159].mxu1 }
 0x224   :  { %v3717_v13 = vmax.f32 %v3716_v44, %v3456_v29  ;;  %vm4319_vm1 = vcmp.eq.f32.partialorder %v12131_v18, %v7752_v47  ;;  %v4801_v32 = vmax.f32 %v8322_v35, %v4573_v43  ;;  %vm4318_vm15 = vcmp.eq.f32.partialorder %v12115_v54, %v7757_v15  ;;  %v8449_v5 = vpop.f32.mrb[160].mxu1 }
 0x225   :  { %v4575_v49 = vsel %vm4319_vm1, %v11579_v16, 0.0  ;;  %v8401_v59 = vsel %vm3210_vm9, %v2634_v25, 0.0  ;;  %vm3208_vm2 = vcmp.eq.f32.partialorder %v12122_v28, %v12089_v23  ;;  %v4574_v29 = vsel %vm4318_vm15, %v2634_v25, 0.0  ;;  %v12137_v25 = vld [vmem:[#allocation275_spill] sm:$0xff]  ;;  %v12158_v23 = vld [vmem:[#allocation18_spill] sm:$0xff] }
 0x226   :  { %3718 = vmax.xlane.f32.xlu1 %v3717_v13  ;;  %v4939_v35 = vmax.f32 %v8335_v61, %v4575_v49  ;;  %v11582_v45 = vand.u32 2147483647, %v8104_v57  ;;  %v12132_v44 = vmin.f32 %v8132_v4, %v12093_v50  ;;  %v12133_v54 = vand.u32 2147483647, %v7978_v11  ;;  %v12134_v61 = vld [vmem:[#allocation52_spill] sm:$0xff]  ;;  %v12135_v49 = vld [vmem:[#allocation231_spill] sm:$0xff] }
 0x227   :  { %v4870_v13 = vmax.f32 %v8347_v62, %v4574_v29  ;;  %vm4320_vm3 = vcmp.eq.f32.partialorder %v12134_v61, %v7759_v37  ;;  %vm3217_vm4 = vcmp.eq.f32.partialorder %v12136_v6, %v12135_v49  ;;  %v3165_v16 = vmin.f32 %v3164_v19, %v12137_v25  ;;  %v8442_v50 = vpop.f32.mrb[160].mxu0 }
 0x228   :  { %3161 = vmin.xlane.f32.xlu0 %v12132_v44  ;;  %v3459_v43 = vsel %vm3203_vm5, %v12133_v54, 0.0  ;;  %v4576_v4 = vsel %vm4320_vm3, %v11582_v45, 0.0  ;;  %v12138_v44 = vand.u32 2147483647, %v7988_v40  ;;  %v12139_v31 = vmax.f32 %v8241_v60, %v8253_v14  ;;  %v12140_v54 = vld [vmem:[#allocation57_spill] sm:$0xff]  ;;  %v8451_v60 = vpop.f32.mrb[161].mxu0  ;;  %v8453_v14 = vpop.xlane.xlu0 %2926 }
 0x229   :  { %v2637_v29 = vand.u32 2147483647, %v8147_v27  ;;  %vm3218_vm9 = vcmp.eq.f32.partialorder %v12140_v54, %v12135_v49  ;;  %v5008_v19 = vmax.f32 %v8376_v22, %v4576_v4  ;;  %vm4321_vm10 = vcmp.eq.f32.partialorder %v12124_v30, %v7750_v53  ;;  %v12141_v4 = vld [vmem:[#allocation54_spill] sm:$0xff] }
 0x22a   :  { %v3460_v11 = vsel %vm3204_vm12, %v12138_v44, 0.0  ;;  %v3721_v62 = vmax.f32 %v12139_v31, %v3459_v43  ;;  %v11581_v40 = vand.u32 2147483647, %v8149_v38  ;;  %v2638_v12 = vand.u32 2147483647, %v8157_v8  ;;  %v8464_v8 = vpop.f32.mrb[161].mxu1 }
 0x22b   :  { %vm3211_vm5 = vcmp.eq.f32.partialorder %v12131_v18, %v12108_v21  ;;  %v8460_v22 = vsel %vm3213_vm7, %v2637_v29, 0.0  ;;  %v4577_v43 = vsel %vm4321_vm10, %v2637_v29, 0.0  ;;  %vm4323_vm11 = vcmp.eq.f32.partialorder %v12141_v4, %v7752_v47  ;;  %v8484_v29 = vpop.f32.mrb[162].mxu0  ;;  %v8501_v45 = vpop.f32.mrb[162].mxu1 }
 0x22c   :  { %v3722_v27 = vmax.f32 %v3721_v62, %v3460_v11  ;;  %3166 = vmin.xlane.f32.xlu0 %v3165_v16  ;;  %v8466_v44 = vmax.f32 %v4801_v32, %v4577_v43  ;;  %v4579_v31 = vsel %vm4323_vm11, %v11581_v40, 0.0  ;;  %v8473_v11 = vsel %vm3214_vm8, %v2638_v12, 0.0  ;;  %12142 = vst [vmem:[#allocation25_spill] sm:$0xff] %v8484_v29  ;;  %v12143_v43 = vld [vmem:[#allocation243_spill] sm:$0xff]  ;;  %12149 = vst [vmem:[#allocation24_spill] sm:$0xff] %v8501_v45  ;;  %v8503_v62 = vpop.f32.mrb[163].mxu0 }
 0x22d   :  { %vm4322_vm6 = vcmp.eq.f32.partialorder %v12129_v0, %v7757_v15  ;;  %vm3212_vm12 = vcmp.eq.f32.partialorder %v12134_v61, %v12108_v21  ;;  %v8479_v30 = vmax.f32 %v4939_v35, %v4579_v31  ;;  %v8488_v40 = vadd.f32 %v12143_v43, %v8453_v14  ;;  %v12146_v31 = vld [vmem:[#allocation56_spill] sm:$0xff]  ;;  %v12148_v16 = vld [vmem:[#allocation59_spill] sm:$0xff]  ;;  %12150 = vst [vmem:[#allocation27_spill] sm:$0xff] %v8503_v62  ;;  %v8518_v45 = vpop.f32.mrb[163].mxu1 }
 0x22e   :  { %3723 = vmax.xlane.f32.xlu1 %v3722_v27  ;;  %v4578_v32 = vsel %vm4322_vm6, %v2638_v12, 0.0  ;;  %v12145_v0 = vand.u32 2147483647, %v8028_v42  ;;  %vm4324_vm0 = vcmp.eq.f32.partialorder %v12146_v31, %v7759_v37  ;;  %v12147_v12 = vld [vmem:[#allocation232_spill] sm:$0xff]  ;;  %v12151_v43 = vand.u32 2147483647, %v8160_v63 }
 0x22f   :  { %12144 = vst [vmem:[#allocation22_spill] sm:$0xff] %v8488_v40  ;;  %v8495_v35 = vmax.f32 %v4870_v13, %v4578_v32  ;;  %vm3221_vm7 = vcmp.eq.f32.partialorder %v12148_v16, %v12147_v12  ;;  %v12152_v42 = vand.u32 2147483647, %v8044_v34  ;;  %v12153_v13 = vmax.f32 %v8315_v7, %v8329_v2  ;;  %v12155_v40 = vld [vmem:[#allocation61_spill] sm:$0xff]  ;;  %12156 = vst [vmem:[#allocation29_spill] sm:$0xff] %v8518_v45  ;;  %v12157_v34 = vld [vmem:[#allocation16_spill] sm:$0xff] }
 0x230   :  { %v3463_v27 = vsel %vm3207_vm14, %v12145_v0, 0.0  ;;  %v4580_v25 = vsel %vm4324_vm0, %v12151_v43, 0.0  ;;  %v12154_v0 = vld [vmem:[#allocation14_spill] sm:$0xff]  ;;  %vm3222_vm8 = vcmp.eq.f32.partialorder %v12155_v40, %v12147_v12  ;;  %vm4325_vm13 = vcmp.eq.f32.partialorder %v12136_v6, %v7750_v53  ;;  %v12173_v45 = vld [vmem:[#allocation65_spill] sm:$0xff] }
 0x231   :  { %v3464_v46 = vsel %vm3208_vm2, %v12152_v42, 0.0  ;;  %v3726_v32 = vmax.f32 %v12153_v13, %v3463_v27  ;;  %v2641_v24 = vand.u32 2147483647, %v12154_v0  ;;  %v8520_v62 = vmax.f32 %v5008_v19, %v4580_v25  ;;  %v12159_v25 = vld [vmem:[#allocation58_spill] sm:$0xff]  ;;  %v8535_v19 = vpop.f32.mrb[164].mxu0 }
 0x232   :  { %v11586_v43 = vand.u32 2147483647, %v12157_v34  ;;  %v2642_v28 = vand.u32 2147483647, %v12158_v23  ;;  %vm3215_vm14 = vcmp.eq.f32.partialorder %v12141_v4, %v12123_v36  ;;  %vm4327_vm1 = vcmp.eq.f32.partialorder %v12159_v25, %v7752_v47  ;;  %12160 = vst [vmem:[#allocation26_spill] sm:$0xff] %v8535_v19  ;;  %v8551_v6 = vpop.f32.mrb[165].mxu0 }
 0x233   :  { %v3727_v7 = vmax.f32 %v3726_v32, %v3464_v46  ;;  %v8531_v2 = vsel %vm3217_vm4, %v2641_v24, 0.0  ;;  %v4581_v27 = vsel %vm4325_vm13, %v2641_v24, 0.0  ;;  %vm4326_vm15 = vcmp.eq.f32.partialorder %v12140_v54, %v7757_v15  ;;  %v8549_v24 = vpop.f32.mrb[164].mxu1  ;;  %12162 = vst [vmem:[#allocation31_spill] sm:$0xff] %v8551_v6  ;;  %v12163_v23 = vld [vmem:[#allocation216_spill] sm:$0xff]  ;;  %v12169_v32 = vld [vmem:[#allocation13_spill] sm:$0xff] }
 0x234   :  { %v4803_v42 = vmax.f32 %v8466_v44, %v4581_v27  ;;  %v4583_v13 = vsel %vm4327_vm1, %v11586_v43, 0.0  ;;  %v8543_v46 = vsel %vm3218_vm9, %v2642_v28, 0.0  ;;  %vm3216_vm2 = vcmp.eq.f32.partialorder %v12146_v31, %v12123_v36  ;;  %12161 = vst [vmem:[#allocation28_spill] sm:$0xff] %v8549_v24  ;;  %v8557_v43 = vpop.f32.mrb[165].mxu1  ;;  %v8584_v29 = vpop.f32.mrb[166].mxu0  ;;  %v12183_v36 = vld [vmem:[#allocation69_spill] sm:$0xff] }
 0x235   :  { %3728 = vmax.xlane.f32.xlu1 %v3727_v7  ;;  %v4941_v44 = vmax.f32 %v8479_v30, %v4583_v13  ;;  %v4582_v0 = vsel %vm4326_vm15, %v2642_v28, 0.0  ;;  %v11591_v27 = vand.u32 2147483647, %v12163_v23  ;;  %12164 = vst [vmem:[#allocation33_spill] sm:$0xff] %v8557_v43  ;;  %v12165_v54 = vand.u32 2147483647, %v8087_v1  ;;  %v8663_v31 = vpop.xlane.xlu1 %2931 }
 0x236   :  { %v4872_v24 = vmax.f32 %v8495_v35, %v4582_v0  ;;  %v12166_v7 = vld [vmem:[#allocation60_spill] sm:$0xff]  ;;  %v12167_v30 = vld [vmem:[#allocation235_spill] sm:$0xff]  ;;  %v12171_v1 = vand.u32 2147483647, %v8104_v57  ;;  %v12172_v35 = vmax.f32 %v8387_v3, %v8401_v59  ;;  %vm4329_vm10 = vcmp.eq.f32.partialorder %v12148_v16, %v7750_v53  ;;  %v8591_v61 = vpop.f32.mrb[166].mxu1  ;;  %v8593_v3 = vpop.f32.mrb[167].mxu0 }
 0x237   :  { %v3467_v19 = vsel %vm3211_vm5, %v12165_v54, 0.0  ;;  %vm4328_vm3 = vcmp.eq.f32.partialorder %v12166_v7, %v7759_v37  ;;  %v12168_v13 = vld [vmem:[#allocation63_spill] sm:$0xff]  ;;  %v12170_v28 = vld [vmem:[#allocation276_spill] sm:$0xff]  ;;  %v2645_v54 = vand.u32 2147483647, %v8245_v51  ;;  %vm3226_vm9 = vcmp.eq.f32.partialorder %v12173_v45, %v12167_v30  ;;  %12184 = vst [vmem:[#allocation32_spill] sm:$0xff] %v8663_v31 }
 0x238   :  { %vm3225_vm4 = vcmp.eq.f32.partialorder %v12168_v13, %v12167_v30  ;;  %v3168_v6 = vmin.f32 %v12170_v28, %v12169_v32  ;;  %v4584_v43 = vsel %vm4328_vm3, %v11591_v27, 0.0  ;;  %v3468_v18 = vsel %vm3212_vm12, %v12171_v1, 0.0 }
 0x239   :  { %v3731_v0 = vmax.f32 %v12172_v35, %v3467_v19  ;;  %v5010_v32 = vmax.f32 %v8520_v62, %v4584_v43  ;;  %v11590_v57 = vand.u32 2147483647, %v8259_v26  ;;  %v2646_v21 = vand.u32 2147483647, %v8261_v41  ;;  %v12174_v43 = vld [vmem:[#allocation62_spill] sm:$0xff]  ;;  %v8606_v41 = vpop.f32.mrb[167].mxu1 }
 0x23a   :  { %vm3219_vm5 = vcmp.eq.f32.partialorder %v12159_v25, %v12135_v49  ;;  %v8600_v59 = vsel %vm3221_vm7, %v2645_v54, 0.0  ;;  %v4585_v62 = vsel %vm4329_vm10, %v2645_v54, 0.0  ;;  %vm4331_vm11 = vcmp.eq.f32.partialorder %v12174_v43, %v7752_v47 }
 0x23b   :  { %v3732_v51 = vmax.f32 %v3731_v0, %v3468_v18  ;;  %vm3220_vm6 = vcmp.eq.f32.partialorder %v12166_v7, %v12135_v49  ;;  %v8608_v19 = vmax.f32 %v4803_v42, %v4585_v62  ;;  %v4587_v1 = vsel %vm4331_vm11, %v11590_v57, 0.0  ;;  %v12175_v42 = vld [vmem:[#allocation23_spill] sm:$0xff]  ;;  %v8624_v62 = vpop.f32.mrb[168].mxu0  ;;  %v12196_v7 = vld [vmem:[#allocation70_spill] sm:$0xff] }
 0x23c   :  { %v8615_v16 = vsel %vm3222_vm8, %v2646_v21, 0.0  ;;  %vm4330_vm12 = vcmp.eq.f32.partialorder %v12155_v40, %v7757_v15  ;;  %v8619_v18 = vmax.f32 %v4941_v44, %v4587_v1  ;;  %v11593_v54 = vand.u32 2147483647, %v12175_v42  ;;  %v12177_v40 = vld [vmem:[#allocation64_spill] sm:$0xff]  ;;  %v12178_v44 = vld [vmem:[#allocation277_spill] sm:$0xff]  ;;  %v12179_v1 = vld [vmem:[#allocation67_spill] sm:$0xff] }
 0x23d   :  { %3733 = vmax.xlane.f32.xlu1 %v3732_v51  ;;  %v4586_v0 = vsel %vm4330_vm12, %v2646_v21, 0.0  ;;  %v12176_v57 = vand.u32 2147483647, %v8149_v38  ;;  %vm4332_vm0 = vcmp.eq.f32.partialorder %v12177_v40, %v7759_v37  ;;  %v3169_v51 = vmin.f32 %v3168_v6, %v12178_v44  ;;  %v8638_v21 = vpop.f32.mrb[168].mxu1  ;;  %v8640_v35 = vpop.f32.mrb[169].mxu0 }
 0x23e   :  { %v8631_v28 = vmax.f32 %v4872_v24, %v4586_v0  ;;  %vm3229_vm7 = vcmp.eq.f32.partialorder %v12179_v1, %v8453_v14  ;;  %12180 = vst [vmem:[#allocation30_spill] sm:$0xff] %v8638_v21  ;;  %v4588_v38 = vsel %vm4332_vm0, %v11593_v54, 0.0  ;;  %v12181_v4 = vand.u32 2147483647, %v8160_v63  ;;  %v8653_v44 = vpop.f32.mrb[169].mxu1 }
 0x23f   :  { %v3471_v27 = vsel %vm3215_vm14, %v12176_v57, 0.0  ;;  %v12182_v57 = vmax.f32 %v8460_v22, %v8473_v11  ;;  %v2649_v0 = vand.u32 2147483647, %v8297_v48  ;;  %v8655_v21 = vmax.f32 %v5010_v32, %v4588_v38  ;;  %v12185_v32 = vld [vmem:[#allocation66_spill] sm:$0xff] }
 0x240   :  { %v3472_v24 = vsel %vm3216_vm2, %v12181_v4, 0.0  ;;  %vm4333_vm8 = vcmp.eq.f32.partialorder %v12168_v13, %v7750_v53  ;;  %v11594_v54 = vand.u32 2147483647, %v8299_v56  ;;  %v2650_v63 = vand.u32 2147483647, %v8306_v33  ;;  %v8688_v13 = vpop.f32.mrb[170].mxu1 }
 0x241   :  { %v3736_v6 = vmax.f32 %v12182_v57, %v3471_v27  ;;  %vm3230_vm13 = vcmp.eq.f32.partialorder %v12183_v36, %v8453_v14  ;;  %vm3223_vm14 = vcmp.eq.f32.partialorder %v12174_v43, %v12147_v12  ;;  %v8670_v22 = vsel %vm3225_vm4, %v2649_v0, 0.0  ;;  %v8674_v27 = vpop.f32.mrb[170].mxu0  ;;  %12186 = vst [vmem:[#allocation35_spill] sm:$0xff] %v8688_v13  ;;  %v12195_v57 = vld [vmem:[#allocation20_spill] sm:$0xff] }
 0x242   :  { %v4589_v11 = vsel %vm4333_vm8, %v2649_v0, 0.0  ;;  %vm4335_vm1 = vcmp.eq.f32.partialorder %v12185_v32, %v7752_v47  ;;  %v8682_v4 = vsel %vm3226_vm9, %v2650_v63, 0.0  ;;  %vm4334_vm15 = vcmp.eq.f32.partialorder %v12173_v45, %v7757_v15 }
 0x243   :  { %v3737_v48 = vmax.f32 %v3736_v6, %v3472_v24  ;;  %v4805_v33 = vmax.f32 %v8608_v19, %v4589_v11  ;;  %v4591_v38 = vsel %vm4335_vm1, %v11594_v54, 0.0  ;;  %vm3224_vm2 = vcmp.eq.f32.partialorder %v12177_v40, %v12147_v12  ;;  %v8690_v24 = vpop.f32.mrb[171].mxu0  ;;  %v8696_v11 = vpop.f32.mrb[171].mxu1 }
 0x244   :  { %12187 = vst [vmem:[#allocation37_spill] sm:$0xff] %v8690_v24  ;;  %v4943_v19 = vmax.f32 %v8619_v18, %v4591_v38  ;;  %v4590_v6 = vsel %vm4334_vm15, %v2650_v63, 0.0  ;;  %v11597_v0 = vand.u32 2147483647, %v8308_v17  ;;  %12188 = vst [vmem:[#allocation34_spill] sm:$0xff] %v8696_v11  ;;  %v12192_v38 = vld [vmem:[#allocation71_spill] sm:$0xff]  ;;  %v12193_v25 = vmax.f32 %v8531_v2, %v8543_v46  ;;  %v8732_v46 = vpop.xlane.xlu0 %2936  ;;  %v8801_v12 = vpop.xlane.xlu1 %2941 }
 0x245   :  { %3738 = vmax.xlane.f32.xlu1 %v3737_v48  ;;  %v12189_v45 = vand.u32 2147483647, %v12157_v34  ;;  %v4874_v13 = vmax.f32 %v8631_v28, %v4590_v6  ;;  %v12190_v48 = vld [vmem:[#allocation68_spill] sm:$0xff]  ;;  %v12191_v18 = vand.u32 2147483647, %v12163_v23  ;;  %vm3233_vm4 = vcmp.eq.f32.partialorder %v12192_v38, %v8663_v31  ;;  %v12194_v28 = vld [vmem:[#allocation278_spill] sm:$0xff] }
 0x246   :  { %vm4336_vm3 = vcmp.eq.f32.partialorder %v12190_v48, %v7759_v37  ;;  %v3170_v6 = vmin.f32 %v3169_v51, %v12194_v28  ;;  %v2653_v11 = vand.u32 2147483647, %v12195_v57  ;;  %v8720_v24 = vpop.f32.mrb[172].mxu0  ;;  %vm4337_vm9 = vcmp.eq.f32.partialorder %v12179_v1, %v7750_v53  ;;  %12197 = vst [vmem:[#allocation255_spill] sm:$0xff] %v8732_v46  ;;  %12206 = vst [vmem:[#allocation226_spill] sm:$0xff] %v8801_v12 }
 0x247   :  { %v3475_v54 = vsel %vm3219_vm5, %v12189_v45, 0.0  ;;  %v3476_v63 = vsel %vm3220_vm6, %v12191_v18, 0.0  ;;  %v4592_v34 = vsel %vm4336_vm3, %v11597_v0, 0.0  ;;  %v11598_v49 = vand.u32 2147483647, %v8354_v9  ;;  %v8728_v18 = vpop.f32.mrb[172].mxu1 }
 0x248   :  { %v3741_v45 = vmax.f32 %v12193_v25, %v3475_v54  ;;  %v5012_v23 = vmax.f32 %v8655_v21, %v4592_v34  ;;  %vm4339_vm10 = vcmp.eq.f32.partialorder %v12196_v7, %v7752_v47  ;;  %v8730_v2 = vpop.f32.mrb[173].mxu0  ;;  %vm3227_vm5 = vcmp.eq.f32.partialorder %v12185_v32, %v12167_v30  ;;  %3171 = vmin.xlane.f32.xlu0 %v3170_v6  ;;  %v8742_v34 = vpop.f32.mrb[173].mxu1 }
 0x249   :  { %v8739_v51 = vsel %vm3229_vm7, %v2653_v11, 0.0  ;;  %v4593_v21 = vsel %vm4337_vm9, %v2653_v11, 0.0  ;;  %v2654_v57 = vand.u32 2147483647, %v8356_v10  ;;  %v4595_v0 = vsel %vm4339_vm10, %v11598_v49, 0.0 }
 0x24a   :  { %v3742_v54 = vmax.f32 %v3741_v45, %v3476_v63  ;;  %v8744_v25 = vmax.f32 %v4805_v33, %v4593_v21  ;;  %vm4338_vm11 = vcmp.eq.f32.partialorder %v12183_v36, %v7757_v15  ;;  %v12198_v63 = vld [vmem:[#allocation73_spill] sm:$0xff]  ;;  %vm3228_vm12 = vcmp.eq.f32.partialorder %v12190_v48, %v12167_v30  ;;  %v8762_v45 = vpop.f32.mrb[174].mxu0  ;;  %v12200_v36 = vld [vmem:[#allocation72_spill] sm:$0xff] }
 0x24b   :  { %vm3234_vm6 = vcmp.eq.f32.partialorder %v12198_v63, %v8663_v31  ;;  %v8754_v1 = vmax.f32 %v4943_v19, %v4595_v0  ;;  %v8759_v10 = vsel %vm3230_vm13, %v2654_v57, 0.0  ;;  %v4594_v33 = vsel %vm4338_vm11, %v2654_v57, 0.0  ;;  %v8777_v57 = vpop.f32.mrb[174].mxu1  ;;  %v8779_v49 = vpop.f32.mrb[175].mxu0 }
 0x24c   :  { %3743 = vmax.xlane.f32.xlu1 %v3742_v54  ;;  %v11599_v11 = vand.u32 2147483647, %v8374_v20  ;;  %v12199_v6 = vand.u32 2147483647, %v8259_v26  ;;  %v8771_v0 = vmax.f32 %v4874_v13, %v4594_v33  ;;  %vm4340_vm0 = vcmp.eq.f32.partialorder %v12200_v36, %v7759_v37  ;;  %v12201_v54 = vld [vmem:[#allocation75_spill] sm:$0xff]  ;;  %12202 = vst [vmem:[#allocation36_spill] sm:$0xff] %v8777_v57 }
 0x24d   :  { %vm3237_vm7 = vcmp.eq.f32.partialorder %v12201_v54, %v8732_v46  ;;  %v12203_v43 = vand.u32 2147483647, %v12175_v42  ;;  %v12204_v33 = vmax.f32 %v8600_v59, %v8615_v16  ;;  %v2657_v19 = vand.u32 2147483647, %v8391_v58  ;;  %v8792_v28 = vpop.f32.mrb[175].mxu1  ;;  %v12205_v42 = vld [vmem:[#allocation74_spill] sm:$0xff] }
 0x24e   :  { %v3479_v21 = vsel %vm3223_vm14, %v12199_v6, 0.0  ;;  %v4596_v26 = vsel %vm4340_vm0, %v11599_v11, 0.0  ;;  %vm4341_vm8 = vcmp.eq.f32.partialorder %v12192_v38, %v7750_v53  ;;  %v11600_v11 = vand.u32 2147483647, %v8393_v55  ;;  %v8822_v38 = vpop.f32.mrb[176].mxu1 }
 0x24f   :  { %v3480_v13 = vsel %vm3224_vm2, %v12203_v43, 0.0  ;;  %v3746_v6 = vmax.f32 %v12204_v33, %v3479_v21  ;;  %v8794_v57 = vmax.f32 %v5012_v23, %v4596_v26  ;;  %vm4343_vm13 = vcmp.eq.f32.partialorder %v12205_v42, %v7752_v47  ;;  %v8811_v23 = vpop.f32.mrb[176].mxu0  ;;  %v12207_v43 = vld [vmem:[#allocation77_spill] sm:$0xff] }
 0x250   :  { %vm3231_vm14 = vcmp.eq.f32.partialorder %v12196_v7, %v8453_v14  ;;  %v8808_v58 = vsel %vm3233_vm4, %v2657_v19, 0.0  ;;  %v4597_v16 = vsel %vm4341_vm8, %v2657_v19, 0.0  ;;  %v2658_v40 = vand.u32 2147483647, %v8407_v52  ;;  %v8824_v19 = vpop.f32.mrb[177].mxu0 }
 0x251   :  { %v3747_v59 = vmax.f32 %v3746_v6, %v3480_v13  ;;  %v4807_v21 = vmax.f32 %v8744_v25, %v4597_v16  ;;  %v4599_v26 = vsel %vm4343_vm13, %v11600_v11, 0.0  ;;  %vm4342_vm1 = vcmp.eq.f32.partialorder %v12198_v63, %v7757_v15  ;;  %v8833_v6 = vpop.f32.mrb[177].mxu1  ;;  %v12210_v63 = vld [vmem:[#allocation76_spill] sm:$0xff] }
 0x252   :  { %vm3238_vm15 = vcmp.eq.f32.partialorder %v12207_v43, %v8732_v46  ;;  %vm3232_vm2 = vcmp.eq.f32.partialorder %v12200_v36, %v8453_v14  ;;  %v4945_v52 = vmax.f32 %v8754_v1, %v4599_v26  ;;  %v8830_v25 = vsel %vm3234_vm6, %v2658_v40, 0.0  ;;  %12208 = vst [vmem:[#allocation39_spill] sm:$0xff] %v8833_v6  ;;  %v8866_v30 = vpop.f32.mrb[178].mxu1  ;;  %v12232_v14 = vld [vmem:[#allocation82_spill] sm:$0xff] }
 0x253   :  { %3748 = vmax.xlane.f32.xlu1 %v3747_v59  ;;  %v4598_v13 = vsel %vm4342_vm1, %v2658_v40, 0.0  ;;  %v11602_v33 = vand.u32 2147483647, %v8409_v39  ;;  %v12209_v16 = vand.u32 2147483647, %v8299_v56  ;;  %vm4344_vm3 = vcmp.eq.f32.partialorder %v12210_v63, %v7759_v37  ;;  %v12211_v40 = vld [vmem:[#allocation79_spill] sm:$0xff] }
 0x254   :  { %v4876_v1 = vmax.f32 %v8771_v0, %v4598_v13  ;;  %vm3241_vm4 = vcmp.eq.f32.partialorder %v12211_v40, %v8801_v12  ;;  %v12212_v56 = vand.u32 2147483647, %v8308_v17  ;;  %v2661_v0 = vand.u32 2147483647, %v8442_v50  ;;  %v8858_v13 = vpop.f32.mrb[178].mxu0  ;;  %v12214_v17 = vld [vmem:[#allocation78_spill] sm:$0xff] }
 0x255   :  { %v3483_v11 = vsel %vm3227_vm5, %v12209_v16, 0.0  ;;  %v4600_v26 = vsel %vm4344_vm3, %v11602_v33, 0.0  ;;  %v12213_v16 = vmax.f32 %v8670_v22, %v8682_v4  ;;  %vm4345_vm9 = vcmp.eq.f32.partialorder %v12201_v54, %v7750_v53  ;;  %v8868_v48 = vpop.f32.mrb[179].mxu0  ;;  %v8870_v22 = vpop.xlane.xlu0 %2946 }
 0x256   :  { %v3484_v32 = vsel %vm3228_vm12, %v12212_v56, 0.0  ;;  %v5014_v6 = vmax.f32 %v8794_v57, %v4600_v26  ;;  %v11603_v33 = vand.u32 2147483647, %v8449_v5  ;;  %vm4347_vm10 = vcmp.eq.f32.partialorder %v12214_v17, %v7752_v47  ;;  %12215 = vst [vmem:[#allocation41_spill] sm:$0xff] %v8868_v48  ;;  %12216 = vst [vmem:[#allocation206_spill] sm:$0xff] %v8870_v22  ;;  %v8880_v26 = vpop.f32.mrb[179].mxu1 }
 0x257   :  { %v3751_v59 = vmax.f32 %v12213_v16, %v3483_v11  ;;  %vm3235_vm5 = vcmp.eq.f32.partialorder %v12205_v42, %v8663_v31  ;;  %v8877_v4 = vsel %vm3237_vm7, %v2661_v0, 0.0  ;;  %v4601_v11 = vsel %vm4345_vm9, %v2661_v0, 0.0  ;;  %12217 = vst [vmem:[#allocation19_spill] sm:$0xff] %v8880_v26  ;;  %v8900_v0 = vpop.f32.mrb[180].mxu0 }
 0x258   :  { %v2662_v57 = vand.u32 2147483647, %v8451_v60  ;;  %v8882_v56 = vmax.f32 %v4807_v21, %v4601_v11  ;;  %v4603_v16 = vsel %vm4347_vm10, %v11603_v33, 0.0  ;;  %vm4346_vm11 = vcmp.eq.f32.partialorder %v12207_v43, %v7757_v15  ;;  %12219 = vst [vmem:[#allocation38_spill] sm:$0xff] %v8900_v0  ;;  %v12221_v43 = vld [vmem:[#allocation80_spill] sm:$0xff] }
 0x259   :  { %v3752_v50 = vmax.f32 %v3751_v59, %v3484_v32  ;;  %v12218_v59 = vld [vmem:[#allocation81_spill] sm:$0xff]  ;;  %vm3236_vm12 = vcmp.eq.f32.partialorder %v12210_v63, %v8663_v31  ;;  %v8892_v54 = vmax.f32 %v4945_v52, %v4603_v16  ;;  %v12220_v11 = vand.u32 2147483647, %v8354_v9  ;;  %v8915_v16 = vpop.f32.mrb[180].mxu1  ;;  %v8917_v32 = vpop.f32.mrb[181].mxu0  ;;  %v12248_v63 = vld [vmem:[#allocation86_spill] sm:$0xff] }
 0x25a   :  { %vm3242_vm6 = vcmp.eq.f32.partialorder %v12218_v59, %v8801_v12  ;;  %v8897_v60 = vsel %vm3238_vm15, %v2662_v57, 0.0  ;;  %v4602_v21 = vsel %vm4346_vm11, %v2662_v57, 0.0  ;;  %vm4348_vm0 = vcmp.eq.f32.partialorder %v12221_v43, %v7759_v37  ;;  %v12222_v57 = vld [vmem:[#allocation83_spill] sm:$0xff]  ;;  %12223 = vst [vmem:[#allocation12_spill] sm:$0xff] %v8915_v16  ;;  %12224 = vst [vmem:[#allocation21_spill] sm:$0xff] %v8917_v32  ;;  %v12228_v52 = vld [vmem:[#allocation25_spill] sm:$0xff]  ;;  %v8932_v16 = vpop.xlane.xlu1 %2951 }
 0x25b   :  { %3753 = vmax.xlane.f32.xlu1 %v3752_v50  ;;  %v3487_v33 = vsel %vm3231_vm14, %v12220_v11, 0.0  ;;  %v8909_v50 = vmax.f32 %v4876_v1, %v4602_v21  ;;  %vm3245_vm7 = vcmp.eq.f32.partialorder %v12222_v57, %v8870_v22  ;;  %v12225_v9 = vand.u32 2147483647, %v8464_v8  ;;  %v8930_v48 = vpop.f32.mrb[181].mxu1  ;;  %12230 = vst [vmem:[#allocation227_spill] sm:$0xff] %v8932_v16 }
 0x25c   :  { %v12226_v7 = vand.u32 2147483647, %v8374_v20  ;;  %v12227_v21 = vmax.f32 %v8739_v51, %v8759_v10  ;;  %v2665_v26 = vand.u32 2147483647, %v12228_v52  ;;  %12229 = vst [vmem:[#allocation40_spill] sm:$0xff] %v8930_v48  ;;  %vm4349_vm8 = vcmp.eq.f32.partialorder %v12211_v40, %v7750_v53  ;;  %v12231_v20 = vld [vmem:[#allocation24_spill] sm:$0xff] }
 0x25d   :  { %v4604_v0 = vsel %vm4348_vm0, %v12225_v9, 0.0  ;;  %v11605_v9 = vand.u32 2147483647, %v12231_v20  ;;  %vm4351_vm13 = vcmp.eq.f32.partialorder %v12232_v14, %v7752_v47  ;;  %vm3239_vm14 = vcmp.eq.f32.partialorder %v12214_v17, %v8732_v46  ;;  %v8951_v52 = vpop.f32.mrb[182].mxu1 }
 0x25e   :  { %v3488_v1 = vsel %vm3232_vm2, %v12226_v7, 0.0  ;;  %v3756_v11 = vmax.f32 %v12227_v21, %v3487_v33  ;;  %v8934_v32 = vmax.f32 %v5014_v6, %v4604_v0  ;;  %v8946_v10 = vsel %vm3241_vm4, %v2665_v26, 0.0  ;;  %v12233_v33 = vld [vmem:[#allocation27_spill] sm:$0xff]  ;;  %v8949_v0 = vpop.f32.mrb[182].mxu0  ;;  %12235 = vst [vmem:[#allocation210_spill] sm:$0xff] %v8951_v52 }
 0x25f   :  { %v4605_v36 = vsel %vm4349_vm8, %v2665_v26, 0.0  ;;  %v2666_v6 = vand.u32 2147483647, %v12233_v33  ;;  %12234 = vst [vmem:[#allocation43_spill] sm:$0xff] %v8949_v0  ;;  %v4607_v21 = vsel %vm4351_vm13, %v11605_v9, 0.0  ;;  %vm4350_vm1 = vcmp.eq.f32.partialorder %v12218_v59, %v7757_v15  ;;  %v8962_v40 = vpop.f32.mrb[183].mxu0 }
 0x260   :  { %v3757_v51 = vmax.f32 %v3756_v11, %v3488_v1  ;;  %v4809_v7 = vmax.f32 %v8882_v56, %v4605_v36  ;;  %v12236_v1 = vld [vmem:[#allocation85_spill] sm:$0xff]  ;;  %vm3240_vm2 = vcmp.eq.f32.partialorder %v12221_v43, %v8732_v46  ;;  %12237 = vst [vmem:[#allocation45_spill] sm:$0xff] %v8962_v40  ;;  %v8964_v26 = vpop.f32.mrb[183].mxu1  ;;  %v4947_v11 = vmax.f32 %v8892_v54, %v4607_v21  ;;  %v12241_v54 = vld [vmem:[#allocation84_spill] sm:$0xff]  ;;  %v12242_v59 = vld [vmem:[#allocation87_spill] sm:$0xff] }
 0x261   :  { %vm3246_vm15 = vcmp.eq.f32.partialorder %v12236_v1, %v8870_v22  ;;  %12238 = vst [vmem:[#allocation42_spill] sm:$0xff] %v8964_v26  ;;  %v8970_v56 = vsel %vm3242_vm6, %v2666_v6, 0.0  ;;  %v4606_v36 = vsel %vm4350_vm1, %v2666_v6, 0.0  ;;  %v12239_v33 = vld [vmem:[#allocation29_spill] sm:$0xff]  ;;  %v12240_v52 = vand.u32 2147483647, %v8393_v55 }
 0x262   :  { %3758 = vmax.xlane.f32.xlu1 %v3757_v51  ;;  %v11608_v9 = vand.u32 2147483647, %v12239_v33  ;;  %v4878_v51 = vmax.f32 %v8909_v50, %v4606_v36  ;;  %vm4352_vm3 = vcmp.eq.f32.partialorder %v12241_v54, %v7759_v37  ;;  %vm3249_vm4 = vcmp.eq.f32.partialorder %v12242_v59, %v8932_v16  ;;  %v12245_v50 = vld [vmem:[#allocation26_spill] sm:$0xff]  ;;  %v8996_v26 = vpop.f32.mrb[184].mxu0  ;;  %v8998_v40 = vpop.f32.mrb[184].mxu1 }
 0x263   :  { %v3491_v0 = vsel %vm3235_vm5, %v12240_v52, 0.0  ;;  %v12243_v55 = vand.u32 2147483647, %v8409_v39  ;;  %v12244_v52 = vmax.f32 %v8808_v58, %v8830_v25  ;;  %v2669_v36 = vand.u32 2147483647, %v12245_v50  ;;  %12246 = vst [vmem:[#allocation15_spill] sm:$0xff] %v8998_v40  ;;  %v9010_v25 = vpop.xlane.xlu0 %2956  ;;  %v9070_v40 = vpop.xlane.xlu1 %2961 }
 0x264   :  { %v4608_v6 = vsel %vm4352_vm3, %v11608_v9, 0.0  ;;  %vm4353_vm9 = vcmp.eq.f32.partialorder %v12222_v57, %v7750_v53  ;;  %v12247_v39 = vld [vmem:[#allocation28_spill] sm:$0xff]  ;;  %vm4355_vm10 = vcmp.eq.f32.partialorder %v12248_v63, %v7752_v47  ;;  %v9008_v58 = vpop.f32.mrb[185].mxu1  ;;  %12251 = vst [vmem:[#allocation47_spill] sm:$0xff] %v9010_v25  ;;  %vm3243_vm5 = vcmp.eq.f32.partialorder %v12232_v14, %v8801_v12  ;;  %12265 = vst [vmem:[#allocation48_spill] sm:$0xff] %v9070_v40 }
 0x265   :  { %v3492_v42 = vsel %vm3236_vm12, %v12243_v55, 0.0  ;;  %v3761_v21 = vmax.f32 %v12244_v52, %v3491_v0  ;;  %v5016_v48 = vmax.f32 %v8934_v32, %v4608_v6  ;;  %v9006_v55 = vpop.f32.mrb[185].mxu0  ;;  %12250 = vst [vmem:[#allocation229_spill] sm:$0xff] %v9008_v58  ;;  %v9017_v32 = vsel %vm3245_vm7, %v2669_v36, 0.0  ;;  %v12252_v52 = vld [vmem:[#allocation31_spill] sm:$0xff]  ;;  %v12254_v58 = vld [vmem:[#allocation89_spill] sm:$0xff] }
 0x266   :  { %12249 = vst [vmem:[#allocation44_spill] sm:$0xff] %v9006_v55  ;;  %v4609_v6 = vsel %vm4353_vm9, %v2669_v36, 0.0  ;;  %v2670_v50 = vand.u32 2147483647, %v12252_v52  ;;  %v12253_v31 = vand.u32 2147483647, %v12247_v39  ;;  %vm4354_vm11 = vcmp.eq.f32.partialorder %v12236_v1, %v7757_v15 }
 0x267   :  { %v3762_v0 = vmax.f32 %v3761_v21, %v3492_v42  ;;  %v9020_v9 = vmax.f32 %v4809_v7, %v4609_v6  ;;  %vm3250_vm6 = vcmp.eq.f32.partialorder %v12254_v58, %v8932_v16  ;;  %vm3244_vm12 = vcmp.eq.f32.partialorder %v12241_v54, %v8801_v12  ;;  %v12255_v21 = vld [vmem:[#allocation33_spill] sm:$0xff]  ;;  %v9038_v36 = vpop.f32.mrb[186].mxu0  ;;  %v9040_v6 = vpop.f32.mrb[186].mxu1  ;;  %v12259_v1 = vld [vmem:[#allocation88_spill] sm:$0xff]  ;;  %v12275_v54 = vld [vmem:[#allocation94_spill] sm:$0xff] }
 0x268   :  { %v4611_v55 = vsel %vm4355_vm10, %v12253_v31, 0.0  ;;  %v9035_v7 = vsel %vm3246_vm15, %v2670_v50, 0.0  ;;  %v4610_v42 = vsel %vm4354_vm11, %v2670_v50, 0.0  ;;  %12256 = vst [vmem:[#allocation49_spill] sm:$0xff] %v9038_v36  ;;  %12257 = vst [vmem:[#allocation46_spill] sm:$0xff] %v9040_v6  ;;  %vm4356_vm0 = vcmp.eq.f32.partialorder %v12259_v1, %v7759_v37  ;;  %v12260_v50 = vld [vmem:[#allocation91_spill] sm:$0xff] }
 0x269   :  { %3763 = vmax.xlane.f32.xlu1 %v3762_v0  ;;  %v9030_v57 = vmax.f32 %v4947_v11, %v4611_v55  ;;  %v12258_v52 = vand.u32 2147483647, %v8449_v5  ;;  %v9049_v55 = vmax.f32 %v4878_v51, %v4610_v42  ;;  %vm3253_vm7 = vcmp.eq.f32.partialorder %v12260_v50, %v9010_v25  ;;  %v9055_v31 = vpop.f32.mrb[187].mxu0  ;;  %v9057_v6 = vpop.f32.mrb[187].mxu1 }
 0x26a   :  { %12261 = vst [vmem:[#allocation17_spill] sm:$0xff] %v9055_v31  ;;  %v12262_v5 = vand.u32 2147483647, %v12255_v21  ;;  %v12263_v17 = vand.u32 2147483647, %v8464_v8  ;;  %v12264_v42 = vmax.f32 %v8877_v4, %v8897_v60  ;;  %vm4357_vm8 = vcmp.eq.f32.partialorder %v12242_v59, %v7750_v53  ;;  %v12266_v8 = vld [vmem:[#allocation90_spill] sm:$0xff] }
 0x26b   :  { %v3495_v0 = vsel %vm3239_vm14, %v12258_v52, 0.0  ;;  %v2673_v11 = vand.u32 2147483647, %v8584_v29  ;;  %vm4359_vm13 = vcmp.eq.f32.partialorder %v12266_v8, %v7752_v47  ;;  %vm3247_vm14 = vcmp.eq.f32.partialorder %v12248_v63, %v8870_v22  ;;  %v9087_v60 = vpop.f32.mrb[188].mxu0 }
 0x26c   :  { %v4612_v36 = vsel %vm4356_vm0, %v12262_v5, 0.0  ;;  %v3496_v51 = vsel %vm3240_vm2, %v12263_v17, 0.0  ;;  %v3766_v52 = vmax.f32 %v12264_v42, %v3495_v0  ;;  %v11611_v5 = vand.u32 2147483647, %v8591_v61  ;;  %v9100_v59 = vpop.f32.mrb[189].mxu0 }
 0x26d   :  { %v9072_v31 = vmax.f32 %v5016_v48, %v4612_v36  ;;  %v9084_v29 = vsel %vm3249_vm4, %v2673_v11, 0.0  ;;  %v4613_v4 = vsel %vm4357_vm8, %v2673_v11, 0.0  ;;  %v2674_v48 = vand.u32 2147483647, %v8593_v3  ;;  %v9089_v36 = vpop.f32.mrb[188].mxu1 }
 0x26e   :  { %v3767_v43 = vmax.f32 %v3766_v52, %v3496_v51  ;;  %v4811_v0 = vmax.f32 %v9020_v9, %v4613_v4  ;;  %v4615_v17 = vsel %vm4359_vm13, %v11611_v5, 0.0  ;;  %vm4358_vm1 = vcmp.eq.f32.partialorder %v12254_v58, %v7757_v15  ;;  %v12267_v51 = vld [vmem:[#allocation93_spill] sm:$0xff]  ;;  %v9102_v3 = vpop.f32.mrb[189].mxu1  ;;  %v12271_v58 = vld [vmem:[#allocation95_spill] sm:$0xff] }
 0x26f   :  { %vm3254_vm15 = vcmp.eq.f32.partialorder %v12267_v51, %v9010_v25  ;;  %vm3248_vm2 = vcmp.eq.f32.partialorder %v12259_v1, %v8870_v22  ;;  %12268 = vst [vmem:[#allocation230_spill] sm:$0xff] %v9102_v3  ;;  %v4949_v11 = vmax.f32 %v9030_v57, %v4615_v17  ;;  %v9108_v9 = vsel %vm3250_vm6, %v2674_v48, 0.0  ;;  %v12270_v57 = vld [vmem:[#allocation92_spill] sm:$0xff]  ;;  %v9136_v46 = vpop.f32.mrb[190].mxu1 }
 0x270   :  { %3768 = vmax.xlane.f32.xlu1 %v3767_v43  ;;  %v4614_v42 = vsel %vm4358_vm1, %v2674_v48, 0.0  ;;  %v11614_v52 = vand.u32 2147483647, %v8606_v41  ;;  %v12269_v4 = vand.u32 2147483647, %v12231_v20  ;;  %vm4360_vm3 = vcmp.eq.f32.partialorder %v12270_v57, %v7759_v37 }
 0x271   :  { %v4880_v43 = vmax.f32 %v9049_v55, %v4614_v42  ;;  %vm3257_vm4 = vcmp.eq.f32.partialorder %v12271_v58, %v9070_v40  ;;  %v12272_v20 = vand.u32 2147483647, %v12239_v33  ;;  %v12273_v17 = vmax.f32 %v8946_v10, %v8970_v56  ;;  %v9134_v42 = vpop.f32.mrb[190].mxu0  ;;  %v12274_v33 = vld [vmem:[#allocation30_spill] sm:$0xff]  ;;  %v9146_v10 = vpop.f32.mrb[191].mxu1 }
 0x272   :  { %v3499_v5 = vsel %vm3243_vm5, %v12269_v4, 0.0  ;;  %v4616_v48 = vsel %vm4360_vm3, %v11614_v52, 0.0  ;;  %v2677_v55 = vand.u32 2147483647, %v8624_v62  ;;  %vm4361_vm9 = vcmp.eq.f32.partialorder %v12260_v50, %v7750_v53  ;;  %12276 = vst [vmem:[#allocation51_spill] sm:$0xff] %v9146_v10  ;;  %v9148_v56 = vpop.xlane.xlu0 %2966  ;;  %v12278_v10 = vld [vmem:[#allocation97_spill] sm:$0xff] }
 0x273   :  { %v3500_v14 = vsel %vm3244_vm12, %v12272_v20, 0.0  ;;  %v3771_v4 = vmax.f32 %v12273_v17, %v3499_v5  ;;  %v5018_v3 = vmax.f32 %v9072_v31, %v4616_v48  ;;  %v11617_v52 = vand.u32 2147483647, %v12274_v33  ;;  %v9144_v20 = vpop.f32.mrb[191].mxu0  ;;  %12277 = vst [vmem:[#allocation53_spill] sm:$0xff] %v9148_v56 }
 0x274   :  { %vm4363_vm10 = vcmp.eq.f32.partialorder %v12275_v54, %v7752_v47  ;;  %vm3251_vm5 = vcmp.eq.f32.partialorder %v12266_v8, %v8932_v16  ;;  %v9155_v31 = vsel %vm3253_vm7, %v2677_v55, 0.0  ;;  %v4617_v5 = vsel %vm4361_vm9, %v2677_v55, 0.0  ;;  %v9178_v55 = vpop.f32.mrb[192].mxu1 }
 0x275   :  { %v3772_v62 = vmax.f32 %v3771_v4, %v3500_v14  ;;  %v2678_v48 = vand.u32 2147483647, %v8640_v35  ;;  %v9158_v17 = vmax.f32 %v4811_v0, %v4617_v5  ;;  %v4619_v12 = vsel %vm4363_vm10, %v11617_v52, 0.0  ;;  %v9176_v4 = vpop.f32.mrb[192].mxu0  ;;  %12280 = vst [vmem:[#allocation52_spill] sm:$0xff] %v9178_v55  ;;  %v9195_v14 = vpop.f32.mrb[193].mxu1 }
 0x276   :  { %vm4362_vm11 = vcmp.eq.f32.partialorder %v12267_v51, %v7757_v15  ;;  %vm3258_vm6 = vcmp.eq.f32.partialorder %v12278_v10, %v9070_v40  ;;  %vm3252_vm12 = vcmp.eq.f32.partialorder %v12270_v57, %v8932_v16  ;;  %v9168_v50 = vmax.f32 %v4949_v11, %v4619_v12  ;;  %12279 = vst [vmem:[#allocation50_spill] sm:$0xff] %v9176_v4  ;;  %v12282_v51 = vld [vmem:[#allocation96_spill] sm:$0xff]  ;;  %v9193_v52 = vpop.f32.mrb[193].mxu0  ;;  %v12301_v57 = vld [vmem:[#allocation102_spill] sm:$0xff] }
 0x277   :  { %3773 = vmax.xlane.f32.xlu1 %v3772_v62  ;;  %v9173_v35 = vsel %vm3254_vm15, %v2678_v48, 0.0  ;;  %v4618_v0 = vsel %vm4362_vm11, %v2678_v48, 0.0  ;;  %v12281_v5 = vand.u32 2147483647, %v12247_v39  ;;  %vm4364_vm0 = vcmp.eq.f32.partialorder %v12282_v51, %v7759_v37  ;;  %v12283_v48 = vld [vmem:[#allocation99_spill] sm:$0xff]  ;;  %12284 = vst [vmem:[#allocation231_spill] sm:$0xff] %v9193_v52 }
 0x278   :  { %v9187_v11 = vmax.f32 %v4880_v43, %v4618_v0  ;;  %vm3261_vm7 = vcmp.eq.f32.partialorder %v12283_v48, %v9148_v56  ;;  %12285 = vst [vmem:[#allocation55_spill] sm:$0xff] %v9195_v14  ;;  %v12286_v39 = vand.u32 2147483647, %v8653_v44  ;;  %v12287_v63 = vand.u32 2147483647, %v12255_v21  ;;  %v12289_v14 = vld [vmem:[#allocation35_spill] sm:$0xff] }
 0x279   :  { %v3503_v62 = vsel %vm3247_vm14, %v12281_v5, 0.0  ;;  %v12288_v0 = vmax.f32 %v9017_v32, %v9035_v7  ;;  %v2681_v12 = vand.u32 2147483647, %v8674_v27  ;;  %vm4365_vm8 = vcmp.eq.f32.partialorder %v12271_v58, %v7750_v53  ;;  %v12291_v7 = vld [vmem:[#allocation37_spill] sm:$0xff] }
 0x27a   :  { %v4620_v55 = vsel %vm4364_vm0, %v12286_v39, 0.0  ;;  %v3504_v43 = vsel %vm3248_vm2, %v12287_v63, 0.0  ;;  %v11619_v52 = vand.u32 2147483647, %v12289_v14  ;;  %v12290_v39 = vld [vmem:[#allocation98_spill] sm:$0xff]  ;;  %vm3255_vm14 = vcmp.eq.f32.partialorder %v12275_v54, %v9010_v25 }
 0x27b   :  { %v3776_v5 = vmax.f32 %v12288_v0, %v3503_v62  ;;  %v9208_v4 = vmax.f32 %v5018_v3, %v4620_v55  ;;  %vm4367_vm13 = vcmp.eq.f32.partialorder %v12290_v39, %v7752_v47  ;;  %v9220_v32 = vsel %vm3257_vm4, %v2681_v12, 0.0  ;;  %v9223_v3 = vpop.f32.mrb[194].mxu0  ;;  %v9225_v55 = vpop.f32.mrb[194].mxu1 }
 0x27c   :  { %v4621_v27 = vsel %vm4365_vm8, %v2681_v12, 0.0  ;;  %v2682_v1 = vand.u32 2147483647, %v12291_v7  ;;  %v4623_v63 = vsel %vm4367_vm13, %v11619_v52, 0.0  ;;  %vm4366_vm1 = vcmp.eq.f32.partialorder %v12278_v10, %v7757_v15  ;;  %v9236_v58 = vpop.f32.mrb[195].mxu0  ;;  %v9238_v12 = vpop.f32.mrb[195].mxu1 }
 0x27d   :  { %v3777_v21 = vmax.f32 %v3776_v5, %v3504_v43  ;;  %v4813_v62 = vmax.f32 %v9158_v17, %v4621_v27  ;;  %v12292_v43 = vld [vmem:[#allocation101_spill] sm:$0xff]  ;;  %vm3256_vm2 = vcmp.eq.f32.partialorder %v12282_v51, %v9010_v25  ;;  %12293 = vst [vmem:[#allocation57_spill] sm:$0xff] %v9236_v58  ;;  %12294 = vst [vmem:[#allocation54_spill] sm:$0xff] %v9238_v12  ;;  %v12295_v27 = vld [vmem:[#allocation34_spill] sm:$0xff]  ;;  %v9247_v52 = vpop.xlane.xlu1 %2971  ;;  %v12297_v22 = vand.u32 2147483647, %v8591_v61 }
 0x27e   :  { %vm3262_vm15 = vcmp.eq.f32.partialorder %v12292_v43, %v9148_v56  ;;  %v4951_v0 = vmax.f32 %v9168_v50, %v4623_v63  ;;  %v9244_v17 = vsel %vm3258_vm6, %v2682_v1, 0.0  ;;  %v4622_v5 = vsel %vm4366_vm1, %v2682_v1, 0.0  ;;  %12296 = vst [vmem:[#allocation243_spill] sm:$0xff] %v9247_v52  ;;  %v12298_v10 = vld [vmem:[#allocation100_spill] sm:$0xff]  ;;  %v9270_v12 = vpop.f32.mrb[196].mxu0 }
 0x27f   :  { %3778 = vmax.xlane.f32.xlu1 %v3777_v21  ;;  %v11622_v7 = vand.u32 2147483647, %v12295_v27  ;;  %v3507_v58 = vsel %vm3251_vm5, %v12297_v22, 0.0  ;;  %v4882_v50 = vmax.f32 %v9187_v11, %v4622_v5  ;;  %vm4368_vm3 = vcmp.eq.f32.partialorder %v12298_v10, %v7759_v37  ;;  %v9272_v11 = vpop.f32.mrb[196].mxu1 }
 0x280   :  { %v12299_v63 = vand.u32 2147483647, %v8606_v41  ;;  %v12300_v22 = vmax.f32 %v9084_v29, %v9108_v9  ;;  %v2685_v21 = vand.u32 2147483647, %v8720_v24  ;;  %vm4369_vm4 = vcmp.eq.f32.partialorder %v12283_v48, %v7750_v53  ;;  %v9282_v29 = vpop.f32.mrb[197].mxu1 }
 0x281   :  { %v4624_v1 = vsel %vm4368_vm3, %v11622_v7, 0.0  ;;  %v11623_v41 = vand.u32 2147483647, %v8728_v18  ;;  %vm4371_vm9 = vcmp.eq.f32.partialorder %v12301_v57, %v7752_v47  ;;  %vm3259_vm10 = vcmp.eq.f32.partialorder %v12290_v39, %v9070_v40  ;;  %v12302_v7 = vld [vmem:[#allocation103_spill] sm:$0xff] }
 0x282   :  { %v3508_v61 = vsel %vm3252_vm12, %v12299_v63, 0.0  ;;  %v3781_v8 = vmax.f32 %v12300_v22, %v3507_v58  ;;  %v5020_v5 = vmax.f32 %v9208_v4, %v4624_v1  ;;  %v9280_v63 = vpop.f32.mrb[197].mxu0  ;;  %v9289_v9 = vsel %vm3261_vm7, %v2685_v21, 0.0 }
 0x283   :  { %v4625_v4 = vsel %vm4369_vm4, %v2685_v21, 0.0  ;;  %v2686_v58 = vand.u32 2147483647, %v8730_v2  ;;  %v4627_v22 = vsel %vm4371_vm9, %v11623_v41, 0.0  ;;  %vm4370_vm5 = vcmp.eq.f32.partialorder %v12292_v43, %v7757_v15  ;;  %v9310_v21 = vpop.f32.mrb[198].mxu0 }
 0x284   :  { %v3782_v24 = vmax.f32 %v3781_v8, %v3508_v61  ;;  %v9292_v1 = vmax.f32 %v4813_v62, %v4625_v4  ;;  %vm3265_vm11 = vcmp.eq.f32.partialorder %v12302_v7, %v9247_v52  ;;  %v9300_v61 = vmax.f32 %v4951_v0, %v4627_v22  ;;  %v9312_v8 = vpop.f32.mrb[198].mxu1  ;;  %v9325_v22 = vpop.f32.mrb[199].mxu0 }
 0x285   :  { %v9305_v48 = vsel %vm3262_vm15, %v2686_v58, 0.0  ;;  %v4626_v2 = vsel %vm4370_vm5, %v2686_v58, 0.0  ;;  %v11625_v62 = vand.u32 2147483647, %v8742_v34  ;;  %vm3260_vm6 = vcmp.eq.f32.partialorder %v12298_v10, %v9070_v40  ;;  %v12304_v58 = vld [vmem:[#allocation104_spill] sm:$0xff]  ;;  %12305 = vst [vmem:[#allocation56_spill] sm:$0xff] %v9325_v22 }
 0x286   :  { %3783 = vmax.xlane.f32.xlu1 %v3782_v24  ;;  %v12303_v4 = vand.u32 2147483647, %v12274_v33  ;;  %v9321_v24 = vmax.f32 %v4882_v50, %v4626_v2  ;;  %vm4372_vm12 = vcmp.eq.f32.partialorder %v12304_v58, %v7759_v37  ;;  %v9327_v41 = vpop.f32.mrb[199].mxu1  ;;  %v12307_v33 = vand.u32 2147483647, %v8653_v44  ;;  %v12319_v40 = vld [vmem:[#allocation109_spill] sm:$0xff] }
 0x287   :  { %12306 = vst [vmem:[#allocation232_spill] sm:$0xff] %v9327_v41  ;;  %v4628_v16 = vsel %vm4372_vm12, %v11625_v62, 0.0  ;;  %v12308_v50 = vmax.f32 %v9155_v31, %v9173_v35  ;;  %vm4373_vm0 = vcmp.eq.f32.partialorder %v12302_v7, %v7750_v53  ;;  %v12309_v41 = vld [vmem:[#allocation36_spill] sm:$0xff]  ;;  %v12310_v62 = vld [vmem:[#allocation106_spill] sm:$0xff]  ;;  %vm3263_vm8 = vcmp.eq.f32.partialorder %v12301_v57, %v9148_v56  ;;  %v9355_v35 = vpop.f32.mrb[200].mxu0  ;;  %v9357_v51 = vpop.f32.mrb[200].mxu1 }
 0x288   :  { %v3511_v0 = vsel %vm3255_vm14, %v12303_v4, 0.0  ;;  %v3512_v54 = vsel %vm3256_vm2, %v12307_v33, 0.0  ;;  %v2689_v4 = vand.u32 2147483647, %v8762_v45  ;;  %v9340_v43 = vmax.f32 %v5020_v5, %v4628_v16  ;;  %v9364_v33 = vpop.f32.mrb[201].mxu0  ;;  %v9366_v7 = vpop.f32.mrb[201].mxu1 }
 0x289   :  { %v3786_v2 = vmax.f32 %v12308_v50, %v3511_v0  ;;  %v2691_v22 = vand.u32 2147483647, %v12309_v41  ;;  %vm4375_vm7 = vcmp.eq.f32.partialorder %v12310_v62, %v7752_v47  ;;  %v2690_v16 = vand.u32 2147483647, %v8779_v49  ;;  %v12311_v0 = vld [vmem:[#allocation105_spill] sm:$0xff] }
 0x28a   :  { %v9352_v31 = vsel %vm3265_vm11, %v2689_v4, 0.0  ;;  %v4629_v45 = vsel %vm4373_vm0, %v2689_v4, 0.0  ;;  %vm3266_vm13 = vcmp.eq.f32.partialorder %v12311_v0, %v9247_v52  ;;  %vm4374_vm14 = vcmp.eq.f32.partialorder %v12311_v0, %v7757_v15  ;;  %v9394_v0 = vpop.f32.mrb[202].mxu1 }
 0x28b   :  { %v3787_v44 = vmax.f32 %v3786_v2, %v3512_v54  ;;  %v4815_v5 = vmax.f32 %v9292_v1, %v4629_v45  ;;  %v4631_v41 = vsel %vm4375_vm7, %v2691_v22, 0.0  ;;  %v9369_v54 = vsel %vm3266_vm13, %v2690_v16, 0.0  ;;  %v9372_v1 = vpop.xlane.xlu0 %2976 }
 0x28c   :  { %v4953_v49 = vmax.f32 %v9300_v61, %v4631_v41  ;;  %v4630_v50 = vsel %vm4374_vm14, %v2690_v16, 0.0  ;;  %v11627_v2 = vand.u32 2147483647, %v8792_v28  ;;  %12312 = vst [vmem:[#allocation59_spill] sm:$0xff] %v9372_v1  ;;  %v12313_v4 = vand.u32 2147483647, %v12289_v14 }
 0x28d   :  { %3788 = vmax.xlane.f32.xlu1 %v3787_v44  ;;  %v4884_v44 = vmax.f32 %v9321_v24, %v4630_v50  ;;  %v12314_v61 = vld [vmem:[#allocation108_spill] sm:$0xff]  ;;  %vm3267_vm15 = vcmp.eq.f32.partialorder %v12310_v62, %v9247_v52  ;;  %v12315_v14 = vmax.f32 %v9220_v32, %v9244_v17  ;;  %v2693_v39 = vand.u32 2147483647, %v8811_v23  ;;  %v9407_v23 = vpop.f32.mrb[203].mxu1 }
 0x28e   :  { %v3515_v45 = vsel %vm3259_vm10, %v12313_v4, 0.0  ;;  %vm4376_vm1 = vcmp.eq.f32.partialorder %v12314_v61, %v7759_v37  ;;  %v9392_v4 = vpop.f32.mrb[202].mxu0  ;;  %v12316_v50 = vand.u32 2147483647, %v12295_v27  ;;  %v2695_v32 = vand.u32 2147483647, %v8822_v38 }
 0x28f   :  { %v4632_v16 = vsel %vm4376_vm1, %v11627_v2, 0.0  ;;  %v3791_v41 = vmax.f32 %v12315_v14, %v3515_v45  ;;  %v12317_v2 = vld [vmem:[#allocation107_spill] sm:$0xff]  ;;  %v9405_v17 = vpop.f32.mrb[203].mxu0  ;;  %v12318_v27 = vld [vmem:[#allocation110_spill] sm:$0xff]  ;;  %vm3270_vm9 = vcmp.eq.f32.partialorder %v12319_v40, %v9372_v1  ;;  %vm4378_vm10 = vcmp.eq.f32.partialorder %v12319_v40, %v7757_v15 }
 0x290   :  { %v5022_v24 = vmax.f32 %v9340_v43, %v4632_v16  ;;  %v3516_v25 = vsel %vm3260_vm6, %v12316_v50, 0.0  ;;  %vm4377_vm2 = vcmp.eq.f32.partialorder %v12317_v2, %v7750_v53  ;;  %vm3269_vm3 = vcmp.eq.f32.partialorder %v12317_v2, %v9372_v1  ;;  %v9442_v2 = vpop.xlane.xlu1 %2981 }
 0x291   :  { %v3792_v45 = vmax.f32 %v3791_v41, %v3516_v25  ;;  %v4633_v43 = vsel %vm4377_vm2, %v2693_v39, 0.0  ;;  %vm4379_vm4 = vcmp.eq.f32.partialorder %v12318_v27, %v7752_v47  ;;  %v9413_v16 = vsel %vm3269_vm3, %v2693_v39, 0.0  ;;  %v12320_v25 = vld [vmem:[#allocation39_spill] sm:$0xff]  ;;  %v9425_v41 = vpop.f32.mrb[204].mxu1  ;;  %v9427_v39 = vpop.f32.mrb[204].mxu0  ;;  %12327 = vst [vmem:[#allocation58_spill] sm:$0xff] %v9442_v2 }
 0x292   :  { %v9415_v10 = vmax.f32 %v4815_v5, %v4633_v43  ;;  %v4635_v14 = vsel %vm4379_vm4, %v2695_v32, 0.0  ;;  %v2694_v50 = vand.u32 2147483647, %v8824_v19  ;;  %12321 = vst [vmem:[#allocation14_spill] sm:$0xff] %v9425_v41  ;;  %12322 = vst [vmem:[#allocation61_spill] sm:$0xff] %v9427_v39  ;;  %v12324_v43 = vld [vmem:[#allocation112_spill] sm:$0xff]  ;;  %vm3264_vm11 = vcmp.eq.f32.partialorder %v12304_v58, %v9148_v56  ;;  %v9484_v56 = vpop.xlane.xlu0 %2986 }
 0x293   :  { %3793 = vmax.xlane.f32.xlu1 %v3792_v45  ;;  %v9418_v38 = vmax.f32 %v4953_v49, %v4635_v14  ;;  %v12323_v5 = vand.u32 2147483647, %v8728_v18  ;;  %vm4380_vm5 = vcmp.eq.f32.partialorder %v12324_v43, %v7759_v37  ;;  %v9438_v14 = vpop.f32.mrb[205].mxu0  ;;  %v9440_v40 = vpop.f32.mrb[205].mxu1  ;;  %v3523_v18 = vsel %vm3267_vm15, %v2691_v22, 0.0 }
 0x294   :  { %v9434_v49 = vsel %vm3270_vm9, %v2694_v50, 0.0  ;;  %v4634_v45 = vsel %vm4378_vm10, %v2694_v50, 0.0  ;;  %12325 = vst [vmem:[#allocation16_spill] sm:$0xff] %v9438_v14  ;;  %12326 = vst [vmem:[#allocation18_spill] sm:$0xff] %v9440_v40  ;;  %v12328_v50 = vand.u32 2147483647, %v12320_v25  ;;  %v12329_v40 = vmax.f32 %v9289_v9, %v9305_v48 }
 0x295   :  { %v3519_v19 = vsel %vm3263_vm8, %v12323_v5, 0.0  ;;  %v9449_v5 = vmax.f32 %v4884_v44, %v4634_v45  ;;  %v2697_v62 = vand.u32 2147483647, %v8858_v13  ;;  %vm3271_vm6 = vcmp.eq.f32.partialorder %v12318_v27, %v9372_v1  ;;  %v12331_v45 = vld [vmem:[#allocation111_spill] sm:$0xff]  ;;  %v9470_v58 = vpop.f32.mrb[206].mxu0  ;;  %v12334_v9 = vld [vmem:[#allocation114_spill] sm:$0xff] }
 0x296   :  { %v4636_v39 = vsel %vm4380_vm5, %v12328_v50, 0.0  ;;  %v3796_v14 = vmax.f32 %v12329_v40, %v3519_v19  ;;  %v12330_v22 = vand.u32 2147483647, %v8742_v34  ;;  %vm4381_vm12 = vcmp.eq.f32.partialorder %v12331_v45, %v7750_v53  ;;  %12333 = vst [vmem:[#allocation60_spill] sm:$0xff] %v9470_v58  ;;  %v9476_v48 = vpop.f32.mrb[207].mxu0 }
 0x297   :  { %v9453_v41 = vmax.f32 %v5022_v24, %v4636_v39  ;;  %v2699_v24 = vand.u32 2147483647, %v8866_v30  ;;  %v9468_v39 = vpop.f32.mrb[206].mxu1  ;;  %vm3273_vm0 = vcmp.eq.f32.partialorder %v12331_v45, %v9442_v2  ;;  %v4637_v13 = vsel %vm4381_vm12, %v2697_v62, 0.0  ;;  %12335 = vst [vmem:[#allocation235_spill] sm:$0xff] %v9476_v48  ;;  %v12339_v45 = vld [vmem:[#allocation19_spill] sm:$0xff] }
 0x298   :  { %v3520_v44 = vsel %vm3264_vm11, %v12330_v22, 0.0  ;;  %12332 = vst [vmem:[#allocation216_spill] sm:$0xff] %v9468_v39  ;;  %vm4383_vm7 = vcmp.eq.f32.partialorder %v12334_v9, %v7752_v47  ;;  %v9478_v34 = vpop.f32.mrb[207].mxu1  ;;  %v9480_v19 = vsel %vm3273_vm0, %v2697_v62, 0.0  ;;  %v4817_v30 = vmax.f32 %v9415_v10, %v4637_v13  ;;  %v12337_v22 = vld [vmem:[#allocation41_spill] sm:$0xff] }
 0x299   :  { %v3797_v50 = vmax.f32 %v3796_v14, %v3520_v44  ;;  %12336 = vst [vmem:[#allocation63_spill] sm:$0xff] %v9478_v34  ;;  %v4639_v40 = vsel %vm4383_vm7, %v2699_v24, 0.0  ;;  %v2698_v57 = vand.u32 2147483647, %v12337_v22  ;;  %v12338_v44 = vld [vmem:[#allocation113_spill] sm:$0xff]  ;;  %v3527_v10 = vsel %vm3271_vm6, %v2695_v32, 0.0 }
 0x29a   :  { %v4955_v14 = vmax.f32 %v9418_v38, %v4639_v40  ;;  %vm3274_vm8 = vcmp.eq.f32.partialorder %v12338_v44, %v9442_v2  ;;  %vm4382_vm13 = vcmp.eq.f32.partialorder %v12338_v44, %v7757_v15  ;;  %v11630_v34 = vand.u32 2147483647, %v12339_v45  ;;  %v12340_v22 = vld [vmem:[#allocation116_spill] sm:$0xff]  ;;  %v9501_v38 = vpop.f32.mrb[208].mxu0 }
 0x29b   :  { %3798 = vmax.xlane.f32.xlu1 %v3797_v50  ;;  %v9495_v62 = vsel %vm3274_vm8, %v2698_v57, 0.0  ;;  %v4638_v13 = vsel %vm4382_vm13, %v2698_v57, 0.0  ;;  %vm4384_vm14 = vcmp.eq.f32.partialorder %v12340_v22, %v7759_v37  ;;  %v9499_v50 = vpop.f32.mrb[208].mxu1  ;;  %12342 = vst [vmem:[#allocation62_spill] sm:$0xff] %v9501_v38  ;;  %vm3275_vm1 = vcmp.eq.f32.partialorder %v12334_v9, %v9442_v2  ;;  %v9510_v27 = vpop.f32.mrb[209].mxu0 }
 0x29c   :  { %12341 = vst [vmem:[#allocation65_spill] sm:$0xff] %v9499_v50  ;;  %v4886_v44 = vmax.f32 %v9449_v5, %v4638_v13  ;;  %v4640_v32 = vsel %vm4384_vm14, %v11630_v34, 0.0  ;;  %12343 = vst [vmem:[#allocation23_spill] sm:$0xff] %v9510_v27  ;;  %v9512_v57 = vpop.f32.mrb[209].mxu1  ;;  %vm3268_vm15 = vcmp.eq.f32.partialorder %v12314_v61, %v9247_v52  ;;  %v12345_v9 = vmax.f32 %v9352_v31, %v9369_v54  ;;  %v12346_v50 = vld [vmem:[#allocation38_spill] sm:$0xff]  ;;  %v12348_v34 = vld [vmem:[#allocation115_spill] sm:$0xff] }
 0x29d   :  { %12344 = vst [vmem:[#allocation64_spill] sm:$0xff] %v9512_v57  ;;  %v5024_v48 = vmax.f32 %v9453_v41, %v4640_v32  ;;  %v2701_v40 = vand.u32 2147483647, %v12346_v50  ;;  %v9521_v58 = vsel %vm3275_vm1, %v2699_v24, 0.0  ;;  %v12347_v5 = vand.u32 2147483647, %v8792_v28 }
 0x29e   :  { %v3801_v38 = vmax.f32 %v12345_v9, %v3523_v18  ;;  %vm4385_vm2 = vcmp.eq.f32.partialorder %v12348_v34, %v7750_v53  ;;  %v12349_v57 = vld [vmem:[#allocation12_spill] sm:$0xff]  ;;  %vm3277_vm3 = vcmp.eq.f32.partialorder %v12348_v34, %v9484_v56  ;;  %v12350_v31 = vld [vmem:[#allocation118_spill] sm:$0xff]  ;;  %v9532_v54 = vpop.f32.mrb[210].mxu1  ;;  %v9534_v18 = vpop.f32.mrb[210].mxu0  ;;  %v12353_v32 = vld [vmem:[#allocation21_spill] sm:$0xff]  ;;  %vm3272_vm6 = vcmp.eq.f32.partialorder %v12324_v43, %v9372_v1 }
 0x29f   :  { %v3524_v13 = vsel %vm3268_vm15, %v12347_v5, 0.0  ;;  %v2703_v27 = vand.u32 2147483647, %v12349_v57  ;;  %v4641_v61 = vsel %vm4385_vm2, %v2701_v40, 0.0  ;;  %vm4387_vm4 = vcmp.eq.f32.partialorder %v12350_v31, %v7752_v47  ;;  %12351 = vst [vmem:[#allocation67_spill] sm:$0xff] %v9532_v54  ;;  %12352 = vst [vmem:[#allocation69_spill] sm:$0xff] %v9534_v18 }
 0x2a0   :  { %v3802_v41 = vmax.f32 %v3801_v38, %v3524_v13  ;;  %v9536_v24 = vsel %vm3277_vm3, %v2701_v40, 0.0  ;;  %v9538_v28 = vmax.f32 %v4817_v30, %v4641_v61  ;;  %v2702_v9 = vand.u32 2147483647, %v12353_v32  ;;  %v9541_v57 = vpop.f32.mrb[211].mxu0  ;;  %v9543_v38 = vpop.f32.mrb[211].mxu1  ;;  %v12356_v5 = vld [vmem:[#allocation117_spill] sm:$0xff] }
 0x2a1   :  { %v4643_v50 = vsel %vm4387_vm4, %v2703_v27, 0.0  ;;  %12354 = vst [vmem:[#allocation66_spill] sm:$0xff] %v9541_v57  ;;  %12355 = vst [vmem:[#allocation68_spill] sm:$0xff] %v9543_v38  ;;  %vm3278_vm9 = vcmp.eq.f32.partialorder %v12356_v5, %v9484_v56  ;;  %vm4386_vm10 = vcmp.eq.f32.partialorder %v12356_v5, %v7757_v15  ;;  %v12357_v40 = vld [vmem:[#allocation40_spill] sm:$0xff]  ;;  %v9552_v30 = vpop.xlane.xlu1 %2991  ;;  %vm3279_vm5 = vcmp.eq.f32.partialorder %v12350_v31, %v9484_v56  ;;  %v9568_v52 = vpop.f32.mrb[212].mxu1  ;;  %v12365_v43 = vld [vmem:[#allocation119_spill] sm:$0xff] }
 0x2a2   :  { %3803 = vmax.xlane.f32.xlu1 %v3802_v41  ;;  %v9545_v34 = vmax.f32 %v4955_v14, %v4643_v50  ;;  %v11632_v13 = vand.u32 2147483647, %v12357_v40  ;;  %v9556_v61 = vsel %vm3278_vm9, %v2702_v9, 0.0  ;;  %v4642_v32 = vsel %vm4386_vm10, %v2702_v9, 0.0  ;;  %v12358_v41 = vld [vmem:[#allocation120_spill] sm:$0xff]  ;;  %v9570_v38 = vpop.f32.mrb[212].mxu0 }
 0x2a3   :  { %vm4388_vm11 = vcmp.eq.f32.partialorder %v12358_v41, %v7759_v37  ;;  %v9562_v50 = vmax.f32 %v4886_v44, %v4642_v32  ;;  %12359 = vst [vmem:[#allocation71_spill] sm:$0xff] %v9570_v38  ;;  %v12360_v9 = vand.u32 2147483647, %v12320_v25  ;;  %v12361_v14 = vmax.f32 %v9413_v16, %v9434_v49  ;;  %v12362_v32 = vld [vmem:[#allocation43_spill] sm:$0xff]  ;;  %v9580_v39 = vpop.f32.mrb[213].mxu0  ;;  %v12367_v25 = vld [vmem:[#allocation122_spill] sm:$0xff] }
 0x2a4   :  { %v4644_v5 = vsel %vm4388_vm11, %v11632_v13, 0.0  ;;  %v2705_v54 = vand.u32 2147483647, %v12362_v32  ;;  %12363 = vst [vmem:[#allocation20_spill] sm:$0xff] %v9580_v39  ;;  %v9582_v13 = vpop.f32.mrb[213].mxu1  ;;  %vm3281_vm12 = vcmp.eq.f32.partialorder %v12365_v43, %v9552_v30  ;;  %vm4389_vm0 = vcmp.eq.f32.partialorder %v12365_v43, %v7750_v53  ;;  %v12369_v43 = vld [vmem:[#allocation121_spill] sm:$0xff] }
 0x2a5   :  { %v9572_v57 = vmax.f32 %v5024_v48, %v4644_v5  ;;  %v3528_v18 = vsel %vm3272_vm6, %v12360_v9, 0.0  ;;  %v3806_v44 = vmax.f32 %v12361_v14, %v3527_v10  ;;  %12364 = vst [vmem:[#allocation70_spill] sm:$0xff] %v9582_v13  ;;  %v12366_v48 = vld [vmem:[#allocation210_spill] sm:$0xff]  ;;  %vm4391_vm7 = vcmp.eq.f32.partialorder %v12367_v25, %v7752_v47  ;;  %v12368_v10 = vld [vmem:[#allocation45_spill] sm:$0xff]  ;;  %v9602_v39 = vpop.f32.mrb[214].mxu0 }
 0x2a6   :  { %v2707_v5 = vand.u32 2147483647, %v12366_v48  ;;  %v9591_v16 = vsel %vm3281_vm12, %v2705_v54, 0.0  ;;  %v4645_v49 = vsel %vm4389_vm0, %v2705_v54, 0.0  ;;  %v2706_v14 = vand.u32 2147483647, %v12368_v10 }
 0x2a7   :  { %v3807_v9 = vmax.f32 %v3806_v44, %v3528_v18  ;;  %v3535_v32 = vsel %vm3279_vm5, %v2703_v27, 0.0  ;;  %v4819_v1 = vmax.f32 %v9538_v28, %v4645_v49  ;;  %vm3282_vm8 = vcmp.eq.f32.partialorder %v12369_v43, %v9552_v30  ;;  %v9600_v48 = vpop.f32.mrb[214].mxu1  ;;  %12371 = vst [vmem:[#allocation72_spill] sm:$0xff] %v9602_v39  ;;  %v12372_v31 = vld [vmem:[#allocation42_spill] sm:$0xff]  ;;  %v9610_v44 = vpop.f32.mrb[215].mxu0 }
 0x2a8   :  { %v4647_v13 = vsel %vm4391_vm7, %v2707_v5, 0.0  ;;  %12370 = vst [vmem:[#allocation73_spill] sm:$0xff] %v9600_v48  ;;  %v9605_v54 = vsel %vm3282_vm8, %v2706_v14, 0.0  ;;  %vm4390_vm13 = vcmp.eq.f32.partialorder %v12369_v43, %v7757_v15  ;;  %v11634_v27 = vand.u32 2147483647, %v12372_v31  ;;  %12373 = vst [vmem:[#allocation75_spill] sm:$0xff] %v9610_v44  ;;  %v9612_v28 = vpop.xlane.xlu0 %2996 }
 0x2a9   :  { %3808 = vmax.xlane.f32.xlu0 %v3807_v9  ;;  %v4957_v18 = vmax.f32 %v9545_v34, %v4647_v13  ;;  %vm3283_vm14 = vcmp.eq.f32.partialorder %v12367_v25, %v9552_v30  ;;  %v4646_v9 = vsel %vm4390_vm13, %v2706_v14, 0.0  ;;  %v12374_v34 = vld [vmem:[#allocation124_spill] sm:$0xff]  ;;  %v9620_v13 = vpop.f32.mrb[215].mxu1  ;;  %vm3276_vm15 = vcmp.eq.f32.partialorder %v12340_v22, %v9442_v2  ;;  %v12380_v22 = vld [vmem:[#allocation123_spill] sm:$0xff] }
 0x2aa   :  { %vm4392_vm1 = vcmp.eq.f32.partialorder %v12374_v34, %v7759_v37  ;;  %12375 = vst [vmem:[#allocation74_spill] sm:$0xff] %v9620_v13  ;;  %v4888_v10 = vmax.f32 %v9562_v50, %v4646_v9  ;;  %v12376_v25 = vmax.f32 %v9480_v19, %v9495_v62  ;;  %v9631_v49 = vsel %vm3283_vm14, %v2707_v5, 0.0  ;;  %v9637_v9 = vpop.f32.mrb[216].mxu1  ;;  %v12385_v5 = vld [vmem:[#allocation44_spill] sm:$0xff] }
 0x2ab   :  { %v4648_v43 = vsel %vm4392_vm1, %v11634_v27, 0.0  ;;  %v12377_v39 = vand.u32 2147483647, %v12339_v45  ;;  %v2709_v50 = vand.u32 2147483647, %v8996_v26  ;;  %12378 = vst [vmem:[#allocation77_spill] sm:$0xff] %v9637_v9  ;;  %vm3285_vm2 = vcmp.eq.f32.partialorder %v12380_v22, %v9612_v28 }
 0x2ac   :  { %v3811_v44 = vmax.f32 %v12376_v25, %v9521_v58  ;;  %v5026_v14 = vmax.f32 %v9572_v57, %v4648_v43  ;;  %v9639_v27 = vpop.f32.mrb[216].mxu0  ;;  %vm4393_vm3 = vcmp.eq.f32.partialorder %v12380_v22, %v7750_v53  ;;  %v12381_v58 = vld [vmem:[#allocation15_spill] sm:$0xff]  ;;  %v9648_v57 = vpop.f32.mrb[217].mxu1  ;;  %v12384_v45 = vld [vmem:[#allocation126_spill] sm:$0xff]  ;;  %v12386_v22 = vld [vmem:[#allocation125_spill] sm:$0xff]  ;;  %vm3280_vm6 = vcmp.eq.f32.partialorder %v12358_v41, %v9484_v56 }
 0x2ad   :  { %v3532_v13 = vsel %vm3276_vm15, %v12377_v39, 0.0  ;;  %12379 = vst [vmem:[#allocation76_spill] sm:$0xff] %v9639_v27  ;;  %v2711_v19 = vand.u32 2147483647, %v12381_v58  ;;  %v9646_v62 = vpop.f32.mrb[217].mxu0  ;;  %12383 = vst [vmem:[#allocation78_spill] sm:$0xff] %v9648_v57  ;;  %vm4395_vm4 = vcmp.eq.f32.partialorder %v12384_v45, %v7752_v47  ;;  %vm3286_vm9 = vcmp.eq.f32.partialorder %v12386_v22, %v9612_v28 }
 0x2ae   :  { %v3812_v48 = vmax.f32 %v3811_v44, %v3532_v13  ;;  %12382 = vst [vmem:[#allocation79_spill] sm:$0xff] %v9646_v62  ;;  %v9650_v39 = vsel %vm3285_vm2, %v2709_v50, 0.0  ;;  %v4649_v26 = vsel %vm4393_vm3, %v2709_v50, 0.0  ;;  %v2710_v44 = vand.u32 2147483647, %v12385_v5  ;;  %v9655_v13 = vpop.xlane.xlu1 %3001  ;;  %v12387_v62 = vld [vmem:[#allocation229_spill] sm:$0xff] }
 0x2af   :  { %v9657_v43 = vmax.f32 %v4819_v1, %v4649_v26  ;;  %v4651_v25 = vsel %vm4395_vm4, %v2711_v19, 0.0  ;;  %vm4394_vm10 = vcmp.eq.f32.partialorder %v12386_v22, %v7757_v15  ;;  %v11636_v27 = vand.u32 2147483647, %v12387_v62  ;;  %v9668_v5 = vpop.f32.mrb[218].mxu1  ;;  %v9670_v9 = vpop.f32.mrb[218].mxu0  ;;  %v12394_v1 = vld [vmem:[#allocation49_spill] sm:$0xff] }
 0x2b0   :  { %3813 = vmax.xlane.f32.xlu1 %v3812_v48  ;;  %v9663_v58 = vmax.f32 %v4957_v18, %v4651_v25  ;;  %v9665_v50 = vsel %vm3286_vm9, %v2710_v44, 0.0  ;;  %v4650_v57 = vsel %vm4394_vm10, %v2710_v44, 0.0  ;;  %12388 = vst [vmem:[#allocation81_spill] sm:$0xff] %v9668_v5  ;;  %12389 = vst [vmem:[#allocation80_spill] sm:$0xff] %v9670_v9  ;;  %vm3287_vm5 = vcmp.eq.f32.partialorder %v12384_v45, %v9612_v28  ;;  %v12390_v18 = vld [vmem:[#allocation128_spill] sm:$0xff]  ;;  %v9680_v26 = vpop.f32.mrb[219].mxu0 }
 0x2b1   :  { %v9676_v48 = vmax.f32 %v4888_v10, %v4650_v57  ;;  %vm4396_vm11 = vcmp.eq.f32.partialorder %v12390_v18, %v7759_v37  ;;  %12391 = vst [vmem:[#allocation83_spill] sm:$0xff] %v9680_v26  ;;  %v9682_v44 = vpop.f32.mrb[219].mxu1  ;;  %v12393_v45 = vmax.f32 %v9536_v24, %v9556_v61  ;;  %v2713_v10 = vand.u32 2147483647, %v12394_v1  ;;  %v12396_v26 = vld [vmem:[#allocation127_spill] sm:$0xff]  ;;  %v9705_v41 = vpop.f32.mrb[220].mxu0 }
 0x2b2   :  { %12392 = vst [vmem:[#allocation25_spill] sm:$0xff] %v9682_v44  ;;  %v4652_v25 = vsel %vm4396_vm11, %v11636_v27, 0.0  ;;  %v12395_v9 = vand.u32 2147483647, %v12357_v40  ;;  %vm4397_vm12 = vcmp.eq.f32.partialorder %v12396_v26, %v7750_v53  ;;  %v12397_v44 = vld [vmem:[#allocation46_spill] sm:$0xff]  ;;  %v9699_v27 = vsel %vm3287_vm5, %v2711_v19, 0.0 }
 0x2b3   :  { %v3816_v22 = vmax.f32 %v12393_v45, %v3535_v32  ;;  %v9692_v57 = vmax.f32 %v5026_v14, %v4652_v25  ;;  %v2715_v2 = vand.u32 2147483647, %v12397_v44  ;;  %vm3289_vm0 = vcmp.eq.f32.partialorder %v12396_v26, %v9655_v13  ;;  %v9703_v61 = vpop.f32.mrb[220].mxu1  ;;  %v12398_v14 = vld [vmem:[#allocation130_spill] sm:$0xff]  ;;  %v9713_v19 = vpop.f32.mrb[221].mxu0  ;;  %v12400_v26 = vld [vmem:[#allocation129_spill] sm:$0xff] }
 0x2b4   :  { %v3536_v5 = vsel %vm3280_vm6, %v12395_v9, 0.0  ;;  %v4653_v24 = vsel %vm4397_vm12, %v2713_v10, 0.0  ;;  %v9707_v32 = vsel %vm3289_vm0, %v2713_v10, 0.0  ;;  %vm4399_vm7 = vcmp.eq.f32.partialorder %v12398_v14, %v7752_v47  ;;  %v12399_v9 = vld [vmem:[#allocation17_spill] sm:$0xff]  ;;  %v9720_v25 = vpop.f32.mrb[221].mxu1 }
 0x2b5   :  { %v3817_v38 = vmax.f32 %v3816_v22, %v3536_v5  ;;  %v4821_v40 = vmax.f32 %v9657_v43, %v4653_v24  ;;  %v2714_v1 = vand.u32 2147483647, %v12399_v9  ;;  %v4655_v5 = vsel %vm4399_vm7, %v2715_v2, 0.0  ;;  %12401 = vst [vmem:[#allocation24_spill] sm:$0xff] %v9720_v25  ;;  %v9722_v43 = vpop.xlane.xlu0 %3006  ;;  %v9736_v25 = vpop.f32.mrb[222].mxu1 }
 0x2b6   :  { %vm3290_vm8 = vcmp.eq.f32.partialorder %v12400_v26, %v9655_v13  ;;  %vm4398_vm13 = vcmp.eq.f32.partialorder %v12400_v26, %v7757_v15  ;;  %v11637_v44 = vand.u32 2147483647, %v9057_v6  ;;  %v4959_v45 = vmax.f32 %v9663_v58, %v4655_v5  ;;  %12403 = vst [vmem:[#allocation82_spill] sm:$0xff] %v9736_v25  ;;  %v9738_v58 = vpop.f32.mrb[222].mxu0 }
 0x2b7   :  { %3818 = vmax.xlane.f32.xlu0 %v3817_v38  ;;  %v9725_v22 = vsel %vm3290_vm8, %v2714_v1, 0.0  ;;  %v4654_v10 = vsel %vm4398_vm13, %v2714_v1, 0.0  ;;  %v12402_v38 = vld [vmem:[#allocation132_spill] sm:$0xff]  ;;  %vm3291_vm1 = vcmp.eq.f32.partialorder %v12398_v14, %v9655_v13  ;;  %12404 = vst [vmem:[#allocation27_spill] sm:$0xff] %v9738_v58  ;;  %vm3284_vm15 = vcmp.eq.f32.partialorder %v12374_v34, %v9552_v30 }
 0x2b8   :  { %vm4400_vm14 = vcmp.eq.f32.partialorder %v12402_v38, %v7759_v37  ;;  %v4890_v9 = vmax.f32 %v9676_v48, %v4654_v10  ;;  %v12405_v14 = vmax.f32 %v9591_v16, %v9605_v54  ;;  %v2717_v24 = vand.u32 2147483647, %v9087_v60  ;;  %v9748_v48 = vpop.f32.mrb[223].mxu0  ;;  %v9750_v10 = vpop.f32.mrb[223].mxu1  ;;  %v12409_v60 = vld [vmem:[#allocation134_spill] sm:$0xff] }
 0x2b9   :  { %v4656_v26 = vsel %vm4400_vm14, %v11637_v44, 0.0  ;;  %12406 = vst [vmem:[#allocation85_spill] sm:$0xff] %v9750_v10  ;;  %v3547_v44 = vsel %vm3291_vm1, %v2715_v2, 0.0  ;;  %v12407_v25 = vand.u32 2147483647, %v12372_v31  ;;  %vm4403_vm4 = vcmp.eq.f32.partialorder %v12409_v60, %v7752_v47 }
 0x2ba   :  { %v5028_v1 = vmax.f32 %v9692_v57, %v4656_v26  ;;  %v3821_v5 = vmax.f32 %v12405_v14, %v9631_v49  ;;  %v12408_v57 = vld [vmem:[#allocation131_spill] sm:$0xff]  ;;  %v2719_v34 = vand.u32 2147483647, %v9089_v36  ;;  %v2718_v31 = vand.u32 2147483647, %v9100_v59  ;;  %v12410_v36 = vld [vmem:[#allocation133_spill] sm:$0xff] }
 0x2bb   :  { %v3540_v58 = vsel %vm3284_vm15, %v12407_v25, 0.0  ;;  %vm4401_vm2 = vcmp.eq.f32.partialorder %v12408_v57, %v7750_v53  ;;  %vm3293_vm3 = vcmp.eq.f32.partialorder %v12408_v57, %v9722_v43  ;;  %vm3294_vm9 = vcmp.eq.f32.partialorder %v12410_v36, %v9722_v43  ;;  %v12414_v57 = vld [vmem:[#allocation136_spill] sm:$0xff] }
 0x2bc   :  { %v3822_v26 = vmax.f32 %v3821_v5, %v3540_v58  ;;  %v4657_v16 = vsel %vm4401_vm2, %v2717_v24, 0.0  ;;  %v9761_v54 = vsel %vm3293_vm3, %v2717_v24, 0.0  ;;  %v4659_v2 = vsel %vm4403_vm4, %v2719_v34, 0.0  ;;  %v12411_v58 = vld [vmem:[#allocation230_spill] sm:$0xff]  ;;  %v9773_v5 = vpop.f32.mrb[224].mxu1  ;;  %v9775_v24 = vpop.f32.mrb[224].mxu0 }
 0x2bd   :  { %v9763_v49 = vmax.f32 %v4821_v40, %v4657_v16  ;;  %v9766_v25 = vmax.f32 %v4959_v45, %v4659_v2  ;;  %vm4402_vm10 = vcmp.eq.f32.partialorder %v12410_v36, %v7757_v15  ;;  %v11638_v14 = vand.u32 2147483647, %v12411_v58  ;;  %12412 = vst [vmem:[#allocation29_spill] sm:$0xff] %v9773_v5  ;;  %12413 = vst [vmem:[#allocation84_spill] sm:$0xff] %v9775_v24  ;;  %v9777_v40 = vpop.xlane.xlu1 %3011  ;;  %v9795_v24 = vpop.f32.mrb[225].mxu1 }
 0x2be   :  { %3823 = vmax.xlane.f32.xlu1 %v3822_v26  ;;  %vm3295_vm5 = vcmp.eq.f32.partialorder %v12409_v60, %v9722_v43  ;;  %v9781_v59 = vsel %vm3294_vm9, %v2718_v31, 0.0  ;;  %v4658_v45 = vsel %vm4402_vm10, %v2718_v31, 0.0  ;;  %vm4404_vm11 = vcmp.eq.f32.partialorder %v12414_v57, %v7759_v37  ;;  %v9785_v26 = vpop.f32.mrb[225].mxu0 }
 0x2bf   :  { %12415 = vst [vmem:[#allocation87_spill] sm:$0xff] %v9785_v26  ;;  %v9789_v2 = vmax.f32 %v4890_v9, %v4658_v45  ;;  %v4660_v36 = vsel %vm4404_vm11, %v11638_v14, 0.0  ;;  %vm3288_vm6 = vcmp.eq.f32.partialorder %v12390_v18, %v9612_v28  ;;  %v12416_v31 = vand.u32 2147483647, %v12387_v62  ;;  %v12418_v45 = vld [vmem:[#allocation135_spill] sm:$0xff]  ;;  %v9830_v60 = vpop.f32.mrb[226].mxu0 }
 0x2c0   :  { %v9797_v5 = vmax.f32 %v5028_v1, %v4660_v36  ;;  %v12417_v26 = vmax.f32 %v9650_v39, %v9665_v50  ;;  %v2721_v9 = vand.u32 2147483647, %v9134_v42  ;;  %vm3297_vm12 = vcmp.eq.f32.partialorder %v12418_v45, %v9777_v40  ;;  %v12419_v1 = vld [vmem:[#allocation138_spill] sm:$0xff]  ;;  %12423 = vst [vmem:[#allocation28_spill] sm:$0xff] %v9830_v60 }
 0x2c1   :  { %v3544_v10 = vsel %vm3288_vm6, %v12416_v31, 0.0  ;;  %vm4405_vm0 = vcmp.eq.f32.partialorder %v12418_v45, %v7750_v53  ;;  %v2723_v18 = vand.u32 2147483647, %v9136_v46  ;;  %vm4407_vm7 = vcmp.eq.f32.partialorder %v12419_v1, %v7752_v47  ;;  %v9822_v46 = vpop.f32.mrb[226].mxu1 }
 0x2c2   :  { %v3826_v16 = vmax.f32 %v12417_v26, %v9699_v27  ;;  %v9813_v36 = vsel %vm3297_vm12, %v2721_v9, 0.0  ;;  %v4661_v31 = vsel %vm4405_vm0, %v2721_v9, 0.0  ;;  %v2722_v39 = vand.u32 2147483647, %v9144_v20  ;;  %v12420_v26 = vld [vmem:[#allocation137_spill] sm:$0xff]  ;;  %12421 = vst [vmem:[#allocation26_spill] sm:$0xff] %v9822_v46 }
 0x2c3   :  { %v3551_v42 = vsel %vm3295_vm5, %v2719_v34, 0.0  ;;  %v4823_v27 = vmax.f32 %v9763_v49, %v4661_v31  ;;  %v4663_v50 = vsel %vm4407_vm7, %v2723_v18, 0.0  ;;  %vm3298_vm8 = vcmp.eq.f32.partialorder %v12420_v26, %v9777_v40  ;;  %v12422_v20 = vld [vmem:[#allocation51_spill] sm:$0xff]  ;;  %v9832_v34 = vpop.xlane.xlu0 %3016  ;;  %v9850_v14 = vpop.f32.mrb[227].mxu1 }
 0x2c4   :  { %v3827_v62 = vmax.f32 %v3826_v16, %v3544_v10  ;;  %v4961_v10 = vmax.f32 %v9766_v25, %v4663_v50  ;;  %v9825_v16 = vsel %vm3298_vm8, %v2722_v39, 0.0  ;;  %vm4406_vm13 = vcmp.eq.f32.partialorder %v12420_v26, %v7757_v15  ;;  %v12424_v25 = vld [vmem:[#allocation140_spill] sm:$0xff]  ;;  %12427 = vst [vmem:[#allocation31_spill] sm:$0xff] %v9850_v14 }
 0x2c5   :  { %v11639_v9 = vand.u32 2147483647, %v12422_v20  ;;  %vm3299_vm14 = vcmp.eq.f32.partialorder %v12419_v1, %v9777_v40  ;;  %v4662_v45 = vsel %vm4406_vm13, %v2722_v39, 0.0  ;;  %vm4408_vm1 = vcmp.eq.f32.partialorder %v12424_v25, %v7759_v37 }
 0x2c6   :  { %3828 = vmax.xlane.f32.xlu0 %v3827_v62  ;;  %v9840_v62 = vpop.f32.mrb[227].mxu0  ;;  %v4892_v31 = vmax.f32 %v9789_v2, %v4662_v45  ;;  %vm3292_vm15 = vcmp.eq.f32.partialorder %v12402_v38, %v9655_v13  ;;  %v12426_v1 = vmax.f32 %v9707_v32, %v9725_v22  ;;  %v9852_v39 = vsel %vm3299_vm14, %v2723_v18, 0.0  ;;  %v12429_v2 = vld [vmem:[#allocation50_spill] sm:$0xff]  ;;  %v12431_v32 = vld [vmem:[#allocation52_spill] sm:$0xff] }
 0x2c7   :  { %12425 = vst [vmem:[#allocation86_spill] sm:$0xff] %v9840_v62  ;;  %v4664_v50 = vsel %vm4408_vm1, %v11639_v9, 0.0  ;;  %v12428_v62 = vand.u32 2147483647, %v9057_v6  ;;  %v2725_v45 = vand.u32 2147483647, %v12429_v2  ;;  %vm3296_vm6 = vcmp.eq.f32.partialorder %v12414_v57, %v9722_v43 }
 0x2c8   :  { %v3831_v26 = vmax.f32 %v12426_v1, %v3547_v44  ;;  %v5030_v49 = vmax.f32 %v9797_v5, %v4664_v50  ;;  %v12430_v9 = vld [vmem:[#allocation139_spill] sm:$0xff]  ;;  %v2727_v44 = vand.u32 2147483647, %v12431_v32  ;;  %v12432_v18 = vld [vmem:[#allocation142_spill] sm:$0xff]  ;;  %v12434_v50 = vld [vmem:[#allocation141_spill] sm:$0xff]  ;;  %v9876_v1 = vpop.f32.mrb[228].mxu0 }
 0x2c9   :  { %v3548_v60 = vsel %vm3292_vm15, %v12428_v62, 0.0  ;;  %vm3301_vm2 = vcmp.eq.f32.partialorder %v12430_v9, %v9832_v34  ;;  %vm4409_vm3 = vcmp.eq.f32.partialorder %v12430_v9, %v7750_v53  ;;  %vm4411_vm4 = vcmp.eq.f32.partialorder %v12432_v18, %v7752_v47  ;;  %v12433_v5 = vld [vmem:[#allocation231_spill] sm:$0xff]  ;;  %v9874_v9 = vpop.f32.mrb[228].mxu1  ;;  %12436 = vst [vmem:[#allocation33_spill] sm:$0xff] %v9876_v1 }
 0x2ca   :  { %v3832_v46 = vmax.f32 %v3831_v26, %v3548_v60  ;;  %v9863_v22 = vsel %vm3301_vm2, %v2725_v45, 0.0  ;;  %v4665_v38 = vsel %vm4409_vm3, %v2725_v45, 0.0  ;;  %v2726_v6 = vand.u32 2147483647, %v12433_v5  ;;  %12435 = vst [vmem:[#allocation89_spill] sm:$0xff] %v9874_v9  ;;  %v12437_v32 = vld [vmem:[#allocation55_spill] sm:$0xff] }
 0x2cb   :  { %v9868_v62 = vmax.f32 %v4823_v27, %v4665_v38  ;;  %v4667_v60 = vsel %vm4411_vm4, %v2727_v44, 0.0  ;;  %vm3302_vm9 = vcmp.eq.f32.partialorder %v12434_v50, %v9832_v34  ;;  %vm4410_vm10 = vcmp.eq.f32.partialorder %v12434_v50, %v7757_v15  ;;  %v9883_v27 = vpop.xlane.xlu1 %3021  ;;  %v12438_v50 = vld [vmem:[#allocation144_spill] sm:$0xff]  ;;  %v9903_v38 = vpop.f32.mrb[229].mxu1 }
 0x2cc   :  { %3833 = vmax.xlane.f32.xlu1 %v3832_v46  ;;  %v9878_v26 = vmax.f32 %v4961_v10, %v4667_v60  ;;  %v9880_v2 = vsel %vm3302_vm9, %v2726_v6, 0.0  ;;  %v4666_v45 = vsel %vm4410_vm10, %v2726_v6, 0.0  ;;  %v11640_v46 = vand.u32 2147483647, %v12437_v32  ;;  %v9893_v10 = vpop.f32.mrb[229].mxu0 }
 0x2cd   :  { %vm3303_vm5 = vcmp.eq.f32.partialorder %v12432_v18, %v9832_v34  ;;  %v9889_v5 = vmax.f32 %v4892_v31, %v4666_v45  ;;  %vm4412_vm11 = vcmp.eq.f32.partialorder %v12438_v50, %v7759_v37  ;;  %12439 = vst [vmem:[#allocation88_spill] sm:$0xff] %v9893_v10  ;;  %v12440_v60 = vmax.f32 %v9761_v54, %v9781_v59  ;;  %v12442_v10 = vld [vmem:[#allocation143_spill] sm:$0xff] }
 0x2ce   :  { %v4668_v6 = vsel %vm4412_vm11, %v11640_v46, 0.0  ;;  %v2729_v1 = vand.u32 2147483647, %v9223_v3  ;;  %v12441_v45 = vand.u32 2147483647, %v12411_v58  ;;  %vm4413_vm12 = vcmp.eq.f32.partialorder %v12442_v10, %v7750_v53  ;;  %v12444_v58 = vld [vmem:[#allocation57_spill] sm:$0xff] }
 0x2cf   :  { %v3836_v18 = vmax.f32 %v12440_v60, %v3551_v42  ;;  %v9905_v31 = vmax.f32 %v5030_v49, %v4668_v6  ;;  %v2731_v46 = vand.u32 2147483647, %v9225_v55  ;;  %v3559_v14 = vsel %vm3303_vm5, %v2727_v44, 0.0  ;;  %v12443_v42 = vld [vmem:[#allocation146_spill] sm:$0xff]  ;;  %v12445_v60 = vld [vmem:[#allocation145_spill] sm:$0xff] }
 0x2d0   :  { %v3552_v9 = vsel %vm3296_vm6, %v12441_v45, 0.0  ;;  %vm3305_vm0 = vcmp.eq.f32.partialorder %v12442_v10, %v9883_v27  ;;  %v4669_v54 = vsel %vm4413_vm12, %v2729_v1, 0.0  ;;  %vm4415_vm7 = vcmp.eq.f32.partialorder %v12443_v42, %v7752_v47  ;;  %v12446_v55 = vld [vmem:[#allocation54_spill] sm:$0xff]  ;;  %v12448_v45 = vld [vmem:[#allocation148_spill] sm:$0xff] }
 0x2d1   :  { %v3837_v57 = vmax.f32 %v3836_v18, %v3552_v9  ;;  %v9914_v59 = vsel %vm3305_vm0, %v2729_v1, 0.0  ;;  %v4825_v3 = vmax.f32 %v9868_v62, %v4669_v54  ;;  %v2730_v49 = vand.u32 2147483647, %v12444_v58  ;;  %v9925_v9 = vpop.f32.mrb[230].mxu1  ;;  %v9927_v1 = vpop.f32.mrb[230].mxu0 }
 0x2d2   :  { %v4671_v6 = vsel %vm4415_vm7, %v2731_v46, 0.0  ;;  %vm3306_vm8 = vcmp.eq.f32.partialorder %v12445_v60, %v9883_v27  ;;  %vm4414_vm13 = vcmp.eq.f32.partialorder %v12445_v60, %v7757_v15  ;;  %v11641_v44 = vand.u32 2147483647, %v12446_v55  ;;  %12447 = vst [vmem:[#allocation91_spill] sm:$0xff] %v9927_v1  ;;  %v9953_v54 = vpop.f32.mrb[231].mxu1 }
 0x2d3   :  { %3838 = vmax.xlane.f32.xlu0 %v3837_v57  ;;  %v4963_v62 = vmax.f32 %v9878_v26, %v4671_v6  ;;  %v9930_v10 = vsel %vm3306_vm8, %v2730_v49, 0.0  ;;  %v4670_v18 = vsel %vm4414_vm13, %v2730_v49, 0.0  ;;  %vm4416_vm14 = vcmp.eq.f32.partialorder %v12448_v45, %v7759_v37  ;;  %v9934_v57 = vpop.xlane.xlu0 %3026  ;;  %v9943_v26 = vpop.f32.mrb[231].mxu0 }
 0x2d4   :  { %vm3307_vm1 = vcmp.eq.f32.partialorder %v12443_v42, %v9883_v27  ;;  %v4894_v58 = vmax.f32 %v9889_v5, %v4670_v18  ;;  %v4672_v60 = vsel %vm4416_vm14, %v11641_v44, 0.0  ;;  %12449 = vst [vmem:[#allocation90_spill] sm:$0xff] %v9943_v26  ;;  %vm3300_vm15 = vcmp.eq.f32.partialorder %v12424_v25, %v9777_v40  ;;  %v12452_v26 = vld [vmem:[#allocation147_spill] sm:$0xff] }
 0x2d5   :  { %v5032_v49 = vmax.f32 %v9905_v31, %v4672_v60  ;;  %v12450_v6 = vmax.f32 %v9813_v36, %v9825_v16  ;;  %v2733_v1 = vand.u32 2147483647, %v9270_v12  ;;  %v9955_v5 = vsel %vm3307_vm1, %v2731_v46, 0.0  ;;  %v12453_v16 = vld [vmem:[#allocation150_spill] sm:$0xff] }
 0x2d6   :  { %v12451_v18 = vand.u32 2147483647, %v12422_v20  ;;  %vm4417_vm2 = vcmp.eq.f32.partialorder %v12452_v26, %v7750_v53  ;;  %v2735_v31 = vand.u32 2147483647, %v9272_v11  ;;  %vm3309_vm3 = vcmp.eq.f32.partialorder %v12452_v26, %v9934_v57  ;;  %v9978_v26 = vpop.f32.mrb[232].mxu0 }
 0x2d7   :  { %v3841_v42 = vmax.f32 %v12450_v6, %v9852_v39  ;;  %v4673_v36 = vsel %vm4417_vm2, %v2733_v1, 0.0  ;;  %vm4419_vm4 = vcmp.eq.f32.partialorder %v12453_v16, %v7752_v47  ;;  %v3565_v12 = vsel %vm3309_vm3, %v2733_v1, 0.0  ;;  %v12454_v6 = vld [vmem:[#allocation149_spill] sm:$0xff]  ;;  %v12455_v1 = vld [vmem:[#allocation152_spill] sm:$0xff] }
 0x2d8   :  { %v3556_v44 = vsel %vm3300_vm15, %v12451_v18, 0.0  ;;  %v9966_v39 = vmax.f32 %v4825_v3, %v4673_v36  ;;  %v4675_v46 = vsel %vm4419_vm4, %v2735_v31, 0.0  ;;  %v2734_v20 = vand.u32 2147483647, %v9280_v63  ;;  %v9986_v36 = vpop.f32.mrb[233].mxu0 }
 0x2d9   :  { %v3842_v25 = vmax.f32 %v3841_v42, %v3556_v44  ;;  %v9969_v60 = vmax.f32 %v4963_v62, %v4675_v46  ;;  %vm3310_vm9 = vcmp.eq.f32.partialorder %v12454_v6, %v9934_v57  ;;  %vm4418_vm10 = vcmp.eq.f32.partialorder %v12454_v6, %v7757_v15  ;;  %v9976_v44 = vpop.f32.mrb[232].mxu1 }
 0x2da   :  { %v2736_v11 = vand.u32 2147483647, %v9282_v29  ;;  %vm3311_vm5 = vcmp.eq.f32.partialorder %v12453_v16, %v9934_v57  ;;  %v3566_v3 = vsel %vm3310_vm9, %v2734_v20, 0.0  ;;  %v4674_v63 = vsel %vm4418_vm10, %v2734_v20, 0.0  ;;  %v9988_v29 = vpop.xlane.xlu1 %3031 }
 0x2db   :  { %3843 = vmax.xlane.f32.xlu1 %v3842_v25  ;;  %vm4420_vm11 = vcmp.eq.f32.partialorder %v12455_v1, %v7759_v37  ;;  %v3567_v62 = vsel %vm3311_vm5, %v2735_v31, 0.0  ;;  %v3855_v42 = vmax.f32 %v3565_v12, %v3566_v3  ;;  %v9984_v18 = vmax.f32 %v4894_v58, %v4674_v63  ;;  %v9998_v31 = vpop.f32.mrb[233].mxu1 }
 0x2dc   :  { %v4676_v25 = vsel %vm4420_vm11, %v2736_v11, 0.0  ;;  %vm3304_vm6 = vcmp.eq.f32.partialorder %v12438_v50, %v9832_v34  ;;  %v12456_v16 = vmax.f32 %v9863_v22, %v9880_v2  ;;  %v2737_v6 = vand.u32 2147483647, %v9310_v21  ;;  %v12459_v2 = vld [vmem:[#allocation154_spill] sm:$0xff] }
 0x2dd   :  { %v9990_v46 = vmax.f32 %v5032_v49, %v4676_v25  ;;  %vm3312_vm12 = vcmp.eq.f32.partialorder %v12455_v1, %v9934_v57  ;;  %v3856_v58 = vmax.f32 %v3855_v42, %v3567_v62  ;;  %v12457_v12 = vand.u32 2147483647, %v12437_v32  ;;  %v12458_v49 = vld [vmem:[#allocation151_spill] sm:$0xff]  ;;  %v10015_v42 = vpop.f32.mrb[234].mxu1 }
 0x2de   :  { %v3846_v20 = vmax.f32 %v12456_v16, %v3559_v14  ;;  %vm4421_vm0 = vcmp.eq.f32.partialorder %v12458_v49, %v7750_v53  ;;  %v3568_v63 = vsel %vm3312_vm12, %v2736_v11, 0.0  ;;  %v2739_v22 = vand.u32 2147483647, %v9312_v8  ;;  %v12460_v11 = vld [vmem:[#allocation56_spill] sm:$0xff]  ;;  %v12461_v16 = vld [vmem:[#allocation153_spill] sm:$0xff] }
 0x2df   :  { %v3560_v3 = vsel %vm3304_vm6, %v12457_v12, 0.0  ;;  %v4677_v25 = vsel %vm4421_vm0, %v2737_v6, 0.0  ;;  %v3857_v14 = vmax.f32 %v3856_v58, %v3568_v63  ;;  %vm3313_vm7 = vcmp.eq.f32.partialorder %v12458_v49, %v9988_v29  ;;  %v10023_v58 = vpop.f32.mrb[234].mxu0  ;;  %v12463_v49 = vld [vmem:[#allocation156_spill] sm:$0xff] }
 0x2e0   :  { %v3847_v50 = vmax.f32 %v3846_v20, %v3560_v3  ;;  %v4827_v21 = vmax.f32 %v9966_v39, %v4677_v25  ;;  %vm4423_vm8 = vcmp.eq.f32.partialorder %v12459_v2, %v7752_v47  ;;  %v3569_v32 = vsel %vm3313_vm7, %v2737_v6, 0.0  ;;  %v12462_v39 = vld [vmem:[#allocation232_spill] sm:$0xff]  ;;  %v10027_v63 = vpop.f32.mrb[235].mxu0 }
 0x2e1   :  { %vm3315_vm13 = vcmp.eq.f32.partialorder %v12459_v2, %v9988_v29  ;;  %v4679_v1 = vsel %vm4423_vm8, %v2739_v22, 0.0  ;;  %v2738_v62 = vand.u32 2147483647, %v12460_v11  ;;  %vm3314_vm14 = vcmp.eq.f32.partialorder %v12461_v16, %v9988_v29 }
 0x2e2   :  { %3848 = vmax.xlane.f32.xlu0 %v3847_v50  ;;  %v4965_v8 = vmax.f32 %v9969_v60, %v4679_v1  ;;  %vm4422_vm1 = vcmp.eq.f32.partialorder %v12461_v16, %v7757_v15  ;;  %v2740_v20 = vand.u32 2147483647, %v12462_v39  ;;  %v3571_v6 = vsel %vm3315_vm13, %v2739_v22, 0.0  ;;  %v10029_v50 = vpop.xlane.xlu0 %3036  ;;  %v10034_v1 = vpop.f32.mrb[235].mxu1 }
 0x2e3   :  { %v3570_v12 = vsel %vm3314_vm14, %v2738_v62, 0.0  ;;  %v4678_v3 = vsel %vm4422_vm1, %v2738_v62, 0.0  ;;  %vm4424_vm15 = vcmp.eq.f32.partialorder %v12463_v49, %v7759_v37  ;;  %vm3316_vm2 = vcmp.eq.f32.partialorder %v12463_v49, %v9988_v29 }
 0x2e4   :  { %v3860_v60 = vmax.f32 %v3569_v32, %v3570_v12  ;;  %v4896_v25 = vmax.f32 %v9984_v18, %v4678_v3  ;;  %v4680_v2 = vsel %vm4424_vm15, %v2740_v20, 0.0  ;;  %vm3308_vm3 = vcmp.eq.f32.partialorder %v12448_v45, %v9883_v27  ;;  %v12466_v12 = vld [vmem:[#allocation155_spill] sm:$0xff] }
 0x2e5   :  { %v5034_v22 = vmax.f32 %v9990_v46, %v4680_v2  ;;  %v12464_v11 = vmax.f32 %v9914_v59, %v9930_v10  ;;  %v2741_v32 = vand.u32 2147483647, %v9355_v35  ;;  %v12465_v16 = vand.u32 2147483647, %v12446_v55  ;;  %v12467_v35 = vld [vmem:[#allocation158_spill] sm:$0xff]  ;;  %v10057_v55 = vpop.f32.mrb[236].mxu1 }
 0x2e6   :  { %3858 = vmax.xlane.f32.xlu0 %v3857_v14  ;;  %v3861_v18 = vmax.f32 %v3860_v60, %v3571_v6  ;;  %vm4425_vm4 = vcmp.eq.f32.partialorder %v12466_v12, %v7750_v53  ;;  %v2743_v46 = vand.u32 2147483647, %v9357_v51  ;;  %v3572_v3 = vsel %vm3316_vm2, %v2740_v20, 0.0  ;;  %v10062_v60 = vpop.xlane.xlu1 %3041  ;;  %v12468_v2 = vld [vmem:[#allocation157_spill] sm:$0xff] }
 0x2e7   :  { %v3851_v62 = vmax.f32 %v12464_v11, %v9955_v5  ;;  %v3564_v39 = vsel %vm3308_vm3, %v12465_v16, 0.0  ;;  %vm3317_vm9 = vcmp.eq.f32.partialorder %v12466_v12, %v10029_v50  ;;  %v4681_v45 = vsel %vm4425_vm4, %v2741_v32, 0.0  ;;  %v10059_v5 = vpop.f32.mrb[236].mxu0 }
 0x2e8   :  { %v3862_v59 = vmax.f32 %v3861_v18, %v3572_v3  ;;  %v10051_v10 = vmax.f32 %v4827_v21, %v4681_v45  ;;  %vm3319_vm10 = vcmp.eq.f32.partialorder %v12467_v35, %v10029_v50  ;;  %vm4427_vm5 = vcmp.eq.f32.partialorder %v12467_v35, %v7752_v47 }
 0x2e9   :  { %v3852_v49 = vmax.f32 %v3851_v62, %v3564_v39  ;;  %v3573_v51 = vsel %vm3317_vm9, %v2741_v32, 0.0  ;;  %v3575_v14 = vsel %vm3319_vm10, %v2743_v46, 0.0  ;;  %v4683_v20 = vsel %vm4427_vm5, %v2743_v46, 0.0  ;;  %v10069_v62 = vpop.f32.mrb[237].mxu0  ;;  %v12469_v32 = vld [vmem:[#allocation160_spill] sm:$0xff]  ;;  %v10074_v39 = vpop.f32.mrb[237].mxu1 }
 0x2ea   :  { %v2742_v6 = vand.u32 2147483647, %v9364_v33  ;;  %v4966_v21 = vmax.f32 %v4965_v8, %v4683_v20  ;;  %vm3318_vm11 = vcmp.eq.f32.partialorder %v12468_v2, %v10029_v50  ;;  %vm4426_vm6 = vcmp.eq.f32.partialorder %v12468_v2, %v7757_v15  ;;  %v10091_v2 = vpop.f32.mrb[238].mxu1 }
 0x2eb   :  { %3853 = vmax.xlane.f32.xlu1 %v3852_v49  ;;  %v2744_v11 = vand.u32 2147483647, %v9366_v7  ;;  %vm4428_vm12 = vcmp.eq.f32.partialorder %v12469_v32, %v7759_v37  ;;  %v2745_v33 = vand.u32 2147483647, %v9392_v4  ;;  %vm3320_vm0 = vcmp.eq.f32.partialorder %v12469_v32, %v10029_v50  ;;  %v12470_v7 = vld [vmem:[#allocation159_spill] sm:$0xff]  ;;  %12472 = vst [vmem:[#allocation93_spill] sm:$0xff] %v10091_v2 }
 0x2ec   :  { %v3574_v18 = vsel %vm3318_vm11, %v2742_v6, 0.0  ;;  %v4682_v16 = vsel %vm4426_vm6, %v2742_v6, 0.0  ;;  %vm3321_vm7 = vcmp.eq.f32.partialorder %v12470_v7, %v10062_v60  ;;  %vm4429_vm8 = vcmp.eq.f32.partialorder %v12470_v7, %v7750_v53 }
 0x2ed   :  { %v3865_v8 = vmax.f32 %v3573_v51, %v3574_v18  ;;  %v10076_v12 = vmax.f32 %v4896_v25, %v4682_v16  ;;  %v4684_v46 = vsel %vm4428_vm12, %v2744_v11, 0.0  ;;  %v2747_v49 = vand.u32 2147483647, %v9394_v0  ;;  %v12471_v25 = vld [vmem:[#allocation162_spill] sm:$0xff]  ;;  %v10093_v18 = vpop.f32.mrb[238].mxu0  ;;  %v12474_v0 = vld [vmem:[#allocation161_spill] sm:$0xff] }
 0x2ee   :  { %v10080_v3 = vmax.f32 %v5034_v22, %v4684_v46  ;;  %v3576_v4 = vsel %vm3320_vm0, %v2744_v11, 0.0  ;;  %v4685_v35 = vsel %vm4429_vm8, %v2745_v33, 0.0  ;;  %vm4431_vm13 = vcmp.eq.f32.partialorder %v12471_v25, %v7752_v47  ;;  %12473 = vst [vmem:[#allocation92_spill] sm:$0xff] %v10093_v18  ;;  %v10104_v11 = vpop.xlane.xlu0 %3046  ;;  %v12477_v46 = vld [vmem:[#allocation14_spill] sm:$0xff]  ;;  %v12503_v18 = vld [vmem:[#allocation168_spill] sm:$0xff] }
 0x2ef   :  { %3863 = vmax.xlane.f32.xlu1 %v3862_v59  ;;  %v3866_v45 = vmax.f32 %v3865_v8, %v3575_v14  ;;  %v3577_v51 = vsel %vm3321_vm7, %v2745_v33, 0.0  ;;  %v4829_v20 = vmax.f32 %v10051_v10, %v4685_v35  ;;  %v4687_v22 = vsel %vm4431_vm13, %v2747_v49, 0.0  ;;  %v12476_v8 = vld [vmem:[#allocation164_spill] sm:$0xff]  ;;  %v12480_v35 = vld [vmem:[#allocation22_spill] sm:$0xff] }
 0x2f0   :  { %v2746_v6 = vand.u32 2147483647, %v9405_v17  ;;  %v4967_v32 = vmax.f32 %v4966_v21, %v4687_v22  ;;  %vm3322_vm14 = vcmp.eq.f32.partialorder %v12474_v0, %v10062_v60  ;;  %vm4430_vm1 = vcmp.eq.f32.partialorder %v12474_v0, %v7757_v15  ;;  %v10102_v17 = vpop.f32.mrb[239].mxu0 }
 0x2f1   :  { %v3867_v16 = vmax.f32 %v3866_v45, %v3576_v4  ;;  %vm3323_vm15 = vcmp.eq.f32.partialorder %v12471_v25, %v10062_v60  ;;  %v2748_v14 = vand.u32 2147483647, %v9407_v23  ;;  %12475 = vst [vmem:[#allocation95_spill] sm:$0xff] %v10102_v17  ;;  %vm4432_vm2 = vcmp.eq.f32.partialorder %v12476_v8, %v7759_v37  ;;  %v10110_v4 = vpop.f32.mrb[239].mxu1  ;;  %v12479_v45 = vld [vmem:[#allocation32_spill] sm:$0xff] }
 0x2f2   :  { %v3578_v59 = vsel %vm3322_vm14, %v2746_v6, 0.0  ;;  %v4686_v10 = vsel %vm4430_vm1, %v2746_v6, 0.0  ;;  %v2751_v7 = vand.u32 2147483647, %v12477_v46  ;;  %12478 = vst [vmem:[#allocation30_spill] sm:$0xff] %v10110_v4  ;;  %v5083_v25 = vadd.f32 %v12480_v35, %v12479_v45  ;;  %v12481_v6 = vld [vmem:[#allocation166_spill] sm:$0xff] }
 0x2f3   :  { %v3870_v33 = vmax.f32 %v3577_v51, %v3578_v59  ;;  %v4898_v21 = vmax.f32 %v10076_v12, %v4686_v10  ;;  %3868 = vmax.xlane.f32.xlu0 %v3867_v16  ;;  %v3579_v22 = vsel %vm3323_vm15, %v2747_v49, 0.0  ;;  %v4688_v23 = vsel %vm4432_vm2, %v2748_v14, 0.0  ;;  %v12482_v16 = vld [vmem:[#allocation61_spill] sm:$0xff]  ;;  %v12483_v4 = vld [vmem:[#allocation163_spill] sm:$0xff]  ;;  %v12484_v45 = vld [vmem:[#allocation16_spill] sm:$0xff] }
 0x2f4   :  { %vm4435_vm3 = vcmp.eq.f32.partialorder %v12481_v6, %v7752_v47  ;;  %vm3324_vm4 = vcmp.eq.f32.partialorder %v12476_v8, %v10062_v60  ;;  %v5036_v51 = vmax.f32 %v10080_v3, %v4688_v23  ;;  %v2749_v46 = vand.u32 2147483647, %v12482_v16  ;;  %v12485_v8 = vld [vmem:[#allocation165_spill] sm:$0xff]  ;;  %v10131_v3 = vpop.f32.mrb[240].mxu0  ;;  %v12494_v17 = vld [vmem:[#allocation216_spill] sm:$0xff] }
 0x2f5   :  { %v3871_v12 = vmax.f32 %v3870_v33, %v3579_v22  ;;  %v4691_v0 = vsel %vm4435_vm3, %v2751_v7, 0.0  ;;  %v3580_v59 = vsel %vm3324_vm4, %v2748_v14, 0.0  ;;  %vm3325_vm9 = vcmp.eq.f32.partialorder %v12483_v4, %v10104_v11  ;;  %v10129_v33 = vpop.f32.mrb[240].mxu1  ;;  %12487 = vst [vmem:[#allocation97_spill] sm:$0xff] %v10131_v3  ;;  %v12488_v22 = vld [vmem:[#allocation18_spill] sm:$0xff]  ;;  %v10140_v16 = vpop.f32.mrb[241].mxu0 }
 0x2f6   :  { %v10119_v10 = vmax.f32 %v4967_v32, %v4691_v0  ;;  %vm4433_vm10 = vcmp.eq.f32.partialorder %v12483_v4, %v7750_v53  ;;  %v2750_v35 = vand.u32 2147483647, %v12484_v45  ;;  %vm3326_vm5 = vcmp.eq.f32.partialorder %v12485_v8, %v10104_v11  ;;  %12486 = vst [vmem:[#allocation94_spill] sm:$0xff] %v10129_v33  ;;  %12490 = vst [vmem:[#allocation96_spill] sm:$0xff] %v10140_v16 }
 0x2f7   :  { %v3872_v49 = vmax.f32 %v3871_v12, %v3580_v59  ;;  %v3581_v32 = vsel %vm3325_vm9, %v2749_v46, 0.0  ;;  %v4689_v14 = vsel %vm4433_vm10, %v2749_v46, 0.0  ;;  %vm4434_vm11 = vcmp.eq.f32.partialorder %v12485_v8, %v7757_v15  ;;  %v12489_v59 = vld [vmem:[#allocation169_spill] sm:$0xff]  ;;  %v10146_v8 = vpop.f32.mrb[241].mxu1 }
 0x2f8   :  { %v2752_v23 = vand.u32 2147483647, %v12488_v22  ;;  %v10136_v12 = vmax.f32 %v4829_v20, %v4689_v14  ;;  %v3582_v0 = vsel %vm3326_vm5, %v2750_v35, 0.0  ;;  %v4690_v4 = vsel %vm4434_vm11, %v2750_v35, 0.0  ;;  %12491 = vst [vmem:[#allocation99_spill] sm:$0xff] %v10146_v8  ;;  %v12492_v22 = vld [vmem:[#allocation255_spill] sm:$0xff]  ;;  %v10149_v14 = vpop.xlane.xlu1 %3051 }
 0x2f9   :  { %vm4436_vm6 = vcmp.eq.f32.partialorder %v12489_v59, %v7759_v37  ;;  %3873 = vmax.xlane.f32.xlu1 %v3872_v49  ;;  %vm3327_vm12 = vcmp.eq.f32.partialorder %v12481_v6, %v10104_v11  ;;  %v3875_v45 = vmax.f32 %v3581_v32, %v3582_v0  ;;  %v10144_v46 = vmax.f32 %v4898_v21, %v4690_v4  ;;  %v12495_v6 = vld [vmem:[#allocation170_spill] sm:$0xff]  ;;  %v12496_v21 = vld [vmem:[#allocation60_spill] sm:$0xff] }
 0x2fa   :  { %v4692_v3 = vsel %vm4436_vm6, %v2752_v23, 0.0  ;;  %v5084_v20 = vadd.f32 %v5083_v25, %v12492_v22  ;;  %12493 = vst [vmem:[#allocation35_spill] sm:$0xff] %v10149_v14  ;;  %v3583_v35 = vsel %vm3327_vm12, %v2751_v7, 0.0  ;;  %v2755_v49 = vand.u32 2147483647, %v12494_v17  ;;  %v12497_v0 = vld [vmem:[#allocation226_spill] sm:$0xff] }
 0x2fb   :  { %v10151_v33 = vmax.f32 %v5036_v51, %v4692_v3  ;;  %vm3328_vm0 = vcmp.eq.f32.partialorder %v12489_v59, %v10104_v11  ;;  %v3876_v16 = vmax.f32 %v3875_v45, %v3583_v35  ;;  %vm4439_vm7 = vcmp.eq.f32.partialorder %v12495_v6, %v7752_v47  ;;  %v12498_v22 = vld [vmem:[#allocation167_spill] sm:$0xff]  ;;  %v10165_v3 = vpop.f32.mrb[242].mxu1  ;;  %v10167_v59 = vpop.f32.mrb[242].mxu0  ;;  %v12501_v45 = vld [vmem:[#allocation206_spill] sm:$0xff] }
 0x2fc   :  { %v2753_v32 = vand.u32 2147483647, %v12496_v21  ;;  %v5085_v4 = vadd.f32 %v5084_v20, %v12497_v0  ;;  %v3584_v8 = vsel %vm3328_vm0, %v2752_v23, 0.0  ;;  %v4695_v25 = vsel %vm4439_vm7, %v2755_v49, 0.0  ;;  %12499 = vst [vmem:[#allocation98_spill] sm:$0xff] %v10165_v3  ;;  %12500 = vst [vmem:[#allocation37_spill] sm:$0xff] %v10167_v59 }
 0x2fd   :  { %vm4437_vm8 = vcmp.eq.f32.partialorder %v12498_v22, %v7750_v53  ;;  %v3877_v7 = vmax.f32 %v3876_v16, %v3584_v8  ;;  %v4969_v51 = vmax.f32 %v10119_v10, %v4695_v25  ;;  %vm3329_vm13 = vcmp.eq.f32.partialorder %v12498_v22, %v10149_v14  ;;  %v12502_v20 = vld [vmem:[#allocation235_spill] sm:$0xff]  ;;  %v12505_v8 = vld [vmem:[#allocation65_spill] sm:$0xff]  ;;  %v10178_v22 = vpop.f32.mrb[243].mxu0 }
 0x2fe   :  { %v4693_v17 = vsel %vm4437_vm8, %v2753_v32, 0.0  ;;  %v5086_v35 = vadd.f32 %v5085_v4, %v12501_v45  ;;  %v3585_v21 = vsel %vm3329_vm13, %v2753_v32, 0.0  ;;  %v2754_v0 = vand.u32 2147483647, %v12502_v20  ;;  %v12504_v10 = vld [vmem:[#allocation63_spill] sm:$0xff]  ;;  %12506 = vst [vmem:[#allocation101_spill] sm:$0xff] %v10178_v22  ;;  %v10186_v45 = vpop.xlane.xlu0 %3056 }
 0x2ff   :  { %v4831_v23 = vmax.f32 %v10136_v12, %v4693_v17  ;;  %vm3330_vm14 = vcmp.eq.f32.partialorder %v12503_v18, %v10149_v14  ;;  %vm4438_vm1 = vcmp.eq.f32.partialorder %v12503_v18, %v7757_v15  ;;  %v2756_v16 = vand.u32 2147483647, %v12504_v10  ;;  %3878 = vmax.xlane.f32.xlu0 %v3877_v7  ;;  %v12507_v4 = vld [vmem:[#allocation172_spill] sm:$0xff]  ;;  %v10184_v17 = vpop.f32.mrb[243].mxu1  ;;  %12509 = vst [vmem:[#allocation100_spill] sm:$0xff] %v10186_v45  ;;  %v12510_v7 = vld [vmem:[#allocation174_spill] sm:$0xff] }
 0x300   :  { %v2759_v25 = vand.u32 2147483647, %v12505_v8  ;;  %vm3331_vm15 = vcmp.eq.f32.partialorder %v12495_v6, %v10149_v14  ;;  %v3586_v32 = vsel %vm3330_vm14, %v2754_v0, 0.0  ;;  %v4694_v12 = vsel %vm4438_vm1, %v2754_v0, 0.0  ;;  %12508 = vst [vmem:[#allocation34_spill] sm:$0xff] %v10184_v17  ;;  %v12511_v17 = vld [vmem:[#allocation62_spill] sm:$0xff] }
 0x301   :  { %vm4440_vm2 = vcmp.eq.f32.partialorder %v12507_v4, %v7759_v37  ;;  %v3880_v18 = vmax.f32 %v3585_v21, %v3586_v32  ;;  %v4900_v20 = vmax.f32 %v10144_v46, %v4694_v12  ;;  %vm4443_vm3 = vcmp.eq.f32.partialorder %v12510_v7, %v7752_v47  ;;  %v12512_v21 = vld [vmem:[#allocation171_spill] sm:$0xff]  ;;  %v12514_v32 = vld [vmem:[#allocation173_spill] sm:$0xff]  ;;  %v10204_v12 = vpop.f32.mrb[244].mxu1 }
 0x302   :  { %v4696_v10 = vsel %vm4440_vm2, %v2756_v16, 0.0  ;;  %v3587_v8 = vsel %vm3331_vm15, %v2755_v49, 0.0  ;;  %vm3332_vm4 = vcmp.eq.f32.partialorder %v12507_v4, %v10149_v14  ;;  %v4699_v0 = vsel %vm4443_vm3, %v2759_v25, 0.0  ;;  %v12513_v46 = vld [vmem:[#allocation23_spill] sm:$0xff]  ;;  %12515 = vst [vmem:[#allocation102_spill] sm:$0xff] %v10204_v12 }
 0x303   :  { %v5038_v6 = vmax.f32 %v10151_v33, %v4696_v10  ;;  %v3588_v22 = vsel %vm3332_vm4, %v2756_v16, 0.0  ;;  %v3881_v59 = vmax.f32 %v3880_v18, %v3587_v8  ;;  %v10194_v3 = vmax.f32 %v4969_v51, %v4699_v0  ;;  %v10206_v33 = vpop.f32.mrb[244].mxu0  ;;  %v12517_v8 = vld [vmem:[#allocation64_spill] sm:$0xff] }
 0x304   :  { %v2757_v2 = vand.u32 2147483647, %v12511_v17  ;;  %vm3333_vm9 = vcmp.eq.f32.partialorder %v12512_v21, %v10186_v45  ;;  %vm4441_vm10 = vcmp.eq.f32.partialorder %v12512_v21, %v7750_v53  ;;  %v2758_v49 = vand.u32 2147483647, %v12513_v46  ;;  %12516 = vst [vmem:[#allocation103_spill] sm:$0xff] %v10206_v33  ;;  %v10213_v21 = vpop.f32.mrb[245].mxu0 }
 0x305   :  { %vm3334_vm5 = vcmp.eq.f32.partialorder %v12514_v32, %v10186_v45  ;;  %v3882_v16 = vmax.f32 %v3881_v59, %v3588_v22  ;;  %vm4442_vm11 = vcmp.eq.f32.partialorder %v12514_v32, %v7757_v15  ;;  %v2760_v0 = vand.u32 2147483647, %v12517_v8  ;;  %12518 = vst [vmem:[#allocation104_spill] sm:$0xff] %v10213_v21  ;;  %v12519_v59 = vld [vmem:[#allocation177_spill] sm:$0xff]  ;;  %v10224_v32 = vpop.xlane.xlu1 %3061  ;;  %v12522_v8 = vld [vmem:[#allocation67_spill] sm:$0xff] }
 0x306   :  { %v3589_v51 = vsel %vm3333_vm9, %v2757_v2, 0.0  ;;  %v4697_v4 = vsel %vm4441_vm10, %v2757_v2, 0.0  ;;  %v3590_v18 = vsel %vm3334_vm5, %v2758_v49, 0.0  ;;  %v4698_v10 = vsel %vm4442_vm11, %v2758_v49, 0.0  ;;  %v10221_v2 = vpop.f32.mrb[245].mxu1 }
 0x307   :  { %v10210_v17 = vmax.f32 %v4831_v23, %v4697_v4  ;;  %vm3335_vm6 = vcmp.eq.f32.partialorder %v12510_v7, %v10186_v45  ;;  %v3885_v46 = vmax.f32 %v3589_v51, %v3590_v18  ;;  %v10217_v12 = vmax.f32 %v4900_v20, %v4698_v10  ;;  %3883 = vmax.xlane.f32.xlu1 %v3882_v16  ;;  %v12521_v23 = vld [vmem:[#allocation227_spill] sm:$0xff]  ;;  %v12523_v51 = vld [vmem:[#allocation178_spill] sm:$0xff] }
 0x308   :  { %vm4444_vm12 = vcmp.eq.f32.partialorder %v12519_v59, %v7759_v37  ;;  %12520 = vst [vmem:[#allocation36_spill] sm:$0xff] %v10221_v2  ;;  %v5087_v22 = vadd.f32 %v5086_v35, %v12521_v23  ;;  %v3591_v49 = vsel %vm3335_vm6, %v2759_v25, 0.0  ;;  %v2763_v21 = vand.u32 2147483647, %v12522_v8  ;;  %v12524_v16 = vld [vmem:[#allocation47_spill] sm:$0xff]  ;;  %v12525_v35 = vld [vmem:[#allocation69_spill] sm:$0xff] }
 0x309   :  { %v4700_v4 = vsel %vm4444_vm12, %v2760_v0, 0.0  ;;  %vm3336_vm0 = vcmp.eq.f32.partialorder %v12519_v59, %v10186_v45  ;;  %v3886_v7 = vmax.f32 %v3885_v46, %v3591_v49  ;;  %vm4447_vm7 = vcmp.eq.f32.partialorder %v12523_v51, %v7752_v47  ;;  %v12526_v8 = vld [vmem:[#allocation175_spill] sm:$0xff]  ;;  %v12528_v46 = vld [vmem:[#allocation48_spill] sm:$0xff] }
 0x30a   :  { %v10229_v20 = vmax.f32 %v5038_v6, %v4700_v4  ;;  %v5088_v18 = vadd.f32 %v5087_v22, %v12524_v16  ;;  %v3592_v10 = vsel %vm3336_vm0, %v2760_v0, 0.0  ;;  %v4703_v2 = vsel %vm4447_vm7, %v2763_v21, 0.0  ;;  %v10240_v6 = vpop.f32.mrb[246].mxu1  ;;  %v12529_v22 = vld [vmem:[#allocation66_spill] sm:$0xff]  ;;  %v10244_v16 = vpop.f32.mrb[246].mxu0 }
 0x30b   :  { %v2761_v23 = vand.u32 2147483647, %v12525_v35  ;;  %v3887_v33 = vmax.f32 %v3886_v7, %v3592_v10  ;;  %v4971_v25 = vmax.f32 %v10194_v3, %v4703_v2  ;;  %vm3337_vm8 = vcmp.eq.f32.partialorder %v12526_v8, %v10224_v32  ;;  %12527 = vst [vmem:[#allocation106_spill] sm:$0xff] %v10240_v6  ;;  %12530 = vst [vmem:[#allocation105_spill] sm:$0xff] %v10244_v16  ;;  %v12531_v3 = vld [vmem:[#allocation176_spill] sm:$0xff]  ;;  %v10252_v35 = vpop.f32.mrb[247].mxu0 }
 0x30c   :  { %vm4445_vm13 = vcmp.eq.f32.partialorder %v12526_v8, %v7750_v53  ;;  %v5089_v59 = vadd.f32 %v5088_v18, %v12528_v46  ;;  %v2762_v0 = vand.u32 2147483647, %v12529_v22  ;;  %vm3338_vm14 = vcmp.eq.f32.partialorder %v12531_v3, %v10224_v32  ;;  %v12532_v2 = vld [vmem:[#allocation68_spill] sm:$0xff]  ;;  %12533 = vst [vmem:[#allocation108_spill] sm:$0xff] %v10252_v35  ;;  %v10257_v22 = vpop.f32.mrb[247].mxu1  ;;  %v12538_v16 = vld [vmem:[#allocation53_spill] sm:$0xff] }
 0x30d   :  { %v3593_v49 = vsel %vm3337_vm8, %v2761_v23, 0.0  ;;  %v4701_v4 = vsel %vm4445_vm13, %v2761_v23, 0.0  ;;  %vm4446_vm1 = vcmp.eq.f32.partialorder %v12531_v3, %v7757_v15  ;;  %v2764_v10 = vand.u32 2147483647, %v12532_v2  ;;  %3888 = vmax.xlane.f32.xlu0 %v3887_v33  ;;  %v12534_v23 = vld [vmem:[#allocation180_spill] sm:$0xff]  ;;  %12535 = vst [vmem:[#allocation107_spill] sm:$0xff] %v10257_v22 }
 0x30e   :  { %v4833_v7 = vmax.f32 %v10210_v17, %v4701_v4  ;;  %v3594_v18 = vsel %vm3338_vm14, %v2762_v0, 0.0  ;;  %v4702_v8 = vsel %vm4446_vm1, %v2762_v0, 0.0  ;;  %vm4448_vm15 = vcmp.eq.f32.partialorder %v12534_v23, %v7759_v37  ;;  %v10259_v17 = vpop.xlane.xlu0 %3066  ;;  %v12537_v0 = vld [vmem:[#allocation182_spill] sm:$0xff] }
 0x30f   :  { %v2767_v46 = vand.u32 2147483647, %v9568_v52  ;;  %12536 = vst [vmem:[#allocation110_spill] sm:$0xff] %v10259_v17  ;;  %vm3339_vm2 = vcmp.eq.f32.partialorder %v12523_v51, %v10224_v32  ;;  %v3890_v4 = vmax.f32 %v3593_v49, %v3594_v18  ;;  %v4902_v3 = vmax.f32 %v10217_v12, %v4702_v8  ;;  %v12539_v51 = vld [vmem:[#allocation71_spill] sm:$0xff]  ;;  %v12544_v8 = vld [vmem:[#allocation181_spill] sm:$0xff] }
 0x310   :  { %v4704_v33 = vsel %vm4448_vm15, %v2764_v10, 0.0  ;;  %v3595_v2 = vsel %vm3339_vm2, %v2763_v21, 0.0  ;;  %vm4451_vm3 = vcmp.eq.f32.partialorder %v12537_v0, %v7752_v47  ;;  %v5090_v6 = vadd.f32 %v5089_v59, %v12538_v16  ;;  %v12540_v12 = vld [vmem:[#allocation179_spill] sm:$0xff]  ;;  %v10275_v21 = vpop.f32.mrb[248].mxu1  ;;  %v12543_v59 = vld [vmem:[#allocation20_spill] sm:$0xff] }
 0x311   :  { %v5040_v35 = vmax.f32 %v10229_v20, %v4704_v33  ;;  %vm3340_vm4 = vcmp.eq.f32.partialorder %v12534_v23, %v10224_v32  ;;  %v3891_v52 = vmax.f32 %v3890_v4, %v3595_v2  ;;  %v4707_v22 = vsel %vm4451_vm3, %v2767_v46, 0.0  ;;  %12541 = vst [vmem:[#allocation109_spill] sm:$0xff] %v10275_v21  ;;  %v10277_v20 = vpop.f32.mrb[248].mxu0  ;;  %v12545_v23 = vld [vmem:[#allocation70_spill] sm:$0xff] }
 0x312   :  { %v3596_v45 = vsel %vm3340_vm4, %v2764_v10, 0.0  ;;  %v10270_v14 = vmax.f32 %v4971_v25, %v4707_v22  ;;  %v2765_v49 = vand.u32 2147483647, %v12539_v51  ;;  %vm3341_vm9 = vcmp.eq.f32.partialorder %v12540_v12, %v10259_v17  ;;  %12542 = vst [vmem:[#allocation39_spill] sm:$0xff] %v10277_v20  ;;  %v10287_v4 = vpop.f32.mrb[249].mxu0  ;;  %v10293_v51 = vpop.f32.mrb[249].mxu1 }
 0x313   :  { %v3892_v18 = vmax.f32 %v3891_v52, %v3596_v45  ;;  %vm4449_vm10 = vcmp.eq.f32.partialorder %v12540_v12, %v7750_v53  ;;  %v2766_v16 = vand.u32 2147483647, %v12543_v59  ;;  %vm3342_vm5 = vcmp.eq.f32.partialorder %v12544_v8, %v10259_v17  ;;  %12546 = vst [vmem:[#allocation112_spill] sm:$0xff] %v10287_v4  ;;  %v12547_v52 = vld [vmem:[#allocation185_spill] sm:$0xff]  ;;  %12548 = vst [vmem:[#allocation111_spill] sm:$0xff] %v10293_v51  ;;  %v10300_v4 = vpop.xlane.xlu0 %3071  ;;  %v12551_v51 = vld [vmem:[#allocation186_spill] sm:$0xff] }
 0x314   :  { %v3597_v25 = vsel %vm3341_vm9, %v2765_v49, 0.0  ;;  %v4705_v10 = vsel %vm4449_vm10, %v2765_v49, 0.0  ;;  %vm4450_vm11 = vcmp.eq.f32.partialorder %v12544_v8, %v7757_v15  ;;  %v2768_v22 = vand.u32 2147483647, %v12545_v23  ;;  %v12549_v8 = vld [vmem:[#allocation243_spill] sm:$0xff] }
 0x315   :  { %v10289_v33 = vmax.f32 %v4833_v7, %v4705_v10  ;;  %v3598_v45 = vsel %vm3342_vm5, %v2766_v16, 0.0  ;;  %v4706_v2 = vsel %vm4450_vm11, %v2766_v16, 0.0  ;;  %vm4452_vm6 = vcmp.eq.f32.partialorder %v12547_v52, %v7759_v37  ;;  %3893 = vmax.xlane.f32.xlu1 %v3892_v18  ;;  %v12550_v16 = vld [vmem:[#allocation73_spill] sm:$0xff] }
 0x316   :  { %vm3343_vm12 = vcmp.eq.f32.partialorder %v12537_v0, %v10259_v17  ;;  %v3895_v49 = vmax.f32 %v3597_v25, %v3598_v45  ;;  %v10297_v12 = vmax.f32 %v4902_v3, %v4706_v2  ;;  %v4708_v59 = vsel %vm4452_vm6, %v2768_v22, 0.0  ;;  %v12552_v0 = vld [vmem:[#allocation72_spill] sm:$0xff]  ;;  %v12553_v25 = vld [vmem:[#allocation59_spill] sm:$0xff] }
 0x317   :  { %v5091_v23 = vadd.f32 %v5090_v6, %v12549_v8  ;;  %v3599_v7 = vsel %vm3343_vm12, %v2767_v46, 0.0  ;;  %v10302_v10 = vmax.f32 %v5040_v35, %v4708_v59  ;;  %v2771_v20 = vand.u32 2147483647, %v12550_v16  ;;  %v12554_v8 = vld [vmem:[#allocation183_spill] sm:$0xff]  ;;  %v10313_v35 = vpop.f32.mrb[250].mxu1  ;;  %v10315_v46 = vpop.f32.mrb[250].mxu0 }
 0x318   :  { %vm3344_vm0 = vcmp.eq.f32.partialorder %v12547_v52, %v10259_v17  ;;  %v3896_v18 = vmax.f32 %v3895_v49, %v3599_v7  ;;  %vm4455_vm7 = vcmp.eq.f32.partialorder %v12551_v51, %v7752_v47  ;;  %v2769_v3 = vand.u32 2147483647, %v12552_v0  ;;  %12555 = vst [vmem:[#allocation114_spill] sm:$0xff] %v10313_v35  ;;  %12556 = vst [vmem:[#allocation41_spill] sm:$0xff] %v10315_v46  ;;  %v12557_v7 = vld [vmem:[#allocation58_spill] sm:$0xff]  ;;  %v10323_v21 = vpop.f32.mrb[251].mxu0 }
 0x319   :  { %v5092_v45 = vadd.f32 %v5091_v23, %v12553_v25  ;;  %v3600_v2 = vsel %vm3344_vm0, %v2768_v22, 0.0  ;;  %v4711_v6 = vsel %vm4455_vm7, %v2771_v20, 0.0  ;;  %vm4453_vm8 = vcmp.eq.f32.partialorder %v12554_v8, %v7750_v53  ;;  %v12558_v23 = vld [vmem:[#allocation75_spill] sm:$0xff]  ;;  %12559 = vst [vmem:[#allocation113_spill] sm:$0xff] %v10323_v21  ;;  %v12560_v35 = vld [vmem:[#allocation184_spill] sm:$0xff] }
 0x31a   :  { %v3897_v59 = vmax.f32 %v3896_v18, %v3600_v2  ;;  %v4973_v52 = vmax.f32 %v10270_v14, %v4711_v6  ;;  %vm3345_vm13 = vcmp.eq.f32.partialorder %v12554_v8, %v10300_v4  ;;  %v4709_v49 = vsel %vm4453_vm8, %v2769_v3, 0.0  ;;  %v12561_v14 = vld [vmem:[#allocation74_spill] sm:$0xff]  ;;  %v12562_v2 = vld [vmem:[#allocation77_spill] sm:$0xff]  ;;  %v10331_v8 = vpop.f32.mrb[251].mxu1  ;;  %v12566_v46 = vld [vmem:[#allocation76_spill] sm:$0xff] }
 0x31b   :  { %v5093_v16 = vadd.f32 %v5092_v45, %v12557_v7  ;;  %v3601_v0 = vsel %vm3345_vm13, %v2769_v3, 0.0  ;;  %v4835_v22 = vmax.f32 %v10289_v33, %v4709_v49  ;;  %v2770_v25 = vand.u32 2147483647, %v12558_v23  ;;  %12563 = vst [vmem:[#allocation19_spill] sm:$0xff] %v10331_v8  ;;  %v12564_v45 = vld [vmem:[#allocation188_spill] sm:$0xff]  ;;  %v10337_v49 = vpop.xlane.xlu0 %3076 }
 0x31c   :  { %vm3346_vm14 = vcmp.eq.f32.partialorder %v12560_v35, %v10300_v4  ;;  %vm4454_vm1 = vcmp.eq.f32.partialorder %v12560_v35, %v7757_v15  ;;  %v2772_v18 = vand.u32 2147483647, %v12561_v14  ;;  %v2775_v6 = vand.u32 2147483647, %v12562_v2  ;;  %3898 = vmax.xlane.f32.xlu0 %v3897_v59  ;;  %v12565_v14 = vld [vmem:[#allocation190_spill] sm:$0xff] }
 0x31d   :  { %vm3347_vm15 = vcmp.eq.f32.partialorder %v12551_v51, %v10300_v4  ;;  %v3602_v33 = vsel %vm3346_vm14, %v2770_v25, 0.0  ;;  %v4710_v3 = vsel %vm4454_vm1, %v2770_v25, 0.0  ;;  %vm4456_vm2 = vcmp.eq.f32.partialorder %v12564_v45, %v7759_v37 }
 0x31e   :  { %v3900_v7 = vmax.f32 %v3601_v0, %v3602_v33  ;;  %v4904_v35 = vmax.f32 %v10297_v12, %v4710_v3  ;;  %v4712_v23 = vsel %vm4456_vm2, %v2772_v18, 0.0  ;;  %vm4459_vm3 = vcmp.eq.f32.partialorder %v12565_v14, %v7752_v47  ;;  %v10348_v0 = vpop.f32.mrb[252].mxu0  ;;  %v10350_v12 = vpop.f32.mrb[252].mxu1  ;;  %v12568_v33 = vld [vmem:[#allocation187_spill] sm:$0xff] }
 0x31f   :  { %v3603_v59 = vsel %vm3347_vm15, %v2771_v20, 0.0  ;;  %vm3348_vm4 = vcmp.eq.f32.partialorder %v12564_v45, %v10300_v4  ;;  %v5042_v51 = vmax.f32 %v10302_v10, %v4712_v23  ;;  %v4715_v2 = vsel %vm4459_vm3, %v2775_v6, 0.0  ;;  %12567 = vst [vmem:[#allocation116_spill] sm:$0xff] %v10350_v12  ;;  %v12569_v20 = vld [vmem:[#allocation79_spill] sm:$0xff]  ;;  %v12570_v10 = vld [vmem:[#allocation189_spill] sm:$0xff] }
 0x320   :  { %v3604_v25 = vsel %vm3348_vm4, %v2772_v18, 0.0  ;;  %v3901_v8 = vmax.f32 %v3900_v7, %v3603_v59  ;;  %v10345_v21 = vmax.f32 %v4973_v52, %v4715_v2  ;;  %v2773_v17 = vand.u32 2147483647, %v12566_v46  ;;  %v10359_v18 = vpop.f32.mrb[253].mxu0  ;;  %v12572_v2 = vld [vmem:[#allocation78_spill] sm:$0xff] }
 0x321   :  { %vm3349_vm9 = vcmp.eq.f32.partialorder %v12568_v33, %v10337_v49  ;;  %vm4457_vm10 = vcmp.eq.f32.partialorder %v12568_v33, %v7750_v53  ;;  %v2774_v3 = vand.u32 2147483647, %v12569_v20  ;;  %vm3350_vm5 = vcmp.eq.f32.partialorder %v12570_v10, %v10337_v49  ;;  %12571 = vst [vmem:[#allocation38_spill] sm:$0xff] %v10359_v18  ;;  %v12573_v18 = vld [vmem:[#allocation193_spill] sm:$0xff] }
 0x322   :  { %v3902_v52 = vmax.f32 %v3901_v8, %v3604_v25  ;;  %v3605_v45 = vsel %vm3349_vm9, %v2773_v17, 0.0  ;;  %v4713_v46 = vsel %vm4457_vm10, %v2773_v17, 0.0  ;;  %vm4458_vm11 = vcmp.eq.f32.partialorder %v12570_v10, %v7757_v15  ;;  %v10372_v17 = vpop.f32.mrb[253].mxu1  ;;  %v12575_v10 = vld [vmem:[#allocation81_spill] sm:$0xff] }
 0x323   :  { %v10363_v7 = vmax.f32 %v4835_v22, %v4713_v46  ;;  %v3606_v23 = vsel %vm3350_vm5, %v2774_v3, 0.0  ;;  %v4714_v59 = vsel %vm4458_vm11, %v2774_v3, 0.0  ;;  %v2776_v12 = vand.u32 2147483647, %v12572_v2  ;;  %12574 = vst [vmem:[#allocation115_spill] sm:$0xff] %v10372_v17  ;;  %v10375_v22 = vpop.xlane.xlu0 %3081  ;;  %v12577_v2 = vld [vmem:[#allocation80_spill] sm:$0xff] }
 0x324   :  { %vm3351_vm6 = vcmp.eq.f32.partialorder %v12565_v14, %v10337_v49  ;;  %v3905_v33 = vmax.f32 %v3605_v45, %v3606_v23  ;;  %v10368_v20 = vmax.f32 %v4904_v35, %v4714_v59  ;;  %vm4460_vm12 = vcmp.eq.f32.partialorder %v12573_v18, %v7759_v37  ;;  %3903 = vmax.xlane.f32.xlu1 %v3902_v52  ;;  %v12576_v45 = vld [vmem:[#allocation194_spill] sm:$0xff]  ;;  %v12578_v17 = vld [vmem:[#allocation191_spill] sm:$0xff] }
 0x325   :  { %v5094_v8 = vadd.f32 %v5093_v16, %v9484_v56  ;;  %v3607_v25 = vsel %vm3351_vm6, %v2775_v6, 0.0  ;;  %v4716_v3 = vsel %vm4460_vm12, %v2776_v12, 0.0  ;;  %v2779_v46 = vand.u32 2147483647, %v12575_v10 }
 0x326   :  { %vm3352_vm0 = vcmp.eq.f32.partialorder %v12573_v18, %v10337_v49  ;;  %v3906_v14 = vmax.f32 %v3905_v33, %v3607_v25  ;;  %v5043_v35 = vmax.f32 %v5042_v51, %v4716_v3  ;;  %vm4463_vm7 = vcmp.eq.f32.partialorder %v12576_v45, %v7752_v47  ;;  %v10389_v18 = vpop.f32.mrb[254].mxu1  ;;  %v12580_v3 = vld [vmem:[#allocation192_spill] sm:$0xff] }
 0x327   :  { %v5095_v52 = vadd.f32 %v5094_v8, %v9552_v30  ;;  %v3608_v23 = vsel %vm3352_vm0, %v2776_v12, 0.0  ;;  %v4719_v59 = vsel %vm4463_vm7, %v2779_v46, 0.0  ;;  %v2777_v56 = vand.u32 2147483647, %v12577_v2  ;;  %v12579_v30 = vld [vmem:[#allocation83_spill] sm:$0xff] }
 0x328   :  { %v3907_v16 = vmax.f32 %v3906_v14, %v3608_v23  ;;  %v4975_v6 = vmax.f32 %v10345_v21, %v4719_v59  ;;  %vm3353_vm8 = vcmp.eq.f32.partialorder %v12578_v17, %v10375_v22  ;;  %vm4461_vm13 = vcmp.eq.f32.partialorder %v12578_v17, %v7750_v53  ;;  %v12581_v21 = vld [vmem:[#allocation25_spill] sm:$0xff]  ;;  %v12582_v23 = vld [vmem:[#allocation196_spill] sm:$0xff] }
 0x329   :  { %v5096_v51 = vadd.f32 %v5095_v52, %v9612_v28  ;;  %v3609_v33 = vsel %vm3353_vm8, %v2777_v56, 0.0  ;;  %v4717_v25 = vsel %vm4461_vm13, %v2777_v56, 0.0  ;;  %v2778_v12 = vand.u32 2147483647, %v12579_v30  ;;  %v10402_v52 = vpop.xlane.xlu0 %3086 }
 0x32a   :  { %v4837_v8 = vmax.f32 %v10363_v7, %v4717_v25  ;;  %vm3354_vm14 = vcmp.eq.f32.partialorder %v12580_v3, %v10375_v22  ;;  %vm4462_vm1 = vcmp.eq.f32.partialorder %v12580_v3, %v7757_v15  ;;  %v2780_v10 = vand.u32 2147483647, %v12581_v21  ;;  %3908 = vmax.xlane.f32.xlu0 %v3907_v16  ;;  %v12583_v16 = vld [vmem:[#allocation198_spill] sm:$0xff] }
 0x32b   :  { %v3610_v17 = vsel %vm3354_vm14, %v2778_v12, 0.0  ;;  %v4718_v14 = vsel %vm4462_vm1, %v2778_v12, 0.0  ;;  %vm4464_vm15 = vcmp.eq.f32.partialorder %v12582_v23, %v7759_v37  ;;  %v2783_v28 = vand.u32 2147483647, %v9703_v61 }
 0x32c   :  { %vm3355_vm2 = vcmp.eq.f32.partialorder %v12576_v45, %v10375_v22  ;;  %v3910_v7 = vmax.f32 %v3609_v33, %v3610_v17  ;;  %v4906_v59 = vmax.f32 %v10368_v20, %v4718_v14  ;;  %v4720_v2 = vsel %vm4464_vm15, %v2780_v10, 0.0  ;;  %v12584_v20 = vld [vmem:[#allocation195_spill] sm:$0xff] }
 0x32d   :  { %v3611_v56 = vsel %vm3355_vm2, %v2779_v46, 0.0  ;;  %v5044_v25 = vmax.f32 %v5043_v35, %v4720_v2  ;;  %vm4467_vm3 = vcmp.eq.f32.partialorder %v12583_v16, %v7752_v47  ;;  %v5097_v30 = vadd.f32 %v5096_v51, %v9655_v13  ;;  %v12585_v13 = vld [vmem:[#allocation197_spill] sm:$0xff] }
 0x32e   :  { %vm3356_vm4 = vcmp.eq.f32.partialorder %v12582_v23, %v10375_v22  ;;  %v3911_v61 = vmax.f32 %v3910_v7, %v3611_v56  ;;  %v4723_v12 = vsel %vm4467_vm3, %v2783_v28, 0.0  ;;  %v2781_v45 = vand.u32 2147483647, %v9705_v41  ;;  %v10425_v41 = vpop.f32.mrb[254].mxu0  ;;  %v12587_v7 = vld [vmem:[#allocation201_spill] sm:$0xff] }
 0x32f   :  { %v3612_v3 = vsel %vm3356_vm4, %v2780_v10, 0.0  ;;  %v10412_v21 = vmax.f32 %v4975_v6, %v4723_v12  ;;  %vm3357_vm9 = vcmp.eq.f32.partialorder %v12584_v20, %v10402_v52  ;;  %vm4465_vm10 = vcmp.eq.f32.partialorder %v12584_v20, %v7750_v53  ;;  %v12586_v6 = vld [vmem:[#allocation24_spill] sm:$0xff]  ;;  %v10436_v12 = vpop.xlane.xlu0 %3091 }
 0x330   :  { %v3912_v46 = vmax.f32 %v3911_v61, %v3612_v3  ;;  %v2782_v35 = vand.u32 2147483647, %v9713_v19  ;;  %vm3358_vm5 = vcmp.eq.f32.partialorder %v12585_v13, %v10402_v52  ;;  %v3613_v51 = vsel %vm3357_vm9, %v2781_v45, 0.0 }
 0x331   :  { %v4721_v33 = vsel %vm4465_vm10, %v2781_v45, 0.0  ;;  %vm4466_vm11 = vcmp.eq.f32.partialorder %v12585_v13, %v7757_v15  ;;  %v2784_v10 = vand.u32 2147483647, %v12586_v6  ;;  %vm4468_vm6 = vcmp.eq.f32.partialorder %v12587_v7, %v7759_v37  ;;  %v12588_v45 = vld [vmem:[#allocation82_spill] sm:$0xff]  ;;  %v10446_v13 = vpop.f32.mrb[255].mxu0 }
 0x332   :  { %v10427_v17 = vmax.f32 %v4837_v8, %v4721_v33  ;;  %v3614_v14 = vsel %vm3358_vm5, %v2782_v35, 0.0  ;;  %v4722_v23 = vsel %vm4466_vm11, %v2782_v35, 0.0  ;;  %3913 = vmax.xlane.f32.xlu1 %v3912_v46  ;;  %vm3359_vm12 = vcmp.eq.f32.partialorder %v12583_v16, %v10402_v52  ;;  %v12589_v35 = vld [vmem:[#allocation202_spill] sm:$0xff]  ;;  %v12590_v16 = vld [vmem:[#allocation27_spill] sm:$0xff] }
 0x333   :  { %v3915_v19 = vmax.f32 %v3613_v51, %v3614_v14  ;;  %v10433_v2 = vmax.f32 %v4906_v59, %v4722_v23  ;;  %v4724_v56 = vsel %vm4468_vm6, %v2784_v10, 0.0  ;;  %v5098_v61 = vadd.f32 %v5097_v30, %v9722_v43 }
 0x334   :  { %v3615_v3 = vsel %vm3359_vm12, %v2783_v28, 0.0  ;;  %v10438_v8 = vmax.f32 %v5044_v25, %v4724_v56  ;;  %v2787_v20 = vand.u32 2147483647, %v12588_v45  ;;  %vm3360_vm0 = vcmp.eq.f32.partialorder %v12587_v7, %v10402_v52  ;;  %v12591_v28 = vld [vmem:[#allocation199_spill] sm:$0xff]  ;;  %v10451_v25 = vpop.f32.mrb[255].mxu1  ;;  %v12593_v56 = vld [vmem:[#allocation85_spill] sm:$0xff] }
 0x335   :  { %v3916_v46 = vmax.f32 %v3915_v19, %v3615_v3  ;;  %vm4471_vm7 = vcmp.eq.f32.partialorder %v12589_v35, %v7752_v47  ;;  %v2785_v59 = vand.u32 2147483647, %v12590_v16  ;;  %v5099_v43 = vadd.f32 %v5098_v61, %v9777_v40 }
 0x336   :  { %v3616_v30 = vsel %vm3360_vm0, %v2784_v10, 0.0  ;;  %v4727_v51 = vsel %vm4471_vm7, %v2787_v20, 0.0  ;;  %vm4469_vm8 = vcmp.eq.f32.partialorder %v12591_v28, %v7750_v53  ;;  %vm3361_vm13 = vcmp.eq.f32.partialorder %v12591_v28, %v10436_v12  ;;  %v12592_v10 = vld [vmem:[#allocation200_spill] sm:$0xff] }
 0x337   :  { %v3917_v33 = vmax.f32 %v3916_v46, %v3616_v30  ;;  %v4977_v6 = vmax.f32 %v10412_v21, %v4727_v51  ;;  %v4725_v14 = vsel %vm4469_vm8, %v2785_v59, 0.0  ;;  %v5100_v23 = vadd.f32 %v5099_v43, %v9832_v34  ;;  %v12594_v21 = vld [vmem:[#allocation29_spill] sm:$0xff]  ;;  %v12596_v43 = vld [vmem:[#allocation207_spill] sm:$0xff] }
 0x338   :  { %v3617_v7 = vsel %vm3361_vm13, %v2785_v59, 0.0  ;;  %v4839_v19 = vmax.f32 %v10427_v17, %v4725_v14  ;;  %v2786_v40 = vand.u32 2147483647, %v9748_v48  ;;  %vm3362_vm14 = vcmp.eq.f32.partialorder %v12592_v10, %v10436_v12  ;;  %v12595_v17 = vld [vmem:[#allocation204_spill] sm:$0xff]  ;;  %v10469_v48 = vpop.xlane.xlu0 %3096 }
 0x339   :  { %vm4470_vm1 = vcmp.eq.f32.partialorder %v12592_v10, %v7757_v15  ;;  %v2788_v61 = vand.u32 2147483647, %v12593_v56  ;;  %v2791_v3 = vand.u32 2147483647, %v12594_v21  ;;  %3918 = vmax.xlane.f32.xlu0 %v3917_v33  ;;  %vm3363_vm15 = vcmp.eq.f32.partialorder %v12589_v35, %v10436_v12  ;;  %v12600_v56 = vld [vmem:[#allocation205_spill] sm:$0xff] }
 0x33a   :  { %v3618_v34 = vsel %vm3362_vm14, %v2786_v40, 0.0  ;;  %v4726_v45 = vsel %vm4470_vm1, %v2786_v40, 0.0  ;;  %vm4472_vm2 = vcmp.eq.f32.partialorder %v12595_v17, %v7759_v37  ;;  %vm4475_vm3 = vcmp.eq.f32.partialorder %v12596_v43, %v7752_v47  ;;  %v12597_v40 = vld [vmem:[#allocation84_spill] sm:$0xff] }
 0x33b   :  { %v3920_v46 = vmax.f32 %v3617_v7, %v3618_v34  ;;  %v4908_v16 = vmax.f32 %v10433_v2, %v4726_v45  ;;  %v4728_v59 = vsel %vm4472_vm2, %v2788_v61, 0.0  ;;  %v3619_v30 = vsel %vm3363_vm15, %v2787_v20, 0.0  ;;  %v12598_v7 = vld [vmem:[#allocation203_spill] sm:$0xff] }
 0x33c   :  { %vm3364_vm4 = vcmp.eq.f32.partialorder %v12595_v17, %v10436_v12  ;;  %v5046_v35 = vmax.f32 %v10438_v8, %v4728_v59  ;;  %v4731_v51 = vsel %vm4475_vm3, %v2791_v3, 0.0  ;;  %v2789_v10 = vand.u32 2147483647, %v12597_v40  ;;  %v12599_v2 = vld [vmem:[#allocation87_spill] sm:$0xff] }
 0x33d   :  { %v3620_v28 = vsel %vm3364_vm4, %v2788_v61, 0.0  ;;  %v3921_v33 = vmax.f32 %v3920_v46, %v3619_v30  ;;  %v10477_v14 = vmax.f32 %v4977_v6, %v4731_v51  ;;  %vm3365_vm9 = vcmp.eq.f32.partialorder %v12598_v7, %v10469_v48  ;;  %v10490_v46 = vpop.xlane.xlu0 %3101  ;;  %v12601_v51 = vld [vmem:[#allocation211_spill] sm:$0xff] }
 0x33e   :  { %vm4473_vm10 = vcmp.eq.f32.partialorder %v12598_v7, %v7750_v53  ;;  %v2790_v20 = vand.u32 2147483647, %v12599_v2  ;;  %vm3366_vm5 = vcmp.eq.f32.partialorder %v12600_v56, %v10469_v48  ;;  %v3621_v8 = vsel %vm3365_vm9, %v2789_v10, 0.0  ;;  %v12603_v2 = vld [vmem:[#allocation212_spill] sm:$0xff] }
 0x33f   :  { %v3922_v21 = vmax.f32 %v3921_v33, %v3620_v28  ;;  %v4729_v34 = vsel %vm4473_vm10, %v2789_v10, 0.0  ;;  %vm4474_vm11 = vcmp.eq.f32.partialorder %v12600_v56, %v7757_v15  ;;  %v2792_v17 = vand.u32 2147483647, %v9795_v24 }
 0x340   :  { %v4840_v6 = vmax.f32 %v4839_v19, %v4729_v34  ;;  %v3622_v61 = vsel %vm3366_vm5, %v2790_v20, 0.0  ;;  %v4730_v45 = vsel %vm4474_vm11, %v2790_v20, 0.0  ;;  %vm3367_vm6 = vcmp.eq.f32.partialorder %v12596_v43, %v10469_v48  ;;  %v12602_v19 = vld [vmem:[#allocation26_spill] sm:$0xff]  ;;  %v12604_v20 = vld [vmem:[#allocation28_spill] sm:$0xff] }
 0x341   :  { %v3925_v59 = vmax.f32 %v3621_v8, %v3622_v61  ;;  %v4909_v30 = vmax.f32 %v4908_v16, %v4730_v45  ;;  %vm4476_vm12 = vcmp.eq.f32.partialorder %v12601_v51, %v7759_v37  ;;  %3923 = vmax.xlane.f32.xlu1 %v3922_v21  ;;  %v5101_v28 = vadd.f32 %v5100_v23, %v9883_v27  ;;  %v12605_v21 = vld [vmem:[#allocation208_spill] sm:$0xff]  ;;  %v12607_v61 = vld [vmem:[#allocation209_spill] sm:$0xff]  ;;  %v10513_v45 = vpop.xlane.xlu0 %3106 }
 0x342   :  { %v3623_v33 = vsel %vm3367_vm6, %v2791_v3, 0.0  ;;  %v4732_v40 = vsel %vm4476_vm12, %v2792_v17, 0.0  ;;  %v2795_v10 = vand.u32 2147483647, %v12602_v19  ;;  %vm3368_vm0 = vcmp.eq.f32.partialorder %v12601_v51, %v10469_v48  ;;  %v12606_v3 = vld [vmem:[#allocation86_spill] sm:$0xff] }
 0x343   :  { %v3926_v24 = vmax.f32 %v3925_v59, %v3623_v33  ;;  %v5047_v7 = vmax.f32 %v5046_v35, %v4732_v40  ;;  %vm4479_vm7 = vcmp.eq.f32.partialorder %v12603_v2, %v7752_v47  ;;  %v3624_v43 = vsel %vm3368_vm0, %v2792_v17, 0.0  ;;  %v12608_v33 = vld [vmem:[#allocation31_spill] sm:$0xff] }
 0x344   :  { %v4735_v16 = vsel %vm4479_vm7, %v2795_v10, 0.0  ;;  %v2793_v56 = vand.u32 2147483647, %v12604_v20  ;;  %vm3369_vm8 = vcmp.eq.f32.partialorder %v12605_v21, %v10490_v46  ;;  %vm4477_vm13 = vcmp.eq.f32.partialorder %v12605_v21, %v7750_v53 }
 0x345   :  { %v3927_v27 = vmax.f32 %v3926_v24, %v3624_v43  ;;  %v4979_v23 = vmax.f32 %v10477_v14, %v4735_v16  ;;  %v2794_v8 = vand.u32 2147483647, %v12606_v3  ;;  %vm3370_vm14 = vcmp.eq.f32.partialorder %v12607_v61, %v10490_v46  ;;  %v12609_v24 = vld [vmem:[#allocation214_spill] sm:$0xff] }
 0x346   :  { %v3625_v34 = vsel %vm3369_vm8, %v2793_v56, 0.0  ;;  %v4733_v35 = vsel %vm4477_vm13, %v2793_v56, 0.0  ;;  %vm4478_vm1 = vcmp.eq.f32.partialorder %v12607_v61, %v7757_v15  ;;  %v2796_v14 = vand.u32 2147483647, %v12608_v33  ;;  %v12610_v56 = vld [vmem:[#allocation89_spill] sm:$0xff]  ;;  %v12615_v33 = vld [vmem:[#allocation215_spill] sm:$0xff] }
 0x347   :  { %v4841_v17 = vmax.f32 %v4840_v6, %v4733_v35  ;;  %v3626_v59 = vsel %vm3370_vm14, %v2794_v8, 0.0  ;;  %v4734_v51 = vsel %vm4478_vm1, %v2794_v8, 0.0  ;;  %3928 = vmax.xlane.f32.xlu0 %v3927_v27  ;;  %vm3371_vm15 = vcmp.eq.f32.partialorder %v12603_v2, %v10490_v46  ;;  %v12611_v27 = vld [vmem:[#allocation217_spill] sm:$0xff] }
 0x348   :  { %v3930_v40 = vmax.f32 %v3625_v34, %v3626_v59  ;;  %v4910_v19 = vmax.f32 %v4909_v30, %v4734_v51  ;;  %vm4480_vm2 = vcmp.eq.f32.partialorder %v12609_v24, %v7759_v37  ;;  %v5102_v43 = vadd.f32 %v5101_v28, %v9934_v57  ;;  %v12612_v30 = vld [vmem:[#allocation33_spill] sm:$0xff]  ;;  %v10532_v59 = vpop.xlane.xlu0 %3111 }
 0x349   :  { %v3627_v16 = vsel %vm3371_vm15, %v2795_v10, 0.0  ;;  %v4736_v20 = vsel %vm4480_vm2, %v2796_v14, 0.0  ;;  %v2799_v21 = vand.u32 2147483647, %v12610_v56  ;;  %vm3372_vm3 = vcmp.eq.f32.partialorder %v12609_v24, %v10490_v46  ;;  %v12613_v35 = vld [vmem:[#allocation213_spill] sm:$0xff]  ;;  %v12614_v10 = vld [vmem:[#allocation88_spill] sm:$0xff] }
 0x34a   :  { %v3931_v6 = vmax.f32 %v3930_v40, %v3627_v16  ;;  %v5048_v3 = vmax.f32 %v5047_v7, %v4736_v20  ;;  %vm4483_vm4 = vcmp.eq.f32.partialorder %v12611_v27, %v7752_v47  ;;  %v3628_v2 = vsel %vm3372_vm3, %v2796_v14, 0.0  ;;  %v12616_v56 = vld [vmem:[#allocation220_spill] sm:$0xff] }
 0x34b   :  { %v4739_v8 = vsel %vm4483_vm4, %v2799_v21, 0.0  ;;  %v2797_v34 = vand.u32 2147483647, %v12612_v30  ;;  %vm3373_vm9 = vcmp.eq.f32.partialorder %v12613_v35, %v10513_v45  ;;  %vm4481_vm10 = vcmp.eq.f32.partialorder %v12613_v35, %v7750_v53 }
 0x34c   :  { %v3932_v57 = vmax.f32 %v3931_v6, %v3628_v2  ;;  %v4980_v28 = vmax.f32 %v4979_v23, %v4739_v8  ;;  %v2798_v61 = vand.u32 2147483647, %v12614_v10  ;;  %vm3374_vm5 = vcmp.eq.f32.partialorder %v12615_v33, %v10513_v45  ;;  %v12619_v10 = vld [vmem:[#allocation218_spill] sm:$0xff] }
 0x34d   :  { %v3629_v7 = vsel %vm3373_vm9, %v2797_v34, 0.0  ;;  %v4737_v51 = vsel %vm4481_vm10, %v2797_v34, 0.0  ;;  %vm4482_vm11 = vcmp.eq.f32.partialorder %v12615_v33, %v7757_v15  ;;  %v2800_v23 = vand.u32 2147483647, %v9903_v38  ;;  %v12617_v34 = vld [vmem:[#allocation221_spill] sm:$0xff] }
 0x34e   :  { %v4842_v14 = vmax.f32 %v4841_v17, %v4737_v51  ;;  %v3630_v40 = vsel %vm3374_vm5, %v2798_v61, 0.0  ;;  %v4738_v24 = vsel %vm4482_vm11, %v2798_v61, 0.0  ;;  %3933 = vmax.xlane.f32.xlu1 %v3932_v57  ;;  %vm3375_vm6 = vcmp.eq.f32.partialorder %v12611_v27, %v10513_v45  ;;  %v12621_v51 = vld [vmem:[#allocation219_spill] sm:$0xff] }
 0x34f   :  { %v3935_v16 = vmax.f32 %v3629_v7, %v3630_v40  ;;  %v4911_v20 = vmax.f32 %v4910_v19, %v4738_v24  ;;  %vm4484_vm12 = vcmp.eq.f32.partialorder %v12616_v56, %v7759_v37  ;;  %v5103_v6 = vadd.f32 %v5102_v43, %v9988_v29  ;;  %v12618_v19 = vld [vmem:[#allocation91_spill] sm:$0xff]  ;;  %v10552_v29 = vpop.xlane.xlu0 %3116 }
 0x350   :  { %v3631_v2 = vsel %vm3375_vm6, %v2799_v21, 0.0  ;;  %v4740_v8 = vsel %vm4484_vm12, %v2800_v23, 0.0  ;;  %v2803_v30 = vand.u32 2147483647, %v9925_v9  ;;  %vm3376_vm0 = vcmp.eq.f32.partialorder %v12616_v56, %v10513_v45  ;;  %v12620_v9 = vld [vmem:[#allocation90_spill] sm:$0xff]  ;;  %v12622_v56 = vld [vmem:[#allocation223_spill] sm:$0xff] }
 0x351   :  { %v3936_v17 = vmax.f32 %v3935_v16, %v3631_v2  ;;  %v5049_v38 = vmax.f32 %v5048_v3, %v4740_v8  ;;  %vm4487_vm7 = vcmp.eq.f32.partialorder %v12617_v34, %v7752_v47  ;;  %v3632_v27 = vsel %vm3376_vm0, %v2800_v23, 0.0 }
 0x352   :  { %v4743_v35 = vsel %vm4487_vm7, %v2803_v30, 0.0  ;;  %v2801_v57 = vand.u32 2147483647, %v12618_v19  ;;  %vm3377_vm8 = vcmp.eq.f32.partialorder %v12619_v10, %v10532_v59  ;;  %vm4485_vm13 = vcmp.eq.f32.partialorder %v12619_v10, %v7750_v53 }
 0x353   :  { %v3937_v43 = vmax.f32 %v3936_v17, %v3632_v27  ;;  %v4981_v21 = vmax.f32 %v4980_v28, %v4743_v35  ;;  %v2802_v61 = vand.u32 2147483647, %v12620_v9  ;;  %vm3378_vm14 = vcmp.eq.f32.partialorder %v12621_v51, %v10532_v59  ;;  %v10567_v8 = vpop.xlane.xlu0 %3688 }
 0x354   :  { %v3633_v3 = vsel %vm3377_vm8, %v2801_v57, 0.0  ;;  %v4741_v7 = vsel %vm4485_vm13, %v2801_v57, 0.0  ;;  %vm4486_vm1 = vcmp.eq.f32.partialorder %v12621_v51, %v7757_v15  ;;  %v2804_v23 = vand.u32 2147483647, %v9953_v54  ;;  %v12626_v51 = vld [vmem:[#allocation228_spill] sm:$0xff] }
 0x355   :  { %v4843_v33 = vmax.f32 %v4842_v14, %v4741_v7  ;;  %v3634_v40 = vsel %vm3378_vm14, %v2802_v61, 0.0  ;;  %v4742_v24 = vsel %vm4486_vm1, %v2802_v61, 0.0  ;;  %3938 = vmax.xlane.f32.xlu0 %v3937_v43  ;;  %vm3379_vm15 = vcmp.eq.f32.partialorder %v12617_v34, %v10532_v59  ;;  %v12623_v34 = vld [vmem:[#allocation225_spill] sm:$0xff] }
 0x356   :  { %v3940_v28 = vmax.f32 %v3633_v3, %v3634_v40  ;;  %v4912_v16 = vmax.f32 %v4911_v20, %v4742_v24  ;;  %vm4488_vm2 = vcmp.eq.f32.partialorder %v12622_v56, %v7759_v37  ;;  %v5104_v2 = vadd.f32 %v5103_v6, %v10029_v50  ;;  %v12624_v50 = vld [vmem:[#allocation222_spill] sm:$0xff] }
 0x357   :  { %v3635_v17 = vsel %vm3379_vm15, %v2803_v30, 0.0  ;;  %v4744_v27 = vsel %vm4488_vm2, %v2804_v23, 0.0  ;;  %v2807_v14 = vand.u32 2147483647, %v9976_v44  ;;  %vm3380_vm3 = vcmp.eq.f32.partialorder %v12622_v56, %v10532_v59  ;;  %v12627_v56 = vld [vmem:[#allocation236_spill] sm:$0xff] }
 0x358   :  { %v3941_v54 = vmax.f32 %v3940_v28, %v3635_v17  ;;  %v5050_v35 = vmax.f32 %v5049_v38, %v4744_v27  ;;  %vm4491_vm4 = vcmp.eq.f32.partialorder %v12623_v34, %v7752_v47  ;;  %v3636_v20 = vsel %vm3380_vm3, %v2804_v23, 0.0  ;;  %v12625_v38 = vld [vmem:[#allocation224_spill] sm:$0xff] }
 0x359   :  { %v4747_v19 = vsel %vm4491_vm4, %v2807_v14, 0.0  ;;  %v2805_v57 = vand.u32 2147483647, %v9978_v26  ;;  %vm3381_vm9 = vcmp.eq.f32.partialorder %v12624_v50, %v10552_v29  ;;  %vm4489_vm10 = vcmp.eq.f32.partialorder %v12624_v50, %v7750_v53 }
 0x35a   :  { %v3942_v6 = vmax.f32 %v3941_v54, %v3636_v20  ;;  %v4982_v30 = vmax.f32 %v4981_v21, %v4747_v19  ;;  %v2806_v44 = vand.u32 2147483647, %v9986_v36  ;;  %vm3382_vm5 = vcmp.eq.f32.partialorder %v12625_v38, %v10552_v29  ;;  %v10585_v21 = vpop.xlane.xlu0 %3121  ;;  %v12628_v54 = vld [vmem:[#allocation233_spill] sm:$0xff] }
 0x35b   :  { %v3637_v10 = vsel %vm3381_vm9, %v2805_v57, 0.0  ;;  %v4745_v43 = vsel %vm4489_vm10, %v2805_v57, 0.0  ;;  %vm4490_vm11 = vcmp.eq.f32.partialorder %v12625_v38, %v7757_v15  ;;  %v2808_v3 = vand.u32 2147483647, %v9998_v31 }
 0x35c   :  { %v4844_v9 = vmax.f32 %v4843_v33, %v4745_v43  ;;  %v3638_v26 = vsel %vm3382_vm5, %v2806_v44, 0.0  ;;  %v4746_v61 = vsel %vm4490_vm11, %v2806_v44, 0.0  ;;  %3943 = vmax.xlane.f32.xlu1 %v3942_v6  ;;  %vm3383_vm6 = vcmp.eq.f32.partialorder %v12623_v34, %v10552_v29  ;;  %v12629_v34 = vld [vmem:[#allocation234_spill] sm:$0xff] }
 0x35d   :  { %v3945_v36 = vmax.f32 %v3637_v10, %v3638_v26  ;;  %v4913_v7 = vmax.f32 %v4912_v16, %v4746_v61  ;;  %vm4492_vm12 = vcmp.eq.f32.partialorder %v12626_v51, %v7759_v37  ;;  %v5105_v40 = vadd.f32 %v5104_v2, %v10062_v60  ;;  %v12631_v26 = vld [vmem:[#allocation240_spill] sm:$0xff]  ;;  %v10623_v61 = vpop.xlane.xlu1 %3693 }
 0x35e   :  { %v3639_v24 = vsel %vm3383_vm6, %v2807_v14, 0.0  ;;  %v4748_v23 = vsel %vm4492_vm12, %v2808_v3, 0.0  ;;  %v2811_v33 = vand.u32 2147483647, %v10015_v42  ;;  %vm3384_vm0 = vcmp.eq.f32.partialorder %v12626_v51, %v10552_v29  ;;  %v10610_v50 = vpop.xlane.xlu0 %3126 }
 0x35f   :  { %v3946_v31 = vmax.f32 %v3945_v36, %v3639_v24  ;;  %v10595_v28 = vmax.f32 %v5050_v35, %v4748_v23  ;;  %vm4495_vm7 = vcmp.eq.f32.partialorder %v12627_v56, %v7752_v47  ;;  %v3640_v17 = vsel %vm3384_vm0, %v2808_v3, 0.0 }
 0x360   :  { %v4751_v16 = vsel %vm4495_vm7, %v2811_v33, 0.0  ;;  %v2809_v27 = vand.u32 2147483647, %v10023_v58  ;;  %vm3385_vm8 = vcmp.eq.f32.partialorder %v12628_v54, %v10585_v21  ;;  %vm4493_vm13 = vcmp.eq.f32.partialorder %v12628_v54, %v7750_v53  ;;  %v12635_v54 = vld [vmem:[#allocation35_spill] sm:$0xff] }
 0x361   :  { %v3947_v60 = vmax.f32 %v3946_v31, %v3640_v17  ;;  %v4983_v2 = vmax.f32 %v4982_v30, %v4751_v16  ;;  %v2810_v42 = vand.u32 2147483647, %v10027_v63  ;;  %vm3386_vm14 = vcmp.eq.f32.partialorder %v12629_v34, %v10585_v21  ;;  %v12630_v30 = vld [vmem:[#allocation239_spill] sm:$0xff] }
 0x362   :  { %v3641_v14 = vsel %vm3385_vm8, %v2809_v27, 0.0  ;;  %v4749_v35 = vsel %vm4493_vm13, %v2809_v27, 0.0  ;;  %vm4494_vm1 = vcmp.eq.f32.partialorder %v12629_v34, %v7757_v15  ;;  %v2812_v57 = vand.u32 2147483647, %v10034_v1  ;;  %v10640_v17 = vpop.xlane.xlu0 %3131  ;;  %v12634_v27 = vld [vmem:[#allocation244_spill] sm:$0xff]  ;;  %v10650_v34 = vpop.xlane.xlu1 %3698 }
 0x363   :  { %v4845_v20 = vmax.f32 %v4844_v9, %v4749_v35  ;;  %v3642_v58 = vsel %vm3386_vm14, %v2810_v42, 0.0  ;;  %v4750_v19 = vsel %vm4494_vm1, %v2810_v42, 0.0  ;;  %3948 = vmax.xlane.f32.xlu0 %v3947_v60  ;;  %vm3387_vm15 = vcmp.eq.f32.partialorder %v12627_v56, %v10585_v21 }
 0x364   :  { %v3950_v63 = vmax.f32 %v3641_v14, %v3642_v58  ;;  %v4914_v6 = vmax.f32 %v4913_v7, %v4750_v19  ;;  %vm4496_vm2 = vcmp.eq.f32.partialorder %v12630_v30, %v7759_v37  ;;  %v5106_v44 = vadd.f32 %v5105_v40, %v10104_v11  ;;  %v12632_v11 = vld [vmem:[#allocation237_spill] sm:$0xff] }
 0x365   :  { %v3643_v10 = vsel %vm3387_vm15, %v2811_v33, 0.0  ;;  %v4752_v43 = vsel %vm4496_vm2, %v2812_v57, 0.0  ;;  %v2815_v38 = vand.u32 2147483647, %v10057_v55  ;;  %vm3388_vm3 = vcmp.eq.f32.partialorder %v12630_v30, %v10585_v21  ;;  %v12633_v33 = vld [vmem:[#allocation238_spill] sm:$0xff]  ;;  %v12636_v14 = vld [vmem:[#allocation93_spill] sm:$0xff] }
 0x366   :  { %v3951_v1 = vmax.f32 %v3950_v63, %v3643_v10  ;;  %v5052_v9 = vmax.f32 %v10595_v28, %v4752_v43  ;;  %vm4499_vm4 = vcmp.eq.f32.partialorder %v12631_v26, %v7752_v47  ;;  %v3644_v3 = vsel %vm3388_vm3, %v2812_v57, 0.0  ;;  %v12637_v58 = vld [vmem:[#allocation245_spill] sm:$0xff]  ;;  %v12638_v63 = vld [vmem:[#allocation92_spill] sm:$0xff]  ;;  %v12640_v43 = vld [vmem:[#allocation95_spill] sm:$0xff] }
 0x367   :  { %v4755_v36 = vsel %vm4499_vm4, %v2815_v38, 0.0  ;;  %v2813_v7 = vand.u32 2147483647, %v10059_v5  ;;  %vm3389_vm9 = vcmp.eq.f32.partialorder %v12632_v11, %v10610_v50  ;;  %vm4497_vm10 = vcmp.eq.f32.partialorder %v12632_v11, %v7750_v53  ;;  %v12639_v30 = vld [vmem:[#allocation241_spill] sm:$0xff]  ;;  %v12642_v11 = vld [vmem:[#allocation30_spill] sm:$0xff] }
 0x368   :  { %v3952_v51 = vmax.f32 %v3951_v1, %v3644_v3  ;;  %v10628_v55 = vmax.f32 %v4983_v2, %v4755_v36  ;;  %v2814_v40 = vand.u32 2147483647, %v10069_v62  ;;  %vm3390_vm5 = vcmp.eq.f32.partialorder %v12633_v33, %v10610_v50 }
 0x369   :  { %v3645_v24 = vsel %vm3389_vm9, %v2813_v7, 0.0  ;;  %v4753_v23 = vsel %vm4497_vm10, %v2813_v7, 0.0  ;;  %vm4498_vm11 = vcmp.eq.f32.partialorder %v12633_v33, %v7757_v15  ;;  %v2816_v56 = vand.u32 2147483647, %v10074_v39  ;;  %v12644_v33 = vld [vmem:[#allocation100_spill] sm:$0xff] }
 0x36a   :  { %v10637_v5 = vmax.f32 %v4845_v20, %v4753_v23  ;;  %v3646_v31 = vsel %vm3390_vm5, %v2814_v40, 0.0  ;;  %v4754_v28 = vsel %vm4498_vm11, %v2814_v40, 0.0  ;;  %3953 = vmax.xlane.f32.xlu1 %v3952_v51  ;;  %vm3391_vm6 = vcmp.eq.f32.partialorder %v12631_v26, %v10610_v50  ;;  %v12641_v26 = vld [vmem:[#allocation242_spill] sm:$0xff] }
 0x36b   :  { %v3955_v62 = vmax.f32 %v3645_v24, %v3646_v31  ;;  %v10644_v16 = vmax.f32 %v4914_v6, %v4754_v28  ;;  %vm4500_vm12 = vcmp.eq.f32.partialorder %v12634_v27, %v7759_v37  ;;  %v5107_v60 = vadd.f32 %v5106_v44, %v12635_v54  ;;  %v12643_v23 = vld [vmem:[#allocation246_spill] sm:$0xff]  ;;  %v10679_v28 = vpop.xlane.xlu1 %3703 }
 0x36c   :  { %v3647_v2 = vsel %vm3391_vm6, %v2815_v38, 0.0  ;;  %v4756_v42 = vsel %vm4500_vm12, %v2816_v56, 0.0  ;;  %v2819_v35 = vand.u32 2147483647, %v12636_v14  ;;  %vm3392_vm0 = vcmp.eq.f32.partialorder %v12634_v27, %v10610_v50 }
 0x36d   :  { %v3956_v39 = vmax.f32 %v3955_v62, %v3647_v2  ;;  %v10654_v20 = vmax.f32 %v5052_v9, %v4756_v42  ;;  %vm4503_vm7 = vcmp.eq.f32.partialorder %v12637_v58, %v7752_v47  ;;  %v3648_v19 = vsel %vm3392_vm0, %v2816_v56, 0.0  ;;  %v12645_v62 = vld [vmem:[#allocation94_spill] sm:$0xff]  ;;  %v12646_v42 = vld [vmem:[#allocation248_spill] sm:$0xff] }
 0x36e   :  { %v4759_v57 = vsel %vm4503_vm7, %v2819_v35, 0.0  ;;  %v2817_v6 = vand.u32 2147483647, %v12638_v63  ;;  %vm3393_vm8 = vcmp.eq.f32.partialorder %v12639_v30, %v10640_v17  ;;  %vm4501_vm13 = vcmp.eq.f32.partialorder %v12639_v30, %v7750_v53  ;;  %v12650_v30 = vld [vmem:[#allocation249_spill] sm:$0xff] }
 0x36f   :  { %v3957_v44 = vmax.f32 %v3956_v39, %v3648_v19  ;;  %v4985_v10 = vmax.f32 %v10628_v55, %v4759_v57  ;;  %v2818_v38 = vand.u32 2147483647, %v12640_v43  ;;  %vm3394_vm14 = vcmp.eq.f32.partialorder %v12641_v26, %v10640_v17  ;;  %v10671_v55 = vpop.xlane.xlu0 %3136  ;;  %v12647_v39 = vld [vmem:[#allocation97_spill] sm:$0xff]  ;;  %v12649_v57 = vld [vmem:[#allocation96_spill] sm:$0xff] }
 0x370   :  { %v3649_v1 = vsel %vm3393_vm8, %v2817_v6, 0.0  ;;  %v4757_v9 = vsel %vm4501_vm13, %v2817_v6, 0.0  ;;  %vm4502_vm1 = vcmp.eq.f32.partialorder %v12641_v26, %v7757_v15  ;;  %v2820_v51 = vand.u32 2147483647, %v12642_v11  ;;  %v12652_v11 = vld [vmem:[#allocation250_spill] sm:$0xff] }
 0x371   :  { %v4847_v3 = vmax.f32 %v10637_v5, %v4757_v9  ;;  %v3650_v36 = vsel %vm3394_vm14, %v2818_v38, 0.0  ;;  %v4758_v7 = vsel %vm4502_vm1, %v2818_v38, 0.0  ;;  %3958 = vmax.xlane.f32.xlu0 %v3957_v44  ;;  %vm3395_vm15 = vcmp.eq.f32.partialorder %v12637_v58, %v10640_v17  ;;  %v10702_v9 = vpop.xlane.xlu1 %3708 }
 0x372   :  { %v3960_v40 = vmax.f32 %v3649_v1, %v3650_v36  ;;  %v4916_v24 = vmax.f32 %v10644_v16, %v4758_v7  ;;  %vm4504_vm2 = vcmp.eq.f32.partialorder %v12643_v23, %v7759_v37  ;;  %v5108_v31 = vadd.f32 %v5107_v60, %v12644_v33  ;;  %v12648_v60 = vld [vmem:[#allocation247_spill] sm:$0xff] }
 0x373   :  { %v3651_v5 = vsel %vm3395_vm15, %v2819_v35, 0.0  ;;  %v4760_v56 = vsel %vm4504_vm2, %v2820_v51, 0.0  ;;  %v2823_v27 = vand.u32 2147483647, %v12645_v62  ;;  %vm3396_vm3 = vcmp.eq.f32.partialorder %v12643_v23, %v10640_v17  ;;  %v12651_v1 = vld [vmem:[#allocation99_spill] sm:$0xff]  ;;  %v10704_v26 = vpop.xlane.xlu0 %3141  ;;  %v12653_v23 = vld [vmem:[#allocation98_spill] sm:$0xff] }
 0x374   :  { %v3961_v54 = vmax.f32 %v3960_v40, %v3651_v5  ;;  %v5054_v2 = vmax.f32 %v10654_v20, %v4760_v56  ;;  %vm4507_vm4 = vcmp.eq.f32.partialorder %v12646_v42, %v7752_v47  ;;  %v3652_v16 = vsel %vm3396_vm3, %v2820_v51, 0.0  ;;  %v12654_v62 = vld [vmem:[#allocation252_spill] sm:$0xff] }
 0x375   :  { %v4763_v14 = vsel %vm4507_vm4, %v2823_v27, 0.0  ;;  %v2821_v58 = vand.u32 2147483647, %v12647_v39  ;;  %vm3397_vm9 = vcmp.eq.f32.partialorder %v12648_v60, %v10671_v55  ;;  %vm4505_vm10 = vcmp.eq.f32.partialorder %v12648_v60, %v7750_v53  ;;  %v12658_v60 = vld [vmem:[#allocation253_spill] sm:$0xff] }
 0x376   :  { %v3962_v35 = vmax.f32 %v3961_v54, %v3652_v16  ;;  %v10690_v19 = vmax.f32 %v4985_v10, %v4763_v14  ;;  %v2822_v63 = vand.u32 2147483647, %v12649_v57  ;;  %vm3398_vm5 = vcmp.eq.f32.partialorder %v12650_v30, %v10671_v55  ;;  %v12656_v14 = vld [vmem:[#allocation251_spill] sm:$0xff] }
 0x377   :  { %v3653_v6 = vsel %vm3397_vm9, %v2821_v58, 0.0  ;;  %v4761_v20 = vsel %vm4505_vm10, %v2821_v58, 0.0  ;;  %vm4506_vm11 = vcmp.eq.f32.partialorder %v12650_v30, %v7757_v15  ;;  %v2824_v10 = vand.u32 2147483647, %v12651_v1  ;;  %v10735_v30 = vpop.xlane.xlu0 %3146  ;;  %v12660_v1 = vld [vmem:[#allocation254_spill] sm:$0xff] }
 0x378   :  { %v10699_v44 = vmax.f32 %v4847_v3, %v4761_v20  ;;  %v3654_v43 = vsel %vm3398_vm5, %v2822_v63, 0.0  ;;  %v4762_v38 = vsel %vm4506_vm11, %v2822_v63, 0.0  ;;  %3963 = vmax.xlane.f32.xlu1 %v3962_v35  ;;  %vm3399_vm6 = vcmp.eq.f32.partialorder %v12646_v42, %v10671_v55  ;;  %v12655_v42 = vld [vmem:[#allocation37_spill] sm:$0xff]  ;;  %v10731_v35 = vpop.xlane.xlu1 %3713 }
 0x379   :  { %v3965_v36 = vmax.f32 %v3653_v6, %v3654_v43  ;;  %v10708_v7 = vmax.f32 %v4916_v24, %v4762_v38  ;;  %vm4508_vm12 = vcmp.eq.f32.partialorder %v12652_v11, %v7759_v37  ;;  %v5109_v3 = vadd.f32 %v5108_v31, %v10224_v32 }
 0x37a   :  { %v3655_v51 = vsel %vm3399_vm6, %v2823_v27, 0.0  ;;  %v4764_v40 = vsel %vm4508_vm12, %v2824_v10, 0.0  ;;  %v2827_v33 = vand.u32 2147483647, %v12653_v23  ;;  %vm3400_vm0 = vcmp.eq.f32.partialorder %v12652_v11, %v10671_v55  ;;  %v12657_v27 = vld [vmem:[#allocation101_spill] sm:$0xff] }
 0x37b   :  { %v3966_v5 = vmax.f32 %v3965_v36, %v3655_v51  ;;  %v10716_v56 = vmax.f32 %v5054_v2, %v4764_v40  ;;  %vm4511_vm7 = vcmp.eq.f32.partialorder %v12654_v62, %v7752_v47  ;;  %v3656_v24 = vsel %vm3400_vm0, %v2824_v10, 0.0  ;;  %v12661_v10 = vld [vmem:[#allocation110_spill] sm:$0xff] }
 0x37c   :  { %v4767_v54 = vsel %vm4511_vm7, %v2827_v33, 0.0  ;;  %v2825_v16 = vand.u32 2147483647, %v12655_v42  ;;  %vm3401_vm8 = vcmp.eq.f32.partialorder %v12656_v14, %v10704_v26  ;;  %vm4509_vm13 = vcmp.eq.f32.partialorder %v12656_v14, %v7750_v53  ;;  %v12662_v51 = vld [vmem:[#allocation102_spill] sm:$0xff]  ;;  %v12666_v14 = vld [vmem:[#allocation104_spill] sm:$0xff] }
 0x37d   :  { %v3967_v32 = vmax.f32 %v3966_v5, %v3656_v24  ;;  %v4987_v31 = vmax.f32 %v10690_v19, %v4767_v54  ;;  %v2826_v39 = vand.u32 2147483647, %v12657_v27  ;;  %vm3402_vm14 = vcmp.eq.f32.partialorder %v12658_v60, %v10704_v26  ;;  %v12659_v19 = vld [vmem:[#allocation34_spill] sm:$0xff]  ;;  %v12664_v54 = vld [vmem:[#allocation103_spill] sm:$0xff]  ;;  %v10757_v27 = vpop.xlane.xlu1 %3718 }
 0x37e   :  { %v3657_v2 = vsel %vm3401_vm8, %v2825_v16, 0.0  ;;  %v4765_v58 = vsel %vm4509_vm13, %v2825_v16, 0.0  ;;  %vm4510_vm1 = vcmp.eq.f32.partialorder %v12658_v60, %v7757_v15  ;;  %v2828_v20 = vand.u32 2147483647, %v12659_v19  ;;  %v12665_v16 = vld [vmem:[#allocation256_spill] sm:$0xff]  ;;  %v10766_v19 = vpop.xlane.xlu0 %3151 }
 0x37f   :  { %v4849_v57 = vmax.f32 %v10699_v44, %v4765_v58  ;;  %v3658_v63 = vsel %vm3402_vm14, %v2826_v39, 0.0  ;;  %v4766_v6 = vsel %vm4510_vm1, %v2826_v39, 0.0  ;;  %3968 = vmax.xlane.f32.xlu0 %v3967_v32  ;;  %vm3403_vm15 = vcmp.eq.f32.partialorder %v12654_v62, %v10704_v26  ;;  %v12663_v62 = vld [vmem:[#allocation257_spill] sm:$0xff] }
 0x380   :  { %v3970_v43 = vmax.f32 %v3657_v2, %v3658_v63  ;;  %v4918_v38 = vmax.f32 %v10708_v7, %v4766_v6  ;;  %vm4512_vm2 = vcmp.eq.f32.partialorder %v12660_v1, %v7759_v37  ;;  %v5110_v36 = vadd.f32 %v5109_v3, %v12661_v10  ;;  %v12667_v2 = vld [vmem:[#allocation258_spill] sm:$0xff]  ;;  %v12668_v63 = vld [vmem:[#allocation36_spill] sm:$0xff] }
 0x381   :  { %v3659_v11 = vsel %vm3403_vm15, %v2827_v33, 0.0  ;;  %v4768_v44 = vsel %vm4512_vm2, %v2828_v20, 0.0  ;;  %v2831_v40 = vand.u32 2147483647, %v12662_v51  ;;  %vm3404_vm3 = vcmp.eq.f32.partialorder %v12660_v1, %v10704_v26  ;;  %v12669_v1 = vld [vmem:[#allocation259_spill] sm:$0xff] }
 0x382   :  { %v3971_v23 = vmax.f32 %v3970_v43, %v3659_v11  ;;  %v5056_v5 = vmax.f32 %v10716_v56, %v4768_v44  ;;  %vm4515_vm4 = vcmp.eq.f32.partialorder %v12663_v62, %v7752_v47  ;;  %v3660_v24 = vsel %vm3404_vm3, %v2828_v20, 0.0  ;;  %v12670_v44 = vld [vmem:[#allocation106_spill] sm:$0xff] }
 0x383   :  { %v4771_v7 = vsel %vm4515_vm4, %v2831_v40, 0.0  ;;  %v2829_v42 = vand.u32 2147483647, %v12664_v54  ;;  %vm3405_vm9 = vcmp.eq.f32.partialorder %v12665_v16, %v10735_v30  ;;  %vm4513_vm10 = vcmp.eq.f32.partialorder %v12665_v16, %v7750_v53  ;;  %v12672_v54 = vld [vmem:[#allocation105_spill] sm:$0xff]  ;;  %v12673_v16 = vld [vmem:[#allocation260_spill] sm:$0xff] }
 0x384   :  { %v3972_v3 = vmax.f32 %v3971_v23, %v3660_v24  ;;  %v10752_v33 = vmax.f32 %v4987_v31, %v4771_v7  ;;  %v2830_v32 = vand.u32 2147483647, %v12666_v14  ;;  %vm3406_vm5 = vcmp.eq.f32.partialorder %v12667_v2, %v10735_v30 }
 0x385   :  { %v3661_v56 = vsel %vm3405_vm9, %v2829_v42, 0.0  ;;  %v4769_v39 = vsel %vm4513_vm10, %v2829_v42, 0.0  ;;  %vm4514_vm11 = vcmp.eq.f32.partialorder %v12667_v2, %v7757_v15  ;;  %v2832_v6 = vand.u32 2147483647, %v12668_v63 }
 0x386   :  { %v10763_v58 = vmax.f32 %v4849_v57, %v4769_v39  ;;  %v3662_v60 = vsel %vm3406_vm5, %v2830_v32, 0.0  ;;  %v4770_v31 = vsel %vm4514_vm11, %v2830_v32, 0.0  ;;  %3973 = vmax.xlane.f32.xlu1 %v3972_v3  ;;  %vm3407_vm6 = vcmp.eq.f32.partialorder %v12663_v62, %v10735_v30  ;;  %v12671_v62 = vld [vmem:[#allocation261_spill] sm:$0xff] }
 0x387   :  { %v3975_v20 = vmax.f32 %v3661_v56, %v3662_v60  ;;  %v10770_v43 = vmax.f32 %v4918_v38, %v4770_v31  ;;  %vm4516_vm12 = vcmp.eq.f32.partialorder %v12669_v1, %v7759_v37  ;;  %v5111_v10 = vadd.f32 %v5110_v36, %v10300_v4  ;;  %v10785_v4 = vpop.xlane.xlu1 %3723  ;;  %v12675_v56 = vld [vmem:[#allocation262_spill] sm:$0xff]  ;;  %v12676_v31 = vld [vmem:[#allocation107_spill] sm:$0xff] }
 0x388   :  { %v3663_v57 = vsel %vm3407_vm6, %v2831_v40, 0.0  ;;  %v4772_v11 = vsel %vm4516_vm12, %v2832_v6, 0.0  ;;  %v2835_v51 = vand.u32 2147483647, %v12670_v44  ;;  %vm3408_vm0 = vcmp.eq.f32.partialorder %v12669_v1, %v10735_v30  ;;  %v12677_v1 = vld [vmem:[#allocation263_spill] sm:$0xff]  ;;  %v12678_v44 = vld [vmem:[#allocation109_spill] sm:$0xff] }
 0x389   :  { %v3976_v23 = vmax.f32 %v3975_v20, %v3663_v57  ;;  %v10778_v24 = vmax.f32 %v5056_v5, %v4772_v11  ;;  %vm4519_vm7 = vcmp.eq.f32.partialorder %v12671_v62, %v7752_v47  ;;  %v3664_v38 = vsel %vm3408_vm0, %v2832_v6, 0.0  ;;  %v12674_v5 = vld [vmem:[#allocation108_spill] sm:$0xff] }
 0x38a   :  { %v4775_v7 = vsel %vm4519_vm7, %v2835_v51, 0.0  ;;  %v2833_v42 = vand.u32 2147483647, %v12672_v54  ;;  %vm3409_vm8 = vcmp.eq.f32.partialorder %v12673_v16, %v10766_v19  ;;  %vm4517_vm13 = vcmp.eq.f32.partialorder %v12673_v16, %v7750_v53  ;;  %v12680_v16 = vld [vmem:[#allocation39_spill] sm:$0xff] }
 0x38b   :  { %v3977_v36 = vmax.f32 %v3976_v23, %v3664_v38  ;;  %v4989_v40 = vmax.f32 %v10752_v33, %v4775_v7  ;;  %v2834_v3 = vand.u32 2147483647, %v12674_v5  ;;  %vm3410_vm14 = vcmp.eq.f32.partialorder %v12675_v56, %v10766_v19  ;;  %v10797_v33 = vpop.xlane.xlu0 %3156  ;;  %v10811_v54 = vpop.xlane.xlu1 %3728  ;;  %v12682_v5 = vld [vmem:[#allocation112_spill] sm:$0xff] }
 0x38c   :  { %v3665_v14 = vsel %vm3409_vm8, %v2833_v42, 0.0  ;;  %v4773_v32 = vsel %vm4517_vm13, %v2833_v42, 0.0  ;;  %vm4518_vm1 = vcmp.eq.f32.partialorder %v12675_v56, %v7757_v15  ;;  %v2836_v63 = vand.u32 2147483647, %v12676_v31  ;;  %v12684_v31 = vld [vmem:[#allocation111_spill] sm:$0xff] }
 0x38d   :  { %v4851_v39 = vmax.f32 %v10763_v58, %v4773_v32  ;;  %v3666_v2 = vsel %vm3410_vm14, %v2834_v3, 0.0  ;;  %v4774_v60 = vsel %vm4518_vm1, %v2834_v3, 0.0  ;;  %3978 = vmax.xlane.f32.xlu0 %v3977_v36  ;;  %vm3411_vm15 = vcmp.eq.f32.partialorder %v12671_v62, %v10766_v19  ;;  %v12679_v62 = vld [vmem:[#allocation265_spill] sm:$0xff]  ;;  %v12683_v32 = vld [vmem:[#allocation266_spill] sm:$0xff] }
 0x38e   :  { %v3980_v6 = vmax.f32 %v3665_v14, %v3666_v2  ;;  %v4920_v20 = vmax.f32 %v10770_v43, %v4774_v60  ;;  %vm4520_vm2 = vcmp.eq.f32.partialorder %v12677_v1, %v7759_v37  ;;  %v5112_v57 = vadd.f32 %v5111_v10, %v10337_v49  ;;  %v12681_v49 = vld [vmem:[#allocation264_spill] sm:$0xff] }
 0x38f   :  { %v3667_v11 = vsel %vm3411_vm15, %v2835_v51, 0.0  ;;  %v4776_v58 = vsel %vm4520_vm2, %v2836_v63, 0.0  ;;  %v2839_v23 = vand.u32 2147483647, %v12678_v44  ;;  %vm3412_vm3 = vcmp.eq.f32.partialorder %v12677_v1, %v10766_v19 }
 0x390   :  { %v3981_v38 = vmax.f32 %v3980_v6, %v3667_v11  ;;  %v5058_v7 = vmax.f32 %v10778_v24, %v4776_v58  ;;  %vm4523_vm4 = vcmp.eq.f32.partialorder %v12679_v62, %v7752_v47  ;;  %v3668_v43 = vsel %vm3412_vm3, %v2836_v63, 0.0  ;;  %v12685_v11 = vld [vmem:[#allocation267_spill] sm:$0xff] }
 0x391   :  { %v4779_v42 = vsel %vm4523_vm4, %v2839_v23, 0.0  ;;  %v2837_v36 = vand.u32 2147483647, %v12680_v16  ;;  %vm3413_vm9 = vcmp.eq.f32.partialorder %v12681_v49, %v10797_v33  ;;  %vm4521_vm10 = vcmp.eq.f32.partialorder %v12681_v49, %v7750_v53 }
 0x392   :  { %v3982_v10 = vmax.f32 %v3981_v38, %v3668_v43  ;;  %v10816_v51 = vmax.f32 %v4989_v40, %v4779_v42  ;;  %v2838_v24 = vand.u32 2147483647, %v12682_v5  ;;  %vm3414_vm5 = vcmp.eq.f32.partialorder %v12683_v32, %v10797_v33  ;;  %v10826_v40 = vpop.xlane.xlu0 %3161  ;;  %v12686_v38 = vld [vmem:[#allocation114_spill] sm:$0xff]  ;;  %v10836_v42 = vpop.xlane.xlu1 %3733 }
 0x393   :  { %v3669_v3 = vsel %vm3413_vm9, %v2837_v36, 0.0  ;;  %v4777_v14 = vsel %vm4521_vm10, %v2837_v36, 0.0  ;;  %vm4522_vm11 = vcmp.eq.f32.partialorder %v12683_v32, %v7757_v15  ;;  %v2840_v63 = vand.u32 2147483647, %v12684_v31  ;;  %v12691_v32 = vld [vmem:[#allocation270_spill] sm:$0xff] }
 0x394   :  { %v4852_v56 = vmax.f32 %v4851_v39, %v4777_v14  ;;  %v3670_v2 = vsel %vm3414_vm5, %v2838_v24, 0.0  ;;  %v4778_v60 = vsel %vm4522_vm11, %v2838_v24, 0.0  ;;  %3983 = vmax.xlane.f32.xlu1 %v3982_v10  ;;  %vm3415_vm6 = vcmp.eq.f32.partialorder %v12679_v62, %v10797_v33  ;;  %v12688_v10 = vld [vmem:[#allocation41_spill] sm:$0xff] }
 0x395   :  { %v3985_v6 = vmax.f32 %v3669_v3, %v3670_v2  ;;  %v10830_v1 = vmax.f32 %v4920_v20, %v4778_v60  ;;  %vm4524_vm12 = vcmp.eq.f32.partialorder %v12685_v11, %v7759_v37  ;;  %v5113_v58 = vadd.f32 %v5112_v57, %v10375_v22  ;;  %v12687_v20 = vld [vmem:[#allocation269_spill] sm:$0xff]  ;;  %v12689_v22 = vld [vmem:[#allocation268_spill] sm:$0xff] }
 0x396   :  { %v3671_v44 = vsel %vm3415_vm6, %v2839_v23, 0.0  ;;  %v4780_v39 = vsel %vm4524_vm12, %v2840_v63, 0.0  ;;  %v2843_v43 = vand.u32 2147483647, %v12686_v38  ;;  %vm3416_vm0 = vcmp.eq.f32.partialorder %v12685_v11, %v10797_v33  ;;  %v12690_v24 = vld [vmem:[#allocation113_spill] sm:$0xff]  ;;  %v10863_v38 = vpop.xlane.xlu1 %3738 }
 0x397   :  { %v3986_v16 = vmax.f32 %v3985_v6, %v3671_v44  ;;  %v10840_v36 = vmax.f32 %v5058_v7, %v4780_v39  ;;  %vm4527_vm7 = vcmp.eq.f32.partialorder %v12687_v20, %v7752_v47  ;;  %v3672_v62 = vsel %vm3416_vm0, %v2840_v63, 0.0  ;;  %v12692_v63 = vld [vmem:[#allocation19_spill] sm:$0xff]  ;;  %v10861_v39 = vpop.xlane.xlu0 %3166 }
 0x398   :  { %v4783_v49 = vsel %vm4527_vm7, %v2843_v43, 0.0  ;;  %v2841_v5 = vand.u32 2147483647, %v12688_v10  ;;  %vm3417_vm8 = vcmp.eq.f32.partialorder %v12689_v22, %v10826_v40  ;;  %vm4525_vm13 = vcmp.eq.f32.partialorder %v12689_v22, %v7750_v53  ;;  %v12693_v44 = vld [vmem:[#allocation271_spill] sm:$0xff]  ;;  %v12694_v10 = vld [vmem:[#allocation272_spill] sm:$0xff] }
 0x399   :  { %v3987_v57 = vmax.f32 %v3986_v16, %v3672_v62  ;;  %v4991_v23 = vmax.f32 %v10816_v51, %v4783_v49  ;;  %v2842_v3 = vand.u32 2147483647, %v12690_v24  ;;  %vm3418_vm14 = vcmp.eq.f32.partialorder %v12691_v32, %v10826_v40 }
 0x39a   :  { %v3673_v7 = vsel %vm3417_vm8, %v2841_v5, 0.0  ;;  %v4781_v14 = vsel %vm4525_vm13, %v2841_v5, 0.0  ;;  %vm4526_vm1 = vcmp.eq.f32.partialorder %v12691_v32, %v7757_v15  ;;  %v2844_v6 = vand.u32 2147483647, %v12692_v63 }
 0x39b   :  { %v4853_v2 = vmax.f32 %v4852_v56, %v4781_v14  ;;  %v3674_v60 = vsel %vm3418_vm14, %v2842_v3, 0.0  ;;  %v4782_v31 = vsel %vm4526_vm1, %v2842_v3, 0.0  ;;  %3988 = vmax.xlane.f32.xlu0 %v3987_v57  ;;  %vm3419_vm15 = vcmp.eq.f32.partialorder %v12687_v20, %v10826_v40 }
 0x39c   :  { %v3990_v51 = vmax.f32 %v3673_v7, %v3674_v60  ;;  %v4922_v11 = vmax.f32 %v10830_v1, %v4782_v31  ;;  %vm4528_vm2 = vcmp.eq.f32.partialorder %v12693_v44, %v7759_v37  ;;  %v3675_v16 = vsel %vm3419_vm15, %v2843_v43, 0.0  ;;  %v12695_v1 = vld [vmem:[#allocation116_spill] sm:$0xff]  ;;  %v12696_v43 = vld [vmem:[#allocation273_spill] sm:$0xff]  ;;  %v12697_v60 = vld [vmem:[#allocation38_spill] sm:$0xff] }
 0x39d   :  { %vm3420_vm3 = vcmp.eq.f32.partialorder %v12693_v44, %v10826_v40  ;;  %v4784_v56 = vsel %vm4528_vm2, %v2844_v6, 0.0  ;;  %v2845_v62 = vand.u32 2147483647, %v10348_v0  ;;  %vm4529_vm4 = vcmp.eq.f32.partialorder %v12694_v10, %v7750_v53 }
 0x39e   :  { %v3991_v49 = vmax.f32 %v3990_v51, %v3675_v16  ;;  %v5060_v20 = vmax.f32 %v10840_v36, %v4784_v56  ;;  %v2847_v5 = vand.u32 2147483647, %v12695_v1  ;;  %v5114_v22 = vadd.f32 %v5113_v58, %v10402_v52  ;;  %v12698_v52 = vld [vmem:[#allocation274_spill] sm:$0xff]  ;;  %v12699_v58 = vld [vmem:[#allocation115_spill] sm:$0xff] }
 0x39f   :  { %v3676_v57 = vsel %vm3420_vm3, %v2844_v6, 0.0  ;;  %v4785_v24 = vsel %vm4529_vm4, %v2845_v62, 0.0  ;;  %vm4531_vm9 = vcmp.eq.f32.partialorder %v12696_v43, %v7752_v47  ;;  %vm3421_vm10 = vcmp.eq.f32.partialorder %v12694_v10, %v10861_v39  ;;  %v10888_v6 = vpop.xlane.xlu0 %3171  ;;  %v12700_v51 = vld [vmem:[#allocation275_spill] sm:$0xff] }
 0x3a0   :  { %v3992_v3 = vmax.f32 %v3991_v49, %v3676_v57  ;;  %v4854_v0 = vmax.f32 %v4853_v2, %v4785_v24  ;;  %v4787_v7 = vsel %vm4531_vm9, %v2847_v5, 0.0  ;;  %v5115_v36 = vadd.f32 %v5114_v22, %v10436_v12  ;;  %v10886_v2 = vpop.xlane.xlu1 %3743  ;;  %v12701_v22 = vld [vmem:[#allocation277_spill] sm:$0xff] }
 0x3a1   :  { %v3677_v14 = vsel %vm3421_vm10, %v2845_v62, 0.0  ;;  %v4992_v32 = vmax.f32 %v4991_v23, %v4787_v7  ;;  %v2846_v31 = vand.u32 2147483647, %v12697_v60  ;;  %vm3423_vm5 = vcmp.eq.f32.partialorder %v12696_v43, %v10861_v39 }
 0x3a2   :  { %vm3422_vm11 = vcmp.eq.f32.partialorder %v12698_v52, %v10861_v39  ;;  %vm4530_vm6 = vcmp.eq.f32.partialorder %v12698_v52, %v7757_v15  ;;  %v2848_v63 = vand.u32 2147483647, %v12699_v58  ;;  %3993 = vmax.xlane.f32.xlu1 %v3992_v3  ;;  %vm4532_vm12 = vcmp.eq.f32.partialorder %v12700_v51, %v7759_v37  ;;  %v12702_v3 = vld [vmem:[#allocation276_spill] sm:$0xff] }
 0x3a3   :  { %v3678_v12 = vsel %vm3422_vm11, %v2846_v31, 0.0  ;;  %v4786_v23 = vsel %vm4530_vm6, %v2846_v31, 0.0  ;;  %v2851_v44 = vand.u32 2147483647, %v10389_v18  ;;  %vm3424_vm0 = vcmp.eq.f32.partialorder %v12700_v51, %v10861_v39 }
 0x3a4   :  { %v3995_v16 = vmax.f32 %v3677_v14, %v3678_v12  ;;  %v4923_v56 = vmax.f32 %v4922_v11, %v4786_v23  ;;  %v4788_v62 = vsel %vm4532_vm12, %v2848_v63, 0.0  ;;  %v3679_v49 = vsel %vm3423_vm5, %v2847_v5, 0.0  ;;  %v12703_v5 = vld [vmem:[#allocation13_spill] sm:$0xff]  ;;  %v10907_v60 = vpop.xlane.xlu1 %3748 }
 0x3a5   :  { %v3680_v10 = vsel %vm3424_vm0, %v2848_v63, 0.0  ;;  %v5061_v1 = vmax.f32 %v5060_v20, %v4788_v62  ;;  %vm4535_vm7 = vcmp.eq.f32.partialorder %v12701_v22, %v7752_v47  ;;  %v2849_v43 = vand.u32 2147483647, %v10425_v41 }
 0x3a6   :  { %v3996_v57 = vmax.f32 %v3995_v16, %v3679_v49  ;;  %v4791_v24 = vsel %vm4535_vm7, %v2851_v44, 0.0  ;;  %vm3425_vm8 = vcmp.eq.f32.partialorder %v12702_v3, %v10888_v6  ;;  %vm4533_vm13 = vcmp.eq.f32.partialorder %v12702_v3, %v7750_v53  ;;  %v12704_v16 = vld [vmem:[#allocation278_spill] sm:$0xff] }
 0x3a7   :  { %v4993_v18 = vmax.f32 %v4992_v32, %v4791_v24  ;;  %v2850_v11 = vand.u32 2147483647, %v10446_v13  ;;  %vm3426_vm14 = vcmp.eq.f32.partialorder %v12703_v5, %v10888_v6  ;;  %v3681_v7 = vsel %vm3425_vm8, %v2849_v43, 0.0 }
 0x3a8   :  { %v3997_v20 = vmax.f32 %v3996_v57, %v3680_v10  ;;  %v4789_v14 = vsel %vm4533_vm13, %v2849_v43, 0.0  ;;  %vm4534_vm1 = vcmp.eq.f32.partialorder %v12703_v5, %v7757_v15  ;;  %vm3427_vm15 = vcmp.eq.f32.partialorder %v12701_v22, %v10888_v6  ;;  %v10919_v3 = vpop.xlane.xlu1 %3753 }
 0x3a9   :  { %v4994_v41 = vrot.slane %v4993_v18, 4  ;;  %v4855_v31 = vmax.f32 %v4854_v0, %v4789_v14  ;;  %v3682_v52 = vsel %vm3426_vm14, %v2850_v11, 0.0  ;;  %v4790_v32 = vsel %vm4534_vm1, %v2850_v11, 0.0 }
 0x3aa   :  { %v4000_v58 = vmax.f32 %v3681_v7, %v3682_v52  ;;  %v4924_v13 = vmax.f32 %v4923_v56, %v4790_v32  ;;  %v2852_v63 = vand.u32 2147483647, %v10451_v25  ;;  %3998 = vmax.xlane.f32.xlu0 %v3997_v20  ;;  %v3683_v12 = vsel %vm3427_vm15, %v2851_v44, 0.0 }
 0x3ab   :  { %v4995_v23 = vmax.f32 %v4993_v18, %v4994_v41  ;;  %v4856_v51 = vrot.slane %v4855_v31, 4  ;;  %vm4536_vm2 = vcmp.eq.f32.partialorder %v12704_v16, %v7759_v37  ;;  %vm3428_vm3 = vcmp.eq.f32.partialorder %v12704_v16, %v10888_v6 }
 0x3ac   :  { %v4925_v62 = vrot.slane %v4924_v13, 4  ;;  %v4001_v0 = vmax.f32 %v4000_v58, %v3683_v12  ;;  %v4792_v49 = vsel %vm4536_vm2, %v2852_v63, 0.0  ;;  %v3684_v22 = vsel %vm3428_vm3, %v2852_v63, 0.0 }
 0x3ad   :  { %v4996_v10 = vrot.slane %v4995_v23, 2  ;;  %v4857_v57 = vmax.f32 %v4855_v31, %v4856_v51  ;;  %v5062_v24 = vmax.f32 %v5061_v1, %v4792_v49  ;;  %v5210_v25 = vadd.f32 %v7757_v15, %v7750_v53 }
 0x3ae   :  { %v4926_v56 = vmax.f32 %v4924_v13, %v4925_v62  ;;  %v4002_v43 = vmax.f32 %v4001_v0, %v3684_v22  ;;  %v5116_v44 = vadd.f32 %v5115_v36, %v10469_v48  ;;  %v3759_v13 = vpop.xlane.xlu1 %3758  ;;  %vm5138_vm4 = vcmask 0  }
 0x3af   :  { %v4858_v18 = vrot.slane %v4857_v57, 2  ;;  %v5063_v11 = vrot.slane %v5062_v24, 4  ;;  %v4997_v5 = vmax.f32 %v4995_v23, %v4996_v10  ;;  %v5211_v7 = vadd.f32 %v5210_v25, %v7752_v47 }
 0x3b0   :  { %v4927_v20 = vrot.slane %v4926_v56, 2  ;;  %4003 = vmax.xlane.f32.xlu1 %v4002_v43  ;;  %v5117_v14 = vadd.f32 %v5116_v44, %v10490_v46 }
 0x3b1   :  { %v4859_v41 = vmax.f32 %v4857_v57, %v4858_v18  ;;  %v5064_v1 = vmax.f32 %v5062_v24, %v5063_v11  ;;  %v5212_v52 = vadd.f32 %v5211_v7, %v7759_v37  ;;  %v4998_v36 = vrot.slane %v4997_v5, 1 }
 0x3b2   :  { %v4928_v31 = vmax.f32 %v4926_v56, %v4927_v20  ;;  %v5118_v15 = vadd.f32 %v5117_v14, %v10513_v45  ;;  %v3764_v49 = vpop.xlane.xlu1 %3763 }
 0x3b3   :  { %v4860_v53 = vrot.slane %v4859_v41, 1  ;;  %v5065_v48 = vrot.slane %v5064_v1, 2  ;;  %5213 = vadd.xlane.f32.xlu0 %v5212_v52  ;;  %v4999_v51 = vmax.f32 %v4997_v5, %v4998_v36 }
 0x3b4   :  { %v4929_v32 = vrot.slane %v4928_v31, 1  ;;  %v5119_v58 = vadd.f32 %v5118_v15, %v10532_v59 }
 0x3b5   :  { %v4861_v63 = vmax.f32 %v4859_v41, %v4860_v53  ;;  %v5066_v47 = vmax.f32 %v5064_v1, %v5065_v48 }
 0x3b6   :  { %v4930_v12 = vmax.f32 %v4928_v31, %v4929_v32  ;;  %v5120_v46 = vadd.f32 %v5119_v58, %v10552_v29  ;;  %v3769_v24 = vpop.xlane.xlu1 %3768  ;;  %v5140_v29 = vadd.f32 %v10623_v61, %v10567_v8 }
 0x3b7   :  { %v5067_v23 = vrot.slane %v5066_v47, 1 }
 0x3b8   :  { %v5216_v16 = vadd.f32 %v4930_v12, %v4861_v63  ;;  %v5121_v37 = vadd.f32 %v5120_v46, %v10585_v21  ;;  %v5141_v21 = vadd.f32 %v5140_v29, %v10650_v34 }
 0x3b9   :  { %v5068_v62 = vmax.f32 %v5066_v47, %v5067_v23 }
 0x3ba   :  { %v5217_v45 = vadd.f32 %v5216_v16, %v4999_v51  ;;  %v5122_v0 = vadd.f32 %v5121_v37, %v10610_v50  ;;  %v5142_v50 = vadd.f32 %v5141_v21, %v10679_v28 }
 0x3bc   :  { %v5218_v10 = vadd.f32 %v5217_v45, %v5068_v62  ;;  %v5123_v57 = vadd.f32 %v5122_v0, %v10640_v17  ;;  %v3774_v17 = vpop.xlane.xlu1 %3773  ;;  %v5143_v44 = vadd.f32 %v5142_v50, %v10702_v9 }
 0x3be   :  { %5219 = vadd.xlane.f32.xlu1 %v5218_v10  ;;  %v5124_v59 = vadd.f32 %v5123_v57, %v10671_v55 }
 0x3c0   :  { %v5125_v22 = vadd.f32 %v5124_v59, %v10704_v26  ;;  %v5144_v26 = vadd.f32 %v5143_v44, %v10731_v35  ;;  %v3779_v61 = vpop.xlane.xlu1 %3778 }
 0x3c2   :  { %v5126_v56 = vadd.f32 %v5125_v22, %v10735_v30  ;;  %v5145_v8 = vadd.f32 %v5144_v26, %v10757_v27 }
 0x3c4   :  { %v5127_v43 = vadd.f32 %v5126_v56, %v10766_v19  ;;  %v5146_v30 = vadd.f32 %v5145_v8, %v10785_v4  ;;  %v3784_v9 = vpop.xlane.xlu1 %3783 }
 0x3c6   :  { %v5128_v25 = vadd.f32 %v5127_v43, %v10797_v33  ;;  %v5147_v28 = vadd.f32 %v5146_v30, %v10811_v54 }
 0x3c8   :  { %v5129_v55 = vadd.f32 %v5128_v25, %v10826_v40  ;;  %v5148_v11 = vadd.f32 %v5147_v28, %v10836_v42  ;;  %v3789_v4 = vpop.xlane.xlu1 %3788 }
 0x3ca   :  { %v5130_v18 = vadd.f32 %v5129_v55, %v10861_v39  ;;  %v5149_v40 = vadd.f32 %v5148_v11, %v10863_v38 }
 0x3cc   :  { %v5131_v34 = vadd.f32 %v5130_v18, %v10888_v6  ;;  %v5150_v39 = vadd.f32 %v5149_v40, %v10886_v2 }
 0x3ce   :  { %v5132_v19 = vrot.slane %v5131_v34, 4  ;;  %v5151_v6 = vadd.f32 %v5150_v39, %v10907_v60 }
 0x3d0   :  { %v5133_v33 = vadd.f32 %v5132_v19, %v5131_v34  ;;  %v5152_v54 = vadd.f32 %v5151_v6, %v10919_v3 }
 0x3d2   :  { %v5134_v5 = vrot.slane %v5133_v33, 2  ;;  %v5153_v42 = vadd.f32 %v5152_v54, %v3759_v13 }
 0x3d4   :  { %v5135_v35 = vadd.f32 %v5134_v5, %v5133_v33 }
 0x3d6   :  { %v5136_v27 = vrot.slane %v5135_v35, 1 }
 0x3d8   :  { %v5137_v20 = vadd.f32 %v5136_v27, %v5135_v35 }
 0x3da   :  { %5139 = vst.msk [vmem:[#allocation2] sm:$0x1] %vm5138_vm4, %v5137_v20 }
 0x3db   :  { %5549 = shalt.err (!%p5546_p4)
}
 0x3dc   :  { %s5550_s21 = scalar_lea.hbm %s11024_s4, 16 }
 0x3dd   :  { %p5551_p5 = scmp.ne.s32.totalorder %s11024_s4, %s5550_s21  ;;  %p5554_p6 = scmp.lt.u32.totalorder %s5550_s21, %s11024_s4 }
 0x3df   :  { %p5556_p7 = pnand %p5554_p6, %p5551_p5 }
 0x3e1   :  { %5559 = shalt.err (!%p5556_p7)
}
 0x3e2   :  { %5231 = dma.vmem_to_hbm [thread:$0]  %s5229_s17, 16, %s11024_s4, [#allocation3]   ;;  %v5154_v38 = vadd.f32 %v5153_v42, %v3764_v49  ;;  %v3794_v2 = vpop.xlane.xlu1 %3793  ;;  %v3809_v53 = vpop.xlane.xlu0 %3808 }
 0x3e3   :  { %s5634_s4 = smov [#allocation4]   ;;  %s5635_s28 = smov [#allocation6]  }
 0x3e4   :  { %v5155_v60 = vadd.f32 %v5154_v38, %v3769_v24  ;;  %s5238_s27 = sshll.u32 %s5634_s4, 4  ;;  %s5248_s29 = sshll.u32 %s5635_s28, 4  ;;  %s5239_s27 = int_to_ptr.vmem [resolvable:$true] %s5238_s27  ;;  %s10966_s29 = int_to_ptr.vmem [resolvable:$true] %s5248_s29 }
 0x3e5   :  { %s5636_s30 = smov [#allocation7]   ;;  %s5560_s9 = scalar_lea.vmem %s5239_s27, 16 }
 0x3e6   :  { %v5156_v3 = vadd.f32 %v5155_v60, %v3774_v17  ;;  %v3799_v14 = vpop.xlane.xlu1 %3798  ;;  %v3819_v58 = vpop.xlane.xlu0 %3818  ;;  %s5258_s8 = sshll.u32 %s5636_s30, 4  ;;  %p5561_p8 = scmp.ne.s32.totalorder %s5239_s27, %s5560_s9  ;;  %s10970_s8 = int_to_ptr.vmem [resolvable:$true] %s5258_s8 }
 0x3e7   :  { %s5564_s10 = scalar_lea.vmem %s5239_s27, 32  ;;  %p5565_p9 = scmp.lt.s32.totalorder %s5239_s27, %s5239_s27 }
 0x3e8   :  { %v5157_v7 = vadd.f32 %v5156_v3, %v3779_v61  ;;  %p5566_p10 = scmp.lt.s32.totalorder %s5564_s10, %s5560_s9 }
 0x3ea   :  { %v5158_v41 = vadd.f32 %v5157_v7, %v3784_v9  ;;  %v3804_v52 = vpop.xlane.xlu1 %3803  ;;  %v3829_v12 = vpop.xlane.xlu0 %3828  ;;  %p5567_p11 = por %p5566_p10, %p5565_p9 }
 0x3ec   :  { %v5159_v1 = vadd.f32 %v5158_v41, %v3789_v4  ;;  %p5568_p12 = pnand %p5567_p11, %p5561_p8 }
 0x3ee   :  { %v5160_v31 = vadd.f32 %v5159_v1, %v3794_v2  ;;  %v3814_v36 = vpop.xlane.xlu1 %3813  ;;  %v3839_v16 = vpop.xlane.xlu0 %3838 }
 0x3f0   :  { %v5161_v15 = vadd.f32 %v5160_v31, %v3799_v14 }
 0x3f2   :  { %v5162_v48 = vadd.f32 %v5161_v15, %v3804_v52  ;;  %v3824_v63 = vpop.xlane.xlu1 %3823  ;;  %v3849_v0 = vpop.xlane.xlu0 %3848 }
 0x3f4   :  { %v5163_v32 = vadd.f32 %v5162_v48, %v3809_v53 }
 0x3f6   :  { %v5164_v13 = vadd.f32 %v5163_v32, %v3814_v36  ;;  %v3834_v23 = vpop.xlane.xlu1 %3833  ;;  %v3859_v59 = vpop.xlane.xlu0 %3858 }
 0x3f8   :  { %v5165_v47 = vadd.f32 %v5164_v13, %v3819_v58 }
 0x3fa   :  { %v5166_v46 = vadd.f32 %v5165_v47, %v3824_v63  ;;  %v3844_v62 = vpop.xlane.xlu1 %3843  ;;  %v3869_v56 = vpop.xlane.xlu0 %3868 }
 0x3fc   :  { %v5167_v51 = vadd.f32 %v5166_v46, %v3829_v12 }
 0x3fe   :  { %v5168_v37 = vadd.f32 %v5167_v51, %v3834_v23  ;;  %v3854_v10 = vpop.xlane.xlu1 %3853  ;;  %v3879_v25 = vpop.xlane.xlu0 %3878 }
 0x400   :  { %v5169_v45 = vadd.f32 %v5168_v37, %v3839_v16 }
 0x402   :  { %v5170_v49 = vadd.f32 %v5169_v45, %v3844_v62  ;;  %v3864_v24 = vpop.xlane.xlu1 %3863  ;;  %v3889_v26 = vpop.xlane.xlu0 %3888 }
 0x404   :  { %v5171_v57 = vadd.f32 %v5170_v49, %v3849_v0 }
 0x406   :  { %v5172_v22 = vadd.f32 %v5171_v57, %v3854_v10  ;;  %v3874_v43 = vpop.xlane.xlu1 %3873  ;;  %v3899_v34 = vpop.xlane.xlu0 %3898 }
 0x408   :  { %v5173_v29 = vadd.f32 %v5172_v22, %v3859_v59 }
 0x40a   :  { %v5174_v21 = vadd.f32 %v5173_v29, %v3864_v24  ;;  %v3884_v44 = vpop.xlane.xlu1 %3883  ;;  %v3909_v33 = vpop.xlane.xlu0 %3908 }
 0x40c   :  { %v5175_v50 = vadd.f32 %v5174_v21, %v3869_v56 }
 0x40e   :  { %v5176_v17 = vadd.f32 %v5175_v50, %v3874_v43  ;;  %v3894_v8 = vpop.xlane.xlu1 %3893  ;;  %v3919_v40 = vpop.xlane.xlu0 %3918 }
 0x410   :  { %v5177_v55 = vadd.f32 %v5176_v17, %v3879_v25 }
 0x412   :  { %v5178_v18 = vadd.f32 %v5177_v55, %v3884_v44  ;;  %v3904_v19 = vpop.xlane.xlu1 %3903  ;;  %v3929_v6 = vpop.xlane.xlu0 %3928 }
 0x414   :  { %v5179_v61 = vadd.f32 %v5178_v18, %v3889_v26 }
 0x416   :  { %v5180_v30 = vadd.f32 %v5179_v61, %v3894_v8  ;;  %v3914_v9 = vpop.xlane.xlu1 %3913  ;;  %v3939_v42 = vpop.xlane.xlu0 %3938 }
 0x418   :  { %v5181_v28 = vadd.f32 %v5180_v30, %v3899_v34 }
 0x41a   :  { %v5182_v11 = vadd.f32 %v5181_v28, %v3904_v19  ;;  %v3924_v39 = vpop.xlane.xlu1 %3923  ;;  %v3949_v3 = vpop.xlane.xlu0 %3948 }
 0x41c   :  { %v5183_v5 = vadd.f32 %v5182_v11, %v3909_v33 }
 0x41e   :  { %v5184_v35 = vadd.f32 %v5183_v5, %v3914_v9  ;;  %v3934_v20 = vpop.xlane.xlu1 %3933  ;;  %v3959_v1 = vpop.xlane.xlu0 %3958 }
 0x420   :  { %v5185_v27 = vadd.f32 %v5184_v35, %v3919_v40 }
 0x422   :  { %v5186_v4 = vadd.f32 %v5185_v27, %v3924_v39  ;;  %v3944_v2 = vpop.xlane.xlu1 %3943  ;;  %v3969_v53 = vpop.xlane.xlu0 %3968 }
 0x424   :  { %v5187_v54 = vadd.f32 %v5186_v4, %v3929_v6 }
 0x426   :  { %v5188_v38 = vadd.f32 %v5187_v54, %v3934_v20  ;;  %v3954_v14 = vpop.xlane.xlu1 %3953  ;;  %v3979_v58 = vpop.xlane.xlu0 %3978 }
 0x428   :  { %v5189_v60 = vadd.f32 %v5188_v38, %v3939_v42 }
 0x42a   :  { %v5190_v7 = vadd.f32 %v5189_v60, %v3944_v2  ;;  %v3964_v52 = vpop.xlane.xlu1 %3963  ;;  %v3989_v12 = vpop.xlane.xlu0 %3988 }
 0x42c   :  { %v5191_v41 = vadd.f32 %v5190_v7, %v3949_v3 }
 0x42e   :  { %v5192_v31 = vadd.f32 %v5191_v41, %v3954_v14  ;;  %v3974_v36 = vpop.xlane.xlu1 %3973 }
 0x430   :  { %v5193_v15 = vadd.f32 %v5192_v31, %v3959_v1 }
 0x432   :  { %v5194_v48 = vadd.f32 %v5193_v15, %v3964_v52  ;;  %v3984_v63 = vpop.xlane.xlu1 %3983 }
 0x434   :  { %v5195_v32 = vadd.f32 %v5194_v48, %v3969_v53 }
 0x436   :  { %v5196_v13 = vadd.f32 %v5195_v32, %v3974_v36  ;;  %v3994_v23 = vpop.xlane.xlu1 %3993 }
 0x437   :  { %v3999_v16 = vpop.xlane.xlu0 %3998 }
 0x438   :  { %v5197_v47 = vadd.f32 %v5196_v13, %v3979_v58 }
 0x43a   :  { %v5198_v46 = vadd.f32 %v5197_v47, %v3984_v63 }
 0x43c   :  { %v5199_v51 = vadd.f32 %v5198_v46, %v3989_v12 }
 0x43d   :  { %v4004_v45 = vpop.xlane.xlu1 %4003 }
 0x43e   :  { %v5200_v37 = vadd.f32 %v5199_v51, %v3994_v23 }
 0x440   :  { %v5201_v62 = vadd.f32 %v5200_v37, %v3999_v16  ;;  %v5214_v10 = vpop.xlane.xlu0 %5213 }
 0x441   :  { %5215 = vst.msk [vmem:[#allocation6] sm:$0x1] %vm5138_vm4, %v5214_v10 }
 0x442   :  { %v5202_v0 = vadd.f32 %v5201_v62, %v4004_v45 }
 0x444   :  { %v5203_v49 = vrot.slane %v5202_v0, 4 }
 0x446   :  { %v5204_v57 = vadd.f32 %v5203_v49, %v5202_v0 }
 0x448   :  { %v5205_v59 = vrot.slane %v5204_v57, 2 }
 0x44a   :  { %v5206_v22 = vadd.f32 %v5205_v59, %v5204_v57 }
 0x44b   :  { %v5220_v56 = vpop.xlane.xlu1 %5219 }
 0x44c   :  { %v5207_v24 = vrot.slane %v5206_v22, 1  ;;  %5221 = vst.msk [vmem:[#allocation7] sm:$0x1] %vm5138_vm4, %v5220_v56 }
 0x44e   :  { %v5208_v29 = vadd.f32 %v5207_v24, %v5206_v22 }
 0x450   :  { %5209 = vst.msk [vmem:[#allocation4] sm:$0x1] %vm5138_vm4, %v5208_v29 }
 0x451   :  { %5571 = shalt.err (!%p5568_p12)
}
 0x452   :  { %s5572_s13 = scalar_lea.hbm %s11025_s5, 16 }
 0x453   :  { %p5573_p13 = scmp.ne.s32.totalorder %s11025_s5, %s5572_s13  ;;  %p5576_p0 = scmp.lt.u32.totalorder %s5572_s13, %s11025_s5 }
 0x455   :  { %p5578_p1 = pnand %p5576_p0, %p5573_p13 }
 0x457   :  { %5581 = shalt.err (!%p5578_p1)
}
 0x458   :  { %5241 = dma.vmem_to_hbm [thread:$0]  %s5239_s27, 16, %s11025_s5, [#allocation5]  }
 0x459   :  { %s5582_s18 = scalar_lea.vmem %s10966_s29, 16  ;;  %s5586_s0 = scalar_lea.vmem %s10966_s29, 32 }
 0x45a   :  { %p5583_p2 = scmp.ne.s32.totalorder %s10966_s29, %s5582_s18  ;;  %p5587_p3 = scmp.lt.s32.totalorder %s10966_s29, %s10966_s29 }
 0x45b   :  { %p5588_p4 = scmp.lt.s32.totalorder %s5586_s0, %s5582_s18 }
 0x45d   :  { %p5589_p5 = por %p5588_p4, %p5587_p3 }
 0x45f   :  { %p5590_p6 = pnand %p5589_p5, %p5583_p2 }
 0x461   :  { %5593 = shalt.err (!%p5590_p6)
}
 0x462   :  { %s5594_s21 = scalar_lea.hbm %s11026_s6, 16 }
 0x463   :  { %p5595_p7 = scmp.ne.s32.totalorder %s11026_s6, %s5594_s21  ;;  %p5598_p8 = scmp.lt.u32.totalorder %s5594_s21, %s11026_s6 }
 0x465   :  { %p5600_p9 = pnand %p5598_p8, %p5595_p7 }
 0x467   :  { %5603 = shalt.err (!%p5600_p9)
}
 0x468   :  { %5251 = dma.vmem_to_hbm [thread:$0]  %s10966_s29, 16, %s11026_s6, [#allocation5]  }
 0x469   :  { %s5604_s26 = scalar_lea.vmem %s10970_s8, 16  ;;  %s5608_s4 = scalar_lea.vmem %s10970_s8, 32 }
 0x46a   :  { %p5605_p10 = scmp.ne.s32.totalorder %s10970_s8, %s5604_s26  ;;  %p5609_p11 = scmp.lt.s32.totalorder %s10970_s8, %s10970_s8 }
 0x46b   :  { %p5610_p12 = scmp.lt.s32.totalorder %s5608_s4, %s5604_s26 }
 0x46d   :  { %p5611_p13 = por %p5610_p12, %p5609_p11 }
 0x46f   :  { %p5612_p0 = pnand %p5611_p13, %p5605_p10 }
 0x471   :  { %5615 = shalt.err (!%p5612_p0)
}
 0x472   :  { %s5616_s30 = scalar_lea.hbm %s11027_s7, 16 }
 0x473   :  { %p5617_p1 = scmp.ne.s32.totalorder %s11027_s7, %s5616_s30  ;;  %p5620_p2 = scmp.lt.u32.totalorder %s5616_s30, %s11027_s7 }
 0x475   :  { %p5622_p3 = pnand %p5620_p2, %p5617_p1 }
 0x477   :  { %5625 = shalt.err (!%p5622_p3)
}
 0x478   :  { %5261 = dma.vmem_to_hbm [thread:$0]  %s10970_s8, 16, %s11027_s7, [#allocation8]  }
 0x479   :  { %5626 = dma.done.wait [#allocation3], 16  }
 0x47a   :  { %5627 = vsyncadd [#allocation3], 4294967280 }
 0x47b   :  { %5628 = dma.done.wait [#allocation5], 32  }
 0x47c   :  { %5629 = vsyncadd [#allocation5], 4294967264 }
 0x47d   :  { %5630 = dma.done.wait [#allocation8], 16  }
 0x47e   :  { %5631 = vsyncadd [#allocation8], 4294967280 }
 0x47f   :  { %5274 = vsyncpa [#allocation3], 1 }
 0x480   :  { %5275 = vsyncpa [#allocation5], 1 }
 0x481   :  { %5276 = vsyncpa [#allocation8], 1 }

</bundles_post_ra>
